<compile_context>
chip_gen: v6e
topology: v6e:2x2x1
jax: 0.10.0
libtpu: 0.0.40
codegen_flags: <defaults>
</compile_context>

<pallas_src>
import jax
import jax.numpy as jnp
from jax.experimental import pallas as pl
from jax.experimental.pallas import tpu as pltpu

FEADIM = 128          # stand-in for Vgg19FPN.outdim() (real model 256/512);
                      # >=128 keeps every feature block lane-dense.
ROI = 16              # self.roi
SPATIAL_SCALE = 1.0 / 8.0
STRIDE = 8
FACTOR = 100.0        # config.FACTOR (stored by __init__, unused in forward)

_VMEM_LIMIT = 32 * 1024 * 1024   # safe scoped-VMEM limit on v5e/v6e/v7x
_TILE_CAP = 1024                 # rows per grid step


def _choose_tile(n, cap=_TILE_CAP):
    """Row tile: as large as possible (<= cap), always a multiple of 8."""
    t = min(cap, max(n, 8))
    return ((t + 7) // 8) * 8


def _bcast_spec(arr):
    """Full-array block broadcast to every grid step (weights / biases)."""
    nd = arr.ndim
    return pl.BlockSpec(arr.shape, lambda *_: (0,) * nd)


# ------------------------------ Pallas kernels ------------------------------

def _enc_anchor_kernel(x_ref, wimg_ref, w1_ref, b1_ref, wc_ref, bc_ref,
                       anc_ref):
    # Fused encoder (cls branch only) + ROIAlign/patch-mean anchor reduction:
    #   anchor[b, :] = sum_hw W[b, hw] * clsfea[b, hw, :]
    # clsfea is recomputed in VMEM and never written to HBM.  The anchor is a
    # resident (1,1,C) output accumulated over the HW ("arbitrary") grid axis.
    @pl.when(pl.program_id(1) == 0)
    def _init():
        anc_ref[...] = jnp.zeros_like(anc_ref)

    x = x_ref[0]                                          # (THW, 4) f32
    h = jnp.dot(x.astype(jnp.bfloat16), w1_ref[...],
                preferred_element_type=jnp.float32)
    h = jnp.maximum(h + b1_ref[...], 0.0)
    h = h * x[:, 3:4]                                     # bs_mean conditioning
    cls = jnp.dot(h.astype(jnp.bfloat16), wc_ref[...],
                  preferred_element_type=jnp.float32)
    cls = jnp.maximum(cls + bc_ref[...], 0.0)             # (THW, C) f32

    w = wimg_ref[0]                                       # (THW, 1) f32
    # MXU contraction over the THW axis ((1,THW)@(THW,C)): the deep reduction
    # rides the MXU accumulate path instead of a cross-sublane XLU reduce.
    anc_ref[0] += jax.lax.dot_general(
        w, cls, (((0,), (0,)), ((), ())),
        preferred_element_type=jnp.float32)


def _decoder_kernel(x_ref, anc_ref, w1_ref, b1_ref, wcd_ref, bcd_ref,
                    wd1_ref, bd1_ref, wd2_ref, bd2_ref, out_ref):
    # Recompute clsfea/denfea from x4 with one fused (C,2C) matmul, then the
    # GroupOp mask (cosine vs anchor -> sigmoid), denfea*mask, and the COMPSER
    # decoder (two 1x1 convs + ReLU) — all in one pass, no (M,C) HBM streams.
    x = x_ref[0]                                          # (THW, 4) f32
    h = jnp.dot(x.astype(jnp.bfloat16), w1_ref[...],
                preferred_element_type=jnp.float32)
    h = jnp.maximum(h + b1_ref[...], 0.0)
    h = h * x[:, 3:4]                                     # bs_mean conditioning
    cd = jnp.dot(h.astype(jnp.bfloat16), wcd_ref[...],
                 preferred_element_type=jnp.float32)
    cd = jnp.maximum(cd + bcd_ref[...], 0.0)              # (THW, 2C) f32
    cls = cd[:, :FEADIM]                                  # lane-aligned split
    den = cd[:, FEADIM:]

    a = anc_ref[0]                                        # (1, C) f32
    a2 = jnp.sum(a * a, axis=-1, keepdims=True)           # block-constant
    dot = jnp.sum(cls * a, axis=-1, keepdims=True)
    f2 = jnp.sum(cls * cls, axis=-1, keepdims=True)
    cos = dot * jax.lax.rsqrt(f2 * a2 + 1e-12)            # single rsqrt (EUP)
    mask = jax.nn.sigmoid(cos)
    masked = (den * mask).astype(jnp.bfloat16)            # (THW, C)

    g = jnp.dot(masked, wd1_ref[...], preferred_element_type=jnp.float32)
    g = jnp.maximum(g + bd1_ref[...], 0.0)                # (THW, C/2) f32
    o = jnp.dot(g.astype(jnp.bfloat16), wd2_ref[...],
                preferred_element_type=jnp.float32)
    # TODO(synk): the (THW,1) store is lane-sparse; repack only if a v5e bundle
    # dump shows the single vst slot saturating (it is tiny vs. the x4 stream).
    out_ref[0] = jnp.maximum(o + bd2_ref[...], 0.0)       # (THW, 1)


# ------------------------------ pallas wrappers ------------------------------

def _enc_anchor(x4, w_img, pp, tile_hw):
    B, HWp, _ = x4.shape
    C = FEADIM
    return pl.pallas_call(
        _enc_anchor_kernel,
        out_shape=jax.ShapeDtypeStruct((B, 1, C), jnp.float32),
        grid=(B, HWp // tile_hw),
        in_specs=[pl.BlockSpec((1, tile_hw, 4), lambda b, t: (b, t, 0)),
                  pl.BlockSpec((1, tile_hw, 1), lambda b, t: (b, t, 0)),
                  _bcast_spec(pp['w1p']), _bcast_spec(pp['b1']),
                  _bcast_spec(pp['wc']), _bcast_spec(pp['bc'])],
        out_specs=pl.BlockSpec((1, 1, C), lambda b, t: (b, 0, 0)),
        compiler_params=pltpu.CompilerParams(
            dimension_semantics=("parallel", "arbitrary"),
            vmem_limit_bytes=_VMEM_LIMIT),
    )(x4, w_img, pp['w1p'], pp['b1'], pp['wc'], pp['bc'])


def _decoder(x4, anchor_b, pp, tile_hw):
    B, HWp, _ = x4.shape
    C = FEADIM
    return pl.pallas_call(
        _decoder_kernel,
        out_shape=jax.ShapeDtypeStruct((B, HWp, 1), jnp.float32),
        grid=(B, HWp // tile_hw),
        in_specs=[pl.BlockSpec((1, tile_hw, 4), lambda b, t: (b, t, 0)),
                  pl.BlockSpec((1, 1, C), lambda b, t: (b, 0, 0)),
                  _bcast_spec(pp['w1p']), _bcast_spec(pp['b1']),
                  _bcast_spec(pp['wcd']), _bcast_spec(pp['bcd']),
                  _bcast_spec(pp['wdec1']), _bcast_spec(pp['bdec1']),
                  _bcast_spec(pp['wdec2']), _bcast_spec(pp['bdec2'])],
        out_specs=pl.BlockSpec((1, tile_hw, 1), lambda b, t: (b, t, 0)),
        compiler_params=pltpu.CompilerParams(
            dimension_semantics=("parallel", "parallel"),
            vmem_limit_bytes=_VMEM_LIMIT),
    )(x4, anchor_b, pp['w1p'], pp['b1'], pp['wcd'], pp['bcd'],
      pp['wdec1'], pp['bdec1'], pp['wdec2'], pp['bdec2'])


# --------------------------------- glue -------------------------------------

def _interp_matrix(lo, hi, n_out, size):
    # One bilinear sample per output bin (ROIAlign, aligned=False convention).
    # TODO(synk): torchvision's adaptive sampling_ratio (multi-sample per bin
    # averaging) is not replicated.
    centers = lo + (jnp.arange(n_out, dtype=jnp.float32) + 0.5) * (hi - lo) / n_out
    x0 = jnp.floor(centers)
    frac = centers - x0
    i0 = jnp.clip(x0.astype(jnp.int32), 0, size - 1)
    i1 = jnp.clip(i0 + 1, 0, size - 1)
    return (jax.nn.one_hot(i0, size, dtype=jnp.float32) * (1.0 - frac)[:, None]
            + jax.nn.one_hot(i1, size, dtype=jnp.float32) * frac[:, None])


def init_params(key):
    C = FEADIM
    ks = jax.random.split(key, 5)

    def lin(k, fan_in, shape):
        return jax.random.normal(k, shape, jnp.float32) / jnp.sqrt(float(fan_in))

    return {
        'w1': lin(ks[0], 3, (3, C)), 'b1': jnp.zeros((1, C), jnp.float32),
        'wc': lin(ks[1], C, (C, C)), 'bc': jnp.zeros((1, C), jnp.float32),
        'wd': lin(ks[2], C, (C, C)), 'bd': jnp.zeros((1, C), jnp.float32),
        'wdec1': lin(ks[3], C, (C, C // 2)),
        'bdec1': jnp.zeros((1, C // 2), jnp.float32),
        'wdec2': lin(ks[4], C // 2, (C // 2, 1)),
        'bdec2': jnp.zeros((1, 1), jnp.float32),
    }


def _prep_params(p):
    # bf16 copies of the MXU weights; f32 biases; w1 zero-padded with a row for
    # the scale-prior column folded into the x4 stream; wc|wd fused to (C,2C).
    C = FEADIM
    w1p = jnp.concatenate([p['w1'], jnp.zeros((1, C), jnp.float32)], axis=0)
    return {
        'w1p': w1p.astype(jnp.bfloat16), 'b1': p['b1'],
        'wc': p['wc'].astype(jnp.bfloat16), 'bc': p['bc'],
        'wcd': jnp.concatenate([p['wc'], p['wd']], axis=1).astype(jnp.bfloat16),
        'bcd': jnp.concatenate([p['bc'], p['bd']], axis=1),
        'wdec1': p['wdec1'].astype(jnp.bfloat16), 'bdec1': p['bdec1'],
        'wdec2': p['wdec2'].astype(jnp.bfloat16), 'bdec2': p['bdec2'],
    }


def spdcn_forward(image, boxes, params):
    B, Cin, H, W = image.shape
    hf, wf = H // STRIDE, W // STRIDE
    HW = hf * wf
    C = FEADIM
    pp = _prep_params(params)

    # bsize / bs_mean exactly as in the PyTorch forward (boxes: [bidx,x1,y1,x2,y2]).
    bsize = jnp.stack([boxes[:, 4] - boxes[:, 2],
                       boxes[:, 3] - boxes[:, 1]], axis=-1)
    bs_mean = bsize.reshape(-1, 3, 2).astype(jnp.float32).mean(axis=1)        # (B, 2)

    # TODO(synk): VGG19+FPN with scale-prior deformable convs is replaced by an
    # 8x8 average-pool stem + 1x1-conv stack; bs_mean conditions the features
    # multiplicatively instead of driving deformable offsets.
    # Pool in NCHW first, transpose the 64x-smaller pooled tensor afterwards.
    x = image.reshape(B, Cin, hf, STRIDE, wf, STRIDE).mean(axis=(3, 5))       # (B,Cin,hf,wf)
    x = jnp.transpose(x, (0, 2, 3, 1)).reshape(B, HW, Cin).astype(jnp.float32)
    scale = 1.0 + 0.1 * jnp.tanh(jnp.mean(jnp.log1p(bs_mean), axis=-1))       # (B,)
    scale_col = jnp.broadcast_to(scale[:, None, None], (B, HW, 1)).astype(jnp.float32)
    x4 = jnp.concatenate([x, scale_col], axis=-1)                             # (B, HW, 4)

    # ROIAlign(16, 1/8) is separable (Ry (x) Rx).  Since `patches` only feeds
    # patches.view(b,3,...).mean(dim=1).mean((-1,-2)), ROIAlign + the means are
    # folded into a per-image weighted average of clsfea with weights
    #   W[b] = sum_{boxes k of image b} rowsum(Ry_k) (x) rowsum(Rx_k) / (3*ROI^2)
    # (grouping by boxes[:,0]; the module itself assumes 3 boxes per image).
    K = boxes.shape[0]
    bidx = boxes[:, 0].astype(jnp.int32)
    fx1, fy1 = boxes[:, 1] * SPATIAL_SCALE, boxes[:, 2] * SPATIAL_SCALE
    fx2, fy2 = boxes[:, 3] * SPATIAL_SCALE, boxes[:, 4] * SPATIAL_SCALE
    ry = jax.vmap(lambda lo, hi: _interp_matrix(lo, hi, ROI, hf))(fy1, fy2)   # (K,ROI,hf)
    rx = jax.vmap(lambda lo, hi: _interp_matrix(lo, hi, ROI, wf))(fx1, fx2)   # (K,ROI,wf)
    w_box = ry.sum(axis=1)[:, :, None] * rx.sum(axis=1)[:, None, :]           # (K,hf,wf)
    w_img = jnp.zeros((B, HW), jnp.float32).at[bidx].add(w_box.reshape(K, HW))
    w_img = (w_img / float(3 * ROI * ROI)).reshape(B, HW, 1)

    # Large row tiles; pad HW to a tile multiple so pipelining never degrades.
    tile_hw = _choose_tile(HW)
    HWp = ((HW + tile_hw - 1) // tile_hw) * tile_hw
    if HWp != HW:
        x4 = jnp.pad(x4, ((0, 0), (0, HWp - HW), (0, 0)))
        w_img = jnp.pad(w_img, ((0, 0), (0, HWp - HW), (0, 0)))   # zero weight

    # Pass 1: encoder(cls) + anchor reduction fused (no feature HBM writes).
    anchor_b = _enc_anchor(x4, w_img, pp, tile_hw)                            # (B,1,C)

    # TODO(synk): GroupOp internals unknown; implemented as per-pixel cosine
    # similarity vs. the anchor -> sigmoid mask, fused with the recomputed
    # denfea*mask and the COMPSER decoder (two 1x1 convs + ReLU).
    denmap = _decoder(x4, anchor_b, pp, tile_hw)                              # (B,HWp,1)
    denmap = denmap[:, :HW, :]
    return denmap.reshape(B, 1, hf, wf)                                       # NCHW


if __name__ == "__main__":
    key = jax.random.PRNGKey(0)
    k_img, k_box, k_par = jax.random.split(key, 3)

    B, H, W = 2, 256, 256
    image = jax.random.normal(k_img, (B, 3, H, W), jnp.float32)

    # boxes: (B*3, 5) = [batch_idx, x1, y1, x2, y2] in image coordinates.
    K = B * 3
    kb1, kb2, kb3, kb4 = jax.random.split(k_box, 4)
    bidx_f = jnp.repeat(jnp.arange(B, dtype=jnp.float32), 3)
    x1 = jax.random.uniform(kb1, (K,), minval=0.0, maxval=W / 2)
    y1 = jax.random.uniform(kb2, (K,), minval=0.0, maxval=H / 2)
    bw = jax.random.uniform(kb3, (K,), minval=8.0, maxval=W / 2)
    bh = jax.random.uniform(kb4, (K,), minval=8.0, maxval=H / 2)
    boxes = jnp.stack([bidx_f, x1, y1,
                       jnp.minimum(x1 + bw, W - 1.0),
                       jnp.minimum(y1 + bh, H - 1.0)], axis=-1)

    params = init_params(k_par)

    fwd = jax.jit(spdcn_forward)
    denmap = fwd(image, boxes, params)
    jax.block_until_ready(denmap)
    assert denmap.shape == (B, 1, H // STRIDE, W // STRIDE)
    print("KERNEL_OK")
</pallas_src>

<mosaic_0001>
module attributes {stable_mosaic.version = 11 : i64} {
  func.func @_enc_anchor_kernel(%arg0: i32, %arg1: i32, %arg2: memref<1x1024x4xf32, #tpu.memory_space<vmem>>, %arg3: memref<1x1024x1xf32, #tpu.memory_space<vmem>>, %arg4: memref<4x128xbf16, #tpu.memory_space<vmem>>, %arg5: memref<1x128xf32, #tpu.memory_space<vmem>>, %arg6: memref<128x128xbf16, #tpu.memory_space<vmem>>, %arg7: memref<1x128xf32, #tpu.memory_space<vmem>>, %arg8: memref<1x1x128xf32, #tpu.memory_space<vmem>>) attributes {dimension_semantics = [#tpu.dimension_semantics<parallel>, #tpu.dimension_semantics<arbitrary>], iteration_bounds = array<i64: 2, 1>, scalar_prefetch = 0 : i64, scratch_operands = 0 : i64, tpu.core_type = #tpu.core_type<tc>, window_params = [{transform_indices = @transform_0, window_bounds = array<i64: 1, 1024, 4>}, {transform_indices = @transform_1, window_bounds = array<i64: 1, 1024, 1>}, {pipeline_mode = #tpu.pipeline_mode<synchronous>, transform_indices = @transform_2, window_bounds = array<i64: 4, 128>}, {pipeline_mode = #tpu.pipeline_mode<synchronous>, transform_indices = @transform_3, window_bounds = array<i64: 1, 128>}, {pipeline_mode = #tpu.pipeline_mode<synchronous>, transform_indices = @transform_4, window_bounds = array<i64: 128, 128>}, {pipeline_mode = #tpu.pipeline_mode<synchronous>, transform_indices = @transform_5, window_bounds = array<i64: 1, 128>}, {transform_indices = @transform_6, window_bounds = array<i64: 1, 1, 128>}]} {
    %c0_i32 = arith.constant 0 : i32
    %0 = arith.cmpi eq, %arg1, %c0_i32 : i32
    %1 = arith.extui %0 : i1 to i32
    %c0_i32_0 = arith.constant 0 : i32
    %2 = arith.cmpi ne, %1, %c0_i32_0 : i32
    scf.if %2 {
      %cst_24 = arith.constant 0.000000e+00 : f32
      %33 = vector.broadcast %cst_24 : f32 to vector<1x1x128xf32>
      %c0_25 = arith.constant 0 : index
      %c0_26 = arith.constant 0 : index
      %c0_27 = arith.constant 0 : index
      %34 = vector.load %arg8[%c0_25, %c0_26, %c0_27] : memref<1x1x128xf32, #tpu.memory_space<vmem>>, vector<1x1x128xf32>
      tpu.vector_store %arg8[%c0_25, %c0_26, %c0_27], %33 {strides = array<i32>} : memref<1x1x128xf32, #tpu.memory_space<vmem>>, vector<1x1x128xf32>,
    } else {
    }
    %c0 = arith.constant 0 : index
    %c0_1 = arith.constant 0 : index
    %c0_2 = arith.constant 0 : index
    %3 = vector.load %arg2[%c0, %c0_1, %c0_2] : memref<1x1024x4xf32, #tpu.memory_space<vmem>>, vector<1x1024x4xf32>
    %4 = vector.shape_cast %3 : vector<1x1024x4xf32> to vector<1024x4xf32>
    %5 = arith.truncf %4 : vector<1024x4xf32> to vector<1024x4xbf16>
    %c0_3 = arith.constant 0 : index
    %c0_4 = arith.constant 0 : index
    %6 = vector.load %arg4[%c0_3, %c0_4] : memref<4x128xbf16, #tpu.memory_space<vmem>>, vector<4x128xbf16>
    %cst = arith.constant dense<0.000000e+00> : vector<1024x128xf32>
    %7 = tpu.matmul %5, %6, %cst {dimension_numbers = #tpu.dot_dimension_numbers<[1], [0], [0], [1], [0, 0, 1, 1], [], []>} : vector<1024x4xbf16>, vector<4x128xbf16>, vector<1024x128xf32> -> vector<1024x128xf32>
    %c0_5 = arith.constant 0 : index
    %c0_6 = arith.constant 0 : index
    %8 = vector.load %arg5[%c0_5, %c0_6] : memref<1x128xf32, #tpu.memory_space<vmem>>, vector<1x128xf32>
    %9 = vector.broadcast %8 : vector<1x128xf32> to vector<1024x128xf32>
    %10 = arith.addf %7, %9 : vector<1024x128xf32>
    %cst_7 = arith.constant 0.000000e+00 : f32
    %11 = vector.broadcast %cst_7 : f32 to vector<1024x128xf32>
    %12 = arith.maximumf %10, %11 : vector<1024x128xf32>
    %13 = vector.extract_strided_slice %4 {offsets = [0, 3], sizes = [1024, 1], strides = [1, 1]} : vector<1024x4xf32> to vector<1024x1xf32>
    %14 = vector.broadcast %13 : vector<1024x1xf32> to vector<1024x128xf32>
    %15 = arith.mulf %12, %14 : vector<1024x128xf32>
    %16 = arith.truncf %15 : vector<1024x128xf32> to vector<1024x128xbf16>
    %c0_8 = arith.constant 0 : index
    %c0_9 = arith.constant 0 : index
    %17 = vector.load %arg6[%c0_8, %c0_9] : memref<128x128xbf16, #tpu.memory_space<vmem>>, vector<128x128xbf16>
    %cst_10 = arith.constant dense<0.000000e+00> : vector<1024x128xf32>
    %18 = tpu.matmul %16, %17, %cst_10 {dimension_numbers = #tpu.dot_dimension_numbers<[1], [0], [0], [1], [0, 0, 1, 1], [], []>} : vector<1024x128xbf16>, vector<128x128xbf16>, vector<1024x128xf32> -> vector<1024x128xf32>
    %c0_11 = arith.constant 0 : index
    %c0_12 = arith.constant 0 : index
    %19 = vector.load %arg7[%c0_11, %c0_12] : memref<1x128xf32, #tpu.memory_space<vmem>>, vector<1x128xf32>
    %20 = vector.broadcast %19 : vector<1x128xf32> to vector<1024x128xf32>
    %21 = arith.addf %18, %20 : vector<1024x128xf32>
    %cst_13 = arith.constant 0.000000e+00 : f32
    %22 = vector.broadcast %cst_13 : f32 to vector<1024x128xf32>
    %23 = arith.maximumf %21, %22 : vector<1024x128xf32>
    %c0_14 = arith.constant 0 : index
    %c0_15 = arith.constant 0 : index
    %c0_16 = arith.constant 0 : index
    %24 = vector.load %arg3[%c0_14, %c0_15, %c0_16] : memref<1x1024x1xf32, #tpu.memory_space<vmem>>, vector<1x1024x1xf32>
    %25 = vector.shape_cast %24 : vector<1x1024x1xf32> to vector<1024x1xf32>
    %c0_17 = arith.constant 0 : index
    %c0_18 = arith.constant 0 : index
    %c0_19 = arith.constant 0 : index
    %26 = vector.load %arg8[%c0_17, %c0_18, %c0_19] : memref<1x1x128xf32, #tpu.memory_space<vmem>>, vector<1x1x128xf32>
    %27 = vector.shape_cast %26 : vector<1x1x128xf32> to vector<1x128xf32>
    %cst_20 = arith.constant dense<0.000000e+00> : vector<1x128xf32>
    %28 = tpu.matmul %25, %23, %cst_20 {dimension_numbers = #tpu.dot_dimension_numbers<[0], [0], [1], [1], [0, 1, 1, 1], [], []>} : vector<1024x1xf32>, vector<1024x128xf32>, vector<1x128xf32> -> vector<1x128xf32>
    %29 = arith.addf %27, %28 : vector<1x128xf32>
    %c0_21 = arith.constant 0 : index
    %c0_22 = arith.constant 0 : index
    %c0_23 = arith.constant 0 : index
    %30 = vector.load %arg8[%c0_21, %c0_22, %c0_23] : memref<1x1x128xf32, #tpu.memory_space<vmem>>, vector<1x1x128xf32>
    %31 = vector.shape_cast %30 : vector<1x1x128xf32> to vector<1x128xf32>
    %32 = vector.shape_cast %29 : vector<1x128xf32> to vector<1x1x128xf32>
    tpu.vector_store %arg8[%c0_21, %c0_22, %c0_23], %32 {strides = array<i32>} : memref<1x1x128xf32, #tpu.memory_space<vmem>>, vector<1x1x128xf32>,
    return
  }
  func.func @transform_0(%arg0: i32, %arg1: i32) -> (i32, i32, i32) {
    %c0_i32 = arith.constant 0 : i32
    %c0_i32_0 = arith.constant 0 : i32
    return %arg0, %arg1, %c0_i32 : i32, i32, i32
  }
  func.func @transform_1(%arg0: i32, %arg1: i32) -> (i32, i32, i32) {
    %c0_i32 = arith.constant 0 : i32
    %c0_i32_0 = arith.constant 0 : i32
    return %arg0, %arg1, %c0_i32 : i32, i32, i32
  }
  func.func @transform_2(%arg0: i32, %arg1: i32) -> (i32, i32) {
    %c0_i32 = arith.constant 0 : i32
    %c0_i32_0 = arith.constant 0 : i32
    %c0_i32_1 = arith.constant 0 : i32
    return %c0_i32, %c0_i32_0 : i32, i32
  }
  func.func @transform_3(%arg0: i32, %arg1: i32) -> (i32, i32) {
    %c0_i32 = arith.constant 0 : i32
    %c0_i32_0 = arith.constant 0 : i32
    %c0_i32_1 = arith.constant 0 : i32
    return %c0_i32, %c0_i32_0 : i32, i32
  }
  func.func @transform_4(%arg0: i32, %arg1: i32) -> (i32, i32) {
    %c0_i32 = arith.constant 0 : i32
    %c0_i32_0 = arith.constant 0 : i32
    %c0_i32_1 = arith.constant 0 : i32
    return %c0_i32, %c0_i32_0 : i32, i32
  }
  func.func @transform_5(%arg0: i32, %arg1: i32) -> (i32, i32) {
    %c0_i32 = arith.constant 0 : i32
    %c0_i32_0 = arith.constant 0 : i32
    %c0_i32_1 = arith.constant 0 : i32
    return %c0_i32, %c0_i32_0 : i32, i32
  }
  func.func @transform_6(%arg0: i32, %arg1: i32) -> (i32, i32, i32) {
    %c0_i32 = arith.constant 0 : i32
    %c0_i32_0 = arith.constant 0 : i32
    %c0_i32_1 = arith.constant 0 : i32
    return %arg0, %c0_i32, %c0_i32_0 : i32, i32, i32
  }
}

module attributes {stable_mosaic.version = 11 : i64} {
  func.func @_decoder_kernel(%arg0: i32, %arg1: i32, %arg2: memref<1x1024x4xf32, #tpu.memory_space<vmem>>, %arg3: memref<1x1x128xf32, #tpu.memory_space<vmem>>, %arg4: memref<4x128xbf16, #tpu.memory_space<vmem>>, %arg5: memref<1x128xf32, #tpu.memory_space<vmem>>, %arg6: memref<128x256xbf16, #tpu.memory_space<vmem>>, %arg7: memref<1x256xf32, #tpu.memory_space<vmem>>, %arg8: memref<128x64xbf16, #tpu.memory_space<vmem>>, %arg9: memref<1x64xf32, #tpu.memory_space<vmem>>, %arg10: memref<64x1xbf16, #tpu.memory_space<vmem>>, %arg11: memref<1x1xf32, #tpu.memory_space<vmem>>, %arg12: memref<1x1024x1xf32, #tpu.memory_space<vmem>>) attributes {dimension_semantics = [#tpu.dimension_semantics<parallel>, #tpu.dimension_semantics<parallel>], iteration_bounds = array<i64: 2, 1>, scalar_prefetch = 0 : i64, scratch_operands = 0 : i64, tpu.core_type = #tpu.core_type<tc>, window_params = [{transform_indices = @transform_0, window_bounds = array<i64: 1, 1024, 4>}, {transform_indices = @transform_1, window_bounds = array<i64: 1, 1, 128>}, {pipeline_mode = #tpu.pipeline_mode<synchronous>, transform_indices = @transform_2, window_bounds = array<i64: 4, 128>}, {pipeline_mode = #tpu.pipeline_mode<synchronous>, transform_indices = @transform_3, window_bounds = array<i64: 1, 128>}, {pipeline_mode = #tpu.pipeline_mode<synchronous>, transform_indices = @transform_4, window_bounds = array<i64: 128, 256>}, {pipeline_mode = #tpu.pipeline_mode<synchronous>, transform_indices = @transform_5, window_bounds = array<i64: 1, 256>}, {pipeline_mode = #tpu.pipeline_mode<synchronous>, transform_indices = @transform_6, window_bounds = array<i64: 128, 64>}, {pipeline_mode = #tpu.pipeline_mode<synchronous>, transform_indices = @transform_7, window_bounds = array<i64: 1, 64>}, {pipeline_mode = #tpu.pipeline_mode<synchronous>, transform_indices = @transform_8, window_bounds = array<i64: 64, 1>}, {pipeline_mode = #tpu.pipeline_mode<synchronous>, transform_indices = @transform_9, window_bounds = array<i64: 1, 1>}, {transform_indices = @transform_10, window_bounds = array<i64: 1, 1024, 1>}]} {
    %c0 = arith.constant 0 : index
    %c0_0 = arith.constant 0 : index
    %c0_1 = arith.constant 0 : index
    %0 = vector.load %arg2[%c0, %c0_0, %c0_1] : memref<1x1024x4xf32, #tpu.memory_space<vmem>>, vector<1x1024x4xf32>
    %1 = vector.shape_cast %0 : vector<1x1024x4xf32> to vector<1024x4xf32>
    %2 = arith.truncf %1 : vector<1024x4xf32> to vector<1024x4xbf16>
    %c0_2 = arith.constant 0 : index
    %c0_3 = arith.constant 0 : index
    %3 = vector.load %arg4[%c0_2, %c0_3] : memref<4x128xbf16, #tpu.memory_space<vmem>>, vector<4x128xbf16>
    %cst = arith.constant dense<0.000000e+00> : vector<1024x128xf32>
    %4 = tpu.matmul %2, %3, %cst {dimension_numbers = #tpu.dot_dimension_numbers<[1], [0], [0], [1], [0, 0, 1, 1], [], []>} : vector<1024x4xbf16>, vector<4x128xbf16>, vector<1024x128xf32> -> vector<1024x128xf32>
    %c0_4 = arith.constant 0 : index
    %c0_5 = arith.constant 0 : index
    %5 = vector.load %arg5[%c0_4, %c0_5] : memref<1x128xf32, #tpu.memory_space<vmem>>, vector<1x128xf32>
    %6 = vector.broadcast %5 : vector<1x128xf32> to vector<1024x128xf32>
    %7 = arith.addf %4, %6 : vector<1024x128xf32>
    %cst_6 = arith.constant 0.000000e+00 : f32
    %8 = vector.broadcast %cst_6 : f32 to vector<1024x128xf32>
    %9 = arith.maximumf %7, %8 : vector<1024x128xf32>
    %10 = vector.extract_strided_slice %1 {offsets = [0, 3], sizes = [1024, 1], strides = [1, 1]} : vector<1024x4xf32> to vector<1024x1xf32>
    %11 = vector.broadcast %10 : vector<1024x1xf32> to vector<1024x128xf32>
    %12 = arith.mulf %9, %11 : vector<1024x128xf32>
    %13 = arith.truncf %12 : vector<1024x128xf32> to vector<1024x128xbf16>
    %c0_7 = arith.constant 0 : index
    %c0_8 = arith.constant 0 : index
    %14 = vector.load %arg6[%c0_7, %c0_8] : memref<128x256xbf16, #tpu.memory_space<vmem>>, vector<128x256xbf16>
    %cst_9 = arith.constant dense<0.000000e+00> : vector<1024x256xf32>
    %15 = tpu.matmul %13, %14, %cst_9 {dimension_numbers = #tpu.dot_dimension_numbers<[1], [0], [0], [1], [0, 0, 1, 1], [], []>} : vector<1024x128xbf16>, vector<128x256xbf16>, vector<1024x256xf32> -> vector<1024x256xf32>
    %c0_10 = arith.constant 0 : index
    %c0_11 = arith.constant 0 : index
    %16 = vector.load %arg7[%c0_10, %c0_11] : memref<1x256xf32, #tpu.memory_space<vmem>>, vector<1x256xf32>
    %17 = vector.broadcast %16 : vector<1x256xf32> to vector<1024x256xf32>
    %18 = arith.addf %15, %17 : vector<1024x256xf32>
    %cst_12 = arith.constant 0.000000e+00 : f32
    %19 = vector.broadcast %cst_12 : f32 to vector<1024x256xf32>
    %20 = arith.maximumf %18, %19 : vector<1024x256xf32>
    %21 = vector.extract_strided_slice %20 {offsets = [0, 0], sizes = [1024, 128], strides = [1, 1]} : vector<1024x256xf32> to vector<1024x128xf32>
    %22 = vector.extract_strided_slice %20 {offsets = [0, 128], sizes = [1024, 128], strides = [1, 1]} : vector<1024x256xf32> to vector<1024x128xf32>
    %c0_13 = arith.constant 0 : index
    %c0_14 = arith.constant 0 : index
    %c0_15 = arith.constant 0 : index
    %23 = vector.load %arg3[%c0_13, %c0_14, %c0_15] : memref<1x1x128xf32, #tpu.memory_space<vmem>>, vector<1x1x128xf32>
    %24 = vector.shape_cast %23 : vector<1x1x128xf32> to vector<1x128xf32>
    %25 = arith.mulf %24, %24 : vector<1x128xf32>
    %cst_16 = arith.constant dense<0.000000e+00> : vector<1xf32>
    %26 = vector.multi_reduction <add>, %25, %cst_16 [1] : vector<1x128xf32> to vector<1xf32>
    %27 = vector.shape_cast %26 : vector<1xf32> to vector<1x1xf32>
    %28 = vector.broadcast %24 : vector<1x128xf32> to vector<1024x128xf32>
    %29 = arith.mulf %21, %28 : vector<1024x128xf32>
    %cst_17 = arith.constant dense<0.000000e+00> : vector<1024xf32>
    %30 = vector.multi_reduction <add>, %29, %cst_17 [1] : vector<1024x128xf32> to vector<1024xf32>
    %31 = vector.shape_cast %30 : vector<1024xf32> to vector<1024x1xf32>
    %32 = arith.mulf %21, %21 : vector<1024x128xf32>
    %cst_18 = arith.constant dense<0.000000e+00> : vector<1024xf32>
    %33 = vector.multi_reduction <add>, %32, %cst_18 [1] : vector<1024x128xf32> to vector<1024xf32>
    %34 = vector.shape_cast %33 : vector<1024xf32> to vector<1024x1xf32>
    %35 = vector.broadcast %27 : vector<1x1xf32> to vector<1024x1xf32>
    %36 = arith.mulf %34, %35 : vector<1024x1xf32>
    %cst_19 = arith.constant 9.99999996E-13 : f32
    %37 = vector.broadcast %cst_19 : f32 to vector<1024x1xf32>
    %38 = arith.addf %36, %37 : vector<1024x1xf32>
    %39 = math.rsqrt %38 : vector<1024x1xf32>
    %40 = arith.mulf %31, %39 : vector<1024x1xf32>
    %41 = arith.negf %40 : vector<1024x1xf32>
    %42 = math.exp %41 : vector<1024x1xf32>
    %cst_20 = arith.constant 1.000000e+00 : f32
    %43 = vector.broadcast %cst_20 : f32 to vector<1024x1xf32>
    %44 = arith.addf %43, %42 : vector<1024x1xf32>
    %45 = arith.divf %43, %44 : vector<1024x1xf32>
    %46 = vector.broadcast %45 : vector<1024x1xf32> to vector<1024x128xf32>
    %47 = arith.mulf %22, %46 : vector<1024x128xf32>
    %48 = arith.truncf %47 : vector<1024x128xf32> to vector<1024x128xbf16>
    %c0_21 = arith.constant 0 : index
    %c0_22 = arith.constant 0 : index
    %49 = vector.load %arg8[%c0_21, %c0_22] : memref<128x64xbf16, #tpu.memory_space<vmem>>, vector<128x64xbf16>
    %cst_23 = arith.constant dense<0.000000e+00> : vector<1024x64xf32>
    %50 = tpu.matmul %48, %49, %cst_23 {dimension_numbers = #tpu.dot_dimension_numbers<[1], [0], [0], [1], [0, 0, 1, 1], [], []>} : vector<1024x128xbf16>, vector<128x64xbf16>, vector<1024x64xf32> -> vector<1024x64xf32>
    %c0_24 = arith.constant 0 : index
    %c0_25 = arith.constant 0 : index
    %51 = vector.load %arg9[%c0_24, %c0_25] : memref<1x64xf32, #tpu.memory_space<vmem>>, vector<1x64xf32>
    %52 = vector.broadcast %51 : vector<1x64xf32> to vector<1024x64xf32>
    %53 = arith.addf %50, %52 : vector<1024x64xf32>
    %cst_26 = arith.constant 0.000000e+00 : f32
    %54 = vector.broadcast %cst_26 : f32 to vector<1024x64xf32>
    %55 = arith.maximumf %53, %54 : vector<1024x64xf32>
    %56 = arith.truncf %55 : vector<1024x64xf32> to vector<1024x64xbf16>
    %c0_27 = arith.constant 0 : index
    %c0_28 = arith.constant 0 : index
    %57 = vector.load %arg10[%c0_27, %c0_28] : memref<64x1xbf16, #tpu.memory_space<vmem>>, vector<64x1xbf16>
    %cst_29 = arith.constant dense<0.000000e+00> : vector<1024x1xf32>
    %58 = tpu.matmul %56, %57, %cst_29 {dimension_numbers = #tpu.dot_dimension_numbers<[1], [0], [0], [1], [0, 0, 1, 1], [], []>} : vector<1024x64xbf16>, vector<64x1xbf16>, vector<1024x1xf32> -> vector<1024x1xf32>
    %c0_30 = arith.constant 0 : index
    %c0_31 = arith.constant 0 : index
    %59 = vector.load %arg11[%c0_30, %c0_31] : memref<1x1xf32, #tpu.memory_space<vmem>>, vector<1x1xf32>
    %60 = vector.broadcast %59 : vector<1x1xf32> to vector<1024x1xf32>
    %61 = arith.addf %58, %60 : vector<1024x1xf32>
    %cst_32 = arith.constant 0.000000e+00 : f32
    %62 = vector.broadcast %cst_32 : f32 to vector<1024x1xf32>
    %63 = arith.maximumf %61, %62 : vector<1024x1xf32>
    %c0_33 = arith.constant 0 : index
    %c0_34 = arith.constant 0 : index
    %c0_35 = arith.constant 0 : index
    %64 = vector.load %arg12[%c0_33, %c0_34, %c0_35] : memref<1x1024x1xf32, #tpu.memory_space<vmem>>, vector<1x1024x1xf32>
    %65 = vector.shape_cast %64 : vector<1x1024x1xf32> to vector<1024x1xf32>
    %66 = vector.shape_cast %63 : vector<1024x1xf32> to vector<1x1024x1xf32>
    tpu.vector_store %arg12[%c0_33, %c0_34, %c0_35], %66 {strides = array<i32>} : memref<1x1024x1xf32, #tpu.memory_space<vmem>>, vector<1x1024x1xf32>,
    return
  }
  func.func @transform_0(%arg0: i32, %arg1: i32) -> (i32, i32, i32) {
    %c0_i32 = arith.constant 0 : i32
    %c0_i32_0 = arith.constant 0 : i32
    return %arg0, %arg1, %c0_i32 : i32, i32, i32
  }
  func.func @transform_1(%arg0: i32, %arg1: i32) -> (i32, i32, i32) {
    %c0_i32 = arith.constant 0 : i32
    %c0_i32_0 = arith.constant 0 : i32
    %c0_i32_1 = arith.constant 0 : i32
    return %arg0, %c0_i32, %c0_i32_0 : i32, i32, i32
  }
  func.func @transform_2(%arg0: i32, %arg1: i32) -> (i32, i32) {
    %c0_i32 = arith.constant 0 : i32
    %c0_i32_0 = arith.constant 0 : i32
    %c0_i32_1 = arith.constant 0 : i32
    return %c0_i32, %c0_i32_0 : i32, i32
  }
  func.func @transform_3(%arg0: i32, %arg1: i32) -> (i32, i32) {
    %c0_i32 = arith.constant 0 : i32
    %c0_i32_0 = arith.constant 0 : i32
    %c0_i32_1 = arith.constant 0 : i32
    return %c0_i32, %c0_i32_0 : i32, i32
  }
  func.func @transform_4(%arg0: i32, %arg1: i32) -> (i32, i32) {
    %c0_i32 = arith.constant 0 : i32
    %c0_i32_0 = arith.constant 0 : i32
    %c0_i32_1 = arith.constant 0 : i32
    return %c0_i32, %c0_i32_0 : i32, i32
  }
  func.func @transform_5(%arg0: i32, %arg1: i32) -> (i32, i32) {
    %c0_i32 = arith.constant 0 : i32
    %c0_i32_0 = arith.constant 0 : i32
    %c0_i32_1 = arith.constant 0 : i32
    return %c0_i32, %c0_i32_0 : i32, i32
  }
  func.func @transform_6(%arg0: i32, %arg1: i32) -> (i32, i32) {
    %c0_i32 = arith.constant 0 : i32
    %c0_i32_0 = arith.constant 0 : i32
    %c0_i32_1 = arith.constant 0 : i32
    return %c0_i32, %c0_i32_0 : i32, i32
  }
  func.func @transform_7(%arg0: i32, %arg1: i32) -> (i32, i32) {
    %c0_i32 = arith.constant 0 : i32
    %c0_i32_0 = arith.constant 0 : i32
    %c0_i32_1 = arith.constant 0 : i32
    return %c0_i32, %c0_i32_0 : i32, i32
  }
  func.func @transform_8(%arg0: i32, %arg1: i32) -> (i32, i32) {
    %c0_i32 = arith.constant 0 : i32
    %c0_i32_0 = arith.constant 0 : i32
    %c0_i32_1 = arith.constant 0 : i32
    return %c0_i32, %c0_i32_0 : i32, i32
  }
  func.func @transform_9(%arg0: i32, %arg1: i32) -> (i32, i32) {
    %c0_i32 = arith.constant 0 : i32
    %c0_i32_0 = arith.constant 0 : i32
    %c0_i32_1 = arith.constant 0 : i32
    return %c0_i32, %c0_i32_0 : i32, i32
  }
  func.func @transform_10(%arg0: i32, %arg1: i32) -> (i32, i32, i32) {
    %c0_i32 = arith.constant 0 : i32
    %c0_i32_0 = arith.constant 0 : i32
    return %arg0, %arg1, %c0_i32 : i32, i32, i32
  }
}

</mosaic_0001>

<bundles_post_ra>
// kernel: spdcn_forward.2
= control target key start
LH: loop header
LB: loop body
LE: loop exit
PB: predicated region body
PF: predicated region fallthrough
CT: control target
= control target key end

     0   :  { %s4596_s21 = smov 0   ;;  %s4598_s22 = smov 0   ;;  %s5875_s0 = inlined_call_operand.vmem [shape: f32[2,1024,4], index: 0, kind: input, shape index: {}]   ;;  %s5876_s1 = inlined_call_operand.vmem [shape: f32[2,1024,1], index: 1, kind: input, shape index: {}]   ;;  %s5877_s2 = inlined_call_operand.vmem [shape: bf16[4,128], index: 2, kind: input, shape index: {}]   ;;  %s5878_s3 = inlined_call_operand.vmem [shape: f32[1,128], index: 3, kind: input, shape index: {}]   ;;  %s5879_s4 = inlined_call_operand.vmem [shape: bf16[128,128], index: 4, kind: input, shape index: {}]   ;;  %s5880_s5 = inlined_call_operand.vmem [shape: f32[1,128], index: 5, kind: input, shape index: {}]   ;;  %s5881_s6 = inlined_call_operand.vmem [shape: f32[2,1,128], index: 6, kind: output, shape index: {}]  }
   0x1   :  { %s4600_s23 = smov 0  }
   0x2 LB: > { %s28_s24 = sadd.s32 1, %s4553_s22  ;;  %p3714_p0 = scmp.ge.s32.totalorder %s4557_s23, 1  ;;  %s4557_s23 = sphi %s4600_s23, %s16_s23   ;;  %s4553_s22 = sphi %s4598_s22, %s5887_s22   ;;  %s4549_s21 = sphi %s4596_s21, %s5886_s21  }
   0x3   : > { %p30_p1 = scmp.ge.s32.totalorder %s28_s24, 2  ;;  %p248_p2 = scmp.lt.s32.totalorder %s4557_s23, 3 }
   0x5   : > { %s5889_s24 = smov (%p30_p1, %s28_s24), 0  ;;  %p249_p3 = pnand %p3714_p0, %p248_p2 }
   0x7   : > { %252 = sbr.rel (%p249_p3) target bundleno = 913 (0x391), region = 44 }
   0xc   : > { %v510_v0 = vld [vmem:[%s5877_s2] sm:$0x3]  ;;  %vm711_vm0 = vcmask 1041408   ;;  %p290_p4 = scmp.lt.s32.totalorder %s4549_s21, 1  ;;  %v4559_v1 = vmov 3   ;;  %vm518_vm1 = vcmask 31744  }
   0xd   : > { %4376 = vset.pattern.permute.xlu1 %v4559_v1  ;;  %4375 = vset.pattern.permute.xlu0 %v4559_v1  ;;  %v713_v2 = vsel %vm711_vm0, %v510_v0, 0  ;;  %v4525_v48 = vld [vmem:[%s5879_s4 + $0x38] sm:$0xff]   ;;  %v4526_v51 = vld [vmem:[%s5879_s4 + $0x30] sm:$0xff]   ;;  %v4527_v56 = vld [vmem:[%s5879_s4 + $0x28] sm:$0xff]  }
   0xe   : > { %4348 = vmatprep.subr.msk.bf16.mxu0 %vm711_vm0, %v510_v0  ;;  %s5891_s21 = smov (!%p290_p4, %s4549_s21), 1  ;;  %4204 = vmatprep.subr.bf16.mxu1 %v4525_v48  ;;  %v4528_v59 = vld [vmem:[%s5879_s4 + $0x20] sm:$0xff]   ;;  %v4529_v0 = vld [vmem:[%s5879_s4 + $0x18] sm:$0xff]  }
   0xf   : > { %4075 = vmatpush3.bf16.msra.mxu0 %v713_v2  ;;  %s3795_s27 = sshll.u32 %s5891_s21, 10  ;;  %4205 = vmatpush3.bf16.msra.mxu1 %v4525_v48  ;;  %s311_s16 = scalar_lea.vmem %s5881_s6, %s5891_s21 }
  0x10   : > { %s4625_s30 = scalar_lea.vmem %s5875_s0, %s3795_s27  ;;  %4206 = vmatprep.subr.bf16.mxu1 %v4526_v51  ;;  %s5157_s8 = scalar_lea.vmem %s5876_s1, %s3795_s27 }
  0x11   : > { %v320_v3 = vld [vmem:[%s4625_s30 + $0x10] sm:$0xff]  ;;  %v321_v4 = vld [vmem:[%s4625_s30 + $0x18] sm:$0xff]  ;;  %v318_v5 = vld [vmem:[%s4625_s30] sm:$0xff] }
  0x12   : > { %1400 = vperm.xlu1 %4376, %v320_v3   ;;  %v447_v6 = vpack.c.bf16 %v321_v4, %v320_v3  ;;  %1390 = vperm.xlu0 %4375, %v318_v5   ;;  %v319_v7 = vld [vmem:[%s4625_s30 + $0x8] sm:$0xff]  ;;  %v322_v9 = vld [vmem:[%s4625_s30 + $0x20] sm:$0xff]  ;;  %v324_v12 = vld [vmem:[%s4625_s30 + $0x30] sm:$0xff] }
  0x13   : > { %v323_v8 = vld [vmem:[%s4625_s30 + $0x28] sm:$0xff]  ;;  %v446_v10 = vpack.c.bf16 %v319_v7, %v318_v5  ;;  %v325_v13 = vld [vmem:[%s4625_s30 + $0x38] sm:$0xff]  ;;  %v326_v15 = vld [vmem:[%s4625_s30 + $0x40] sm:$0xff]  ;;  %4207 = vmatpush3.bf16.msra.mxu1 %v4526_v51 }
  0x14   : > { %v448_v11 = vpack.c.bf16 %v323_v8, %v322_v9  ;;  %v327_v14 = vld [vmem:[%s4625_s30 + $0x48] sm:$0xff]  ;;  %v449_v16 = vpack.c.bf16 %v325_v13, %v324_v12  ;;  %v328_v18 = vld [vmem:[%s4625_s30 + $0x50] sm:$0xff]  ;;  %v329_v19 = vld [vmem:[%s4625_s30 + $0x58] sm:$0xff]  ;;  %4208 = vmatprep.subr.bf16.mxu1 %v4527_v56 }
  0x15   : > { %4076 = vmatprep.mubr.msk.bf16.mxu0 %vm518_vm1, %v446_v10  ;;  %v450_v17 = vpack.c.bf16 %v327_v14, %v326_v15  ;;  %v331_v20 = vld [vmem:[%s4625_s30 + $0x68] sm:$0xff]  ;;  %v330_v21 = vld [vmem:[%s4625_s30 + $0x60] sm:$0xff]  ;;  %v451_v22 = vpack.c.bf16 %v329_v19, %v328_v18  ;;  %v332_v24 = vld [vmem:[%s4625_s30 + $0x70] sm:$0xff] }
  0x16   : > { %4077 = vmatmul.mubr.msk.bf16.vlgmr.msra.gmra.mxu0 %vm518_vm1, %v447_v6  ;;  %1405 = vperm.xlu1 %4376, %v321_v4   ;;  %v452_v23 = vpack.c.bf16 %v331_v20, %v330_v21  ;;  %v333_v25 = vld [vmem:[%s4625_s30 + $0x78] sm:$0xff]  ;;  %v335_v26 = vld [vmem:[%s4625_s30 + $0x88] sm:$0xff]  ;;  %v334_v27 = vld [vmem:[%s4625_s30 + $0x80] sm:$0xff] }
  0x17   : > { %1395 = vperm.xlu0 %4375, %v319_v7   ;;  %4080 = vmatprep.mubr.msk.bf16.mxu0 %vm518_vm1, %v448_v11  ;;  %v453_v28 = vpack.c.bf16 %v333_v25, %v332_v24  ;;  %v454_v29 = vpack.c.bf16 %v335_v26, %v334_v27  ;;  %v336_v30 = vld [vmem:[%s4625_s30 + $0x90] sm:$0xff]  ;;  %v337_v31 = vld [vmem:[%s4625_s30 + $0x98] sm:$0xff]  ;;  %v339_v32 = vld [vmem:[%s4625_s30 + $0xa8] sm:$0xff] }
  0x18   : > { %v338_v33 = vld [vmem:[%s4625_s30 + $0xa0] sm:$0xff]  ;;  %v455_v34 = vpack.c.bf16 %v337_v31, %v336_v30  ;;  %v340_v36 = vld [vmem:[%s4625_s30 + $0xb0] sm:$0xff]  ;;  %v341_v37 = vld [vmem:[%s4625_s30 + $0xb8] sm:$0xff]  ;;  %4209 = vmatpush3.bf16.msra.mxu1 %v4527_v56 }
  0x19   : > { %v456_v35 = vpack.c.bf16 %v339_v32, %v338_v33  ;;  %v343_v38 = vld [vmem:[%s4625_s30 + $0xc8] sm:$0xff]  ;;  %v342_v39 = vld [vmem:[%s4625_s30 + $0xc0] sm:$0xff]  ;;  %v457_v40 = vpack.c.bf16 %v341_v37, %v340_v36  ;;  %v344_v42 = vld [vmem:[%s4625_s30 + $0xd0] sm:$0xff]  ;;  %4210 = vmatprep.subr.bf16.mxu1 %v4528_v59 }
  0x1a   : > { %1415 = vperm.xlu1 %4376, %v323_v8   ;;  %v458_v41 = vpack.c.bf16 %v343_v38, %v342_v39  ;;  %v345_v43 = vld [vmem:[%s4625_s30 + $0xd8] sm:$0xff]  ;;  %v347_v44 = vld [vmem:[%s4625_s30 + $0xe8] sm:$0xff]  ;;  %v346_v45 = vld [vmem:[%s4625_s30 + $0xe0] sm:$0xff] }
  0x1b   : > { %1410 = vperm.xlu0 %4375, %v322_v9   ;;  %v459_v46 = vpack.c.bf16 %v345_v43, %v344_v42  ;;  %v460_v47 = vpack.c.bf16 %v347_v44, %v346_v45  ;;  %v348_v49 = vld [vmem:[%s4625_s30 + $0xf0] sm:$0xff]  ;;  %v349_v50 = vld [vmem:[%s4625_s30 + $0xf8] sm:$0xff]  ;;  %v351_v52 = vld [vmem:[%s4625_s30 + $0x108] sm:$0xff] }
  0x1c   : > { %v350_v53 = vld [vmem:[%s4625_s30 + $0x100] sm:$0xff]  ;;  %v461_v54 = vpack.c.bf16 %v349_v50, %v348_v49  ;;  %v352_v57 = vld [vmem:[%s4625_s30 + $0x110] sm:$0xff]  ;;  %v353_v58 = vld [vmem:[%s4625_s30 + $0x118] sm:$0xff]  ;;  %4211 = vmatpush3.bf16.msra.mxu1 %v4528_v59 }
  0x1d   : > { %v462_v55 = vpack.c.bf16 %v351_v52, %v350_v53  ;;  %v355_v60 = vld [vmem:[%s4625_s30 + $0x128] sm:$0xff]  ;;  %v354_v61 = vld [vmem:[%s4625_s30 + $0x120] sm:$0xff]  ;;  %v463_v62 = vpack.c.bf16 %v353_v58, %v352_v57  ;;  %4212 = vmatprep.subr.bf16.mxu1 %v4529_v0  ;;  %v356_v1 = vld [vmem:[%s4625_s30 + $0x130] sm:$0xff] }
  0x1e   : > { %4081 = vmatmul.mubr.msk.bf16.gmra.mxu0 %vm518_vm1, %v449_v16  ;;  %1425 = vperm.xlu1 %4376, %v325_v13   ;;  %v464_v63 = vpack.c.bf16 %v355_v60, %v354_v61  ;;  %v357_v2 = vld [vmem:[%s4625_s30 + $0x138] sm:$0xff]  ;;  %v359_v3 = vld [vmem:[%s4625_s30 + $0x148] sm:$0xff]  ;;  %v358_v4 = vld [vmem:[%s4625_s30 + $0x140] sm:$0xff] }
  0x1f   : > { %1420 = vperm.xlu0 %4375, %v324_v12   ;;  %4084 = vmatprep.mubr.msk.bf16.mxu0 %vm518_vm1, %v450_v17  ;;  %v4530_v5 = vld [vmem:[%s5879_s4 + $0x10] sm:$0xff]   ;;  %v465_v6 = vpack.c.bf16 %v357_v2, %v356_v1  ;;  %v466_v7 = vpack.c.bf16 %v359_v3, %v358_v4  ;;  %v4531_v8 = vld [vmem:[%s5879_s4 + $0x8] sm:$0xff]   ;;  %v361_v10 = vld [vmem:[%s4625_s30 + $0x158] sm:$0xff] }
  0x20   : > { %4213 = vmatpush3.bf16.msra.mxu1 %v4529_v0  ;;  %v360_v9 = vld [vmem:[%s4625_s30 + $0x150] sm:$0xff]  ;;  %v363_v11 = vld [vmem:[%s4625_s30 + $0x168] sm:$0xff]  ;;  %v362_v12 = vld [vmem:[%s4625_s30 + $0x160] sm:$0xff] }
  0x21   : > { %4214 = vmatprep.subr.bf16.mxu1 %v4530_v5  ;;  %v4532_v13 = vld [vmem:[%s5879_s4] sm:$0xff]   ;;  %v364_v16 = vld [vmem:[%s4625_s30 + $0x170] sm:$0xff]  ;;  %v365_v17 = vld [vmem:[%s4625_s30 + $0x178] sm:$0xff] }
  0x22   : > { %1435 = vperm.xlu1 %4376, %v327_v14   ;;  %v467_v14 = vpack.c.bf16 %v361_v10, %v360_v9  ;;  %v384_v48 = vld [vmem:[%s4625_s30 + $0x210] sm:$0xff]  ;;  %v386_v51 = vld [vmem:[%s4625_s30 + $0x220] sm:$0xff]  ;;  %v389_v59 = vld [vmem:[%s4625_s30 + $0x238] sm:$0xff] }
  0x23   : > { %1430 = vperm.xlu0 %4375, %v326_v15   ;;  %v468_v15 = vpack.c.bf16 %v363_v11, %v362_v12 }
  0x24   : > { %4215 = vmatpush3.bf16.msra.mxu1 %v4530_v5  ;;  %v393_v5 = vld [vmem:[%s4625_s30 + $0x258] sm:$0xff] }
  0x25   : > { %4216 = vmatprep.subr.bf16.mxu1 %v4531_v8 }
  0x26   : > { %4085 = vmatmul.mubr.msk.bf16.gmra.mxu0 %vm518_vm1, %v451_v22  ;;  %1445 = vperm.xlu1 %4376, %v329_v19   ;;  %v366_v19 = vld [vmem:[%s4625_s30 + $0x180] sm:$0xff]  ;;  %v368_v22 = vld [vmem:[%s4625_s30 + $0x190] sm:$0xff] }
  0x27   : > { %1440 = vperm.xlu0 %4375, %v328_v18   ;;  %4088 = vmatprep.mubr.msk.bf16.mxu0 %vm518_vm1, %v452_v23  ;;  %v367_v18 = vld [vmem:[%s4625_s30 + $0x188] sm:$0xff]  ;;  %v369_v23 = vld [vmem:[%s4625_s30 + $0x198] sm:$0xff] }
  0x28   : > { %4217 = vmatpush3.bf16.msra.mxu1 %v4531_v8 }
  0x29   : > { %4218 = vmatprep.subr.bf16.mxu1 %v4532_v13 }
  0x2a   : > { %1455 = vperm.xlu1 %4376, %v331_v20   ;;  %v469_v20 = vpack.c.bf16 %v365_v17, %v364_v16 }
  0x2b   : > { %1450 = vperm.xlu0 %4375, %v330_v21   ;;  %v470_v21 = vpack.c.bf16 %v367_v18, %v366_v19 }
  0x2c   : > { %4219 = vmatpush3.bf16.msra.mxu1 %v4532_v13 }
  0x2e   : > { %4089 = vmatmul.mubr.msk.bf16.gmra.mxu0 %vm518_vm1, %v453_v28  ;;  %1465 = vperm.xlu1 %4376, %v333_v25   ;;  %v370_v25 = vld [vmem:[%s4625_s30 + $0x1a0] sm:$0xff]  ;;  %v372_v28 = vld [vmem:[%s4625_s30 + $0x1b0] sm:$0xff] }
  0x2f   : > { %1460 = vperm.xlu0 %4375, %v332_v24   ;;  %4092 = vmatprep.mubr.msk.bf16.mxu0 %vm518_vm1, %v454_v29  ;;  %v371_v24 = vld [vmem:[%s4625_s30 + $0x1a8] sm:$0xff]  ;;  %v373_v29 = vld [vmem:[%s4625_s30 + $0x1b8] sm:$0xff] }
  0x32   : > { %1475 = vperm.xlu1 %4376, %v335_v26   ;;  %v471_v26 = vpack.c.bf16 %v369_v23, %v368_v22 }
  0x33   : > { %1470 = vperm.xlu0 %4375, %v334_v27   ;;  %v472_v27 = vpack.c.bf16 %v371_v24, %v370_v25 }
  0x36   : > { %4093 = vmatmul.mubr.msk.bf16.gmra.mxu0 %vm518_vm1, %v455_v34  ;;  %1485 = vperm.xlu1 %4376, %v337_v31   ;;  %v374_v31 = vld [vmem:[%s4625_s30 + $0x1c0] sm:$0xff]  ;;  %v376_v34 = vld [vmem:[%s4625_s30 + $0x1d0] sm:$0xff] }
  0x37   : > { %1480 = vperm.xlu0 %4375, %v336_v30   ;;  %4096 = vmatprep.mubr.msk.bf16.mxu0 %vm518_vm1, %v456_v35  ;;  %v375_v30 = vld [vmem:[%s4625_s30 + $0x1c8] sm:$0xff]  ;;  %v377_v35 = vld [vmem:[%s4625_s30 + $0x1d8] sm:$0xff] }
  0x3a   : > { %1495 = vperm.xlu1 %4376, %v339_v32   ;;  %v473_v32 = vpack.c.bf16 %v373_v29, %v372_v28 }
  0x3b   : > { %1490 = vperm.xlu0 %4375, %v338_v33   ;;  %v474_v33 = vpack.c.bf16 %v375_v30, %v374_v31 }
  0x3e   : > { %4097 = vmatmul.mubr.msk.bf16.gmra.mxu0 %vm518_vm1, %v457_v40  ;;  %1505 = vperm.xlu1 %4376, %v341_v37   ;;  %v378_v37 = vld [vmem:[%s4625_s30 + $0x1e0] sm:$0xff]  ;;  %v380_v40 = vld [vmem:[%s4625_s30 + $0x1f0] sm:$0xff] }
  0x3f   : > { %1500 = vperm.xlu0 %4375, %v340_v36   ;;  %4100 = vmatprep.mubr.msk.bf16.mxu0 %vm518_vm1, %v458_v41  ;;  %v379_v36 = vld [vmem:[%s4625_s30 + $0x1e8] sm:$0xff]  ;;  %v381_v41 = vld [vmem:[%s4625_s30 + $0x1f8] sm:$0xff] }
  0x42   : > { %1515 = vperm.xlu1 %4376, %v343_v38   ;;  %v475_v38 = vpack.c.bf16 %v377_v35, %v376_v34 }
  0x43   : > { %1510 = vperm.xlu0 %4375, %v342_v39   ;;  %v476_v39 = vpack.c.bf16 %v379_v36, %v378_v37 }
  0x46   : > { %4101 = vmatmul.mubr.msk.bf16.gmra.mxu0 %vm518_vm1, %v459_v46  ;;  %1525 = vperm.xlu1 %4376, %v345_v43   ;;  %v382_v43 = vld [vmem:[%s4625_s30 + $0x200] sm:$0xff] }
  0x47   : > { %1520 = vperm.xlu0 %4375, %v344_v42   ;;  %4104 = vmatprep.mubr.msk.bf16.mxu0 %vm518_vm1, %v460_v47  ;;  %v383_v42 = vld [vmem:[%s4625_s30 + $0x208] sm:$0xff] }
  0x4a   : > { %1535 = vperm.xlu1 %4376, %v347_v44   ;;  %v477_v44 = vpack.c.bf16 %v381_v41, %v380_v40 }
  0x4b   : > { %1530 = vperm.xlu0 %4375, %v346_v45   ;;  %v478_v45 = vpack.c.bf16 %v383_v42, %v382_v43 }
  0x4e   : > { %4105 = vmatmul.mubr.msk.bf16.gmra.mxu0 %vm518_vm1, %v461_v54  ;;  %1545 = vperm.xlu1 %4376, %v349_v50   ;;  %v387_v50 = vld [vmem:[%s4625_s30 + $0x228] sm:$0xff] }
  0x4f   : > { %1540 = vperm.xlu0 %4375, %v348_v49   ;;  %4108 = vmatprep.mubr.msk.bf16.mxu0 %vm518_vm1, %v462_v55  ;;  %v385_v49 = vld [vmem:[%s4625_s30 + $0x218] sm:$0xff]  ;;  %v480_v55 = vpack.c.bf16 %v387_v50, %v386_v51 }
  0x50   : > { %v479_v54 = vpack.c.bf16 %v385_v49, %v384_v48 }
  0x52   : > { %1555 = vperm.xlu1 %4376, %v351_v52  }
  0x53   : > { %1550 = vperm.xlu0 %4375, %v350_v53  }
  0x56   : > { %4109 = vmatmul.mubr.msk.bf16.gmra.mxu0 %vm518_vm1, %v463_v62  ;;  %1565 = vperm.xlu1 %4376, %v353_v58   ;;  %v388_v58 = vld [vmem:[%s4625_s30 + $0x230] sm:$0xff] }
  0x57   : > { %1560 = vperm.xlu0 %4375, %v352_v57   ;;  %4112 = vmatprep.mubr.msk.bf16.mxu0 %vm518_vm1, %v464_v63  ;;  %v481_v0 = vpack.c.bf16 %v389_v59, %v388_v58 }
  0x5a   : > { %1575 = vperm.xlu1 %4376, %v355_v60   ;;  %v391_v60 = vld [vmem:[%s4625_s30 + $0x248] sm:$0xff] }
  0x5b   : > { %1570 = vperm.xlu0 %4375, %v354_v61   ;;  %v390_v61 = vld [vmem:[%s4625_s30 + $0x240] sm:$0xff] }
  0x5e   : > { %4113 = vmatmul.mubr.msk.bf16.gmra.mxu0 %vm518_vm1, %v465_v6  ;;  %1585 = vperm.xlu1 %4376, %v357_v2   ;;  %v395_v6 = vld [vmem:[%s4625_s30 + $0x268] sm:$0xff] }
  0x5f   : > { %1580 = vperm.xlu0 %4375, %v356_v1   ;;  %4116 = vmatprep.mubr.msk.bf16.mxu0 %vm518_vm1, %v466_v7  ;;  %v482_v1 = vpack.c.bf16 %v391_v60, %v390_v61  ;;  %v394_v7 = vld [vmem:[%s4625_s30 + $0x260] sm:$0xff] }
  0x62   : > { %1595 = vperm.xlu1 %4376, %v359_v3  }
  0x63   : > { %1590 = vperm.xlu0 %4375, %v358_v4   ;;  %v392_v4 = vld [vmem:[%s4625_s30 + $0x250] sm:$0xff] }
  0x66   : > { %4117 = vmatmul.mubr.msk.bf16.gmra.mxu0 %vm518_vm1, %v467_v14  ;;  %1605 = vperm.xlu1 %4376, %v361_v10   ;;  %v483_v10 = vpack.c.bf16 %v393_v5, %v392_v4  ;;  %v396_v14 = vld [vmem:[%s4625_s30 + $0x270] sm:$0xff] }
  0x67   : > { %1600 = vperm.xlu0 %4375, %v360_v9   ;;  %4120 = vmatprep.mubr.msk.bf16.mxu0 %vm518_vm1, %v468_v15  ;;  %v397_v15 = vld [vmem:[%s4625_s30 + $0x278] sm:$0xff] }
  0x6a   : > { %1615 = vperm.xlu1 %4376, %v363_v11   ;;  %v484_v11 = vpack.c.bf16 %v395_v6, %v394_v7 }
  0x6b   : > { %1610 = vperm.xlu0 %4375, %v362_v12  }
  0x6e   : > { %4121 = vmatmul.mubr.msk.bf16.gmra.mxu0 %vm518_vm1, %v469_v20  ;;  %1625 = vperm.xlu1 %4376, %v365_v17   ;;  %v398_v17 = vld [vmem:[%s4625_s30 + $0x280] sm:$0xff]  ;;  %v485_v20 = vpack.c.bf16 %v397_v15, %v396_v14 }
  0x6f   : > { %1620 = vperm.xlu0 %4375, %v364_v16   ;;  %4124 = vmatprep.mubr.msk.bf16.mxu0 %vm518_vm1, %v470_v21  ;;  %v399_v16 = vld [vmem:[%s4625_s30 + $0x288] sm:$0xff] }
  0x70   : > { %v486_v21 = vpack.c.bf16 %v399_v16, %v398_v17 }
  0x72   : > { %1635 = vperm.xlu1 %4376, %v367_v18  }
  0x73   : > { %1630 = vperm.xlu0 %4375, %v366_v19  }
  0x76   : > { %4125 = vmatmul.mubr.msk.bf16.gmra.mxu0 %vm518_vm1, %v471_v26  ;;  %1645 = vperm.xlu1 %4376, %v369_v23   ;;  %v403_v26 = vld [vmem:[%s4625_s30 + $0x2a8] sm:$0xff] }
  0x77   : > { %1640 = vperm.xlu0 %4375, %v368_v22   ;;  %4128 = vmatprep.mubr.msk.bf16.mxu0 %vm518_vm1, %v472_v27  ;;  %v402_v27 = vld [vmem:[%s4625_s30 + $0x2a0] sm:$0xff] }
  0x7a   : > { %1655 = vperm.xlu1 %4376, %v371_v24   ;;  %v400_v24 = vld [vmem:[%s4625_s30 + $0x290] sm:$0xff] }
  0x7b   : > { %1650 = vperm.xlu0 %4375, %v370_v25   ;;  %v401_v25 = vld [vmem:[%s4625_s30 + $0x298] sm:$0xff] }
  0x7e   : > { %4129 = vmatmul.mubr.msk.bf16.gmra.mxu0 %vm518_vm1, %v473_v32  ;;  %1665 = vperm.xlu1 %4376, %v373_v29  }
  0x7f   : > { %1660 = vperm.xlu0 %4375, %v372_v28   ;;  %4132 = vmatprep.mubr.msk.bf16.mxu0 %vm518_vm1, %v474_v33 }
  0x82   : > { %1675 = vperm.xlu1 %4376, %v375_v30   ;;  %v487_v30 = vpack.c.bf16 %v401_v25, %v400_v24 }
  0x83   : > { %1670 = vperm.xlu0 %4375, %v374_v31   ;;  %v488_v31 = vpack.c.bf16 %v403_v26, %v402_v27 }
  0x86   : > { %4133 = vmatmul.mubr.msk.bf16.gmra.mxu0 %vm518_vm1, %v475_v38  ;;  %1685 = vperm.xlu1 %4376, %v377_v35   ;;  %v405_v35 = vld [vmem:[%s4625_s30 + $0x2b8] sm:$0xff] }
  0x87   : > { %1680 = vperm.xlu0 %4375, %v376_v34   ;;  %4136 = vmatprep.mubr.msk.bf16.mxu0 %vm518_vm1, %v476_v39  ;;  %v404_v34 = vld [vmem:[%s4625_s30 + $0x2b0] sm:$0xff] }
  0x8a   : > { %1695 = vperm.xlu1 %4376, %v379_v36   ;;  %v407_v36 = vld [vmem:[%s4625_s30 + $0x2c8] sm:$0xff] }
  0x8b   : > { %1690 = vperm.xlu0 %4375, %v378_v37   ;;  %v406_v37 = vld [vmem:[%s4625_s30 + $0x2c0] sm:$0xff] }
  0x8d   : > { %v4748_v46 = vpop.permute.xlu1 %1400  ;;  %v4750_v47 = vpop.permute.xlu0 %1390 }
  0x8e   : > { %4137 = vmatmul.mubr.msk.bf16.gmra.mxu0 %vm518_vm1, %v477_v44  ;;  %1705 = vperm.xlu1 %4376, %v381_v41   ;;  %v490_v41 = vpack.c.bf16 %v407_v36, %v406_v37  ;;  %v408_v44 = vld [vmem:[%s4625_s30 + $0x2d0] sm:$0xff] }
  0x8f   : > { %1700 = vperm.xlu0 %4375, %v380_v40   ;;  %4140 = vmatprep.mubr.msk.bf16.mxu0 %vm518_vm1, %v478_v45  ;;  %v489_v40 = vpack.c.bf16 %v405_v35, %v404_v34  ;;  %v409_v45 = vld [vmem:[%s4625_s30 + $0x2d8] sm:$0xff] }
  0x91   : > { %v4758_v52 = vpop.permute.xlu1 %1405 }
  0x92   : > { %v4760_v53 = vpop.permute.xlu0 %1395  ;;  %1715 = vperm.xlu1 %4376, %v383_v42  }
  0x93   : > { %1710 = vperm.xlu0 %4375, %v382_v43  }
  0x95   : > { %v4762_v56 = vpop.permute.xlu1 %1415 }
  0x96   : > { %v4764_v57 = vpop.permute.xlu0 %1410  ;;  %4141 = vmatmul.mubr.msk.bf16.gmra.mxu0 %vm518_vm1, %v479_v54  ;;  %1725 = vperm.xlu1 %4376, %v385_v49   ;;  %v410_v49 = vld [vmem:[%s4625_s30 + $0x2e0] sm:$0xff]  ;;  %v491_v54 = vpack.c.bf16 %v409_v45, %v408_v44 }
  0x97   : > { %1720 = vperm.xlu0 %4375, %v384_v48   ;;  %4144 = vmatprep.mubr.msk.bf16.mxu0 %vm518_vm1, %v480_v55  ;;  %v411_v48 = vld [vmem:[%s4625_s30 + $0x2e8] sm:$0xff] }
  0x98   : > { %v492_v55 = vpack.c.bf16 %v411_v48, %v410_v49 }
  0x99   : > { %v4772_v62 = vpop.permute.xlu1 %1425 }
  0x9a   : > { %v4774_v63 = vpop.permute.xlu0 %1420  ;;  %1735 = vperm.xlu1 %4376, %v387_v50  }
  0x9b   : > { %1730 = vperm.xlu0 %4375, %v386_v51  }
  0x9d   : > { %v4776_v2 = vpop.permute.xlu1 %1435 }
  0x9e   : > { %v4778_v3 = vpop.permute.xlu0 %1430  ;;  %4145 = vmatmul.mubr.msk.bf16.gmra.mxu0 %vm518_vm1, %v481_v0  ;;  %1745 = vperm.xlu1 %4376, %v389_v59   ;;  %v415_v0 = vld [vmem:[%s4625_s30 + $0x308] sm:$0xff] }
  0x9f   : > { %1740 = vperm.xlu0 %4375, %v388_v58   ;;  %4148 = vmatprep.mubr.msk.bf16.mxu0 %vm518_vm1, %v482_v1  ;;  %v414_v1 = vld [vmem:[%s4625_s30 + $0x300] sm:$0xff] }
  0xa1   : > { %v4786_v8 = vpop.permute.xlu1 %1445 }
  0xa2   : > { %v4788_v9 = vpop.permute.xlu0 %1440  ;;  %1755 = vperm.xlu1 %4376, %v391_v60   ;;  %v412_v60 = vld [vmem:[%s4625_s30 + $0x2f0] sm:$0xff] }
  0xa3   : > { %1750 = vperm.xlu0 %4375, %v390_v61   ;;  %v413_v61 = vld [vmem:[%s4625_s30 + $0x2f8] sm:$0xff] }
  0xa5   : > { %v4790_v12 = vpop.permute.xlu1 %1455 }
  0xa6   : > { %v4792_v13 = vpop.permute.xlu0 %1450  ;;  %4149 = vmatmul.mubr.msk.bf16.gmra.mxu0 %vm518_vm1, %v483_v10  ;;  %1765 = vperm.xlu1 %4376, %v393_v5  }
  0xa7   : > { %1760 = vperm.xlu0 %4375, %v392_v4   ;;  %4152 = vmatprep.mubr.msk.bf16.mxu0 %vm518_vm1, %v484_v11 }
  0xa9   : > { %v4800_v18 = vpop.permute.xlu1 %1465 }
  0xaa   : > { %v4802_v19 = vpop.permute.xlu0 %1460  ;;  %1775 = vperm.xlu1 %4376, %v395_v6   ;;  %v493_v6 = vpack.c.bf16 %v413_v61, %v412_v60 }
  0xab   : > { %1770 = vperm.xlu0 %4375, %v394_v7   ;;  %v494_v7 = vpack.c.bf16 %v415_v0, %v414_v1 }
  0xad   : > { %v4804_v22 = vpop.permute.xlu1 %1475 }
  0xae   : > { %v4806_v23 = vpop.permute.xlu0 %1470  ;;  %4153 = vmatmul.mubr.msk.bf16.gmra.mxu0 %vm518_vm1, %v485_v20  ;;  %1785 = vperm.xlu1 %4376, %v397_v15   ;;  %v417_v15 = vld [vmem:[%s4625_s30 + $0x318] sm:$0xff] }
  0xaf   : > { %1780 = vperm.xlu0 %4375, %v396_v14   ;;  %4156 = vmatprep.mubr.msk.bf16.mxu0 %vm518_vm1, %v486_v21  ;;  %v416_v14 = vld [vmem:[%s4625_s30 + $0x310] sm:$0xff] }
  0xb1   : > { %v4814_v28 = vpop.permute.xlu1 %1485 }
  0xb2   : > { %v4816_v29 = vpop.permute.xlu0 %1480  ;;  %1795 = vperm.xlu1 %4376, %v399_v16   ;;  %v419_v16 = vld [vmem:[%s4625_s30 + $0x328] sm:$0xff] }
  0xb3   : > { %1790 = vperm.xlu0 %4375, %v398_v17   ;;  %v418_v17 = vld [vmem:[%s4625_s30 + $0x320] sm:$0xff] }
  0xb5   : > { %v4818_v32 = vpop.permute.xlu1 %1495 }
  0xb6   : > { %v4820_v33 = vpop.permute.xlu0 %1490  ;;  %4157 = vmatmul.mubr.msk.bf16.gmra.mxu0 %vm518_vm1, %v487_v30  ;;  %1805 = vperm.xlu1 %4376, %v401_v25   ;;  %v496_v25 = vpack.c.bf16 %v419_v16, %v418_v17 }
  0xb7   : > { %1800 = vperm.xlu0 %4375, %v400_v24   ;;  %4160 = vmatprep.mubr.msk.bf16.mxu0 %vm518_vm1, %v488_v31  ;;  %v495_v24 = vpack.c.bf16 %v417_v15, %v416_v14  ;;  %v4882_v31 = vld [vmem:[%s5878_s3] ss:$0 sm:$0xff] }
  0xb9   : > { %v4828_v38 = vpop.permute.xlu1 %1505 }
  0xba   : > { %v4830_v39 = vpop.permute.xlu0 %1500  ;;  %1815 = vperm.xlu1 %4376, %v403_v26  }
  0xbb   : > { %1810 = vperm.xlu0 %4375, %v402_v27  }
  0xbd   : > { %v4832_v42 = vpop.permute.xlu1 %1515 }
  0xbe   : > { %v4834_v43 = vpop.permute.xlu0 %1510  ;;  %4161 = vmatmul.mubr.msk.bf16.gmra.mxu0 %vm518_vm1, %v489_v40  ;;  %1825 = vperm.xlu1 %4376, %v405_v35   ;;  %v421_v35 = vld [vmem:[%s4625_s30 + $0x338] sm:$0xff]  ;;  %v422_v40 = vld [vmem:[%s4625_s30 + $0x340] sm:$0xff] }
  0xbf   : > { %1820 = vperm.xlu0 %4375, %v404_v34   ;;  %4164 = vmatprep.mubr.msk.bf16.mxu0 %vm518_vm1, %v490_v41  ;;  %v420_v34 = vld [vmem:[%s4625_s30 + $0x330] sm:$0xff] }
  0xc1   : > { %v4842_v50 = vpop.permute.xlu1 %1525 }
  0xc2   : > { %v4844_v51 = vpop.permute.xlu0 %1520  ;;  %1835 = vperm.xlu1 %4376, %v407_v36  }
  0xc3   : > { %1830 = vperm.xlu0 %4375, %v406_v37   ;;  %v423_v37 = vld [vmem:[%s4625_s30 + $0x348] sm:$0xff] }
  0xc5   : > { %v4846_v58 = vpop.permute.xlu1 %1535 }
  0xc6   : > { %v4848_v59 = vpop.permute.xlu0 %1530  ;;  %4165 = vmatmul.mubr.msk.bf16.gmra.mxu0 %vm518_vm1, %v491_v54  ;;  %1845 = vperm.xlu1 %4376, %v409_v45   ;;  %v497_v54 = vpack.c.bf16 %v421_v35, %v420_v34 }
  0xc7   : > { %1840 = vperm.xlu0 %4375, %v408_v44   ;;  %4168 = vmatprep.mubr.msk.bf16.mxu0 %vm518_vm1, %v492_v55 }
  0xc9   : > { %v4856_v4 = vpop.permute.xlu1 %1545 }
  0xca   : > { %v4858_v5 = vpop.permute.xlu0 %1540  ;;  %1855 = vperm.xlu1 %4376, %v411_v48  }
  0xcb   : > { %1850 = vperm.xlu0 %4375, %v410_v49  }
  0xcd   : > { %v4860_v10 = vpop.permute.xlu1 %1555 }
  0xce   : > { %v4862_v11 = vpop.permute.xlu0 %1550  ;;  %4169 = vmatmul.mubr.msk.bf16.gmra.mxu0 %vm518_vm1, %v493_v6  ;;  %1865 = vperm.xlu1 %4376, %v413_v61  }
  0xcf   : > { %1860 = vperm.xlu0 %4375, %v412_v60   ;;  %4172 = vmatprep.mubr.msk.bf16.mxu0 %vm518_vm1, %v494_v7  ;;  %v498_v60 = vpack.c.bf16 %v423_v37, %v422_v40 }
  0xd1   : > { %v4870_v20 = vpop.permute.xlu1 %1565 }
  0xd2   : > { %v4872_v21 = vpop.permute.xlu0 %1560  ;;  %1875 = vperm.xlu1 %4376, %v415_v0  }
  0xd3   : > { %1870 = vperm.xlu0 %4375, %v414_v1  }
  0xd5   : > { %v4874_v26 = vpop.permute.xlu1 %1575 }
  0xd6   : > { %v4876_v27 = vpop.permute.xlu0 %1570  ;;  %v4078_v30 = vpop.f32.mrf.mxu0  ;;  %4173 = vmatmul.mubr.msk.bf16.gmra.mxu0 %vm518_vm1, %v495_v24  ;;  %1885 = vperm.xlu1 %4376, %v417_v15  }
  0xd7   : > { %1880 = vperm.xlu0 %4375, %v416_v14   ;;  %4176 = vmatprep.mubr.msk.bf16.mxu0 %vm518_vm1, %v496_v25  ;;  %v758_v45 = vadd.f32 %v4078_v30, %v4882_v31  ;;  %v425_v25 = vld [vmem:[%s4625_s30 + $0x358] sm:$0xff] }
  0xd8   : > { %v749_v36 = vpop.f32.mrf.mxu0 }
  0xd9   : > { %v750_v41 = vadd.f32 %v4882_v31, %v749_v36  ;;  %v4890_v44 = vpop.permute.xlu1 %1585  ;;  %v1262_v14 = vmax.f32 %v758_v45, 0.0 }
  0xda   : > { %v4893_v48 = vpop.permute.xlu0 %1580  ;;  %v4079_v49 = vpop.f32.mrf.mxu0  ;;  %1895 = vperm.xlu1 %4376, %v419_v16  }
  0xdb   : > { %v761_v55 = vadd.f32 %v4079_v49, %v4882_v31  ;;  %1890 = vperm.xlu0 %4375, %v418_v17   ;;  %v1260_v0 = vmax.f32 %v750_v41, 0.0  ;;  %v424_v17 = vld [vmem:[%s4625_s30 + $0x350] sm:$0xff] }
  0xdc   : > { %v752_v61 = vpop.f32.mrf.mxu0 }
  0xdd   : > { %v1263_v1 = vmax.f32 %v761_v55, 0.0  ;;  %v753_v6 = vadd.f32 %v4882_v31, %v752_v61  ;;  %v4897_v7 = vpop.permute.xlu1 %1595  ;;  %v2028_v49 = vmul.f32 %v4750_v47, %v1260_v0  ;;  %v427_v61 = vld [vmem:[%s4625_s30 + $0x368] sm:$0xff] }
  0xde   : > { %5882 = vst [vmem:[#allocation2_spill] sm:$0xff] %v4897_v7  ;;  %v4899_v15 = vpop.permute.xlu0 %1590  ;;  %v4082_v16 = vpop.f32.mrf.mxu0  ;;  %4177 = vmatmul.mubr.msk.bf16.gmra.mxu0 %vm518_vm1, %v497_v54  ;;  %1905 = vperm.xlu1 %4376, %v421_v35   ;;  %v426_v54 = vld [vmem:[%s4625_s30 + $0x360] sm:$0xff]  ;;  %v2030_v35 = vmul.f32 %v4748_v46, %v1262_v14 }
  0xdf   : > { %v1261_v24 = vmax.f32 %v753_v6, 0.0  ;;  %1900 = vperm.xlu0 %4375, %v420_v34   ;;  %4180 = vmatprep.mubr.msk.bf16.mxu0 %vm518_vm1, %v498_v60  ;;  %v2031_v30 = vmul.f32 %v4758_v52, %v1263_v1  ;;  %v774_v34 = vadd.f32 %v4082_v16, %v4882_v31  ;;  %v499_v52 = vpack.c.bf16 %v425_v25, %v424_v17 }
  0xe0   : > { %v765_v36 = vpop.f32.mrf.mxu0 }
  0xe1   : > { %v766_v41 = vadd.f32 %v4882_v31, %v765_v36  ;;  %v4907_v45 = vpop.permute.xlu1 %1605  ;;  %v2029_v55 = vmul.f32 %v4760_v53, %v1261_v24  ;;  %v2157_v47 = vpack.c.bf16 %v2031_v30, %v2030_v35  ;;  %v500_v53 = vpack.c.bf16 %v427_v61, %v426_v54  ;;  %v428_v30 = vld [vmem:[%s4625_s30 + $0x370] sm:$0xff] }
  0xe2   : > { %v4915_v60 = vpop.permute.xlu0 %1600  ;;  %v4083_v6 = vpop.f32.mrf.mxu0  ;;  %1915 = vperm.xlu1 %4376, %v423_v37   ;;  %v1266_v16 = vmax.f32 %v774_v34, 0.0 }
  0xe3   : > { %5883 = vst [vmem:[#allocation3_spill] sm:$0xff] %v4915_v60  ;;  %v777_v1 = vadd.f32 %v4083_v6, %v4882_v31  ;;  %1910 = vperm.xlu0 %4375, %v422_v40   ;;  %v2156_v36 = vpack.c.bf16 %v2029_v55, %v2028_v49  ;;  %v1264_v0 = vmax.f32 %v766_v41, 0.0  ;;  %v429_v41 = vld [vmem:[%s4625_s30 + $0x378] sm:$0xff] }
  0xe4   : > { %v768_v7 = vpop.f32.mrf.mxu0 }
  0xe5   : > { %v1267_v24 = vmax.f32 %v777_v1, 0.0  ;;  %v769_v46 = vadd.f32 %v4882_v31, %v768_v7  ;;  %4220 = vmatprep.mubr.bf16.mxu1 %v2156_v36  ;;  %v4919_v14 = vpop.permute.xlu1 %1615  ;;  %v2032_v55 = vmul.f32 %v4764_v57, %v1264_v0  ;;  %v430_v1 = vld [vmem:[%s4625_s30 + $0x380] sm:$0xff] }
  0xe6   : > { %v4921_v60 = vpop.permute.xlu0 %1610  ;;  %v4086_v37 = vpop.f32.mrf.mxu0  ;;  %4181 = vmatmul.mubr.msk.bf16.gmra.mxu0 %vm518_vm1, %v499_v52  ;;  %4221 = vmatmul.mubr.bf16.vlgmr.msra.gmra.mxu1 %v2157_v47  ;;  %v431_v52 = vld [vmem:[%s4625_s30 + $0x388] sm:$0xff]  ;;  %v501_v47 = vpack.c.bf16 %v429_v41, %v428_v30 }
  0xe7   : > { %v1265_v40 = vmax.f32 %v769_v46, 0.0  ;;  %1925 = vperm.xlu1 %4376, %v425_v25   ;;  %1920 = vperm.xlu0 %4375, %v424_v17   ;;  %v2035_v49 = vmul.f32 %v4772_v62, %v1267_v24  ;;  %v2034_v25 = vmul.f32 %v4774_v63, %v1266_v16  ;;  %v790_v17 = vadd.f32 %v4086_v37, %v4882_v31 }
  0xe8   : > { %v781_v7 = vpop.f32.mrf.mxu0  ;;  %4184 = vmatprep.mubr.msk.bf16.mxu0 %vm518_vm1, %v500_v53  ;;  %v502_v24 = vpack.c.bf16 %v431_v52, %v430_v1 }
  0xe9   : > { %v2033_v35 = vmul.f32 %v4762_v56, %v1265_v40  ;;  %v782_v34 = vadd.f32 %v4882_v31, %v781_v7  ;;  %v4931_v6 = vpop.permute.xlu1 %1625  ;;  %v2159_v0 = vpack.c.bf16 %v2035_v49, %v2034_v25  ;;  %v1270_v16 = vmax.f32 %v790_v17, 0.0  ;;  %v433_v49 = vld [vmem:[%s4625_s30 + $0x398] sm:$0xff] }
  0xea   : > { %v4937_v36 = vpop.permute.xlu0 %1620  ;;  %v4087_v62 = vpop.f32.mrf.mxu0 }
  0xeb   : > { %v793_v53 = vadd.f32 %v4087_v62, %v4882_v31  ;;  %1935 = vperm.xlu1 %4376, %v427_v61   ;;  %1930 = vperm.xlu0 %4375, %v426_v54   ;;  %v2158_v57 = vpack.c.bf16 %v2033_v35, %v2032_v55  ;;  %v1268_v46 = vmax.f32 %v782_v34, 0.0  ;;  %v432_v54 = vld [vmem:[%s4625_s30 + $0x390] sm:$0xff] }
  0xec   : > { %v784_v56 = vpop.f32.mrf.mxu0 }
  0xed   : > { %v1271_v40 = vmax.f32 %v793_v53, 0.0  ;;  %v785_v63 = vadd.f32 %v4882_v31, %v784_v56  ;;  %4224 = vmatprep.mubr.bf16.mxu1 %v2158_v57  ;;  %v4941_v37 = vpop.permute.xlu1 %1635  ;;  %v2036_v25 = vmul.f32 %v4778_v3, %v1268_v46  ;;  %v434_v53 = vld [vmem:[%s4625_s30 + $0x3a0] sm:$0xff]  ;;  %v503_v56 = vpack.c.bf16 %v433_v49, %v432_v54 }
  0xee   : > { %v4090_v7 = vpop.f32.mrf.mxu0  ;;  %4185 = vmatmul.mubr.msk.bf16.gmra.mxu0 %vm518_vm1, %v501_v47  ;;  %4225 = vmatmul.mubr.bf16.gmra.mxu1 %v2159_v0  ;;  %v4947_v35 = vpop.permute.xlu0 %1630  ;;  %v435_v47 = vld [vmem:[%s4625_s30 + $0x3a8] sm:$0xff] }
  0xef   : > { %v1269_v61 = vmax.f32 %v785_v63, 0.0  ;;  %1945 = vperm.xlu1 %4376, %v429_v41   ;;  %1940 = vperm.xlu0 %4375, %v428_v30   ;;  %v2039_v55 = vmul.f32 %v4786_v8, %v1271_v40  ;;  %v2038_v41 = vmul.f32 %v4788_v9, %v1270_v16  ;;  %v806_v30 = vadd.f32 %v4090_v7, %v4882_v31 }
  0xf0   : > { %v797_v34 = vpop.f32.mrf.mxu0  ;;  %4188 = vmatprep.mubr.msk.bf16.mxu0 %vm518_vm1, %v502_v24  ;;  %v504_v46 = vpack.c.bf16 %v435_v47, %v434_v53 }
  0xf1   : > { %v2037_v17 = vmul.f32 %v4776_v2, %v1269_v61  ;;  %v798_v62 = vadd.f32 %v4882_v31, %v797_v34  ;;  %v4958_v24 = vpop.permute.xlu1 %1645  ;;  %v2161_v2 = vpack.c.bf16 %v2039_v55, %v2038_v41  ;;  %v1274_v16 = vmax.f32 %v806_v30, 0.0  ;;  %v436_v61 = vld [vmem:[%s4625_s30 + $0x3b0] sm:$0xff]  ;;  %v437_v55 = vld [vmem:[%s4625_s30 + $0x3b8] sm:$0xff]  ;;  %v439_v30 = vld [vmem:[%s4625_s30 + $0x3c8] sm:$0xff] }
  0xf2   : > { %v4091_v57 = vpop.f32.mrf.mxu0  ;;  %v4961_v7 = vpop.permute.xlu0 %1640 }
  0xf3   : > { %v809_v8 = vadd.f32 %v4091_v57, %v4882_v31  ;;  %1955 = vperm.xlu1 %4376, %v431_v52   ;;  %1950 = vperm.xlu0 %4375, %v430_v1   ;;  %v2160_v0 = vpack.c.bf16 %v2037_v17, %v2036_v25  ;;  %v1272_v40 = vmax.f32 %v798_v62, 0.0  ;;  %v438_v57 = vld [vmem:[%s4625_s30 + $0x3c0] sm:$0xff] }
  0xf4   : > { %v800_v3 = vpop.f32.mrf.mxu0 }
  0xf5   : > { %v1275_v63 = vmax.f32 %v809_v8, 0.0  ;;  %v801_v9 = vadd.f32 %v4882_v31, %v800_v3  ;;  %4228 = vmatprep.mubr.bf16.mxu1 %v2160_v0  ;;  %v2040_v17 = vmul.f32 %v4792_v13, %v1272_v40  ;;  %v4974_v8 = vpop.permute.xlu1 %1655  ;;  %v505_v0 = vpack.c.bf16 %v437_v55, %v436_v61 }
  0xf6   : > { %v4094_v52 = vpop.f32.mrf.mxu0  ;;  %4189 = vmatmul.mubr.msk.bf16.gmra.mxu0 %vm518_vm1, %v503_v56  ;;  %4229 = vmatmul.mubr.bf16.gmra.mxu1 %v2161_v2  ;;  %v2042_v56 = vmul.f32 %v4802_v19, %v1274_v16  ;;  %v4978_v13 = vpop.permute.xlu0 %1650 }
  0xf7   : > { %v1273_v1 = vmax.f32 %v801_v9, 0.0  ;;  %1965 = vperm.xlu1 %4376, %v433_v49   ;;  %1960 = vperm.xlu0 %4375, %v432_v54   ;;  %v2043_v34 = vmul.f32 %v4800_v18, %v1275_v63  ;;  %v822_v54 = vadd.f32 %v4094_v52, %v4882_v31  ;;  %v441_v52 = vld [vmem:[%s4625_s30 + $0x3d8] sm:$0xff] }
  0xf8   : > { %v813_v25 = vpop.f32.mrf.mxu0  ;;  %4192 = vmatprep.mubr.msk.bf16.mxu0 %vm518_vm1, %v504_v46  ;;  %v506_v46 = vpack.c.bf16 %v439_v30, %v438_v57 }
  0xf9   : > { %v2041_v62 = vmul.f32 %v4790_v12, %v1273_v1  ;;  %v814_v41 = vadd.f32 %v4882_v31, %v813_v25  ;;  %v2163_v2 = vpack.c.bf16 %v2043_v34, %v2042_v56  ;;  %v1278_v9 = vmax.f32 %v822_v54, 0.0  ;;  %v4984_v1 = vpop.permute.xlu1 %1665  ;;  %v443_v56 = vld [vmem:[%s4625_s30 + $0x3e8] sm:$0xff]  ;;  %v442_v54 = vld [vmem:[%s4625_s30 + $0x3e0] sm:$0xff] }
  0xfa   : > { %v4095_v49 = vpop.f32.mrf.mxu0 }
  0xfb   : > { %v825_v18 = vadd.f32 %v4095_v49, %v4882_v31  ;;  %1975 = vperm.xlu1 %4376, %v435_v47   ;;  %1970 = vperm.xlu0 %4375, %v434_v53   ;;  %v2162_v3 = vpack.c.bf16 %v2041_v62, %v2040_v17  ;;  %v1276_v40 = vmax.f32 %v814_v41, 0.0  ;;  %v440_v53 = vld [vmem:[%s4625_s30 + $0x3d0] sm:$0xff] }
  0xfc   : > { %v816_v12 = vpop.f32.mrf.mxu0 }
  0xfd   : > { %v1279_v19 = vmax.f32 %v825_v18, 0.0  ;;  %v817_v63 = vadd.f32 %v4882_v31, %v816_v12  ;;  %4232 = vmatprep.mubr.bf16.mxu1 %v2162_v3  ;;  %v2044_v17 = vmul.f32 %v4806_v23, %v1276_v40  ;;  %v507_v18 = vpack.c.bf16 %v441_v52, %v440_v53  ;;  %v4999_v40 = vpop.permute.xlu1 %1675 }
  0xfe   : > { %v4098_v16 = vpop.f32.mrf.mxu0  ;;  %4193 = vmatmul.mubr.msk.bf16.gmra.mxu0 %vm518_vm1, %v505_v0  ;;  %4233 = vmatmul.mubr.bf16.gmra.mxu1 %v2163_v2  ;;  %v508_v12 = vpack.c.bf16 %v443_v56, %v442_v54 }
  0xff   : > { %v1277_v47 = vmax.f32 %v817_v63, 0.0  ;;  %1985 = vperm.xlu1 %4376, %v437_v55   ;;  %1980 = vperm.xlu0 %4375, %v436_v61   ;;  %v2047_v34 = vmul.f32 %v4814_v28, %v1279_v19  ;;  %v2046_v55 = vmul.f32 %v4816_v29, %v1278_v9  ;;  %v4994_v61 = vpop.permute.xlu0 %1660  ;;  %v838_v49 = vadd.f32 %v4098_v16, %v4882_v31  ;;  %v445_v9 = vld [vmem:[%s4625_s30 + $0x3f8] sm:$0xff] }
 0x100   : > { %v829_v25 = vpop.f32.mrf.mxu0  ;;  %4196 = vmatprep.mubr.msk.bf16.mxu0 %vm518_vm1, %v506_v46 }
 0x101   : > { %v2045_v62 = vmul.f32 %v4804_v22, %v1277_v47  ;;  %v830_v41 = vadd.f32 %v4882_v31, %v829_v25  ;;  %v2165_v22 = vpack.c.bf16 %v2047_v34, %v2046_v55  ;;  %v1282_v19 = vmax.f32 %v838_v49, 0.0 }
 0x102   : > { %v4099_v0 = vpop.f32.mrf.mxu0 }
 0x103   : > { %v841_v28 = vadd.f32 %v4099_v0, %v4882_v31  ;;  %1995 = vperm.xlu1 %4376, %v439_v30   ;;  %1990 = vperm.xlu0 %4375, %v438_v57   ;;  %v2164_v3 = vpack.c.bf16 %v2045_v62, %v2044_v17  ;;  %v1280_v2 = vmax.f32 %v830_v41, 0.0  ;;  %v444_v57 = vld [vmem:[%s4625_s30 + $0x3f0] sm:$0xff]  ;;  %v5004_v16 = vpop.permute.xlu0 %1670  ;;  %v2050_v41 = vmul.f32 %v4830_v39, %v1282_v19  ;;  %v5014_v0 = vpop.permute.xlu1 %1685 }
 0x104   : > { %v832_v23 = vpop.f32.mrf.mxu0  ;;  %v509_v55 = vpack.c.bf16 %v445_v9, %v444_v57 }
 0x105   : > { %v1283_v46 = vmax.f32 %v841_v28, 0.0  ;;  %v833_v29 = vadd.f32 %v4882_v31, %v832_v23  ;;  %4236 = vmatprep.mubr.bf16.mxu1 %v2164_v3  ;;  %v2048_v25 = vmul.f32 %v4820_v33, %v1280_v2 }
 0x106   : > { %v4102_v63 = vpop.f32.mrf.mxu0  ;;  %4197 = vmatmul.mubr.msk.bf16.gmra.mxu0 %vm518_vm1, %v507_v18  ;;  %4237 = vmatmul.mubr.bf16.gmra.mxu1 %v2165_v22 }
 0x107   : > { %v1281_v30 = vmax.f32 %v833_v29, 0.0  ;;  %2005 = vperm.xlu1 %4376, %v441_v52   ;;  %2000 = vperm.xlu0 %4375, %v440_v53   ;;  %v2051_v47 = vmul.f32 %v4828_v38, %v1283_v46  ;;  %v854_v52 = vadd.f32 %v4102_v63, %v4882_v31  ;;  %v5017_v23 = vpop.permute.xlu0 %1680  ;;  %v5024_v19 = vpop.permute.xlu1 %1695 }
 0x108   : > { %v845_v34 = vpop.f32.mrf.mxu0  ;;  %4200 = vmatprep.mubr.msk.bf16.mxu0 %vm518_vm1, %v508_v12 }
 0x109   : > { %v2049_v17 = vmul.f32 %v4818_v32, %v1281_v30  ;;  %v846_v62 = vadd.f32 %v4882_v31, %v845_v34  ;;  %v2167_v28 = vpack.c.bf16 %v2051_v47, %v2050_v41  ;;  %v1286_v39 = vmax.f32 %v854_v52, 0.0 }
 0x10a   : > { %v4103_v53 = vpop.f32.mrf.mxu0 }
 0x10b   : > { %v857_v49 = vadd.f32 %v4103_v53, %v4882_v31  ;;  %2015 = vperm.xlu1 %4376, %v443_v56   ;;  %2010 = vperm.xlu0 %4375, %v442_v54   ;;  %v2166_v38 = vpack.c.bf16 %v2049_v17, %v2048_v25  ;;  %v1284_v33 = vmax.f32 %v846_v62, 0.0  ;;  %v2054_v63 = vmul.f32 %v4844_v51, %v1286_v39  ;;  %v5032_v51 = vpop.permute.xlu1 %1705 }
 0x10c   : > { %v848_v18 = vpop.f32.mrf.mxu0 }
 0x10d   : > { %v1287_v3 = vmax.f32 %v857_v49, 0.0  ;;  %v849_v32 = vadd.f32 %v4882_v31, %v848_v18  ;;  %4240 = vmatprep.mubr.bf16.mxu1 %v2166_v38  ;;  %v2052_v2 = vmul.f32 %v4834_v43, %v1284_v33 }
 0x10e   : > { %v4106_v22 = vpop.f32.mrf.mxu0  ;;  %4201 = vmatmul.mubr.msk.bf16.gmra.mxu0 %vm518_vm1, %v509_v55  ;;  %4241 = vmatmul.mubr.bf16.gmra.mxu1 %v2167_v28 }
 0x10f   : > { %v1285_v12 = vmax.f32 %v849_v32, 0.0  ;;  %2025 = vperm.xlu1 %4376, %v445_v9   ;;  %2020 = vperm.xlu0 %4375, %v444_v57   ;;  %v2055_v56 = vmul.f32 %v4842_v50, %v1287_v3  ;;  %v870_v30 = vadd.f32 %v4106_v22, %v4882_v31  ;;  %v5029_v57 = vpop.permute.xlu0 %1690 }
 0x110   : > { %v861_v54 = vpop.f32.mrf.mxu0 }
 0x111   : > { %v2053_v46 = vmul.f32 %v4832_v42, %v1285_v12  ;;  %v862_v29 = vadd.f32 %v4882_v31, %v861_v54  ;;  %v2169_v25 = vpack.c.bf16 %v2055_v56, %v2054_v63  ;;  %v1290_v62 = vmax.f32 %v870_v30, 0.0 }
 0x112   : > { %v4107_v47 = vpop.f32.mrf.mxu0 }
 0x113   : > { %v873_v34 = vadd.f32 %v4107_v47, %v4882_v31  ;;  %v2168_v9 = vpack.c.bf16 %v2053_v46, %v2052_v2  ;;  %v1288_v17 = vmax.f32 %v862_v29, 0.0  ;;  %v5038_v28 = vpop.permute.xlu0 %1700  ;;  %v2058_v33 = vmul.f32 %v4858_v5, %v1290_v62 }
 0x114   : > { %v864_v50 = vpop.f32.mrf.mxu0 }
 0x115   : > { %v1291_v43 = vmax.f32 %v873_v34, 0.0  ;;  %v865_v42 = vadd.f32 %v4882_v31, %v864_v50  ;;  %4244 = vmatprep.mubr.bf16.mxu1 %v2168_v9  ;;  %v2056_v49 = vmul.f32 %v4848_v59, %v1288_v17 }
 0x116   : > { %v4110_v41 = vpop.f32.mrf.mxu0  ;;  %4245 = vmatmul.mubr.bf16.gmra.mxu1 %v2169_v25 }
 0x117   : > { %v1289_v52 = vmax.f32 %v865_v42, 0.0  ;;  %v2059_v53 = vmul.f32 %v4856_v4, %v1291_v43  ;;  %v886_v3 = vadd.f32 %v4110_v41, %v4882_v31  ;;  %v5046_v5 = vpop.permute.xlu0 %1710 }
 0x118   : > { %v877_v55 = vpop.f32.mrf.mxu0 }
 0x119   : > { %v2057_v38 = vmul.f32 %v4846_v58, %v1289_v52  ;;  %v878_v18 = vadd.f32 %v4882_v31, %v877_v55  ;;  %v2171_v56 = vpack.c.bf16 %v2059_v53, %v2058_v33  ;;  %v5044_v58 = vpop.permute.xlu1 %1715  ;;  %v1294_v2 = vmax.f32 %v886_v3, 0.0 }
 0x11a   : > { %v4111_v32 = vpop.f32.mrf.mxu0 }
 0x11b   : > { %v889_v39 = vadd.f32 %v4111_v32, %v4882_v31  ;;  %v2170_v22 = vpack.c.bf16 %v2057_v38, %v2056_v49  ;;  %v1292_v4 = vmax.f32 %v878_v18, 0.0  ;;  %v2062_v50 = vmul.f32 %v4872_v21, %v1294_v2 }
 0x11c   : > { %v880_v12 = vpop.f32.mrf.mxu0 }
 0x11d   : > { %v1295_v54 = vmax.f32 %v889_v39, 0.0  ;;  %v881_v59 = vadd.f32 %v4882_v31, %v880_v12  ;;  %4248 = vmatprep.mubr.bf16.mxu1 %v2170_v22  ;;  %v2060_v47 = vmul.f32 %v4862_v11, %v1292_v4  ;;  %v5055_v62 = vpop.permute.xlu1 %1725 }
 0x11e   : > { %v4114_v46 = vpop.f32.mrf.mxu0  ;;  %4249 = vmatmul.mubr.bf16.gmra.mxu1 %v2171_v56 }
 0x11f   : > { %v1293_v29 = vmax.f32 %v881_v59, 0.0  ;;  %v2063_v63 = vmul.f32 %v4870_v20, %v1295_v54  ;;  %v902_v25 = vadd.f32 %v4114_v46, %v4882_v31 }
 0x120   : > { %v893_v30 = vpop.f32.mrf.mxu0 }
 0x121   : > { %v2061_v34 = vmul.f32 %v4860_v10, %v1293_v29  ;;  %v894_v9 = vadd.f32 %v4882_v31, %v893_v30  ;;  %v2173_v52 = vpack.c.bf16 %v2063_v63, %v2062_v50  ;;  %v5058_v10 = vpop.permute.xlu0 %1720  ;;  %v1298_v55 = vmax.f32 %v902_v25, 0.0  ;;  %v5064_v39 = vpop.permute.xlu1 %1735  ;;  %v5884_v50 = vld [vmem:[#allocation2_spill] sm:$0xff] }
 0x122   : > { %v4115_v17 = vpop.f32.mrf.mxu0 }
 0x123   : > { %v905_v43 = vadd.f32 %v4115_v17, %v4882_v31  ;;  %v2172_v42 = vpack.c.bf16 %v2061_v34, %v2060_v47  ;;  %v1296_v20 = vmax.f32 %v894_v9, 0.0  ;;  %v2066_v22 = vmul.f32 %v4893_v48, %v1298_v55 }
 0x124   : > { %v896_v41 = vpop.f32.mrf.mxu0 }
 0x125   : > { %v1299_v53 = vmax.f32 %v905_v43, 0.0  ;;  %v897_v11 = vadd.f32 %v4882_v31, %v896_v41  ;;  %4252 = vmatprep.mubr.bf16.mxu1 %v2172_v42  ;;  %v2064_v33 = vmul.f32 %v4876_v27, %v1296_v20  ;;  %v5069_v59 = vpop.permute.xlu0 %1730  ;;  %v5072_v48 = vpop.permute.xlu1 %1745  ;;  %v5885_v42 = vld [vmem:[#allocation3_spill] sm:$0xff] }
 0x126   : > { %v4118_v49 = vpop.f32.mrf.mxu0  ;;  %4253 = vmatmul.mubr.bf16.gmra.mxu1 %v2173_v52 }
 0x127   : > { %v1297_v21 = vmax.f32 %v897_v11, 0.0  ;;  %v2067_v38 = vmul.f32 %v4890_v44, %v1299_v53  ;;  %v918_v12 = vadd.f32 %v4118_v49, %v4882_v31 }
 0x128   : > { %v909_v18 = vpop.f32.mrf.mxu0 }
 0x129   : > { %v2065_v3 = vmul.f32 %v4874_v26, %v1297_v21  ;;  %v910_v32 = vadd.f32 %v4882_v31, %v909_v18  ;;  %v2175_v2 = vpack.c.bf16 %v2067_v38, %v2066_v22  ;;  %v1302_v29 = vmax.f32 %v918_v12, 0.0  ;;  %v5078_v43 = vpop.permute.xlu0 %1740  ;;  %v5084_v38 = vpop.permute.xlu1 %1755 }
 0x12a   : > { %v4119_v56 = vpop.f32.mrf.mxu0 }
 0x12b   : > { %v921_v4 = vadd.f32 %v4119_v56, %v4882_v31  ;;  %v2174_v54 = vpack.c.bf16 %v2065_v3, %v2064_v33  ;;  %v1300_v46 = vmax.f32 %v910_v32, 0.0  ;;  %v2070_v41 = vmul.f32 %v5885_v42, %v1302_v29 }
 0x12c   : > { %v912_v44 = vpop.f32.mrf.mxu0 }
 0x12d   : > { %v1303_v27 = vmax.f32 %v921_v4, 0.0  ;;  %v913_v26 = vadd.f32 %v4882_v31, %v912_v44  ;;  %4256 = vmatprep.mubr.bf16.mxu1 %v2174_v54  ;;  %v2068_v9 = vmul.f32 %v4899_v15, %v1300_v46  ;;  %v5086_v32 = vpop.permute.xlu0 %1750  ;;  %v5095_v29 = vpop.permute.xlu1 %1765 }
 0x12e   : > { %v4122_v63 = vpop.f32.mrf.mxu0  ;;  %4257 = vmatmul.mubr.bf16.gmra.mxu1 %v2175_v2 }
 0x12f   : > { %v1301_v30 = vmax.f32 %v913_v26, 0.0  ;;  %v2071_v47 = vmul.f32 %v4907_v45, %v1303_v27  ;;  %v934_v52 = vadd.f32 %v4122_v63, %v4882_v31 }
 0x130   : > { %v925_v34 = vpop.f32.mrf.mxu0 }
 0x131   : > { %v2069_v25 = vmul.f32 %v5884_v50, %v1301_v30  ;;  %v926_v17 = vadd.f32 %v4882_v31, %v925_v34  ;;  %v2177_v49 = vpack.c.bf16 %v2071_v47, %v2070_v41  ;;  %v1306_v18 = vmax.f32 %v934_v52, 0.0  ;;  %v5104_v52 = vpop.permute.xlu1 %1775 }
 0x132   : > { %v4123_v20 = vpop.f32.mrf.mxu0 }
 0x133   : > { %v937_v53 = vadd.f32 %v4123_v20, %v4882_v31  ;;  %v2176_v11 = vpack.c.bf16 %v2069_v25, %v2068_v9  ;;  %v1304_v45 = vmax.f32 %v926_v17, 0.0  ;;  %v2074_v44 = vmul.f32 %v4937_v36, %v1306_v18 }
 0x134   : > { %v928_v55 = vpop.f32.mrf.mxu0 }
 0x135   : > { %v1307_v21 = vmax.f32 %v937_v53, 0.0  ;;  %v929_v15 = vadd.f32 %v4882_v31, %v928_v55  ;;  %4260 = vmatprep.mubr.bf16.mxu1 %v2176_v11  ;;  %v2072_v56 = vmul.f32 %v4921_v60, %v1304_v45 }
 0x136   : > { %v4126_v33 = vpop.f32.mrf.mxu0  ;;  %4261 = vmatmul.mubr.bf16.gmra.mxu1 %v2177_v49 }
 0x137   : > { %v1305_v3 = vmax.f32 %v929_v15, 0.0  ;;  %v2075_v22 = vmul.f32 %v4931_v6, %v1307_v21  ;;  %v950_v2 = vadd.f32 %v4126_v33, %v4882_v31 }
 0x138   : > { %v941_v12 = vpop.f32.mrf.mxu0 }
 0x139   : > { %v2073_v4 = vmul.f32 %v4919_v14, %v1305_v3  ;;  %v942_v54 = vadd.f32 %v4882_v31, %v941_v12  ;;  %v2179_v30 = vpack.c.bf16 %v2075_v22, %v2074_v44  ;;  %v5098_v14 = vpop.permute.xlu0 %1760  ;;  %v1310_v34 = vmax.f32 %v950_v2, 0.0 }
 0x13a   : > { %v4127_v46 = vpop.f32.mrf.mxu0 }
 0x13b   : > { %v953_v27 = vadd.f32 %v4127_v46, %v4882_v31  ;;  %v2178_v26 = vpack.c.bf16 %v2073_v4, %v2072_v56  ;;  %v1308_v6 = vmax.f32 %v942_v54, 0.0  ;;  %v2078_v20 = vmul.f32 %v4961_v7, %v1310_v34  ;;  %v5112_v7 = vpop.permute.xlu1 %1785 }
 0x13c   : > { %v944_v63 = vpop.f32.mrf.mxu0 }
 0x13d   : > { %v1311_v47 = vmax.f32 %v953_v27, 0.0  ;;  %v945_v60 = vadd.f32 %v4882_v31, %v944_v63  ;;  %4264 = vmatprep.mubr.bf16.mxu1 %v2178_v26  ;;  %v2076_v17 = vmul.f32 %v4947_v35, %v1308_v6  ;;  %v5109_v45 = vpop.permute.xlu0 %1770 }
 0x13e   : > { %v4130_v9 = vpop.f32.mrf.mxu0  ;;  %4265 = vmatmul.mubr.bf16.gmra.mxu1 %v2179_v30 }
 0x13f   : > { %v1309_v36 = vmax.f32 %v945_v60, 0.0  ;;  %v2079_v50 = vmul.f32 %v4958_v24, %v1311_v47  ;;  %v966_v53 = vadd.f32 %v4130_v9, %v4882_v31 }
 0x140   : > { %v957_v25 = vpop.f32.mrf.mxu0 }
 0x141   : > { %v2077_v42 = vmul.f32 %v4941_v37, %v1309_v36  ;;  %v958_v41 = vadd.f32 %v4882_v31, %v957_v25  ;;  %v2181_v21 = vpack.c.bf16 %v2079_v50, %v2078_v20  ;;  %v1314_v18 = vmax.f32 %v966_v53, 0.0  ;;  %v5118_v44 = vpop.permute.xlu0 %1780 }
 0x142   : > { %v4131_v11 = vpop.f32.mrf.mxu0 }
 0x143   : > { %v969_v55 = vadd.f32 %v4131_v11, %v4882_v31  ;;  %v2180_v49 = vpack.c.bf16 %v2077_v42, %v2076_v17  ;;  %v1312_v15 = vmax.f32 %v958_v41, 0.0  ;;  %v2082_v2 = vmul.f32 %v4994_v61, %v1314_v18 }
 0x144   : > { %v960_v24 = vpop.f32.mrf.mxu0 }
 0x145   : > { %v1315_v35 = vmax.f32 %v969_v55, 0.0  ;;  %v961_v37 = vadd.f32 %v4882_v31, %v960_v24  ;;  %4268 = vmatprep.mubr.bf16.mxu1 %v2180_v49  ;;  %v2080_v56 = vmul.f32 %v4978_v13, %v1312_v15  ;;  %v5126_v61 = vpop.permute.xlu0 %1790 }
 0x146   : > { %v4134_v33 = vpop.f32.mrf.mxu0  ;;  %4269 = vmatmul.mubr.bf16.gmra.mxu1 %v2181_v21 }
 0x147   : > { %v1313_v3 = vmax.f32 %v961_v37, 0.0  ;;  %v2083_v22 = vmul.f32 %v4984_v1, %v1315_v35  ;;  %v982_v46 = vadd.f32 %v4134_v33, %v4882_v31 }
 0x148   : > { %v973_v12 = vpop.f32.mrf.mxu0 }
 0x149   : > { %v2081_v4 = vmul.f32 %v4974_v8, %v1313_v3  ;;  %v974_v54 = vadd.f32 %v4882_v31, %v973_v12  ;;  %v2183_v6 = vpack.c.bf16 %v2083_v22, %v2082_v2  ;;  %v5124_v8 = vpop.permute.xlu1 %1795  ;;  %v1318_v60 = vmax.f32 %v982_v46, 0.0 }
 0x14a   : > { %v4135_v27 = vpop.f32.mrf.mxu0 }
 0x14b   : > { %v985_v26 = vadd.f32 %v4135_v27, %v4882_v31  ;;  %v2182_v63 = vpack.c.bf16 %v2081_v4, %v2080_v56  ;;  %v1316_v1 = vmax.f32 %v974_v54, 0.0  ;;  %v2086_v41 = vmul.f32 %v5017_v23, %v1318_v60 }
 0x14c   : > { %v976_v30 = vpop.f32.mrf.mxu0 }
 0x14d   : > { %v1319_v47 = vmax.f32 %v985_v26, 0.0  ;;  %v977_v13 = vadd.f32 %v4882_v31, %v976_v30  ;;  %4272 = vmatprep.mubr.bf16.mxu1 %v2182_v63  ;;  %v2084_v25 = vmul.f32 %v5004_v16, %v1316_v1  ;;  %v5135_v49 = vpop.permute.xlu1 %1805 }
 0x14e   : > { %v4138_v34 = vpop.f32.mrf.mxu0  ;;  %4273 = vmatmul.mubr.bf16.gmra.mxu1 %v2183_v6 }
 0x14f   : > { %v1317_v9 = vmax.f32 %v977_v13, 0.0  ;;  %v2087_v36 = vmul.f32 %v5014_v0, %v1319_v47  ;;  %v998_v20 = vadd.f32 %v4138_v34, %v4882_v31 }
 0x150   : > { %v989_v50 = vpop.f32.mrf.mxu0 }
 0x151   : > { %v2085_v17 = vmul.f32 %v4999_v40, %v1317_v9  ;;  %v990_v42 = vadd.f32 %v4882_v31, %v989_v50  ;;  %v2185_v21 = vpack.c.bf16 %v2087_v36, %v2086_v41  ;;  %v5138_v40 = vpop.permute.xlu0 %1800  ;;  %v1322_v35 = vmax.f32 %v998_v20, 0.0  ;;  %v5144_v56 = vpop.permute.xlu1 %1815  ;;  %v2964_v20 = vld [vmem:[%s5157_s8] sm:$0xff] }
 0x152   : > { %v4139_v53 = vpop.f32.mrf.mxu0 }
 0x153   : > { %v1001_v11 = vadd.f32 %v4139_v53, %v4882_v31  ;;  %v2184_v55 = vpack.c.bf16 %v2085_v17, %v2084_v25  ;;  %v1320_v0 = vmax.f32 %v990_v42, 0.0  ;;  %v2090_v4 = vmul.f32 %v5038_v28, %v1322_v35  ;;  %v2980_v53 = vld [vmem:[%s5157_s8 + $0x80] sm:$0xff]  ;;  %v2981_v35 = vld [vmem:[%s5157_s8 + $0x88] sm:$0xff] }
 0x154   : > { %v992_v24 = vpop.f32.mrf.mxu0 }
 0x155   : > { %v1323_v15 = vmax.f32 %v1001_v11, 0.0  ;;  %v993_v16 = vadd.f32 %v4882_v31, %v992_v24  ;;  %4276 = vmatprep.mubr.bf16.mxu1 %v2184_v55  ;;  %v2088_v3 = vmul.f32 %v5029_v57, %v1320_v0  ;;  %v5149_v26 = vpop.permute.xlu0 %1810  ;;  %v5159_v47 = vpop.permute.xlu1 %1825 }
 0x156   : > { %v4142_v37 = vpop.f32.mrf.mxu0  ;;  %4277 = vmatmul.mubr.bf16.gmra.mxu1 %v2185_v21 }
 0x157   : > { %v1321_v23 = vmax.f32 %v993_v16, 0.0  ;;  %v2091_v18 = vmul.f32 %v5032_v51, %v1323_v15  ;;  %v1014_v54 = vadd.f32 %v4142_v37, %v4882_v31  ;;  %v2965_v16 = vld [vmem:[%s5157_s8 + $0x8] sm:$0xff] }
 0x158   : > { %v1005_v33 = vpop.f32.mrf.mxu0 }
 0x159   : > { %v2089_v22 = vmul.f32 %v5024_v19, %v1321_v23  ;;  %v1006_v12 = vadd.f32 %v4882_v31, %v1005_v33  ;;  %v2187_v63 = vpack.c.bf16 %v2091_v18, %v2090_v4  ;;  %v1326_v6 = vmax.f32 %v1014_v54, 0.0  ;;  %v5164_v36 = vpop.permute.xlu0 %1820 }
 0x15a   : > { %v4143_v2 = vpop.f32.mrf.mxu0  ;;  %v4379_v18 = vpack.i.bf16 %v2981_v35, %v2965_v16 }
 0x15b   : > { %v1017_v46 = vadd.f32 %v4143_v2, %v4882_v31  ;;  %v2186_v27 = vpack.c.bf16 %v2089_v22, %v2088_v3  ;;  %v1324_v57 = vmax.f32 %v1006_v12, 0.0  ;;  %v2094_v50 = vmul.f32 %v5058_v10, %v1326_v6 }
 0x15c   : > { %v1008_v51 = vpop.f32.mrf.mxu0 }
 0x15d   : > { %v1327_v30 = vmax.f32 %v1017_v46, 0.0  ;;  %v1009_v19 = vadd.f32 %v4882_v31, %v1008_v51  ;;  %4280 = vmatprep.mubr.bf16.mxu1 %v2186_v27  ;;  %v2092_v34 = vmul.f32 %v5046_v5, %v1324_v57  ;;  %v4377_v5 = vpack.i.bf16 %v2980_v53, %v2964_v20  ;;  %v5177_v37 = vpop.permute.xlu0 %1830  ;;  %v2966_v27 = vld [vmem:[%s5157_s8 + $0x10] sm:$0xff] }
 0x15e   : > { %v4146_v1 = vpop.f32.mrf.mxu0  ;;  %4281 = vmatmul.mubr.bf16.gmra.mxu1 %v2187_v63  ;;  %v2982_v51 = vld [vmem:[%s5157_s8 + $0x90] sm:$0xff] }
 0x15f   : > { %v1325_v28 = vmax.f32 %v1009_v19, 0.0  ;;  %v2095_v13 = vmul.f32 %v5055_v62, %v1327_v30  ;;  %v1030_v17 = vadd.f32 %v4146_v1, %v4882_v31  ;;  %4378 = vxpose.xlu0.b32.start [1/16] (narrow) %v4377_v5, 8 }
 0x160   : > { %v1021_v60 = vpop.f32.mrf.mxu0 }
 0x161   : > { %v2093_v9 = vmul.f32 %v5044_v58, %v1325_v28  ;;  %v1022_v25 = vadd.f32 %v4882_v31, %v1021_v60  ;;  %v2189_v11 = vpack.c.bf16 %v2095_v13, %v2094_v50  ;;  %v5172_v58 = vpop.permute.xlu1 %1835  ;;  %v1330_v0 = vmax.f32 %v1030_v17, 0.0  ;;  %v5190_v19 = vpop.permute.xlu0 %1840 }
 0x162   : > { %v4147_v42 = vpop.f32.mrf.mxu0 }
 0x163   : > { %v2188_v41 = vpack.c.bf16 %v2093_v9, %v2092_v34  ;;  %v1033_v62 = vadd.f32 %v4147_v42, %v4882_v31  ;;  %v1328_v24 = vmax.f32 %v1022_v25, 0.0  ;;  %4380 = vxpose.xlu0.b32.cont [2/16] (narrow) %v4379_v18, 8  ;;  %v2098_v54 = vmul.f32 %v5078_v43, %v1330_v0  ;;  %v5195_v43 = vld [vmem:[%s5878_s3] ss:$0 sm:$0xff]  ;;  %v2983_v34 = vld [vmem:[%s5157_s8 + $0x98] sm:$0xff]  ;;  %v2969_v18 = vld [vmem:[%s5157_s8 + $0x28] sm:$0xff] }
 0x164   : > { %v1024_v55 = vpop.f32.mrf.mxu0 }
 0x165   : > { %4284 = vmatprep.mubr.bf16.mxu1 %v2188_v41  ;;  %v1331_v10 = vmax.f32 %v1033_v62, 0.0  ;;  %v1025_v21 = vadd.f32 %v4882_v31, %v1024_v55  ;;  %v2096_v22 = vmul.f32 %v5069_v59, %v1328_v24  ;;  %v5187_v63 = vpop.permute.xlu1 %1845  ;;  %v2968_v55 = vld [vmem:[%s5157_s8 + $0x20] sm:$0xff] }
 0x166   : > { %4285 = vmatmul.mubr.bf16.gmra.mxu1 %v2189_v11  ;;  %v4150_v15 = vpop.f32.mrf.mxu0  ;;  %v2984_v24 = vld [vmem:[%s5157_s8 + $0xa0] sm:$0xff] }
 0x167   : > { %v1329_v23 = vmax.f32 %v1025_v21, 0.0  ;;  %v2099_v33 = vmul.f32 %v5072_v48, %v1331_v10  ;;  %v1046_v2 = vadd.f32 %v4150_v15, %v4882_v31 }
 0x168   : > { %v1037_v3 = vpop.f32.mrf.mxu0 }
 0x169   : > { %v2097_v12 = vmul.f32 %v5064_v39, %v1329_v23  ;;  %v1038_v4 = vadd.f32 %v4882_v31, %v1037_v3  ;;  %v2191_v30 = vpack.c.bf16 %v2099_v33, %v2098_v54  ;;  %v4381_v39 = vpack.i.bf16 %v2982_v51, %v2966_v27  ;;  %v5201_v42 = vpop.permute.xlu1 %1855  ;;  %v2985_v33 = vld [vmem:[%s5157_s8 + $0xa8] sm:$0xff] }
 0x16a   : > { %v4151_v46 = vpop.f32.mrf.mxu0  ;;  %v1334_v13 = vmax.f32 %v1046_v2, 0.0 }
 0x16b   : > { %v1049_v48 = vadd.f32 %v4151_v46, %v4882_v31  ;;  %v2190_v57 = vpack.c.bf16 %v2097_v12, %v2096_v22  ;;  %v1332_v6 = vmax.f32 %v1038_v4, 0.0  ;;  %4382 = vxpose.xlu0.b32.cont [3/16] (narrow) %v4381_v39, 8  ;;  %v2967_v31 = vld [vmem:[%s5157_s8 + $0x18] sm:$0xff]  ;;  %v4387_v12 = vpack.i.bf16 %v2985_v33, %v2969_v18  ;;  %v2986_v39 = vld [vmem:[%s5157_s8 + $0xb0] sm:$0xff] }
 0x16c   : > { %v1040_v59 = vpop.f32.mrf.mxu0  ;;  %v4383_v50 = vpack.i.bf16 %v2983_v34, %v2967_v31  ;;  %v2102_v62 = vmul.f32 %v5098_v14, %v1334_v13 }
 0x16d   : > { %v1335_v1 = vmax.f32 %v1049_v48, 0.0  ;;  %v1041_v28 = vadd.f32 %v5195_v43, %v1040_v59  ;;  %4288 = vmatprep.mubr.bf16.mxu1 %v2190_v57  ;;  %v2100_v41 = vmul.f32 %v5086_v32, %v1332_v6  ;;  %v5216_v3 = vpop.permute.xlu1 %1865 }
 0x16e   : > { %v4154_v60 = vpop.f32.mrf.mxu0  ;;  %4289 = vmatmul.mubr.bf16.gmra.mxu1 %v2191_v30  ;;  %v2970_v30 = vld [vmem:[%s5157_s8 + $0x30] sm:$0xff] }
 0x16f   : > { %v1333_v9 = vmax.f32 %v1041_v28, 0.0  ;;  %v2103_v25 = vmul.f32 %v5095_v29, %v1335_v1  ;;  %v1062_v11 = vadd.f32 %v5195_v43, %v4154_v60  ;;  %4384 = vxpose.xlu0.b32.cont [4/16] (narrow) %v4383_v50, 8  ;;  %v5210_v29 = vpop.permute.xlu0 %1850  ;;  %v2987_v50 = vld [vmem:[%s5157_s8 + $0xb8] sm:$0xff] }
 0x170   : > { %v1053_v17 = vpop.f32.mrf.mxu0 }
 0x171   : > { %v2101_v20 = vmul.f32 %v5084_v38, %v1333_v9  ;;  %v1054_v53 = vadd.f32 %v5195_v43, %v1053_v17  ;;  %v2193_v0 = vpack.c.bf16 %v2103_v25, %v2102_v62  ;;  %v4385_v38 = vpack.i.bf16 %v2984_v24, %v2968_v55  ;;  %v5229_v13 = vpop.permute.xlu1 %1875  ;;  %v2971_v9 = vld [vmem:[%s5157_s8 + $0x38] sm:$0xff] }
 0x172   : > { %v4155_v5 = vpop.f32.mrf.mxu0  ;;  %v1338_v35 = vmax.f32 %v1062_v11, 0.0 }
 0x173   : > { %v1065_v10 = vadd.f32 %v5195_v43, %v4155_v5  ;;  %v2192_v21 = vpack.c.bf16 %v2101_v20, %v2100_v41  ;;  %v1336_v15 = vmax.f32 %v1054_v53, 0.0  ;;  %4386 = vxpose.xlu0.b32.cont [5/16] (narrow) %v4385_v38, 8  ;;  %v5219_v2 = vpop.permute.xlu0 %1860  ;;  %v4391_v41 = vpack.i.bf16 %v2987_v50, %v2971_v9  ;;  %v2998_v50 = vld [vmem:[%s5157_s8 + $0x110] sm:$0xff] }
 0x174   : > { %v1056_v32 = vpop.f32.mrf.mxu0  ;;  %v2106_v48 = vmul.f32 %v5118_v44, %v1338_v35 }
 0x175   : > { %v1339_v16 = vmax.f32 %v1065_v10, 0.0  ;;  %v1057_v14 = vadd.f32 %v5195_v43, %v1056_v32  ;;  %4292 = vmatprep.mubr.bf16.mxu1 %v2192_v21  ;;  %v2104_v46 = vmul.f32 %v5109_v45, %v1336_v15  ;;  %v4389_v45 = vpack.i.bf16 %v2986_v39, %v2970_v30  ;;  %v2972_v21 = vld [vmem:[%s5157_s8 + $0x40] sm:$0xff] }
 0x176   : > { %v4158_v23 = vpop.f32.mrf.mxu0  ;;  %4293 = vmatmul.mubr.bf16.gmra.mxu1 %v2193_v0  ;;  %v2988_v32 = vld [vmem:[%s5157_s8 + $0xc0] sm:$0xff]  ;;  %v5244_v0 = vpop.permute.xlu1 %1885 }
 0x177   : > { %v1337_v22 = vmax.f32 %v1057_v14, 0.0  ;;  %v2107_v4 = vmul.f32 %v5112_v7, %v1339_v16  ;;  %v1078_v57 = vadd.f32 %v5195_v43, %v4158_v23  ;;  %4388 = vxpose.xlu0.b32.cont [6/16] (narrow) %v4387_v12, 8  ;;  %v5234_v25 = vpop.permute.xlu0 %1870  ;;  %v2996_v16 = vld [vmem:[%s5157_s8 + $0x100] sm:$0xff] }
 0x178   : > { %v1069_v54 = vpop.f32.mrf.mxu0  ;;  %v3012_v14 = vld [vmem:[%s5157_s8 + $0x180] sm:$0xff] }
 0x179   : > { %v2105_v27 = vmul.f32 %v5104_v52, %v1337_v22  ;;  %v1070_v51 = vadd.f32 %v5195_v43, %v1069_v54  ;;  %v2195_v28 = vpack.c.bf16 %v2107_v4, %v2106_v48  ;;  %v1342_v31 = vmax.f32 %v1078_v57, 0.0  ;;  %v2973_v4 = vld [vmem:[%s5157_s8 + $0x48] sm:$0xff] }
 0x17a   : > { %v4159_v59 = vpop.f32.mrf.mxu0  ;;  %v4414_v33 = vpack.i.bf16 %v2996_v16, %v3012_v14  ;;  %v2989_v54 = vld [vmem:[%s5157_s8 + $0xc8] sm:$0xff]  ;;  %v5257_v30 = vpop.permute.xlu1 %1895 }
 0x17b   : > { %v1081_v7 = vadd.f32 %v5195_v43, %v4159_v59  ;;  %v2194_v6 = vpack.c.bf16 %v2105_v27, %v2104_v46  ;;  %v1340_v52 = vmax.f32 %v1070_v51, 0.0  ;;  %4390 = vxpose.xlu0.b32.cont [7/16] (narrow) %v4389_v45, 8  ;;  %v2110_v55 = vmul.f32 %v5138_v40, %v1342_v31  ;;  %v5249_v35 = vpop.permute.xlu0 %1880  ;;  %v2997_v57 = vld [vmem:[%s5157_s8 + $0x108] sm:$0xff] }
 0x17c   : > { %v1072_v1 = vpop.f32.mrf.mxu0  ;;  %v4395_v27 = vpack.i.bf16 %v2989_v54, %v2973_v4  ;;  %4415 = vxpose.xlu1.b32.start [1/16] (narrow) %v4414_v33, 8  ;;  %v3013_v59 = vld [vmem:[%s5157_s8 + $0x188] sm:$0xff]  ;;  %v2992_v33 = vld [vmem:[%s5157_s8 + $0xe0] sm:$0xff] }
 0x17d   : > { %v1343_v60 = vmax.f32 %v1081_v7, 0.0  ;;  %v1073_v44 = vadd.f32 %v5195_v43, %v1072_v1  ;;  %4296 = vmatprep.mubr.bf16.mxu1 %v2194_v6  ;;  %v2108_v62 = vmul.f32 %v5126_v61, %v1340_v52  ;;  %v2990_v52 = vld [vmem:[%s5157_s8 + $0xd0] sm:$0xff] }
 0x17e   : > { %v4162_v34 = vpop.f32.mrf.mxu0  ;;  %4297 = vmatmul.mubr.bf16.gmra.mxu1 %v2195_v28 }
 0x17f   : > { %v1341_v17 = vmax.f32 %v1073_v44, 0.0  ;;  %v2111_v20 = vmul.f32 %v5135_v49, %v1343_v60  ;;  %v1094_v24 = vadd.f32 %v5195_v43, %v4162_v34  ;;  %4392 = vxpose.xlu0.b32.cont [8/16] (narrow) %v4391_v41, 8  ;;  %v4416_v60 = vpack.i.bf16 %v2997_v57, %v3013_v59  ;;  %v5266_v44 = vpop.permute.xlu0 %1890 }
 0x180   : > { %v1085_v53 = vpop.f32.mrf.mxu0 }
 0x181   : > { %v2109_v11 = vmul.f32 %v5124_v8, %v1341_v17  ;;  %v1086_v5 = vadd.f32 %v5195_v43, %v1085_v53  ;;  %v2197_v15 = vpack.c.bf16 %v2111_v20, %v2110_v55  ;;  %v4393_v8 = vpack.i.bf16 %v2988_v32, %v2972_v21  ;;  %4417 = vxpose.xlu1.b32.cont [2/16] (narrow) %v4416_v60, 8  ;;  %v2991_v55 = vld [vmem:[%s5157_s8 + $0xd8] sm:$0xff] }
 0x182   : > { %v4163_v10 = vpop.f32.mrf.mxu0  ;;  %v1346_v22 = vmax.f32 %v1094_v24, 0.0  ;;  %v5274_v24 = vpop.permute.xlu1 %1905 }
 0x183   : > { %v1097_v49 = vadd.f32 %v5195_v43, %v4163_v10  ;;  %v2196_v38 = vpack.c.bf16 %v2109_v11, %v2108_v62  ;;  %v1344_v40 = vmax.f32 %v1086_v5, 0.0  ;;  %4394 = vxpose.xlu0.b32.cont [9/16] (narrow) %v4393_v8, 8  ;;  %v2975_v5 = vld [vmem:[%s5157_s8 + $0x58] sm:$0xff] }
 0x184   : > { %v1088_v61 = vpop.f32.mrf.mxu0  ;;  %v2114_v1 = vmul.f32 %v5164_v36, %v1346_v22  ;;  %v3014_v36 = vld [vmem:[%s5157_s8 + $0x190] sm:$0xff]  ;;  %v4399_v21 = vpack.i.bf16 %v2991_v55, %v2975_v5 }
 0x185   : > { %v1347_v23 = vmax.f32 %v1097_v49, 0.0  ;;  %v1089_v18 = vadd.f32 %v5195_v43, %v1088_v61  ;;  %4300 = vmatprep.mubr.bf16.mxu1 %v2196_v38  ;;  %v2112_v39 = vmul.f32 %v5149_v26, %v1344_v40  ;;  %v4418_v53 = vpack.i.bf16 %v2998_v50, %v3014_v36  ;;  %v2999_v38 = vld [vmem:[%s5157_s8 + $0x118] sm:$0xff]  ;;  %v3002_v55 = vld [vmem:[%s5157_s8 + $0x130] sm:$0xff] }
 0x186   : > { %v4166_v12 = vpop.f32.mrf.mxu0  ;;  %4301 = vmatmul.mubr.bf16.gmra.mxu1 %v2197_v15  ;;  %v3015_v61 = vld [vmem:[%s5157_s8 + $0x198] sm:$0xff]  ;;  %v5279_v15 = vpop.permute.xlu0 %1900 }
 0x187   : > { %v1345_v46 = vmax.f32 %v1089_v18, 0.0  ;;  %v2115_v51 = vmul.f32 %v5159_v47, %v1347_v23  ;;  %v1110_v28 = vadd.f32 %v5195_v43, %v4166_v12  ;;  %4396 = vxpose.xlu0.b32.cont [10/16] (narrow) %v4395_v27, 8  ;;  %v2974_v47 = vld [vmem:[%s5157_s8 + $0x50] sm:$0xff]  ;;  %4419 = vxpose.xlu1.b32.cont [3/16] (narrow) %v4418_v53, 8  ;;  %v4420_v22 = vpack.i.bf16 %v2999_v38, %v3015_v61  ;;  %v3016_v27 = vld [vmem:[%s5157_s8 + $0x1a0] sm:$0xff] }
 0x188   : > { %v1101_v48 = vpop.f32.mrf.mxu0  ;;  %v4397_v9 = vpack.i.bf16 %v2990_v52, %v2974_v47 }
 0x189   : > { %v2113_v7 = vmul.f32 %v5144_v56, %v1345_v46  ;;  %v1102_v6 = vadd.f32 %v5195_v43, %v1101_v48  ;;  %v2199_v34 = vpack.c.bf16 %v2115_v51, %v2114_v1  ;;  %v1350_v62 = vmax.f32 %v1110_v28, 0.0  ;;  %v3000_v46 = vld [vmem:[%s5157_s8 + $0x120] sm:$0xff]  ;;  %v5291_v51 = vpop.permute.xlu1 %1915  ;;  %v2993_v1 = vld [vmem:[%s5157_s8 + $0xe8] sm:$0xff] }
 0x18a   : > { %v4167_v45 = vpop.f32.mrf.mxu0  ;;  %v4422_v59 = vpack.i.bf16 %v3000_v46, %v3016_v27  ;;  %v5296_v28 = vpop.permute.xlu0 %1910 }
 0x18b   : > { %v1113_v31 = vadd.f32 %v5195_v43, %v4167_v45  ;;  %v2198_v26 = vpack.c.bf16 %v2113_v7, %v2112_v39  ;;  %v1348_v17 = vmax.f32 %v1102_v6, 0.0  ;;  %4398 = vxpose.xlu0.b32.cont [11/16] (narrow) %v4397_v9, 8  ;;  %v2118_v40 = vmul.f32 %v5190_v19, %v1350_v62  ;;  %4421 = vxpose.xlu1.b32.cont [4/16] (narrow) %v4420_v22, 8  ;;  %v2977_v6 = vld [vmem:[%s5157_s8 + $0x68] sm:$0xff]  ;;  %v3019_v22 = vld [vmem:[%s5157_s8 + $0x1b8] sm:$0xff] }
 0x18c   : > { %v1104_v56 = vpop.f32.mrf.mxu0  ;;  %v4403_v47 = vpack.i.bf16 %v2993_v1, %v2977_v6  ;;  %v3020_v6 = vld [vmem:[%s5157_s8 + $0x1c0] sm:$0xff] }
 0x18d   : > { %v1351_v41 = vmax.f32 %v1113_v31, 0.0  ;;  %v1105_v20 = vadd.f32 %v5195_v43, %v1104_v56  ;;  %4304 = vmatprep.mubr.bf16.mxu1 %v2198_v26  ;;  %v2116_v8 = vmul.f32 %v5177_v37, %v1348_v17  ;;  %v3001_v31 = vld [vmem:[%s5157_s8 + $0x128] sm:$0xff]  ;;  %v5308_v53 = vpop.permute.xlu1 %1925 }
 0x18e   : > { %v4170_v11 = vpop.f32.mrf.mxu0  ;;  %4305 = vmatmul.mubr.bf16.gmra.mxu1 %v2199_v34  ;;  %v3017_v26 = vld [vmem:[%s5157_s8 + $0x1a8] sm:$0xff] }
 0x18f   : > { %v1349_v10 = vmax.f32 %v1105_v20, 0.0  ;;  %v2119_v32 = vmul.f32 %v5187_v63, %v1351_v41  ;;  %v1126_v23 = vadd.f32 %v5195_v43, %v4170_v11  ;;  %4400 = vxpose.xlu0.b32.cont [12/16] (narrow) %v4399_v21, 8  ;;  %v2976_v63 = vld [vmem:[%s5157_s8 + $0x60] sm:$0xff]  ;;  %4423 = vxpose.xlu1.b32.cont [5/16] (narrow) %v4422_v59, 8  ;;  %v2978_v41 = vld [vmem:[%s5157_s8 + $0x70] sm:$0xff]  ;;  %v4424_v20 = vpack.i.bf16 %v3001_v31, %v3017_v26 }
 0x190   : > { %v1117_v49 = vpop.f32.mrf.mxu0 }
 0x191   : > { %v2117_v16 = vmul.f32 %v5172_v58, %v1349_v10  ;;  %v1118_v14 = vadd.f32 %v5195_v43, %v1117_v49  ;;  %v2201_v37 = vpack.c.bf16 %v2119_v32, %v2118_v40  ;;  %v4401_v58 = vpack.i.bf16 %v2992_v33, %v2976_v63  ;;  %v5313_v10 = vpop.permute.xlu0 %1920  ;;  %v3003_v33 = vld [vmem:[%s5157_s8 + $0x138] sm:$0xff] }
 0x192   : > { %v4171_v18 = vpop.f32.mrf.mxu0  ;;  %v1354_v39 = vmax.f32 %v1126_v23, 0.0 }
 0x193   : > { %v1129_v12 = vadd.f32 %v5195_v43, %v4171_v18  ;;  %v2200_v4 = vpack.c.bf16 %v2117_v16, %v2116_v8  ;;  %v1352_v19 = vmax.f32 %v1118_v14, 0.0  ;;  %4402 = vxpose.xlu0.b32.cont [13/16] (narrow) %v4401_v58, 8  ;;  %4425 = vxpose.xlu1.b32.cont [6/16] (narrow) %v4424_v20, 8  ;;  %v2979_v16 = vld [vmem:[%s5157_s8 + $0x78] sm:$0xff]  ;;  %v3005_v20 = vld [vmem:[%s5157_s8 + $0x148] sm:$0xff] }
 0x194   : > { %v1120_v54 = vpop.f32.mrf.mxu0  ;;  %v2122_v50 = vmul.f32 %v5219_v2, %v1354_v39  ;;  %v3018_v2 = vld [vmem:[%s5157_s8 + $0x1b0] sm:$0xff]  ;;  %v2995_v14 = vld [vmem:[%s5157_s8 + $0xf8] sm:$0xff] }
 0x195   : > { %v1355_v48 = vmax.f32 %v1129_v12, 0.0  ;;  %v1121_v57 = vadd.f32 %v5195_v43, %v1120_v54  ;;  %4308 = vmatprep.mubr.bf16.mxu1 %v2200_v4  ;;  %v2120_v56 = vmul.f32 %v5210_v29, %v1352_v19  ;;  %v4426_v38 = vpack.i.bf16 %v3002_v55, %v3018_v2  ;;  %v5321_v12 = vpop.permute.xlu1 %1935  ;;  %v3028_v19 = vld [vmem:[%s5157_s8 + $0x200] sm:$0xff] }
 0x196   : > { %v4174_v7 = vpop.f32.mrf.mxu0  ;;  %4309 = vmatmul.mubr.bf16.gmra.mxu1 %v2201_v37  ;;  %v4407_v23 = vpack.i.bf16 %v2995_v14, %v2979_v16  ;;  %v3006_v14 = vld [vmem:[%s5157_s8 + $0x150] sm:$0xff] }
 0x197   : > { %v1353_v45 = vmax.f32 %v1121_v57, 0.0  ;;  %v2123_v52 = vmul.f32 %v5216_v3, %v1355_v48  ;;  %v1142_v36 = vadd.f32 %v5195_v43, %v4174_v7  ;;  %4404 = vxpose.xlu0.b32.cont [14/16] (narrow) %v4403_v47, 8  ;;  %v2994_v3 = vld [vmem:[%s5157_s8 + $0xf0] sm:$0xff]  ;;  %4427 = vxpose.xlu1.b32.cont [7/16] (narrow) %v4426_v38, 8  ;;  %v3044_v48 = vld [vmem:[%s5157_s8 + $0x280] sm:$0xff]  ;;  %v5330_v57 = vpop.permute.xlu0 %1930 }
 0x198   : > { %v1133_v60 = vpop.f32.mrf.mxu0  ;;  %v4405_v5 = vpack.i.bf16 %v2994_v3, %v2978_v41  ;;  %v3004_v7 = vld [vmem:[%s5157_s8 + $0x140] sm:$0xff]  ;;  %v3046_v38 = vld [vmem:[%s5157_s8 + $0x290] sm:$0xff] }
 0x199   : > { %v2121_v34 = vmul.f32 %v5201_v42, %v1353_v45  ;;  %v1134_v9 = vadd.f32 %v5195_v43, %v1133_v60  ;;  %v2203_v42 = vpack.c.bf16 %v2123_v52, %v2122_v50  ;;  %v1358_v61 = vmax.f32 %v1142_v36, 0.0 }
 0x19a   : > { %v4175_v17 = vpop.f32.mrf.mxu0  ;;  %v4430_v60 = vpack.i.bf16 %v3004_v7, %v3020_v6 }
 0x19b   : > { %v1145_v62 = vadd.f32 %v5195_v43, %v4175_v17  ;;  %v2202_v29 = vpack.c.bf16 %v2121_v34, %v2120_v56  ;;  %v1356_v21 = vmax.f32 %v1134_v9, 0.0  ;;  %4406 = vxpose.xlu0.b32.cont [15/16] (narrow) %v4405_v5, 8  ;;  %v2126_v58 = vmul.f32 %v5249_v35, %v1358_v61  ;;  %v3029_v56 = vld [vmem:[%s5157_s8 + $0x208] sm:$0xff]  ;;  %v5340_v9 = vpop.permute.xlu1 %1945 }
 0x19c   : > { %v1136_v11 = vpop.f32.mrf.mxu0  ;;  %v4451_v35 = vpack.i.bf16 %v3028_v19, %v3044_v48  ;;  %v3045_v34 = vld [vmem:[%s5157_s8 + $0x288] sm:$0xff] }
 0x19d   : > { %v1359_v32 = vmax.f32 %v1145_v62, 0.0  ;;  %v1137_v49 = vadd.f32 %v5195_v43, %v1136_v11  ;;  %4312 = vmatprep.mubr.bf16.mxu1 %v2202_v29  ;;  %v2124_v4 = vmul.f32 %v5234_v25, %v1356_v21  ;;  %v4453_v17 = vpack.i.bf16 %v3029_v56, %v3045_v34  ;;  %v3021_v62 = vld [vmem:[%s5157_s8 + $0x1c8] sm:$0xff]  ;;  %v5347_v29 = vpop.permute.xlu0 %1940 }
 0x19e   : > { %v4178_v8 = vpop.f32.mrf.mxu0  ;;  %4313 = vmatmul.mubr.bf16.gmra.mxu1 %v2203_v42 }
 0x19f   : > { %v1357_v40 = vmax.f32 %v1137_v49, 0.0  ;;  %v2127_v18 = vmul.f32 %v5244_v0, %v1359_v32  ;;  %v1158_v46 = vadd.f32 %v5195_v43, %v4178_v8  ;;  %4408 = vxpose.xlu0.b32.end [16/16] (narrow) %v4407_v23, 8  ;;  %v4428_v0 = vpack.i.bf16 %v3003_v33, %v3019_v22  ;;  %v3030_v49 = vld [vmem:[%s5157_s8 + $0x210] sm:$0xff]  ;;  %v5363_v23 = vpop.permute.xlu1 %1955 }
 0x1a0   : > { %v1149_v63 = vpop.f32.mrf.mxu0  ;;  %v4432_v32 = vpack.i.bf16 %v3005_v20, %v3021_v62 }
 0x1a1   : > { %v2125_v54 = vmul.f32 %v5229_v13, %v1357_v40  ;;  %v1150_v37 = vadd.f32 %v5195_v43, %v1149_v63  ;;  %v2205_v13 = vpack.c.bf16 %v2127_v18, %v2126_v58  ;;  %4429 = vxpose.xlu1.b32.cont [8/16] (narrow) %v4428_v0, 8  ;;  %v1362_v31 = vmax.f32 %v1158_v46, 0.0  ;;  %v3022_v40 = vld [vmem:[%s5157_s8 + $0x1d0] sm:$0xff]  ;;  %v3031_v58 = vld [vmem:[%s5157_s8 + $0x218] sm:$0xff] }
 0x1a2   : > { %v4179_v27 = vpop.f32.mrf.mxu0  ;;  %v3047_v46 = vld [vmem:[%s5157_s8 + $0x298] sm:$0xff] }
 0x1a3   : > { %v1161_v59 = vadd.f32 %v5195_v43, %v4179_v27  ;;  %v2204_v25 = vpack.c.bf16 %v2125_v54, %v2124_v4  ;;  %v1360_v1 = vmax.f32 %v1150_v37, 0.0  ;;  %4452 = vxpose.xlu0.b32.start [1/16] (narrow) %v4451_v35, 8  ;;  %v2130_v2 = vmul.f32 %v5279_v15, %v1362_v31  ;;  %v5370_v27 = vpop.permute.xlu0 %1950  ;;  %v3032_v31 = vld [vmem:[%s5157_s8 + $0x220] sm:$0xff]  ;;  %v5386_v56 = vpop.permute.xlu1 %1965 }
 0x1a4   : > { %v1152_v39 = vpop.f32.mrf.mxu0  ;;  %v4455_v15 = vpack.i.bf16 %v3030_v49, %v3046_v38  ;;  %v4434_v4 = vpack.i.bf16 %v3006_v14, %v3022_v40  ;;  %v4457_v48 = vpack.i.bf16 %v3031_v58, %v3047_v46  ;;  %v3049_v49 = vld [vmem:[%s5157_s8 + $0x2a8] sm:$0xff]  ;;  %v3034_v46 = vld [vmem:[%s5157_s8 + $0x230] sm:$0xff] }
 0x1a5   : > { %v1363_v45 = vmax.f32 %v1161_v59, 0.0  ;;  %v1153_v47 = vadd.f32 %v5195_v43, %v1152_v39  ;;  %4316 = vmatprep.mubr.bf16.mxu1 %v2204_v25  ;;  %4431 = vxpose.xlu1.b32.cont [9/16] (narrow) %v4430_v60, 8  ;;  %v2128_v11 = vmul.f32 %v5266_v44, %v1360_v1  ;;  %v3007_v39 = vld [vmem:[%s5157_s8 + $0x158] sm:$0xff]  ;;  %v3009_v14 = vld [vmem:[%s5157_s8 + $0x168] sm:$0xff] }
 0x1a6   : > { %v5336_v52 = vpop.f32.mrf.mxu1  ;;  %v4182_v26 = vpop.f32.mrf.mxu0  ;;  %4317 = vmatmul.mubr.bf16.gmra.mxu1 %v2205_v13  ;;  %v3023_v13 = vld [vmem:[%s5157_s8 + $0x1d8] sm:$0xff]  ;;  %v3025_v40 = vld [vmem:[%s5157_s8 + $0x1e8] sm:$0xff] }
 0x1a7   : > { %v1361_v50 = vmax.f32 %v1153_v47, 0.0  ;;  %v2131_v41 = vmul.f32 %v5274_v24, %v1363_v45  ;;  %v1174_v24 = vadd.f32 %v5195_v43, %v4182_v26  ;;  %4454 = vxpose.xlu0.b32.cont [2/16] (narrow) %v4453_v17, 8  ;;  %v3048_v26 = vld [vmem:[%s5157_s8 + $0x2a0] sm:$0xff]  ;;  %v5393_v20 = vpop.permute.xlu0 %1960  ;;  %v4440_v58 = vpack.i.bf16 %v3009_v14, %v3025_v40 }
 0x1a8   : > { %v5342_v36 = vpop.f32.mrf.mxu1  ;;  %v1165_v3 = vpop.f32.mrf.mxu0 }
 0x1a9   : > { %v2129_v42 = vmul.f32 %v5257_v30, %v1361_v50  ;;  %v1166_v5 = vadd.f32 %v5195_v43, %v1165_v3  ;;  %v2207_v16 = vpack.c.bf16 %v2131_v41, %v2130_v2  ;;  %4433 = vxpose.xlu1.b32.cont [10/16] (narrow) %v4432_v32, 8  ;;  %v1366_v54 = vmax.f32 %v1174_v24, 0.0  ;;  %v3024_v41 = vld [vmem:[%s5157_s8 + $0x1e0] sm:$0xff]  ;;  %v3033_v32 = vld [vmem:[%s5157_s8 + $0x228] sm:$0xff] }
 0x1aa   : > { %v5352_v55 = vpop.f32.mrf.mxu1  ;;  %v4183_v21 = vpop.f32.mrf.mxu0  ;;  %v4459_v3 = vpack.i.bf16 %v3032_v31, %v3048_v26  ;;  %v3035_v26 = vld [vmem:[%s5157_s8 + $0x238] sm:$0xff] }
 0x1ab   : > { %v1177_v61 = vadd.f32 %v5195_v43, %v4183_v21  ;;  %v2206_v30 = vpack.c.bf16 %v2129_v42, %v2128_v11  ;;  %v1364_v18 = vmax.f32 %v1166_v5, 0.0  ;;  %4456 = vxpose.xlu0.b32.cont [3/16] (narrow) %v4455_v15, 8  ;;  %v2134_v45 = vmul.f32 %v5313_v10, %v1366_v54  ;;  %v3008_v10 = vld [vmem:[%s5157_s8 + $0x160] sm:$0xff]  ;;  %v5405_v15 = vpop.permute.xlu1 %1975 }
 0x1ac   : > { %v5359_v44 = vpop.f32.mrf.mxu1  ;;  %v1168_v8 = vpop.f32.mrf.mxu0  ;;  %v4438_v2 = vpack.i.bf16 %v3008_v10, %v3024_v41 }
 0x1ad   : > { %v1367_v63 = vmax.f32 %v1177_v61, 0.0  ;;  %v1169_v33 = vadd.f32 %v5195_v43, %v1168_v8  ;;  %4320 = vmatprep.mubr.bf16.mxu1 %v2206_v30  ;;  %4435 = vxpose.xlu1.b32.cont [11/16] (narrow) %v4434_v4, 8  ;;  %v2132_v7 = vmul.f32 %v5296_v28, %v1364_v18  ;;  %v4461_v30 = vpack.i.bf16 %v3033_v32, %v3049_v49 }
 0x1ae   : > { %v5366_v22 = vpop.f32.mrf.mxu1  ;;  %v4186_v37 = vpop.f32.mrf.mxu0  ;;  %4321 = vmatmul.mubr.bf16.gmra.mxu1 %v2207_v16 }
 0x1af   : > { %v1365_v0 = vmax.f32 %v1169_v33, 0.0  ;;  %v2135_v59 = vmul.f32 %v5308_v53, %v1367_v63  ;;  %v1190_v47 = vadd.f32 %v5195_v43, %v4186_v37  ;;  %v4436_v53 = vpack.i.bf16 %v3007_v39, %v3023_v13  ;;  %4458 = vxpose.xlu0.b32.cont [4/16] (narrow) %v4457_v48, 8  ;;  %v5416_v48 = vpop.permute.xlu0 %1970  ;;  %v3026_v13 = vld [vmem:[%s5157_s8 + $0x1f0] sm:$0xff] }
 0x1b0   : > { %v5372_v19 = vpop.f32.mrf.mxu1  ;;  %v1181_v25 = vpop.f32.mrf.mxu0 }
 0x1b1   : > { %v2133_v6 = vmul.f32 %v5291_v51, %v1365_v0  ;;  %v1182_v35 = vadd.f32 %v5195_v43, %v1181_v25  ;;  %v2209_v17 = vpack.c.bf16 %v2135_v59, %v2134_v45  ;;  %4437 = vxpose.xlu1.b32.cont [12/16] (narrow) %v4436_v53, 8  ;;  %v1370_v24 = vmax.f32 %v1190_v47, 0.0  ;;  %v3050_v0 = vld [vmem:[%s5157_s8 + $0x2b0] sm:$0xff] }
 0x1b2   : > { %v5380_v1 = vpop.f32.mrf.mxu1  ;;  %v4187_v60 = vpop.f32.mrf.mxu0 }
 0x1b3   : > { %v1193_v28 = vadd.f32 %v5195_v43, %v4187_v60  ;;  %v2208_v34 = vpack.c.bf16 %v2133_v6, %v2132_v7  ;;  %v1368_v62 = vmax.f32 %v1182_v35, 0.0  ;;  %4460 = vxpose.xlu0.b32.cont [5/16] (narrow) %v4459_v3, 8  ;;  %v2138_v54 = vmul.f32 %v5347_v29, %v1370_v24  ;;  %v3010_v29 = vld [vmem:[%s5157_s8 + $0x170] sm:$0xff] }
 0x1b4   : > { %v5389_v51 = vpop.f32.mrf.mxu1  ;;  %v1184_v50 = vpop.f32.mrf.mxu0  ;;  %v4463_v7 = vpack.i.bf16 %v3034_v46, %v3050_v0  ;;  %v4442_v60 = vpack.i.bf16 %v3010_v29, %v3026_v13 }
 0x1b5   : > { %v1371_v11 = vmax.f32 %v1193_v28, 0.0  ;;  %v1185_v42 = vadd.f32 %v5195_v43, %v1184_v50  ;;  %4324 = vmatprep.mubr.bf16.mxu1 %v2208_v34  ;;  %4439 = vxpose.xlu1.b32.cont [13/16] (narrow) %v4438_v2, 8  ;;  %v2136_v18 = vmul.f32 %v5330_v57, %v1368_v62  ;;  %v3051_v28 = vld [vmem:[%s5157_s8 + $0x2b8] sm:$0xff]  ;;  %v1986_v34 = vpop.permute.xlu1 %1985 }
 0x1b6   : > { %v5396_v5 = vpop.f32.mrf.mxu1  ;;  %v4190_v21 = vpop.f32.mrf.mxu0  ;;  %4325 = vmatmul.mubr.bf16.gmra.mxu1 %v2209_v17  ;;  %v4465_v10 = vpack.i.bf16 %v3035_v26, %v3051_v28  ;;  %v3011_v62 = vld [vmem:[%s5157_s8 + $0x178] sm:$0xff] }
 0x1b7   : > { %v1369_v38 = vmax.f32 %v1185_v42, 0.0  ;;  %v2139_v8 = vmul.f32 %v5340_v9, %v1371_v11  ;;  %v1206_v9 = vadd.f32 %v5195_v43, %v4190_v21  ;;  %4462 = vxpose.xlu0.b32.cont [6/16] (narrow) %v4461_v30, 8  ;;  %v3027_v11 = vld [vmem:[%s5157_s8 + $0x1f8] sm:$0xff]  ;;  %v1981_v42 = vpop.permute.xlu0 %1980 }
 0x1b8   : > { %v5400_v61 = vpop.f32.mrf.mxu1  ;;  %v1197_v16 = vpop.f32.mrf.mxu0  ;;  %v4444_v30 = vpack.i.bf16 %v3011_v62, %v3027_v11  ;;  %v3054_v11 = vld [vmem:[%s5157_s8 + $0x2d0] sm:$0xff] }
 0x1b9   : > { %v2137_v63 = vmul.f32 %v5321_v12, %v1369_v38  ;;  %v1198_v33 = vadd.f32 %v5195_v43, %v1197_v16  ;;  %v2211_v39 = vpack.c.bf16 %v2139_v8, %v2138_v54  ;;  %4441 = vxpose.xlu1.b32.cont [14/16] (narrow) %v4440_v58, 8  ;;  %v1374_v53 = vmax.f32 %v1206_v9, 0.0  ;;  %v3036_v8 = vld [vmem:[%s5157_s8 + $0x240] sm:$0xff]  ;;  %v5447_v54 = vpop.permute.xlu1 %1995 }
 0x1ba   : > { %v5410_v4 = vpop.f32.mrf.mxu1  ;;  %v4191_v37 = vpop.f32.mrf.mxu0  ;;  %v3052_v16 = vld [vmem:[%s5157_s8 + $0x2c0] sm:$0xff] }
 0x1bb   : > { %v1209_v57 = vadd.f32 %v5195_v43, %v4191_v37  ;;  %v2210_v59 = vpack.c.bf16 %v2137_v63, %v2136_v18  ;;  %v1372_v6 = vmax.f32 %v1198_v33, 0.0  ;;  %4464 = vxpose.xlu0.b32.cont [7/16] (narrow) %v4463_v7, 8  ;;  %v2142_v49 = vmul.f32 %v5393_v20, %v1374_v53  ;;  %v3060_v63 = vld [vmem:[%s5157_s8 + $0x300] sm:$0xff]  ;;  %v1991_v29 = vpop.permute.xlu0 %1990  ;;  %v3077_v53 = vld [vmem:[%s5157_s8 + $0x388] sm:$0xff] }
 0x1bc   : > { %v5419_v12 = vpop.f32.mrf.mxu1  ;;  %v1200_v25 = vpop.f32.mrf.mxu0  ;;  %v3076_v33 = vld [vmem:[%s5157_s8 + $0x380] sm:$0xff]  ;;  %v4467_v20 = vpack.i.bf16 %v3036_v8, %v3052_v16 }
 0x1bd   : > { %v1375_v35 = vmax.f32 %v1209_v57, 0.0  ;;  %v1201_v45 = vadd.f32 %v5195_v43, %v1200_v25  ;;  %4328 = vmatprep.mubr.bf16.mxu1 %v2210_v59  ;;  %4443 = vxpose.xlu1.b32.cont [15/16] (narrow) %v4442_v60, 8  ;;  %v2140_v2 = vmul.f32 %v5370_v27, %v1372_v6  ;;  %v4488_v0 = vpack.i.bf16 %v3060_v63, %v3076_v33  ;;  %v3037_v25 = vld [vmem:[%s5157_s8 + $0x248] sm:$0xff]  ;;  %v3039_v33 = vld [vmem:[%s5157_s8 + $0x258] sm:$0xff] }
 0x1be   : > { %v5424_v47 = vpop.f32.mrf.mxu1  ;;  %v4194_v31 = vpop.f32.mrf.mxu0  ;;  %4329 = vmatmul.mubr.bf16.gmra.mxu1 %v2211_v39  ;;  %v3053_v39 = vld [vmem:[%s5157_s8 + $0x2c8] sm:$0xff] }
 0x1bf   : > { %v1373_v50 = vmax.f32 %v1201_v45, 0.0  ;;  %v2143_v41 = vmul.f32 %v5386_v56, %v1375_v35  ;;  %v1222_v56 = vadd.f32 %v5195_v43, %v4194_v31  ;;  %4466 = vxpose.xlu0.b32.cont [8/16] (narrow) %v4465_v10, 8  ;;  %v4469_v6 = vpack.i.bf16 %v3037_v25, %v3053_v39  ;;  %v3061_v60 = vld [vmem:[%s5157_s8 + $0x308] sm:$0xff]  ;;  %v3079_v25 = vld [vmem:[%s5157_s8 + $0x398] sm:$0xff] }
 0x1c0   : > { %v5428_v17 = vpop.f32.mrf.mxu1  ;;  %v1213_v3 = vpop.f32.mrf.mxu0  ;;  %v4490_v62 = vpack.i.bf16 %v3061_v60, %v3077_v53 }
 0x1c1   : > { %v2141_v24 = vmul.f32 %v5363_v23, %v1373_v50  ;;  %v1214_v21 = vadd.f32 %v5195_v43, %v1213_v3  ;;  %v2213_v40 = vpack.c.bf16 %v2143_v41, %v2142_v49  ;;  %4445 = vxpose.xlu1.b32.end [16/16] (narrow) %v4444_v30, 8  ;;  %v1378_v57 = vmax.f32 %v1222_v56, 0.0  ;;  %v3062_v56 = vld [vmem:[%s5157_s8 + $0x310] sm:$0xff]  ;;  %v2001_v30 = vpop.permute.xlu0 %2000 }
 0x1c2   : > { %v5436_v32 = vpop.f32.mrf.mxu1  ;;  %v4195_v38 = vpop.f32.mrf.mxu0 }
 0x1c3   : > { %v1225_v14 = vadd.f32 %v5195_v43, %v4195_v38  ;;  %v2212_v23 = vpack.c.bf16 %v2141_v24, %v2140_v2  ;;  %v1376_v9 = vmax.f32 %v1214_v21, 0.0  ;;  %4468 = vxpose.xlu0.b32.cont [9/16] (narrow) %v4467_v20, 8  ;;  %v2146_v10 = vmul.f32 %v1981_v42, %v1378_v57  ;;  %v2006_v2 = vpop.permute.xlu1 %2005  ;;  %v3078_v42 = vld [vmem:[%s5157_s8 + $0x390] sm:$0xff]  ;;  %v3055_v20 = vld [vmem:[%s5157_s8 + $0x2d8] sm:$0xff] }
 0x1c4   : > { %v5443_v27 = vpop.f32.mrf.mxu1  ;;  %v1216_v18 = vpop.f32.mrf.mxu0 }
 0x1c5   : > { %v1379_v37 = vmax.f32 %v1225_v14, 0.0  ;;  %v1217_v58 = vadd.f32 %v5195_v43, %v1216_v18  ;;  %4332 = vmatprep.mubr.bf16.mxu1 %v2212_v23  ;;  %4489 = vxpose.xlu1.b32.start [1/16] (narrow) %v4488_v0, 8  ;;  %v2144_v31 = vmul.f32 %v5416_v48, %v1376_v9 }
 0x1c6   : > { %v5450_v46 = vpop.f32.mrf.mxu1  ;;  %v4198_v59 = vpop.f32.mrf.mxu0  ;;  %4333 = vmatmul.mubr.bf16.gmra.mxu1 %v2213_v40  ;;  %v4492_v40 = vpack.i.bf16 %v3062_v56, %v3078_v42 }
 0x1c7   : > { %v1377_v13 = vmax.f32 %v1217_v58, 0.0  ;;  %v2147_v35 = vmul.f32 %v1986_v34, %v1379_v37  ;;  %v1238_v41 = vadd.f32 %v5195_v43, %v4198_v59  ;;  %4470 = vxpose.xlu0.b32.cont [10/16] (narrow) %v4469_v6, 8  ;;  %v3038_v34 = vld [vmem:[%s5157_s8 + $0x250] sm:$0xff]  ;;  %v4473_v58 = vpack.i.bf16 %v3039_v33, %v3055_v20  ;;  %v3063_v59 = vld [vmem:[%s5157_s8 + $0x318] sm:$0xff]  ;;  %v2016_v39 = vpop.permute.xlu1 %2015  ;;  %v3081_v33 = vld [vmem:[%s5157_s8 + $0x3a8] sm:$0xff] }
 0x1c8   : > { %v5454_v7 = vpop.f32.mrf.mxu1  ;;  %v1229_v45 = vpop.f32.mrf.mxu0  ;;  %v4471_v38 = vpack.i.bf16 %v3038_v34, %v3054_v11  ;;  %v3064_v11 = vld [vmem:[%s5157_s8 + $0x320] sm:$0xff] }
 0x1c9   : > { %v2145_v26 = vmul.f32 %v5405_v15, %v1377_v13  ;;  %v1230_v28 = vadd.f32 %v5195_v43, %v1229_v45  ;;  %v2215_v21 = vpack.c.bf16 %v2147_v35, %v2146_v10  ;;  %4491 = vxpose.xlu1.b32.cont [2/16] (narrow) %v4490_v62, 8  ;;  %v1382_v18 = vmax.f32 %v1238_v41, 0.0  ;;  %v3056_v10 = vld [vmem:[%s5157_s8 + $0x2e0] sm:$0xff]  ;;  %v2011_v41 = vpop.permute.xlu0 %2010 }
 0x1ca   : > { %v5461_v50 = vpop.f32.mrf.mxu1  ;;  %v4199_v3 = vpop.f32.mrf.mxu0 }
 0x1cb   : > { %v1241_v24 = vadd.f32 %v5195_v43, %v4199_v3  ;;  %v2214_v15 = vpack.c.bf16 %v2145_v26, %v2144_v31  ;;  %v1380_v8 = vmax.f32 %v1230_v28, 0.0  ;;  %4472 = vxpose.xlu0.b32.cont [11/16] (narrow) %v4471_v38, 8  ;;  %v2150_v60 = vmul.f32 %v2001_v30, %v1382_v18  ;;  %v3040_v28 = vld [vmem:[%s5157_s8 + $0x260] sm:$0xff]  ;;  %v3041_v30 = vld [vmem:[%s5157_s8 + $0x268] sm:$0xff] }
 0x1cc   : > { %v5467_v48 = vpop.f32.mrf.mxu1  ;;  %v1232_v49 = vpop.f32.mrf.mxu0  ;;  %v4494_v26 = vpack.i.bf16 %v3063_v59, %v3079_v25  ;;  %v3042_v25 = vld [vmem:[%s5157_s8 + $0x270] sm:$0xff] }
 0x1cd   : > { %v1383_v16 = vmax.f32 %v1241_v24, 0.0  ;;  %v1233_v14 = vadd.f32 %v5195_v43, %v1232_v49  ;;  %4336 = vmatprep.mubr.bf16.mxu1 %v2214_v15  ;;  %4493 = vxpose.xlu1.b32.cont [3/16] (narrow) %v4492_v40, 8  ;;  %v2148_v13 = vmul.f32 %v1991_v29, %v1380_v8  ;;  %v4475_v24 = vpack.i.bf16 %v3040_v28, %v3056_v10  ;;  %v3057_v8 = vld [vmem:[%s5157_s8 + $0x2e8] sm:$0xff]  ;;  %v2021_v20 = vpop.permute.xlu0 %2020  ;;  %v3043_v10 = vld [vmem:[%s5157_s8 + $0x278] sm:$0xff] }
 0x1ce   : > { %v5472_v23 = vpop.f32.mrf.mxu1  ;;  %v4202_v63 = vpop.f32.mrf.mxu0  ;;  %4337 = vmatmul.mubr.bf16.gmra.mxu1 %v2215_v21  ;;  %v4477_v18 = vpack.i.bf16 %v3041_v30, %v3057_v8 }
 0x1cf   : > { %v1381_v9 = vmax.f32 %v1233_v14, 0.0  ;;  %v2151_v0 = vmul.f32 %v2006_v2, %v1383_v16  ;;  %v1254_v53 = vadd.f32 %v5195_v43, %v4202_v63  ;;  %4474 = vxpose.xlu0.b32.cont [12/16] (narrow) %v4473_v58, 8  ;;  %v3080_v2 = vld [vmem:[%s5157_s8 + $0x3a0] sm:$0xff]  ;;  %v2026_v16 = vpop.permute.xlu1 %2025 }
 0x1d0   : > { %v5476_v37 = vpop.f32.mrf.mxu1  ;;  %v1245_v57 = vpop.f32.mrf.mxu0  ;;  %v4496_v42 = vpack.i.bf16 %v3064_v11, %v3080_v2  ;;  %v3067_v11 = vld [vmem:[%s5157_s8 + $0x338] sm:$0xff] }
 0x1d1   : > { %v2149_v6 = vmul.f32 %v5447_v54, %v1381_v9  ;;  %v1246_v35 = vadd.f32 %v5195_v43, %v1245_v57  ;;  %v2217_v62 = vpack.c.bf16 %v2151_v0, %v2150_v60  ;;  %4495 = vxpose.xlu1.b32.cont [4/16] (narrow) %v4494_v26, 8  ;;  %v1386_v38 = vmax.f32 %v1254_v53, 0.0  ;;  %v3082_v26 = vld [vmem:[%s5157_s8 + $0x3b0] sm:$0xff]  ;;  %v3083_v2 = vld [vmem:[%s5157_s8 + $0x3b8] sm:$0xff] }
 0x1d2   : > { %v5482_v45 = vpop.f32.mrf.mxu1  ;;  %v4203_v31 = vpop.f32.mrf.mxu0 }
 0x1d3   : > { %v1257_v3 = vadd.f32 %v5195_v43, %v4203_v31  ;;  %v2216_v54 = vpack.c.bf16 %v2149_v6, %v2148_v13  ;;  %v1384_v15 = vmax.f32 %v1246_v35, 0.0  ;;  %4476 = vxpose.xlu0.b32.cont [13/16] (narrow) %v4475_v24, 8  ;;  %v2154_v59 = vmul.f32 %v2021_v20, %v1386_v38  ;;  %v3058_v13 = vld [vmem:[%s5157_s8 + $0x2f0] sm:$0xff] }
 0x1d4   : > { %v5488_v29 = vpop.f32.mrf.mxu1  ;;  %v1248_v34 = vpop.f32.mrf.mxu0  ;;  %v4479_v60 = vpack.i.bf16 %v3042_v25, %v3058_v13  ;;  %v3066_v31 = vld [vmem:[%s5157_s8 + $0x330] sm:$0xff]  ;;  %v3069_v13 = vld [vmem:[%s5157_s8 + $0x348] sm:$0xff] }
 0x1d5   : > { %v1387_v21 = vmax.f32 %v1257_v3, 0.0  ;;  %v1249_v49 = vadd.f32 %v5195_v43, %v1248_v34  ;;  %4340 = vmatprep.mubr.bf16.mxu1 %v2216_v54  ;;  %4497 = vxpose.xlu1.b32.cont [5/16] (narrow) %v4496_v42, 8  ;;  %v3065_v43 = vld [vmem:[%s5157_s8 + $0x328] sm:$0xff]  ;;  %v2152_v9 = vmul.f32 %v2011_v41, %v1384_v15  ;;  %v4500_v28 = vpack.i.bf16 %v3066_v31, %v3082_v26  ;;  %v3059_v41 = vld [vmem:[%s5157_s8 + $0x2f8] sm:$0xff]  ;;  %v5512_v3 = vld [vmem:[%s5880_s5] ss:$0 sm:$0xff] }
 0x1d6   : > { %v5493_v56 = vpop.f32.mrf.mxu1  ;;  %4341 = vmatmul.mubr.bf16.gmra.mxu1 %v2217_v62  ;;  %v4498_v57 = vpack.i.bf16 %v3065_v43, %v3081_v33  ;;  %v4481_v62 = vpack.i.bf16 %v3043_v10, %v3059_v41  ;;  %v2385_v34 = vadd.f32 %v5436_v32, %v5512_v3  ;;  %v4502_v15 = vpack.i.bf16 %v3067_v11, %v3083_v2 }
 0x1d7   : > { %v1385_v14 = vmax.f32 %v1249_v49, 0.0  ;;  %v2155_v63 = vmul.f32 %v2026_v16, %v1387_v21  ;;  %4478 = vxpose.xlu0.b32.cont [14/16] (narrow) %v4477_v18, 8  ;;  %v2382_v42 = vadd.f32 %v5424_v47, %v5512_v3  ;;  %v3084_v18 = vld [vmem:[%s5157_s8 + $0x3c0] sm:$0xff]  ;;  %v2430_v26 = vadd.f32 %v5493_v56, %v5512_v3 }
 0x1d8   : > { %v5497_v40 = vpop.f32.mrf.mxu1  ;;  %v2851_v30 = vmax.f32 %v2385_v34, 0.0  ;;  %v2361_v56 = vadd.f32 %v5512_v3, %v5419_v12  ;;  %v2417_v12 = vadd.f32 %v5482_v45, %v5512_v3  ;;  %v2350_v45 = vadd.f32 %v5366_v22, %v5512_v3 }
 0x1d9   : > { %v2153_v58 = vmul.f32 %v2016_v39, %v1385_v14  ;;  %v2219_v53 = vpack.c.bf16 %v2155_v63, %v2154_v59  ;;  %4499 = vxpose.xlu1.b32.cont [6/16] (narrow) %v4498_v57, 8  ;;  %v3068_v14 = vld [vmem:[%s5157_s8 + $0x340] sm:$0xff]  ;;  %v2377_v63 = vadd.f32 %v5512_v3, %v5443_v27  ;;  %v2374_v57 = vadd.f32 %v5512_v3, %v5428_v17 }
 0x1da   : > { %v4247_v0 = vpop.f32.mrf.mxu1  ;;  %v2862_v2 = vmax.f32 %v2430_v26, 0.0 }
 0x1db   : > { %v2218_v35 = vpack.c.bf16 %v2153_v58, %v2152_v9  ;;  %4480 = vxpose.xlu0.b32.cont [15/16] (narrow) %v4479_v60, 8  ;;  %v4504_v9 = vpack.i.bf16 %v3068_v14, %v3084_v18  ;;  %v2850_v58 = vmax.f32 %v2382_v42, 0.0  ;;  %v2433_v27 = vadd.f32 %v4247_v0, %v5512_v3  ;;  %v3071_v42 = vld [vmem:[%s5157_s8 + $0x358] sm:$0xff] }
 0x1dc   : > { %v5503_v6 = vpop.f32.mrf.mxu1  ;;  %v2369_v60 = vadd.f32 %v5410_v4, %v5512_v3  ;;  %v2366_v0 = vadd.f32 %v5396_v5, %v5512_v3 }
 0x1dd   : > { %4344 = vmatprep.mubr.bf16.mxu1 %v2218_v35  ;;  %4501 = vxpose.xlu1.b32.cont [7/16] (narrow) %v4500_v28, 8  ;;  %v3085_v35 = vld [vmem:[%s5157_s8 + $0x3c8] sm:$0xff]  ;;  %v2848_v28 = vmax.f32 %v2374_v57, 0.0  ;;  %v2863_v4 = vmax.f32 %v2433_v27, 0.0  ;;  %v2425_v41 = vadd.f32 %v5512_v3, %v5503_v6  ;;  %v2406_v27 = vadd.f32 %v5512_v3, %v5476_v37 }
 0x1de   : > { %v4250_v39 = vpop.f32.mrf.mxu1  ;;  %4345 = vmatmul.mubr.bf16.gmra.mxu1 %v2219_v53  ;;  %v2849_v53 = vmax.f32 %v2377_v63, 0.0  ;;  %v4506_v17 = vpack.i.bf16 %v3069_v13, %v3085_v35  ;;  %v2847_v34 = vmax.f32 %v2369_v60, 0.0  ;;  %v2846_v6 = vmax.f32 %v2366_v0, 0.0  ;;  %v3073_v60 = vld [vmem:[%s5157_s8 + $0x368] sm:$0xff] }
 0x1df   : > { %v2446_v21 = vadd.f32 %v4250_v39, %v5512_v3  ;;  %4482 = vxpose.xlu0.b32.end [16/16] (narrow) %v4481_v62, 8  ;;  %v5523_v16 = vpop.trf.xlu0  ;;  %v3086_v62 = vld [vmem:[%s5157_s8 + $0x3d0] sm:$0xff]  ;;  %v2856_v0 = vmax.f32 %v2406_v27, 0.0 }
 0x1e0   : > { %v2437_v54 = vpop.f32.mrf.mxu1  ;;  %v4413_v33 = vunpack.i.h.bf16 %v5523_v16 }
 0x1e1   : > { %4503 = vxpose.xlu1.b32.cont [8/16] (narrow) %v4502_v15, 8  ;;  %v2866_v47 = vmax.f32 %v2446_v21, 0.0  ;;  %v2438_v20 = vadd.f32 %v5512_v3, %v2437_v54  ;;  %v3070_v54 = vld [vmem:[%s5157_s8 + $0x350] sm:$0xff]  ;;  %v2358_v15 = vadd.f32 %v5512_v3, %v5400_v61 }
 0x1e2   : > { %v4251_v24 = vpop.f32.mrf.mxu1  ;;  %3413 = vmatprep.mubr.f32.mxu0 %v4413_v33  ;;  %v4508_v5 = vpack.i.bf16 %v3070_v54, %v3086_v62  ;;  %v2409_v33 = vadd.f32 %v5512_v3, %v5488_v29  ;;  %v2842_v29 = vmax.f32 %v2350_v45, 0.0  ;;  %v3074_v54 = vld [vmem:[%s5157_s8 + $0x370] sm:$0xff] }
 0x1e3   : > { %v2449_v49 = vadd.f32 %v4251_v24, %v5512_v3  ;;  %v2864_v39 = vmax.f32 %v2438_v20, 0.0  ;;  %v2422_v24 = vadd.f32 %v5512_v3, %v5497_v40  ;;  %v2845_v40 = vmax.f32 %v2361_v56, 0.0  ;;  %v3088_v20 = vld [vmem:[%s5157_s8 + $0x3e0] sm:$0xff]  ;;  %v3090_v62 = vld [vmem:[%s5157_s8 + $0x3f0] sm:$0xff] }
 0x1e4   : > { %v2440_v38 = vpop.f32.mrf.mxu1  ;;  %v2844_v18 = vmax.f32 %v2358_v15, 0.0  ;;  %v2857_v35 = vmax.f32 %v2409_v33, 0.0 }
 0x1e5   : > { %v2867_v8 = vmax.f32 %v2449_v49, 0.0  ;;  %v2441_v32 = vadd.f32 %v5512_v3, %v2440_v38  ;;  %4505 = vxpose.xlu1.b32.cont [9/16] (narrow) %v4504_v9, 8  ;;  %v2861_v49 = vmax.f32 %v2425_v41, 0.0  ;;  %v3087_v38 = vld [vmem:[%s5157_s8 + $0x3d8] sm:$0xff]  ;;  %v2860_v14 = vmax.f32 %v2422_v24, 0.0 }
 0x1e6   : > { %v5529_v43 = vpop.f32.mrf.mxu1  ;;  %v4510_v61 = vpack.i.bf16 %v3071_v42, %v3087_v38  ;;  %v2393_v41 = vadd.f32 %v5512_v3, %v5467_v48  ;;  %v2326_v48 = vadd.f32 %v5512_v3, %v5342_v36 }
 0x1e7   : > { %3934 = vmatprep.subr.mxu0 %v2867_v8  ;;  %v2865_v25 = vmax.f32 %v2441_v32, 0.0  ;;  %v2414_v32 = vadd.f32 %v5472_v23, %v5512_v3  ;;  %v2345_v23 = vadd.f32 %v5512_v3, %v5389_v51  ;;  %v2401_v51 = vadd.f32 %v5461_v50, %v5512_v3 }
 0x1e8   : > { %v5535_v59 = vpop.f32.mrf.mxu1  ;;  %3935 = vmatpush3.msra.mxu0 %v2851_v30  ;;  %v2353_v30 = vadd.f32 %v5380_v1, %v5512_v3  ;;  %v2859_v1 = vmax.f32 %v2417_v12, 0.0  ;;  %v2334_v50 = vadd.f32 %v5336_v52, %v5512_v3  ;;  %v4516_v52 = vpack.i.bf16 %v3074_v54, %v3090_v62  ;;  %v3075_v12 = vld [vmem:[%s5157_s8 + $0x378] sm:$0xff] }
 0x1e9   : > { %3936 = vmatprep.subr.mxu0 %v2866_v47  ;;  %4507 = vxpose.xlu1.b32.cont [10/16] (narrow) %v4506_v17, 8  ;;  %v3072_v47 = vld [vmem:[%s5157_s8 + $0x360] sm:$0xff]  ;;  %v2858_v57 = vmax.f32 %v2414_v32, 0.0  ;;  %v2337_v17 = vadd.f32 %v5352_v55, %v5512_v3  ;;  %v2841_v37 = vmax.f32 %v2345_v23, 0.0  ;;  %v2855_v55 = vmax.f32 %v2401_v51, 0.0 }
 0x1ea   : > { %v5542_v31 = vpop.f32.mrf.mxu1  ;;  %3937 = vmatpush3.msra.mxu0 %v2850_v58  ;;  %v2843_v9 = vmax.f32 %v2353_v30, 0.0  ;;  %v4512_v22 = vpack.i.bf16 %v3072_v47, %v3088_v20  ;;  %v2838_v24 = vmax.f32 %v2334_v50, 0.0  ;;  %v2853_v15 = vmax.f32 %v2393_v41, 0.0 }
 0x1eb   : > { %3938 = vmatprep.subr.mxu0 %v2865_v25  ;;  %v2342_v25 = vadd.f32 %v5512_v3, %v5372_v19 }
 0x1ec   : > { %v5548_v10 = vpop.f32.mrf.mxu1  ;;  %3939 = vmatpush3.msra.mxu0 %v2849_v53  ;;  %v3089_v53 = vld [vmem:[%s5157_s8 + $0x3e8] sm:$0xff] }
 0x1ed   : > { %3940 = vmatprep.subr.mxu0 %v2864_v39  ;;  %4509 = vxpose.xlu1.b32.cont [11/16] (narrow) %v4508_v5, 8  ;;  %v4514_v19 = vpack.i.bf16 %v3073_v60, %v3089_v53  ;;  %v2398_v39 = vadd.f32 %v5450_v46, %v5512_v3  ;;  %v2329_v46 = vadd.f32 %v5512_v3, %v5359_v44 }
 0x1ee   : > { %v5556_v11 = vpop.f32.mrf.mxu1  ;;  %3941 = vmatpush3.msra.mxu0 %v2848_v28  ;;  %v2840_v28 = vmax.f32 %v2342_v25, 0.0 }
 0x1ef   : > { %3942 = vmatprep.subr.mxu0 %v2863_v4  ;;  %v2854_v5 = vmax.f32 %v2398_v39, 0.0  ;;  %v2837_v44 = vmax.f32 %v2329_v46, 0.0 }
 0x1f0   : > { %v5562_v21 = vpop.f32.mrf.mxu1  ;;  %3943 = vmatpush3.msra.mxu0 %v2847_v34  ;;  %v2839_v34 = vmax.f32 %v2337_v17, 0.0 }
 0x1f1   : > { %3944 = vmatprep.subr.mxu0 %v2862_v2  ;;  %4511 = vxpose.xlu1.b32.cont [12/16] (narrow) %v4510_v61, 8  ;;  %v2390_v2 = vadd.f32 %v5512_v3, %v5454_v7  ;;  %v4410_v7 = vunpack.i.l.bf16 %v5523_v16 }
 0x1f2   : > { %v5570_v8 = vpop.f32.mrf.mxu1  ;;  %3945 = vmatpush3.msra.mxu0 %v2846_v6 }
 0x1f3   : > { %3946 = vmatprep.subr.mxu0 %v2861_v49  ;;  %v3091_v49 = vld [vmem:[%s5157_s8 + $0x3f8] sm:$0xff]  ;;  %v2852_v30 = vmax.f32 %v2390_v2, 0.0 }
 0x1f4   : > { %v5576_v63 = vpop.f32.mrf.mxu1  ;;  %3947 = vmatpush3.msra.mxu0 %v2845_v40  ;;  %v4518_v38 = vpack.i.bf16 %v3075_v12, %v3091_v49  ;;  %v2836_v40 = vmax.f32 %v2326_v48, 0.0 }
 0x1f5   : > { %3948 = vmatprep.subr.mxu0 %v2860_v14  ;;  %4513 = vxpose.xlu1.b32.cont [13/16] (narrow) %v4512_v22, 8 }
 0x1f6   : > { %v5584_v58 = vpop.f32.mrf.mxu1  ;;  %3949 = vmatpush3.msra.mxu0 %v2844_v18 }
 0x1f7   : > { %3950 = vmatprep.subr.mxu0 %v2859_v1 }
 0x1f8   : > { %v5590_v13 = vpop.f32.mrf.mxu1  ;;  %3951 = vmatpush3.msra.mxu0 %v2843_v9 }
 0x1f9   : > { %3952 = vmatprep.subr.mxu0 %v2858_v57  ;;  %4515 = vxpose.xlu1.b32.cont [14/16] (narrow) %v4514_v19, 8 }
 0x1fa   : > { %v5598_v26 = vpop.f32.mrf.mxu1  ;;  %3953 = vmatpush3.msra.mxu0 %v2842_v29 }
 0x1fb   : > { %3954 = vmatprep.subr.mxu0 %v2857_v35 }
 0x1fc   : > { %v5604_v4 = vpop.f32.mrf.mxu1  ;;  %3955 = vmatpush3.msra.mxu0 %v2841_v37 }
 0x1fd   : > { %3956 = vmatprep.subr.mxu0 %v2856_v0  ;;  %4517 = vxpose.xlu1.b32.cont [15/16] (narrow) %v4516_v52, 8 }
 0x1fe   : > { %v4266_v56 = vpop.f32.mrf.mxu1  ;;  %3957 = vmatpush3.msra.mxu0 %v2840_v28 }
 0x1ff   : > { %3958 = vmatprep.subr.mxu0 %v2855_v55  ;;  %v2510_v17 = vadd.f32 %v4266_v56, %v5512_v3 }
 0x200   : > { %v2501_v6 = vpop.f32.mrf.mxu1  ;;  %3959 = vmatpush3.msra.mxu0 %v2839_v34 }
 0x201   : > { %3960 = vmatprep.subr.mxu0 %v2854_v5  ;;  %4519 = vxpose.xlu1.b32.end [16/16] (narrow) %v4518_v38, 8  ;;  %v5633_v27 = vpop.trf.xlu1  ;;  %v2882_v62 = vmax.f32 %v2510_v17, 0.0  ;;  %v2502_v34 = vadd.f32 %v5512_v3, %v2501_v6  ;;  %v2497_v5 = vadd.f32 %v5598_v26, %v5512_v3  ;;  %v2494_v6 = vadd.f32 %v5584_v58, %v5512_v3 }
 0x202   : > { %v4267_v42 = vpop.f32.mrf.mxu1  ;;  %3961 = vmatpush3.msra.mxu0 %v2838_v24  ;;  %v4447_v51 = vunpack.i.l.bf16 %v5633_v27  ;;  %v2489_v38 = vadd.f32 %v5512_v3, %v5604_v4  ;;  %v2481_v4 = vadd.f32 %v5570_v8, %v5512_v3 }
 0x203   : > { %3962 = vmatprep.subr.mxu0 %v2853_v15  ;;  %v2513_v29 = vadd.f32 %v4267_v42, %v5512_v3  ;;  %v2880_v12 = vmax.f32 %v2502_v34, 0.0  ;;  %v2879_v26 = vmax.f32 %v2497_v5, 0.0  ;;  %v2878_v58 = vmax.f32 %v2494_v6, 0.0 }
 0x204   : > { %v2504_v61 = vpop.f32.mrf.mxu1  ;;  %3963 = vmatpush3.msra.mxu0 %v2837_v44  ;;  %3483 = vmatprep.mubr.f32.mxu1 %v4447_v51  ;;  %v2875_v8 = vmax.f32 %v2481_v4, 0.0 }
 0x205   : > { %3964 = vmatprep.subr.mxu0 %v2852_v30  ;;  %v2883_v50 = vmax.f32 %v2513_v29, 0.0  ;;  %v2505_v28 = vadd.f32 %v5512_v3, %v2504_v61  ;;  %v2486_v61 = vadd.f32 %v5512_v3, %v5590_v13  ;;  %v2478_v13 = vadd.f32 %v5556_v11, %v5512_v3 }
 0x206   : > { %v5619_v36 = vpop.f32.mrf.mxu1  ;;  %3965 = vmatpush3.msra.mxu0 %v2836_v40 }
 0x207   : > { %3414 = vmatmul.mubr.f32.vlgmr.msra.gmra.mxu0 %v4410_v7  ;;  %v2881_v2 = vmax.f32 %v2505_v28, 0.0  ;;  %v2874_v11 = vmax.f32 %v2478_v13, 0.0 }
 0x208   : > { %v5621_v32 = vpop.f32.mrf.mxu1 }
 0x20a   : > { %v5623_v14 = vpop.f32.mrf.mxu1 }
 0x20c   : > { %v5625_v45 = vpop.f32.mrf.mxu1 }
 0x20e   : > { %v5627_v18 = vpop.f32.mrf.mxu1 }
 0x210   : > { %v5629_v1 = vpop.f32.mrf.mxu1 }
 0x211   : > { %v2534_v17 = vadd.f32 %v5512_v3, %v5629_v1  ;;  %v2526_v1 = vadd.f32 %v5619_v36, %v5512_v3  ;;  %v2457_v36 = vadd.f32 %v5512_v3, %v5548_v10  ;;  %v4450_v10 = vunpack.i.h.bf16 %v5633_v27 }
 0x212   : > { %v4275_v16 = vpop.f32.mrf.mxu1 }
 0x213   : > { %v2888_v28 = vmax.f32 %v2534_v17, 0.0 }
 0x214   : > { %v5631_v33 = vpop.f32.mrf.mxu1 }
 0x215   : > { %v2537_v51 = vadd.f32 %v5512_v3, %v5631_v33  ;;  %v2529_v33 = vadd.f32 %v5623_v14, %v5512_v3 }
 0x216   : > { %v4278_v47 = vpop.f32.mrf.mxu1 }
 0x217   : > { %v2558_v48 = vadd.f32 %v4278_v47, %v5512_v3  ;;  %v2545_v47 = vadd.f32 %v4275_v16, %v5512_v3  ;;  %v2876_v16 = vmax.f32 %v2486_v61, 0.0 }
 0x218   : > { %v2549_v20 = vpop.f32.mrf.mxu1 }
 0x219   : > { %v2894_v30 = vmax.f32 %v2558_v48, 0.0  ;;  %v2550_v7 = vadd.f32 %v5512_v3, %v2549_v20  ;;  %v2542_v20 = vadd.f32 %v5627_v18, %v5512_v3  ;;  %v2473_v18 = vadd.f32 %v5512_v3, %v5576_v63 }
 0x21a   : > { %v4279_v9 = vpop.f32.mrf.mxu1  ;;  %v2465_v63 = vadd.f32 %v5542_v31, %v5512_v3 }
 0x21b   : > { %v2561_v56 = vadd.f32 %v4279_v9, %v5512_v3 }
 0x21c   : > { %v2552_v23 = vpop.f32.mrf.mxu1  ;;  %v2871_v31 = vmax.f32 %v2465_v63, 0.0 }
 0x21d   : > { %v2895_v44 = vmax.f32 %v2561_v56, 0.0  ;;  %v2553_v42 = vadd.f32 %v5512_v3, %v2552_v23  ;;  %v2886_v56 = vmax.f32 %v2526_v1, 0.0 }
 0x21e   : > { %v4282_v22 = vpop.f32.mrf.mxu1 }
 0x21f   : > { %v2574_v35 = vadd.f32 %v4282_v22, %v5512_v3  ;;  %v5639_v53 = vpop.trf.xlu0  ;;  %v2893_v9 = vmax.f32 %v2553_v42, 0.0  ;;  %v2877_v22 = vmax.f32 %v2489_v38, 0.0 }
 0x220   : > { %v2565_v57 = vpop.f32.mrf.mxu1  ;;  %v4484_v19 = vunpack.i.l.bf16 %v5639_v53 }
 0x221   : > { %v2898_v41 = vmax.f32 %v2574_v35, 0.0  ;;  %v2566_v54 = vadd.f32 %v5512_v3, %v2565_v57  ;;  %v2892_v57 = vmax.f32 %v2550_v7, 0.0 }
 0x222   : > { %v4283_v25 = vpop.f32.mrf.mxu1  ;;  %3553 = vmatprep.mubr.f32.mxu0 %v4484_v19  ;;  %v2470_v19 = vadd.f32 %v5512_v3, %v5562_v21  ;;  %v2462_v21 = vadd.f32 %v5529_v43, %v5512_v3 }
 0x223   : > { %v2577_v60 = vadd.f32 %v4283_v25, %v5512_v3  ;;  %v2896_v15 = vmax.f32 %v2566_v54, 0.0  ;;  %v2891_v25 = vmax.f32 %v2545_v47, 0.0  ;;  %v2887_v54 = vmax.f32 %v2529_v33, 0.0 }
 0x224   : > { %v2568_v37 = vpop.f32.mrf.mxu1  ;;  %v2872_v14 = vmax.f32 %v2470_v19, 0.0  ;;  %v2870_v43 = vmax.f32 %v2462_v21, 0.0 }
 0x225   : > { %v2899_v39 = vmax.f32 %v2577_v60, 0.0  ;;  %v2569_v0 = vadd.f32 %v5512_v3, %v2568_v37  ;;  %v2890_v60 = vmax.f32 %v2542_v20, 0.0 }
 0x226   : > { %v5645_v55 = vpop.f32.mrf.mxu1 }
 0x227   : > { %3969 = vmatprep.subr.mxu1 %v2899_v39  ;;  %v2897_v52 = vmax.f32 %v2569_v0, 0.0  ;;  %v2889_v39 = vmax.f32 %v2537_v51, 0.0 }
 0x228   : > { %v5649_v46 = vpop.f32.mrf.mxu1  ;;  %3970 = vmatpush3.msra.mxu1 %v2883_v50  ;;  %v2873_v50 = vmax.f32 %v2473_v18, 0.0 }
 0x229   : > { %3971 = vmatprep.subr.mxu1 %v2898_v41 }
 0x22a   : > { %v5654_v24 = vpop.f32.mrf.mxu1  ;;  %3972 = vmatpush3.msra.mxu1 %v2882_v62  ;;  %v2521_v62 = vadd.f32 %v5512_v3, %v5625_v45 }
 0x22b   : > { %3973 = vmatprep.subr.mxu1 %v2897_v52  ;;  %v2518_v52 = vadd.f32 %v5512_v3, %v5621_v32 }
 0x22c   : > { %v5659_v49 = vpop.f32.mrf.mxu1  ;;  %3974 = vmatpush3.msra.mxu1 %v2881_v2  ;;  %v2454_v2 = vadd.f32 %v5512_v3, %v5535_v59  ;;  %v2885_v45 = vmax.f32 %v2521_v62, 0.0 }
 0x22d   : > { %3975 = vmatprep.subr.mxu1 %v2896_v15  ;;  %v2869_v15 = vmax.f32 %v2457_v36, 0.0  ;;  %v2884_v6 = vmax.f32 %v2518_v52, 0.0 }
 0x22e   : > { %3976 = vmatpush3.msra.mxu1 %v2880_v12  ;;  %v5665_v40 = vpop.f32.mrf.mxu1 }
 0x22f   : > { %3977 = vmatprep.subr.mxu1 %v2895_v44  ;;  %v2868_v44 = vmax.f32 %v2454_v2, 0.0 }
 0x230   : > { %3978 = vmatpush3.msra.mxu1 %v2879_v26  ;;  %v5670_v23 = vpop.f32.mrf.mxu1 }
 0x231   : > { %3979 = vmatprep.subr.mxu1 %v2894_v30 }
 0x232   : > { %3980 = vmatpush3.msra.mxu1 %v2878_v58  ;;  %v5676_v29 = vpop.f32.mrf.mxu1 }
 0x233   : > { %3981 = vmatprep.subr.mxu1 %v2893_v9 }
 0x234   : > { %3982 = vmatpush3.msra.mxu1 %v2877_v22  ;;  %v5682_v35 = vpop.f32.mrf.mxu1 }
 0x235   : > { %3983 = vmatprep.subr.mxu1 %v2892_v57 }
 0x236   : > { %3984 = vmatpush3.msra.mxu1 %v2876_v16  ;;  %v5688_v37 = vpop.f32.mrf.mxu1 }
 0x237   : > { %3985 = vmatprep.subr.mxu1 %v2891_v25 }
 0x238   : > { %3986 = vmatpush3.msra.mxu1 %v2875_v8  ;;  %v5694_v0 = vpop.f32.mrf.mxu1 }
 0x239   : > { %3987 = vmatprep.subr.mxu1 %v2890_v60 }
 0x23a   : > { %3988 = vmatpush3.msra.mxu1 %v2874_v11  ;;  %v5700_v41 = vpop.f32.mrf.mxu1 }
 0x23b   : > { %3989 = vmatprep.subr.mxu1 %v2889_v39  ;;  %v2625_v62 = vadd.f32 %v5700_v41, %v5512_v3 }
 0x23c   : > { %3990 = vmatpush3.msra.mxu1 %v2873_v50  ;;  %v5706_v34 = vpop.f32.mrf.mxu1 }
 0x23d   : > { %3991 = vmatprep.subr.mxu1 %v2888_v28  ;;  %v2911_v41 = vmax.f32 %v2625_v62, 0.0 }
 0x23e   : > { %3992 = vmatpush3.msra.mxu1 %v2872_v14  ;;  %v4298_v5 = vpop.f32.mrf.mxu1 }
 0x23f   : > { %3993 = vmatprep.subr.mxu1 %v2887_v54  ;;  %v2638_v18 = vadd.f32 %v4298_v5, %v5512_v3  ;;  %v2622_v5 = vadd.f32 %v5688_v37, %v5512_v3 }
 0x240   : > { %3994 = vmatpush3.msra.mxu1 %v2871_v31  ;;  %v2629_v48 = vpop.f32.mrf.mxu1 }
 0x241   : > { %3995 = vmatprep.subr.mxu1 %v2886_v56  ;;  %v5715_v42 = vpop.trf.xlu1  ;;  %v2914_v1 = vmax.f32 %v2638_v18, 0.0  ;;  %v2630_v28 = vadd.f32 %v5512_v3, %v2629_v48  ;;  %v2910_v37 = vmax.f32 %v2622_v5, 0.0 }
 0x242   : > { %3996 = vmatpush3.msra.mxu1 %v2870_v43  ;;  %v4299_v12 = vpop.f32.mrf.mxu1  ;;  %v4521_v59 = vunpack.i.l.bf16 %v5715_v42 }
 0x243   : > { %3997 = vmatprep.subr.mxu1 %v2885_v45  ;;  %v2641_v16 = vadd.f32 %v4299_v12, %v5512_v3  ;;  %v2912_v43 = vmax.f32 %v2630_v28, 0.0 }
 0x244   : > { %3998 = vmatpush3.msra.mxu1 %v2869_v15  ;;  %v2632_v32 = vpop.f32.mrf.mxu1  ;;  %v2617_v15 = vadd.f32 %v5512_v3, %v5706_v34  ;;  %v2609_v34 = vadd.f32 %v5676_v29, %v5512_v3 }
 0x245   : > { %3999 = vmatprep.subr.mxu1 %v2884_v6  ;;  %v2915_v19 = vmax.f32 %v2641_v16, 0.0  ;;  %v2633_v33 = vadd.f32 %v5512_v3, %v2632_v32 }
 0x246   : > { %4000 = vmatpush3.msra.mxu1 %v2868_v44  ;;  %v5717_v26 = vpop.f32.mrf.mxu1  ;;  %v2614_v44 = vadd.f32 %v5512_v3, %v5694_v0  ;;  %v2606_v0 = vadd.f32 %v5665_v40, %v5512_v3 }
 0x247   : > { %3484 = vmatmul.mubr.f32.vlgmr.msra.gmra.mxu1 %v4450_v10  ;;  %v2913_v31 = vmax.f32 %v2633_v33, 0.0 }
 0x248   : > { %v5720_v38 = vpop.f32.mrf.mxu1  ;;  %3623 = vmatprep.mubr.f32.mxu1 %v4521_v59  ;;  %v2906_v18 = vmax.f32 %v2606_v0, 0.0 }
 0x249   : > { %v2646_v62 = vadd.f32 %v5512_v3, %v5720_v38 }
 0x24a   : > { %v5722_v30 = vpop.f32.mrf.mxu1 }
 0x24c   : > { %v5724_v7 = vpop.f32.mrf.mxu1 }
 0x24e   : > { %v5726_v27 = vpop.f32.mrf.mxu1 }
 0x250   : > { %v5728_v58 = vpop.f32.mrf.mxu1 }
 0x251   : > { %v2662_v40 = vadd.f32 %v5512_v3, %v5728_v58  ;;  %v2654_v58 = vadd.f32 %v5717_v26, %v5512_v3 }
 0x252   : > { %v4307_v61 = vpop.f32.mrf.mxu1 }
 0x253   : > { %v2673_v59 = vadd.f32 %v4307_v61, %v5512_v3  ;;  %v2918_v26 = vmax.f32 %v2654_v58, 0.0 }
 0x254   : > { %v5730_v47 = vpop.f32.mrf.mxu1 }
 0x255   : > { %v2923_v61 = vmax.f32 %v2673_v59, 0.0  ;;  %v2665_v29 = vadd.f32 %v5512_v3, %v5730_v47  ;;  %v2657_v47 = vadd.f32 %v5722_v30, %v5512_v3 }
 0x256   : > { %v4310_v9 = vpop.f32.mrf.mxu1 }
 0x257   : > { %v2686_v56 = vadd.f32 %v4310_v9, %v5512_v3  ;;  %v2919_v30 = vmax.f32 %v2657_v47, 0.0 }
 0x258   : > { %v2677_v4 = vpop.f32.mrf.mxu1 }
 0x259   : > { %v2926_v12 = vmax.f32 %v2686_v56, 0.0  ;;  %v2678_v10 = vadd.f32 %v5512_v3, %v2677_v4  ;;  %v2670_v4 = vadd.f32 %v5726_v27, %v5512_v3 }
 0x25a   : > { %v4311_v22 = vpop.f32.mrf.mxu1 }
 0x25b   : > { %v2689_v14 = vadd.f32 %v4311_v22, %v5512_v3  ;;  %v2909_v22 = vmax.f32 %v2617_v15, 0.0  ;;  %v2922_v27 = vmax.f32 %v2670_v4, 0.0 }
 0x25c   : > { %v2680_v20 = vpop.f32.mrf.mxu1 }
 0x25d   : > { %v2927_v45 = vmax.f32 %v2689_v14, 0.0  ;;  %v2681_v48 = vadd.f32 %v5512_v3, %v2680_v20  ;;  %v2585_v14 = vadd.f32 %v5512_v3, %v5659_v49  ;;  %v4487_v49 = vunpack.i.h.bf16 %v5639_v53 }
 0x25e   : > { %v4314_v57 = vpop.f32.mrf.mxu1 }
 0x25f   : > { %v2702_v51 = vadd.f32 %v4314_v57, %v5512_v3  ;;  %v2925_v9 = vmax.f32 %v2681_v48, 0.0  ;;  %v2924_v57 = vmax.f32 %v2678_v10, 0.0 }
 0x260   : > { %v2693_v13 = vpop.f32.mrf.mxu1 }
 0x261   : > { %v2930_v63 = vmax.f32 %v2702_v51, 0.0  ;;  %v2694_v50 = vadd.f32 %v5512_v3, %v2693_v13  ;;  %v2908_v13 = vmax.f32 %v2614_v44, 0.0  ;;  %v2601_v51 = vadd.f32 %v5512_v3, %v5682_v35 }
 0x262   : > { %v4315_v25 = vpop.f32.mrf.mxu1  ;;  %v2593_v35 = vadd.f32 %v5654_v24, %v5512_v3  ;;  %v2649_v24 = vadd.f32 %v5512_v3, %v5724_v7  ;;  %v2901_v7 = vmax.f32 %v2585_v14, 0.0 }
 0x263   : > { %v2705_v8 = vadd.f32 %v4315_v25, %v5512_v3  ;;  %v2928_v52 = vmax.f32 %v2694_v50, 0.0  ;;  %v2907_v25 = vmax.f32 %v2609_v34, 0.0 }
 0x264   : > { %v2696_v60 = vpop.f32.mrf.mxu1  ;;  %v2903_v28 = vmax.f32 %v2593_v35, 0.0 }
 0x265   : > { %v2931_v17 = vmax.f32 %v2705_v8, 0.0  ;;  %v2697_v11 = vadd.f32 %v5512_v3, %v2696_v60  ;;  %v2598_v60 = vadd.f32 %v5512_v3, %v5670_v23  ;;  %v2590_v23 = vadd.f32 %v5645_v55, %v5512_v3 }
 0x266   : > { %v5738_v39 = vpop.f32.mrf.mxu1 }
 0x267   : > { %4004 = vmatprep.subr.mxu0 %v2931_v17  ;;  %v2929_v54 = vmax.f32 %v2697_v11, 0.0  ;;  %v2921_v11 = vmax.f32 %v2665_v29, 0.0  ;;  %v2904_v50 = vmax.f32 %v2598_v60, 0.0  ;;  %v2902_v55 = vmax.f32 %v2590_v23, 0.0 }
 0x268   : > { %v5742_v21 = vpop.f32.mrf.mxu1  ;;  %4005 = vmatpush3.msra.mxu0 %v2915_v19  ;;  %v2905_v19 = vmax.f32 %v2601_v51, 0.0 }
 0x269   : > { %4006 = vmatprep.subr.mxu0 %v2930_v63  ;;  %v2920_v63 = vmax.f32 %v2662_v40, 0.0 }
 0x26a   : > { %v5747_v36 = vpop.f32.mrf.mxu1  ;;  %4007 = vmatpush3.msra.mxu0 %v2914_v1 }
 0x26b   : > { %4008 = vmatprep.subr.mxu0 %v2929_v54 }
 0x26c   : > { %v5752_v2 = vpop.f32.mrf.mxu1  ;;  %4009 = vmatpush3.msra.mxu0 %v2913_v31  ;;  %v2582_v31 = vadd.f32 %v5512_v3, %v5649_v46 }
 0x26d   : > { %4010 = vmatprep.subr.mxu0 %v2928_v52  ;;  %v2917_v52 = vmax.f32 %v2649_v24, 0.0 }
 0x26e   : > { %v5757_v6 = vpop.f32.mrf.mxu1  ;;  %4011 = vmatpush3.msra.mxu0 %v2912_v43  ;;  %v2916_v43 = vmax.f32 %v2646_v62, 0.0 }
 0x26f   : > { %4012 = vmatprep.subr.mxu0 %v2927_v45  ;;  %v2900_v45 = vmax.f32 %v2582_v31, 0.0 }
 0x270   : > { %v5762_v32 = vpop.f32.mrf.mxu1  ;;  %4013 = vmatpush3.msra.mxu0 %v2911_v41 }
 0x271   : > { %4014 = vmatprep.subr.mxu0 %v2926_v12 }
 0x272   : > { %v5767_v20 = vpop.f32.mrf.mxu1  ;;  %4015 = vmatpush3.msra.mxu0 %v2910_v37 }
 0x273   : > { %4016 = vmatprep.subr.mxu0 %v2925_v9 }
 0x274   : > { %v5773_v16 = vpop.f32.mrf.mxu1  ;;  %4017 = vmatpush3.msra.mxu0 %v2909_v22 }
 0x275   : > { %4018 = vmatprep.subr.mxu0 %v2924_v57 }
 0x276   : > { %v5779_v8 = vpop.f32.mrf.mxu1  ;;  %4019 = vmatpush3.msra.mxu0 %v2908_v13 }
 0x277   : > { %4020 = vmatprep.subr.mxu0 %v2923_v61  ;;  %v2750_v24 = vadd.f32 %v5779_v8, %v5512_v3 }
 0x278   : > { %v5785_v17 = vpop.f32.mrf.mxu1  ;;  %4021 = vmatpush3.msra.mxu0 %v2907_v25 }
 0x279   : > { %4022 = vmatprep.subr.mxu0 %v2922_v27  ;;  %v2942_v31 = vmax.f32 %v2750_v24, 0.0 }
 0x27a   : > { %v5791_v33 = vpop.f32.mrf.mxu1  ;;  %4023 = vmatpush3.msra.mxu0 %v2906_v18 }
 0x27b   : > { %4024 = vmatprep.subr.mxu0 %v2921_v11 }
 0x27c   : > { %v5797_v1 = vpop.f32.mrf.mxu1  ;;  %4025 = vmatpush3.msra.mxu0 %v2905_v19 }
 0x27d   : > { %4026 = vmatprep.subr.mxu0 %v2920_v63  ;;  %v2753_v63 = vadd.f32 %v5791_v33, %v5512_v3  ;;  %v2745_v62 = vadd.f32 %v5512_v3, %v5797_v1 }
 0x27e   : > { %v4330_v54 = vpop.f32.mrf.mxu1  ;;  %4027 = vmatpush3.msra.mxu0 %v2904_v50 }
 0x27f   : > { %4028 = vmatprep.subr.mxu0 %v2919_v30  ;;  %v2766_v29 = vadd.f32 %v4330_v54, %v5512_v3 }
 0x280   : > { %v2757_v56 = vpop.f32.mrf.mxu1  ;;  %4029 = vmatpush3.msra.mxu0 %v2903_v28 }
 0x281   : > { %4030 = vmatprep.subr.mxu0 %v2918_v26  ;;  %v2946_v11 = vmax.f32 %v2766_v29, 0.0  ;;  %v2758_v35 = vadd.f32 %v5512_v3, %v2757_v56  ;;  %v2943_v26 = vmax.f32 %v2753_v63, 0.0  ;;  %v2742_v56 = vadd.f32 %v5512_v3, %v5785_v17 }
 0x282   : > { %v4331_v5 = vpop.f32.mrf.mxu1  ;;  %4031 = vmatpush3.msra.mxu0 %v2902_v55 }
 0x283   : > { %4032 = vmatprep.subr.mxu0 %v2917_v52  ;;  %v2769_v57 = vadd.f32 %v4331_v5, %v5512_v3  ;;  %v2944_v28 = vmax.f32 %v2758_v35, 0.0  ;;  %v2941_v5 = vmax.f32 %v2745_v62, 0.0 }
 0x284   : > { %v2760_v48 = vpop.f32.mrf.mxu1  ;;  %4033 = vmatpush3.msra.mxu0 %v2901_v7  ;;  %v2737_v7 = vadd.f32 %v5767_v20, %v5512_v3 }
 0x285   : > { %4034 = vmatprep.subr.mxu0 %v2916_v43  ;;  %v2947_v40 = vmax.f32 %v2769_v57, 0.0  ;;  %v2761_v18 = vadd.f32 %v5512_v3, %v2760_v48 }
 0x286   : > { %v5808_v38 = vpop.f32.mrf.mxu1  ;;  %4035 = vmatpush3.msra.mxu0 %v2900_v45  ;;  %v2940_v45 = vmax.f32 %v2742_v56, 0.0 }
 0x287   : > { %3554 = vmatmul.mubr.f32.vlgmr.msra.gmra.mxu0 %v4487_v49  ;;  %v2945_v23 = vmax.f32 %v2761_v18, 0.0  ;;  %v2734_v49 = vadd.f32 %v5757_v6, %v5512_v3  ;;  %v4534_v6 = vld [vmem:[%s5880_s5] ss:$0 sm:$0xff] }
 0x288   : > { %v5810_v46 = vpop.f32.mrf.mxu1  ;;  %v2710_v29 = vadd.f32 %v4534_v6, %v5742_v21 }
 0x28a   : > { %v5812_v41 = vpop.f32.mrf.mxu1 }
 0x28c   : > { %v5814_v15 = vpop.f32.mrf.mxu1 }
 0x28e   : > { %v4338_v12 = vpop.f32.mrf.mxu1 }
 0x28f   : > { %v2798_v1 = vadd.f32 %v4338_v12, %v5512_v3 }
 0x290   : > { %v5816_v10 = vpop.f32.mrf.mxu1 }
 0x291   : > { %v2954_v20 = vmax.f32 %v2798_v1, 0.0  ;;  %v2790_v12 = vadd.f32 %v5512_v3, %v5816_v10  ;;  %v2718_v10 = vadd.f32 %v4534_v6, %v5738_v39 }
 0x292   : > { %v4339_v37 = vpop.f32.mrf.mxu1 }
 0x293   : > { %v2801_v8 = vadd.f32 %v4339_v37, %v5512_v3  ;;  %v2939_v37 = vmax.f32 %v2737_v7, 0.0 }
 0x294   : > { %v2792_v44 = vpop.f32.mrf.mxu1 }
 0x295   : > { %v2955_v17 = vmax.f32 %v2801_v8, 0.0  ;;  %v2793_v48 = vadd.f32 %v5512_v3, %v2792_v44  ;;  %v2785_v44 = vadd.f32 %v4534_v6, %v5812_v41  ;;  %v2713_v41 = vadd.f32 %v4534_v6, %v5752_v2 }
 0x296   : > { %v4342_v53 = vpop.f32.mrf.mxu1  ;;  %v4560_v2 = vmov 0.0  }
 0x297   : > { %v2814_v50 = vadd.f32 %v4342_v53, %v5512_v3  ;;  %v2729_v53 = vadd.f32 %v5512_v3, %v5773_v16  ;;  %v2721_v16 = vadd.f32 %v4534_v6, %v5747_v36  ;;  %v2774_v36 = vadd.f32 %v4534_v6, %v5810_v46  ;;  %317 = vst [vmem:[%s311_s16] sm:$0x1] %v4560_v2 }
 0x298   : > { %v2805_v59 = vpop.f32.mrf.mxu1 }
 0x299   : > { %v2958_v33 = vmax.f32 %v2814_v50, 0.0  ;;  %v2806_v55 = vadd.f32 %v5512_v3, %v2805_v59  ;;  %v2938_v59 = vmax.f32 %v2734_v49, 0.0 }
 0x29a   : > { %v4343_v9 = vpop.f32.mrf.mxu1 }
 0x29b   : > { %v2817_v19 = vadd.f32 %v4343_v9, %v5512_v3  ;;  %v2956_v43 = vmax.f32 %v2806_v55, 0.0  ;;  %v2726_v9 = vadd.f32 %v4534_v6, %v5762_v32  ;;  %v2777_v32 = vadd.f32 %v4534_v6, %v5814_v15 }
 0x29c   : > { %v2808_v34 = vpop.f32.mrf.mxu1  ;;  %v4524_v15 = vunpack.i.h.bf16 %v5715_v42 }
 0x29d   : > { %v2959_v14 = vmax.f32 %v2817_v19, 0.0  ;;  %v2809_v54 = vadd.f32 %v5512_v3, %v2808_v34  ;;  %v2953_v34 = vmax.f32 %v2793_v48, 0.0  ;;  %v2936_v57 = vmax.f32 %v2726_v9, 0.0 }
 0x29e   : > { %v4346_v22 = vpop.f32.mrf.mxu1  ;;  %v2949_v39 = vmax.f32 %v2777_v32, 0.0 }
 0x29f   : > { %v2830_v13 = vadd.f32 %v4346_v22, %v5512_v3  ;;  %v2957_v52 = vmax.f32 %v2809_v54, 0.0  ;;  %v2937_v22 = vmax.f32 %v2729_v53, 0.0 }
 0x2a0   : > { %v2821_v4 = vpop.f32.mrf.mxu1 }
 0x2a1   : > { %v2962_v60 = vmax.f32 %v2830_v13, 0.0  ;;  %v2822_v47 = vadd.f32 %v5512_v3, %v2821_v4  ;;  %v2782_v4 = vadd.f32 %v4534_v6, %v5808_v38  ;;  %v2935_v13 = vmax.f32 %v2721_v16, 0.0 }
 0x2a2   : > { %v4347_v0 = vpop.f32.mrf.mxu1  ;;  %v2934_v38 = vmax.f32 %v2718_v10, 0.0 }
 0x2a3   : > { %v2833_v61 = vadd.f32 %v4347_v0, %v5512_v3  ;;  %v2960_v30 = vmax.f32 %v2822_v47, 0.0  ;;  %v2951_v0 = vmax.f32 %v2785_v44, 0.0 }
 0x2a4   : > { %v2824_v25 = vpop.f32.mrf.mxu1 }
 0x2a5   : > { %v2963_v51 = vmax.f32 %v2833_v61, 0.0  ;;  %v2825_v27 = vadd.f32 %v5512_v3, %v2824_v25  ;;  %v2952_v3 = vmax.f32 %v2790_v12, 0.0  ;;  %v2950_v61 = vmax.f32 %v2782_v4, 0.0 }
 0x2a6   : > { %v2933_v25 = vmax.f32 %v2713_v41, 0.0 }
 0x2a7   : > { %4039 = vmatprep.subr.mxu1 %v2963_v51  ;;  %v2961_v58 = vmax.f32 %v2825_v27, 0.0  ;;  %v2948_v51 = vmax.f32 %v2774_v36, 0.0  ;;  %v2932_v27 = vmax.f32 %v2710_v29, 0.0 }
 0x2a8   : > { %4040 = vmatpush3.msra.mxu1 %v2947_v40 }
 0x2a9   : > { %4041 = vmatprep.subr.mxu1 %v2962_v60 }
 0x2aa   : > { %4042 = vmatpush3.msra.mxu1 %v2946_v11 }
 0x2ab   : > { %4043 = vmatprep.subr.mxu1 %v2961_v58 }
 0x2ac   : > { %4044 = vmatpush3.msra.mxu1 %v2945_v23 }
 0x2ad   : > { %4045 = vmatprep.subr.mxu1 %v2960_v30  ;;  %v3092_v30 = vld [vmem:[%s311_s16] sm:$0x1] }
 0x2ae   : > { %4046 = vmatpush3.msra.mxu1 %v2944_v28 }
 0x2af   : > { %4047 = vmatprep.subr.mxu1 %v2959_v14 }
 0x2b0   : > { %4048 = vmatpush3.msra.mxu1 %v2943_v26 }
 0x2b1   : > { %4049 = vmatprep.subr.mxu1 %v2958_v33 }
 0x2b2   : > { %4050 = vmatpush3.msra.mxu1 %v2942_v31 }
 0x2b3   : > { %4051 = vmatprep.subr.mxu1 %v2957_v52 }
 0x2b4   : > { %4052 = vmatpush3.msra.mxu1 %v2941_v5 }
 0x2b5   : > { %4053 = vmatprep.subr.mxu1 %v2956_v43 }
 0x2b6   : > { %4054 = vmatpush3.msra.mxu1 %v2940_v45 }
 0x2b7   : > { %4055 = vmatprep.subr.mxu1 %v2955_v17 }
 0x2b8   : > { %4056 = vmatpush3.msra.mxu1 %v2939_v37 }
 0x2b9   : > { %4057 = vmatprep.subr.mxu1 %v2954_v20 }
 0x2ba   : > { %4058 = vmatpush3.msra.mxu1 %v2938_v59 }
 0x2bb   : > { %4059 = vmatprep.subr.mxu1 %v2953_v34 }
 0x2bc   : > { %4060 = vmatpush3.msra.mxu1 %v2937_v22 }
 0x2bd   : > { %4061 = vmatprep.subr.mxu1 %v2952_v3 }
 0x2be   : > { %4062 = vmatpush3.msra.mxu1 %v2936_v57 }
 0x2bf   : > { %4063 = vmatprep.subr.mxu1 %v2951_v0 }
 0x2c0   : > { %4064 = vmatpush3.msra.mxu1 %v2935_v13 }
 0x2c1   : > { %4065 = vmatprep.subr.mxu1 %v2950_v61 }
 0x2c2   : > { %4066 = vmatpush3.msra.mxu1 %v2934_v38 }
 0x2c3   : > { %4067 = vmatprep.subr.mxu1 %v2949_v39 }
 0x2c4   : > { %4068 = vmatpush3.msra.mxu1 %v2933_v25 }
 0x2c5   : > { %4069 = vmatprep.subr.mxu1 %v2948_v51 }
 0x2c6   : > { %4070 = vmatpush3.msra.mxu1 %v2932_v27 }
 0x2c7   : > { %3624 = vmatmul.mubr.f32.vlgmr.msra.gmra.mxu1 %v4524_v15  ;;  %v3966_v21 = vpop.f32.mrf.mxu0 }
 0x2c9   : > { %v3967_v46 = vpop.f32.mrf.mxu0 }
 0x2ca   : > { %v3968_v47 = vadd.f32 %v3967_v46, %v3966_v21 }
 0x307   : > { %v4001_v40 = vpop.f32.mrf.mxu1 }
 0x309   : > { %v4002_v18 = vpop.f32.mrf.mxu1 }
 0x30a   : > { %v4003_v11 = vadd.f32 %v4002_v18, %v4001_v40 }
 0x30c   : > { %v3486_v42 = vadd.f32 %v4003_v11, %v3968_v47 }
 0x347   : > { %v4036_v60 = vpop.f32.mrf.mxu0 }
 0x349   : > { %v4037_v35 = vpop.f32.mrf.mxu0 }
 0x34a   : > { %v4038_v19 = vadd.f32 %v4037_v35, %v4036_v60 }
 0x34c   : > { %v3556_v23 = vadd.f32 %v4038_v19, %v3486_v42 }
 0x387   : > { %v4071_v58 = vpop.f32.mrf.mxu1 }
 0x389   : > { %v4072_v63 = vpop.f32.mrf.mxu1 }
 0x38a   : > { %v4073_v50 = vadd.f32 %v4072_v63, %v4071_v58 }
 0x38c   : > { %v3626_v24 = vadd.f32 %v4073_v50, %v3556_v23 }
 0x38e   : > { %v3629_v28 = vadd.f32 %v3626_v24, %v3092_v30 }
 0x390   : > { %3630 = vst [vmem:[%s311_s16] sm:$0x1] %v3629_v28 }
 0x391 PF: > { %s16_s23 = sadd.s32 1, %s4557_s23   ;;  %s5886_s21 = smov %s4553_s22 }
 0x392   : > { %p13_p5 = scmp.ge.s32.totalorder %s16_s23, 4   ;;  %s5887_s22 = smov %s5889_s24 }
 0x394   :  { %15 = sbr.rel (!%p13_p5) target bundleno = 2 (0x2), region = 81 }

// kernel: spdcn_forward.3
= control target key start
LH: loop header
LB: loop body
LE: loop exit
PB: predicated region body
PF: predicated region fallthrough
CT: control target
= control target key end

     0   :  { %s9388_s15 = smov 0   ;;  %s9390_s16 = smov 0   ;;  %s13372_s0 = inlined_call_operand.vmem [shape: f32[2,1024,4], index: 0, kind: input, shape index: {}]   ;;  %s13373_s1 = inlined_call_operand.vmem [shape: f32[2,1,128], index: 1, kind: input, shape index: {}]   ;;  %s13374_s2 = inlined_call_operand.vmem [shape: bf16[4,128], index: 2, kind: input, shape index: {}]   ;;  %s13375_s3 = inlined_call_operand.vmem [shape: f32[1,128], index: 3, kind: input, shape index: {}]   ;;  %s13376_s4 = inlined_call_operand.vmem [shape: bf16[128,256], index: 4, kind: input, shape index: {}]   ;;  %s13377_s5 = inlined_call_operand.vmem [shape: f32[1,256], index: 5, kind: input, shape index: {}]   ;;  %s13378_s6 = inlined_call_operand.vmem [shape: bf16[128,64], index: 6, kind: input, shape index: {}]   ;;  %s13379_s7 = inlined_call_operand.vmem [shape: f32[1,64], index: 7, kind: input, shape index: {}]   ;;  %s13380_s8 = inlined_call_operand.vmem [shape: bf16[64,1], index: 8, kind: input, shape index: {}]   ;;  %s13381_s9 = inlined_call_operand.<no memory space> [shape: f32[1,1], index: 9, kind: input, shape index: {}]   ;;  %s13382_s10 = inlined_call_operand.vmem [shape: f32[2,1024,1], index: 10, kind: output, shape index: {}]  }
   0x1   :  { %v15_v0 = vstv %s13381_s9  ;;  %s9392_s17 = smov 0  }
   0x2   :  { %16 = vst [vmem:[#allocation2] sm:$0x1] %v15_v0 }
   0x3 LB: > { %s34_s9 = sadd.s32 1, %s9322_s16  ;;  %p7553_p0 = scmp.ge.s32.totalorder %s9326_s17, 1  ;;  %s9326_s17 = sphi %s9392_s17, %s22_s17   ;;  %s9322_s16 = sphi %s9390_s16, %s13842_s16   ;;  %s9318_s15 = sphi %s9388_s15, %s13841_s15  }
   0x4   : > { %p36_p1 = scmp.ge.s32.totalorder %s34_s9, 2  ;;  %p343_p2 = scmp.lt.s32.totalorder %s9326_s17, 3 }
   0x6   : > { %s13844_s9 = smov (%p36_p1, %s34_s9), 0  ;;  %p344_p3 = pnand %p7553_p0, %p343_p2 }
   0x8   : > { %347 = sbr.rel (%p344_p3) target bundleno = 1610 (0x64a), region = 60 }
   0xd   : > { %v608_v1 = vld [vmem:[%s13374_s2] sm:$0x3]  ;;  %vm809_vm0 = vcmask 1041408   ;;  %p393_p4 = scmp.lt.s32.totalorder %s9318_s15, 1  ;;  %v9328_v2 = vmov 3   ;;  %vm616_vm1 = vcmask 31744  }
   0xe   : > { %8495 = vset.pattern.permute.xlu1 %v9328_v2  ;;  %8494 = vset.pattern.permute.xlu0 %v9328_v2  ;;  %v811_v3 = vsel %vm809_vm0, %v608_v1, 0  ;;  %v8498_v4 = vld [vmem:[%s13376_s4 + $0x74] ss:$8 sps:$4 sm:$0xff]   ;;  %v8496_v28 = vld [vmem:[%s13376_s4 + $0x70] ss:$8 sps:$4 sm:$0xff]   ;;  %vm3357_vm2 = vcmask 1040384  }
   0xf   : > { %8466 = vmatprep.subr.msk.bf16.mxu0 %vm809_vm0, %v608_v1  ;;  %s13846_s15 = smov (!%p393_p4, %s9318_s15), 1  ;;  %8467 = vmatprep.subr.msk.bf16.mxu1 %vm809_vm0, %v608_v1  ;;  %v8501_v30 = vld [vmem:[%s13376_s4 + $0x64] ss:$8 sps:$4 sm:$0xff]   ;;  %v8499_v37 = vld [vmem:[%s13376_s4 + $0x60] ss:$8 sps:$4 sm:$0xff]   ;;  %vm6458_vm3 = vcmask 523264  }
  0x10   : > { %8055 = vmatpush3.bf16.msra.mxu0 %v811_v3  ;;  %8465 = vmatpush3.bf16.msra.mxu1 %v811_v3  ;;  %s7847_s22 = sshll.u32 %s13846_s15, 10  ;;  %v8504_v41 = vld [vmem:[%s13376_s4 + $0x54] ss:$8 sps:$4 sm:$0xff]   ;;  %v8502_v45 = vld [vmem:[%s13376_s4 + $0x50] ss:$8 sps:$4 sm:$0xff]   ;;  %s404_s29 = scalar_lea.vmem %s13373_s1, %s13846_s15  ;;  %vm7324_vm4 = vcmask 7168  }
  0x11   : > { %2426 = vmatprep.subr.bf16.mxu1 %v8498_v4  ;;  %s9420_s25 = scalar_lea.vmem %s13372_s0, %s7847_s22  ;;  %s12922_s12 = scalar_lea.vmem %s13382_s10, %s7847_s22 }
  0x12   : > { %v418_v5 = vld [vmem:[%s9420_s25 + $0x10] sm:$0xff]  ;;  %v419_v6 = vld [vmem:[%s9420_s25 + $0x18] sm:$0xff]  ;;  %v416_v7 = vld [vmem:[%s9420_s25] sm:$0xff] }
  0x13   : > { %1498 = vperm.xlu1 %8495, %v418_v5   ;;  %v545_v8 = vpack.c.bf16 %v419_v6, %v418_v5  ;;  %1488 = vperm.xlu0 %8494, %v416_v7   ;;  %v417_v9 = vld [vmem:[%s9420_s25 + $0x8] sm:$0xff]  ;;  %v420_v11 = vld [vmem:[%s9420_s25 + $0x20] sm:$0xff]  ;;  %v422_v14 = vld [vmem:[%s9420_s25 + $0x30] sm:$0xff] }
  0x14   : > { %v421_v10 = vld [vmem:[%s9420_s25 + $0x28] sm:$0xff]  ;;  %v544_v12 = vpack.c.bf16 %v417_v9, %v416_v7  ;;  %v423_v15 = vld [vmem:[%s9420_s25 + $0x38] sm:$0xff]  ;;  %v424_v17 = vld [vmem:[%s9420_s25 + $0x40] sm:$0xff] }
  0x15   : > { %v546_v13 = vpack.c.bf16 %v421_v10, %v420_v11  ;;  %v425_v16 = vld [vmem:[%s9420_s25 + $0x48] sm:$0xff]  ;;  %v9436_v18 = vld [vmem:[%s9420_s25 + $0x200] sm:$0xff]  ;;  %v547_v20 = vpack.c.bf16 %v423_v15, %v422_v14  ;;  %v9444_v22 = vld [vmem:[%s9420_s25 + $0x210] sm:$0xff] }
  0x16   : > { %8056 = vmatprep.mubr.msk.bf16.mxu0 %vm616_vm1, %v544_v12  ;;  %v9439_v19 = vld [vmem:[%s9420_s25 + $0x208] sm:$0xff]  ;;  %v9447_v23 = vld [vmem:[%s9420_s25 + $0x218] sm:$0xff]  ;;  %v548_v24 = vpack.c.bf16 %v425_v16, %v424_v17  ;;  %v9452_v26 = vld [vmem:[%s9420_s25 + $0x220] sm:$0xff] }
  0x17   : > { %8057 = vmatmul.mubr.msk.bf16.vlgmr.msra.gmra.mxu0 %vm616_vm1, %v545_v8  ;;  %1503 = vperm.xlu1 %8495, %v419_v6   ;;  %v576_v21 = vpack.c.bf16 %v9439_v19, %v9436_v18  ;;  %v577_v25 = vpack.c.bf16 %v9447_v23, %v9444_v22  ;;  %v9456_v27 = vld [vmem:[%s9420_s25 + $0x228] sm:$0xff]  ;;  %v9469_v31 = vld [vmem:[%s9420_s25 + $0x230] sm:$0xff]  ;;  %v9472_v32 = vld [vmem:[%s9420_s25 + $0x238] sm:$0xff] }
  0x18   : > { %1493 = vperm.xlu0 %8494, %v417_v9   ;;  %8060 = vmatprep.mubr.msk.bf16.mxu0 %vm616_vm1, %v546_v13  ;;  %v578_v29 = vpack.c.bf16 %v9456_v27, %v9452_v26  ;;  %v426_v33 = vld [vmem:[%s9420_s25 + $0x50] sm:$0xff]  ;;  %v427_v34 = vld [vmem:[%s9420_s25 + $0x58] sm:$0xff]  ;;  %v429_v35 = vld [vmem:[%s9420_s25 + $0x68] sm:$0xff]  ;;  %v579_v38 = vpack.c.bf16 %v9472_v32, %v9469_v31 }
  0x19   : > { %8120 = vmatprep.mubr.msk.bf16.mxu1 %vm616_vm1, %v576_v21  ;;  %v428_v36 = vld [vmem:[%s9420_s25 + $0x60] sm:$0xff]  ;;  %v9489_v40 = vld [vmem:[%s9420_s25 + $0x248] sm:$0xff]  ;;  %v549_v42 = vpack.c.bf16 %v427_v34, %v426_v33  ;;  %v9502_v46 = vld [vmem:[%s9420_s25 + $0x250] sm:$0xff] }
  0x1a   : > { %8121 = vmatmul.mubr.msk.bf16.vlgmr.msra.gmra.mxu1 %vm616_vm1, %v577_v25  ;;  %v9486_v39 = vld [vmem:[%s9420_s25 + $0x240] sm:$0xff]  ;;  %v550_v43 = vpack.c.bf16 %v429_v35, %v428_v36  ;;  %v9505_v47 = vld [vmem:[%s9420_s25 + $0x258] sm:$0xff]  ;;  %v430_v48 = vld [vmem:[%s9420_s25 + $0x70] sm:$0xff] }
  0x1b   : > { %1513 = vperm.xlu1 %8495, %v421_v10   ;;  %8124 = vmatprep.mubr.msk.bf16.mxu1 %vm616_vm1, %v578_v29  ;;  %v580_v44 = vpack.c.bf16 %v9489_v40, %v9486_v39  ;;  %v431_v49 = vld [vmem:[%s9420_s25 + $0x78] sm:$0xff]  ;;  %v433_v50 = vld [vmem:[%s9420_s25 + $0x88] sm:$0xff]  ;;  %v432_v51 = vld [vmem:[%s9420_s25 + $0x80] sm:$0xff]  ;;  %v581_v52 = vpack.c.bf16 %v9505_v47, %v9502_v46 }
  0x1c   : > { %1508 = vperm.xlu0 %8494, %v420_v11   ;;  %2427 = vmatpush1.bf16.msra.mxu1 %v8496_v28  ;;  %v9516_v53 = vld [vmem:[%s9420_s25 + $0x260] sm:$0xff]  ;;  %v9519_v54 = vld [vmem:[%s9420_s25 + $0x268] sm:$0xff]  ;;  %v551_v55 = vpack.c.bf16 %v431_v49, %v430_v48  ;;  %v552_v56 = vpack.c.bf16 %v433_v50, %v432_v51  ;;  %v9526_v58 = vld [vmem:[%s9420_s25 + $0x270] sm:$0xff] }
  0x1d   : > { %2428 = vmatprep.subr.bf16.mxu1 %v8501_v30  ;;  %v582_v57 = vpack.c.bf16 %v9519_v54, %v9516_v53  ;;  %v9529_v59 = vld [vmem:[%s9420_s25 + $0x278] sm:$0xff]  ;;  %v434_v60 = vld [vmem:[%s9420_s25 + $0x90] sm:$0xff]  ;;  %v437_v62 = vld [vmem:[%s9420_s25 + $0xa8] sm:$0xff] }
  0x1e   : > { %v435_v61 = vld [vmem:[%s9420_s25 + $0x98] sm:$0xff]  ;;  %v436_v63 = vld [vmem:[%s9420_s25 + $0xa0] sm:$0xff]  ;;  %v583_v0 = vpack.c.bf16 %v9529_v59, %v9526_v58  ;;  %v9543_v2 = vld [vmem:[%s9420_s25 + $0x288] sm:$0xff] }
  0x1f   : > { %8061 = vmatmul.mubr.msk.bf16.gmra.mxu0 %vm616_vm1, %v547_v20  ;;  %1523 = vperm.xlu1 %8495, %v423_v15   ;;  %v9540_v1 = vld [vmem:[%s9420_s25 + $0x280] sm:$0xff]  ;;  %v553_v3 = vpack.c.bf16 %v435_v61, %v434_v60  ;;  %v554_v4 = vpack.c.bf16 %v437_v62, %v436_v63  ;;  %v9556_v8 = vld [vmem:[%s9420_s25 + $0x290] sm:$0xff]  ;;  %v9559_v9 = vld [vmem:[%s9420_s25 + $0x298] sm:$0xff] }
  0x20   : > { %1518 = vperm.xlu0 %8494, %v422_v14   ;;  %8064 = vmatprep.mubr.msk.bf16.mxu0 %vm616_vm1, %v548_v24  ;;  %v584_v5 = vpack.c.bf16 %v9543_v2, %v9540_v1  ;;  %v8505_v6 = vld [vmem:[%s13376_s4 + $0x40] ss:$8 sps:$4 sm:$0xff]   ;;  %v8507_v7 = vld [vmem:[%s13376_s4 + $0x44] ss:$8 sps:$4 sm:$0xff]   ;;  %v438_v10 = vld [vmem:[%s9420_s25 + $0xb0] sm:$0xff]  ;;  %v585_v14 = vpack.c.bf16 %v9559_v9, %v9556_v8 }
  0x21   : > { %2429 = vmatpush1.bf16.msra.mxu1 %v8499_v37  ;;  %v439_v11 = vld [vmem:[%s9420_s25 + $0xb8] sm:$0xff]  ;;  %v441_v12 = vld [vmem:[%s9420_s25 + $0xc8] sm:$0xff]  ;;  %v440_v13 = vld [vmem:[%s9420_s25 + $0xc0] sm:$0xff] }
  0x22   : > { %8125 = vmatmul.mubr.msk.bf16.gmra.mxu1 %vm616_vm1, %v579_v38  ;;  %2430 = vmatprep.subr.bf16.mxu1 %v8504_v41  ;;  %v9570_v15 = vld [vmem:[%s9420_s25 + $0x2a0] sm:$0xff]  ;;  %v555_v20 = vpack.c.bf16 %v439_v11, %v438_v10  ;;  %v556_v21 = vpack.c.bf16 %v441_v12, %v440_v13  ;;  %v8508_v25 = vld [vmem:[%s13376_s4 + $0x30] ss:$8 sps:$4 sm:$0xff]   ;;  %v9606_v41 = vld [vmem:[%s9420_s25 + $0x2c8] sm:$0xff] }
  0x23   : > { %1533 = vperm.xlu1 %8495, %v425_v16   ;;  %8128 = vmatprep.mubr.msk.bf16.mxu1 %vm616_vm1, %v580_v44  ;;  %v9573_v16 = vld [vmem:[%s9420_s25 + $0x2a8] sm:$0xff]  ;;  %v442_v28 = vld [vmem:[%s9420_s25 + $0xd0] sm:$0xff]  ;;  %v443_v29 = vld [vmem:[%s9420_s25 + $0xd8] sm:$0xff] }
  0x24   : > { %1528 = vperm.xlu0 %8494, %v424_v17   ;;  %v8510_v17 = vld [vmem:[%s13376_s4 + $0x34] ss:$8 sps:$4 sm:$0xff]   ;;  %v586_v24 = vpack.c.bf16 %v9573_v16, %v9570_v15  ;;  %v8511_v37 = vld [vmem:[%s13376_s4 + $0x20] ss:$8 sps:$4 sm:$0xff]  }
  0x25   : > { %2431 = vmatpush1.bf16.msra.mxu1 %v8502_v45  ;;  %v9587_v30 = vld [vmem:[%s9420_s25 + $0x2b0] sm:$0xff]  ;;  %v9603_v38 = vld [vmem:[%s9420_s25 + $0x2c0] sm:$0xff] }
  0x26   : > { %2432 = vmatprep.subr.bf16.mxu1 %v8507_v7  ;;  %v8514_v45 = vld [vmem:[%s13376_s4 + $0x10] ss:$8 sps:$4 sm:$0xff]  }
  0x27   : > { %8065 = vmatmul.mubr.msk.bf16.gmra.mxu0 %vm616_vm1, %v549_v42  ;;  %1543 = vperm.xlu1 %8495, %v427_v34   ;;  %v445_v34 = vld [vmem:[%s9420_s25 + $0xe8] sm:$0xff]  ;;  %v451_v7 = vld [vmem:[%s9420_s25 + $0x118] sm:$0xff] }
  0x28   : > { %1538 = vperm.xlu0 %8494, %v426_v33   ;;  %8068 = vmatprep.mubr.msk.bf16.mxu0 %vm616_vm1, %v550_v43  ;;  %v8513_v33 = vld [vmem:[%s13376_s4 + $0x24] ss:$8 sps:$4 sm:$0xff]   ;;  %v557_v43 = vpack.c.bf16 %v443_v29, %v442_v28 }
  0x29   : > { %2433 = vmatpush1.bf16.msra.mxu1 %v8505_v6  ;;  %v450_v6 = vld [vmem:[%s9420_s25 + $0x110] sm:$0xff] }
  0x2a   : > { %8129 = vmatmul.mubr.msk.bf16.gmra.mxu1 %vm616_vm1, %v581_v52  ;;  %2434 = vmatprep.subr.bf16.mxu1 %v8510_v17  ;;  %v446_v52 = vld [vmem:[%s9420_s25 + $0xf0] sm:$0xff]  ;;  %v561_v17 = vpack.c.bf16 %v451_v7, %v450_v6 }
  0x2b   : > { %1553 = vperm.xlu1 %8495, %v429_v35   ;;  %8132 = vmatprep.mubr.msk.bf16.mxu1 %vm616_vm1, %v582_v57  ;;  %v444_v35 = vld [vmem:[%s9420_s25 + $0xe0] sm:$0xff] }
  0x2c   : > { %1548 = vperm.xlu0 %8494, %v428_v36   ;;  %v9596_v36 = vld [vmem:[%s9420_s25 + $0x2b8] sm:$0xff]  ;;  %v558_v44 = vpack.c.bf16 %v445_v34, %v444_v35  ;;  %v448_v57 = vld [vmem:[%s9420_s25 + $0x100] sm:$0xff] }
  0x2d   : > { %2435 = vmatpush1.bf16.msra.mxu1 %v8508_v25  ;;  %v587_v42 = vpack.c.bf16 %v9596_v36, %v9587_v30  ;;  %v8517_v25 = vld [vmem:[%s13376_s4] ss:$8 sps:$4 sm:$0xff]  }
  0x2e   : > { %2436 = vmatprep.subr.bf16.mxu1 %v8513_v33  ;;  %v454_v33 = vld [vmem:[%s9420_s25 + $0x130] sm:$0xff] }
  0x2f   : > { %8069 = vmatmul.mubr.msk.bf16.gmra.mxu0 %vm616_vm1, %v551_v55  ;;  %1563 = vperm.xlu1 %8495, %v431_v49   ;;  %v588_v49 = vpack.c.bf16 %v9606_v41, %v9603_v38  ;;  %v447_v55 = vld [vmem:[%s9420_s25 + $0xf8] sm:$0xff] }
  0x30   : > { %1558 = vperm.xlu0 %8494, %v430_v48   ;;  %8072 = vmatprep.mubr.msk.bf16.mxu0 %vm616_vm1, %v552_v56  ;;  %v8516_v48 = vld [vmem:[%s13376_s4 + $0x14] ss:$8 sps:$4 sm:$0xff]   ;;  %v449_v56 = vld [vmem:[%s9420_s25 + $0x108] sm:$0xff] }
  0x31   : > { %2437 = vmatpush1.bf16.msra.mxu1 %v8511_v37  ;;  %v456_v37 = vld [vmem:[%s9420_s25 + $0x140] sm:$0xff] }
  0x32   : > { %8133 = vmatmul.mubr.msk.bf16.gmra.mxu1 %vm616_vm1, %v583_v0  ;;  %2438 = vmatprep.subr.bf16.mxu1 %v8516_v48  ;;  %v560_v0 = vpack.c.bf16 %v449_v56, %v448_v57 }
  0x33   : > { %1573 = vperm.xlu1 %8495, %v433_v50   ;;  %8136 = vmatprep.mubr.msk.bf16.mxu1 %vm616_vm1, %v584_v5  ;;  %v9620_v50 = vld [vmem:[%s9420_s25 + $0x2d0] sm:$0xff]  ;;  %v9649_v5 = vld [vmem:[%s9420_s25 + $0x2f8] sm:$0xff] }
  0x34   : > { %1568 = vperm.xlu0 %8494, %v432_v51   ;;  %v9623_v51 = vld [vmem:[%s9420_s25 + $0x2d8] sm:$0xff] }
  0x35   : > { %2439 = vmatpush1.bf16.msra.mxu1 %v8514_v45 }
  0x37   : > { %8073 = vmatmul.mubr.msk.bf16.gmra.mxu0 %vm616_vm1, %v553_v3  ;;  %1583 = vperm.xlu1 %8495, %v435_v61   ;;  %v9636_v61 = vld [vmem:[%s9420_s25 + $0x2e0] sm:$0xff] }
  0x38   : > { %1578 = vperm.xlu0 %8494, %v434_v60   ;;  %8076 = vmatprep.mubr.msk.bf16.mxu0 %vm616_vm1, %v554_v4  ;;  %v589_v60 = vpack.c.bf16 %v9623_v51, %v9620_v50  ;;  %v9646_v4 = vld [vmem:[%s9420_s25 + $0x2f0] sm:$0xff] }
  0x3a   : > { %8137 = vmatmul.mubr.msk.bf16.gmra.mxu1 %vm616_vm1, %v585_v14  ;;  %v9663_v14 = vld [vmem:[%s9420_s25 + $0x308] sm:$0xff] }
  0x3b   : > { %1593 = vperm.xlu1 %8495, %v437_v62   ;;  %8140 = vmatprep.mubr.msk.bf16.mxu1 %vm616_vm1, %v586_v24  ;;  %v9639_v62 = vld [vmem:[%s9420_s25 + $0x2e8] sm:$0xff] }
  0x3c   : > { %1588 = vperm.xlu0 %8494, %v436_v63   ;;  %v559_v63 = vpack.c.bf16 %v447_v55, %v446_v52  ;;  %v590_v3 = vpack.c.bf16 %v9639_v62, %v9636_v61 }
  0x3f   : > { %8077 = vmatmul.mubr.msk.bf16.gmra.mxu0 %vm616_vm1, %v555_v20  ;;  %1603 = vperm.xlu1 %8495, %v439_v11   ;;  %v452_v11 = vld [vmem:[%s9420_s25 + $0x120] sm:$0xff] }
  0x40   : > { %1598 = vperm.xlu0 %8494, %v438_v10   ;;  %8080 = vmatprep.mubr.msk.bf16.mxu0 %vm616_vm1, %v556_v21  ;;  %v453_v10 = vld [vmem:[%s9420_s25 + $0x128] sm:$0xff] }
  0x41   : > { %v562_v20 = vpack.c.bf16 %v453_v10, %v452_v11  ;;  %v8519_v21 = vld [vmem:[%s13376_s4 + $0x4] ss:$8 sps:$4 sm:$0xff]  }
  0x42   : > { %8141 = vmatmul.mubr.msk.bf16.gmra.mxu1 %vm616_vm1, %v587_v42  ;;  %2440 = vmatprep.subr.bf16.mxu1 %v8519_v21  ;;  %v463_v21 = vld [vmem:[%s9420_s25 + $0x178] sm:$0xff] }
  0x43   : > { %1613 = vperm.xlu1 %8495, %v441_v12   ;;  %8144 = vmatprep.mubr.msk.bf16.mxu1 %vm616_vm1, %v588_v49  ;;  %v591_v12 = vpack.c.bf16 %v9649_v5, %v9646_v4 }
  0x44   : > { %1608 = vperm.xlu0 %8494, %v440_v13   ;;  %v9660_v13 = vld [vmem:[%s9420_s25 + $0x300] sm:$0xff]  ;;  %2441 = vmatpush1.bf16.msra.mxu1 %v8517_v25 }
  0x45   : > { %v592_v24 = vpack.c.bf16 %v9663_v14, %v9660_v13  ;;  %v464_v25 = vld [vmem:[%s9420_s25 + $0x180] sm:$0xff] }
  0x47   : > { %8081 = vmatmul.mubr.msk.bf16.gmra.mxu0 %vm616_vm1, %v557_v43  ;;  %1623 = vperm.xlu1 %8495, %v443_v29   ;;  %v9679_v29 = vld [vmem:[%s9420_s25 + $0x318] sm:$0xff]  ;;  %v9690_v43 = vld [vmem:[%s9420_s25 + $0x320] sm:$0xff] }
  0x48   : > { %1618 = vperm.xlu0 %8494, %v442_v28   ;;  %8084 = vmatprep.mubr.msk.bf16.mxu0 %vm616_vm1, %v558_v44  ;;  %v9676_v28 = vld [vmem:[%s9420_s25 + $0x310] sm:$0xff]  ;;  %v9693_v44 = vld [vmem:[%s9420_s25 + $0x328] sm:$0xff] }
  0x49   : > { %v593_v42 = vpack.c.bf16 %v9679_v29, %v9676_v28  ;;  %v594_v49 = vpack.c.bf16 %v9693_v44, %v9690_v43 }
  0x4a   : > { %8145 = vmatmul.mubr.msk.bf16.gmra.mxu1 %vm616_vm1, %v589_v60  ;;  %v461_v60 = vld [vmem:[%s9420_s25 + $0x168] sm:$0xff] }
  0x4b   : > { %1633 = vperm.xlu1 %8495, %v445_v34   ;;  %8148 = vmatprep.mubr.msk.bf16.mxu1 %vm616_vm1, %v590_v3  ;;  %v455_v34 = vld [vmem:[%s9420_s25 + $0x138] sm:$0xff]  ;;  %v9714_v3 = vld [vmem:[%s9420_s25 + $0x340] sm:$0xff] }
  0x4c   : > { %1628 = vperm.xlu0 %8494, %v444_v35   ;;  %v457_v35 = vld [vmem:[%s9420_s25 + $0x148] sm:$0xff]  ;;  %v563_v45 = vpack.c.bf16 %v455_v34, %v454_v33 }
  0x4d   : > { %v564_v48 = vpack.c.bf16 %v457_v35, %v456_v37 }
  0x4f   : > { %8085 = vmatmul.mubr.msk.bf16.gmra.mxu0 %vm616_vm1, %v559_v63  ;;  %1643 = vperm.xlu1 %8495, %v447_v55   ;;  %v9703_v55 = vld [vmem:[%s9420_s25 + $0x338] sm:$0xff]  ;;  %v460_v63 = vld [vmem:[%s9420_s25 + $0x160] sm:$0xff] }
  0x50   : > { %1638 = vperm.xlu0 %8494, %v446_v52   ;;  %8088 = vmatprep.mubr.msk.bf16.mxu0 %vm616_vm1, %v560_v0  ;;  %v9700_v52 = vld [vmem:[%s9420_s25 + $0x330] sm:$0xff] }
  0x51   : > { %v595_v0 = vpack.c.bf16 %v9703_v55, %v9700_v52 }
  0x52   : > { %8149 = vmatmul.mubr.msk.bf16.gmra.mxu1 %vm616_vm1, %v591_v12  ;;  %v9724_v12 = vld [vmem:[%s9420_s25 + $0x350] sm:$0xff] }
  0x53   : > { %1653 = vperm.xlu1 %8495, %v449_v56   ;;  %8152 = vmatprep.mubr.msk.bf16.mxu1 %vm616_vm1, %v592_v24  ;;  %v458_v56 = vld [vmem:[%s9420_s25 + $0x150] sm:$0xff]  ;;  %v465_v24 = vld [vmem:[%s9420_s25 + $0x188] sm:$0xff] }
  0x54   : > { %1648 = vperm.xlu0 %8494, %v448_v57   ;;  %v459_v57 = vld [vmem:[%s9420_s25 + $0x158] sm:$0xff] }
  0x57   : > { %8089 = vmatmul.mubr.msk.bf16.gmra.mxu0 %vm616_vm1, %v561_v17  ;;  %1663 = vperm.xlu1 %8495, %v451_v7   ;;  %v565_v7 = vpack.c.bf16 %v459_v57, %v458_v56  ;;  %v9727_v17 = vld [vmem:[%s9420_s25 + $0x358] sm:$0xff] }
  0x58   : > { %1658 = vperm.xlu0 %8494, %v450_v6   ;;  %8092 = vmatprep.mubr.msk.bf16.mxu0 %vm616_vm1, %v562_v20  ;;  %v9717_v6 = vld [vmem:[%s9420_s25 + $0x348] sm:$0xff]  ;;  %v462_v20 = vld [vmem:[%s9420_s25 + $0x170] sm:$0xff] }
  0x5a   : > { %8153 = vmatmul.mubr.msk.bf16.gmra.mxu1 %vm616_vm1, %v593_v42  ;;  %v568_v42 = vpack.c.bf16 %v465_v24, %v464_v25 }
  0x5b   : > { %1673 = vperm.xlu1 %8495, %v453_v10   ;;  %8156 = vmatprep.mubr.msk.bf16.mxu1 %vm616_vm1, %v594_v49  ;;  %v566_v10 = vpack.c.bf16 %v461_v60, %v460_v63  ;;  %v9751_v49 = vld [vmem:[%s9420_s25 + $0x378] sm:$0xff] }
  0x5c   : > { %1668 = vperm.xlu0 %8494, %v452_v11   ;;  %v596_v11 = vpack.c.bf16 %v9717_v6, %v9714_v3 }
  0x5f   : > { %8093 = vmatmul.mubr.msk.bf16.gmra.mxu0 %vm616_vm1, %v563_v45  ;;  %1683 = vperm.xlu1 %8495, %v455_v34   ;;  %v9738_v34 = vld [vmem:[%s9420_s25 + $0x360] sm:$0xff] }
  0x60   : > { %1678 = vperm.xlu0 %8494, %v454_v33   ;;  %8096 = vmatprep.mubr.msk.bf16.mxu0 %vm616_vm1, %v564_v48  ;;  %v597_v33 = vpack.c.bf16 %v9727_v17, %v9724_v12  ;;  %v9748_v48 = vld [vmem:[%s9420_s25 + $0x370] sm:$0xff] }
  0x62   : > { %8157 = vmatmul.mubr.msk.bf16.gmra.mxu1 %vm616_vm1, %v595_v0  ;;  %v599_v0 = vpack.c.bf16 %v9751_v49, %v9748_v48 }
  0x63   : > { %1693 = vperm.xlu1 %8495, %v457_v35   ;;  %8160 = vmatprep.mubr.msk.bf16.mxu1 %vm616_vm1, %v596_v11  ;;  %v9741_v35 = vld [vmem:[%s9420_s25 + $0x368] sm:$0xff] }
  0x64   : > { %1688 = vperm.xlu0 %8494, %v456_v37   ;;  %v567_v37 = vpack.c.bf16 %v463_v21, %v462_v20  ;;  %v598_v45 = vpack.c.bf16 %v9741_v35, %v9738_v34 }
  0x67   : > { %8097 = vmatmul.mubr.msk.bf16.gmra.mxu0 %vm616_vm1, %v565_v7  ;;  %1703 = vperm.xlu1 %8495, %v459_v57   ;;  %v467_v57 = vld [vmem:[%s9420_s25 + $0x198] sm:$0xff]  ;;  %v9762_v7 = vld [vmem:[%s9420_s25 + $0x380] sm:$0xff] }
  0x68   : > { %1698 = vperm.xlu0 %8494, %v458_v56   ;;  %8100 = vmatprep.mubr.msk.bf16.mxu0 %vm616_vm1, %v566_v10  ;;  %v466_v56 = vld [vmem:[%s9420_s25 + $0x190] sm:$0xff]  ;;  %13417 = vst [vmem:[#allocation3_spill] sm:$0xff] %v9762_v7  ;;  %v9765_v10 = vld [vmem:[%s9420_s25 + $0x388] sm:$0xff] }
  0x69   : > { %13418 = vst [vmem:[#allocation4_spill] sm:$0xff] %v9765_v10  ;;  %v569_v11 = vpack.c.bf16 %v467_v57, %v466_v56 }
  0x6a   : > { %8161 = vmatmul.mubr.msk.bf16.gmra.mxu1 %vm616_vm1, %v597_v33  ;;  %v9772_v33 = vld [vmem:[%s9420_s25 + $0x390] sm:$0xff] }
  0x6b   : > { %1713 = vperm.xlu1 %8495, %v461_v60   ;;  %v469_v60 = vld [vmem:[%s9420_s25 + $0x1a8] sm:$0xff]  ;;  %8164 = vmatprep.mubr.msk.bf16.mxu1 %vm616_vm1, %v598_v45  ;;  %13419 = vst [vmem:[#allocation5_spill] sm:$0xff] %v9772_v33  ;;  %v472_v45 = vld [vmem:[%s9420_s25 + $0x1c0] sm:$0xff] }
  0x6c   : > { %1708 = vperm.xlu0 %8494, %v460_v63   ;;  %v468_v63 = vld [vmem:[%s9420_s25 + $0x1a0] sm:$0xff] }
  0x6f   : > { %8101 = vmatmul.mubr.msk.bf16.gmra.mxu0 %vm616_vm1, %v567_v37  ;;  %1723 = vperm.xlu1 %8495, %v463_v21   ;;  %v600_v21 = vpack.c.bf16 %v9765_v10, %v9762_v7  ;;  %v9775_v37 = vld [vmem:[%s9420_s25 + $0x398] sm:$0xff]  ;;  %v477_v7 = vld [vmem:[%s9420_s25 + $0x1e8] sm:$0xff]  ;;  %v476_v10 = vld [vmem:[%s9420_s25 + $0x1e0] sm:$0xff] }
  0x70   : > { %1718 = vperm.xlu0 %8494, %v462_v20   ;;  %8104 = vmatprep.mubr.msk.bf16.mxu0 %vm616_vm1, %v568_v42  ;;  %v570_v20 = vpack.c.bf16 %v469_v60, %v468_v63  ;;  %13420 = vst [vmem:[#allocation6_spill] sm:$0xff] %v9775_v37  ;;  %v473_v42 = vld [vmem:[%s9420_s25 + $0x1c8] sm:$0xff] }
  0x72   : > { %8165 = vmatmul.mubr.msk.bf16.gmra.mxu1 %vm616_vm1, %v599_v0  ;;  %v601_v0 = vpack.c.bf16 %v9775_v37, %v9772_v33  ;;  %v9796_v33 = vld [vmem:[%s9420_s25 + $0x3b0] sm:$0xff]  ;;  %v9799_v37 = vld [vmem:[%s9420_s25 + $0x3b8] sm:$0xff] }
  0x73   : > { %1733 = vperm.xlu1 %8495, %v465_v24   ;;  %v470_v24 = vld [vmem:[%s9420_s25 + $0x1b0] sm:$0xff]  ;;  %8168 = vmatprep.mubr.msk.bf16.mxu1 %vm616_vm1, %v600_v21  ;;  %13422 = vst [vmem:[#allocation8_spill] sm:$0xff] %v9796_v33  ;;  %13423 = vst [vmem:[#allocation9_spill] sm:$0xff] %v9799_v37 }
  0x74   : > { %1728 = vperm.xlu0 %8494, %v464_v25   ;;  %v471_v25 = vld [vmem:[%s9420_s25 + $0x1b8] sm:$0xff] }
  0x77   : > { %8105 = vmatmul.mubr.msk.bf16.gmra.mxu0 %vm616_vm1, %v569_v11  ;;  %1743 = vperm.xlu1 %8495, %v467_v57   ;;  %v9786_v57 = vld [vmem:[%s9420_s25 + $0x3a0] sm:$0xff]  ;;  %v9789_v11 = vld [vmem:[%s9420_s25 + $0x3a8] sm:$0xff] }
  0x78   : > { %1738 = vperm.xlu0 %8494, %v466_v56   ;;  %8108 = vmatprep.mubr.msk.bf16.mxu0 %vm616_vm1, %v570_v20  ;;  %13421 = vst [vmem:[#allocation7_spill] sm:$0xff] %v9786_v57  ;;  %v571_v56 = vpack.c.bf16 %v471_v25, %v470_v24  ;;  %v572_v20 = vpack.c.bf16 %v473_v42, %v472_v45 }
  0x79   : > { %v602_v21 = vpack.c.bf16 %v9789_v11, %v9786_v57 }
  0x7a   : > { %8169 = vmatmul.mubr.msk.bf16.gmra.mxu1 %vm616_vm1, %v601_v0  ;;  %v603_v0 = vpack.c.bf16 %v9799_v37, %v9796_v33  ;;  %v9823_v33 = vld [vmem:[%s9420_s25 + $0x3d8] sm:$0xff]  ;;  %v9830_v37 = vld [vmem:[%s9420_s25 + $0x3e0] sm:$0xff] }
  0x7b   : > { %1753 = vperm.xlu1 %8495, %v469_v60   ;;  %v474_v60 = vld [vmem:[%s9420_s25 + $0x1d0] sm:$0xff]  ;;  %8172 = vmatprep.mubr.msk.bf16.mxu1 %vm616_vm1, %v602_v21  ;;  %13426 = vst [vmem:[#allocation12_spill] sm:$0xff] %v9830_v37 }
  0x7c   : > { %1748 = vperm.xlu0 %8494, %v468_v63   ;;  %v475_v63 = vld [vmem:[%s9420_s25 + $0x1d8] sm:$0xff]  ;;  %v9820_v21 = vld [vmem:[%s9420_s25 + $0x3d0] sm:$0xff] }
  0x7f   : > { %8109 = vmatmul.mubr.msk.bf16.gmra.mxu0 %vm616_vm1, %v571_v56  ;;  %1763 = vperm.xlu1 %8495, %v471_v25   ;;  %v9810_v25 = vld [vmem:[%s9420_s25 + $0x3c0] sm:$0xff]  ;;  %v9813_v56 = vld [vmem:[%s9420_s25 + $0x3c8] sm:$0xff] }
  0x80   : > { %1758 = vperm.xlu0 %8494, %v470_v24   ;;  %8112 = vmatprep.mubr.msk.bf16.mxu0 %vm616_vm1, %v572_v20  ;;  %13424 = vst [vmem:[#allocation10_spill] sm:$0xff] %v9810_v25  ;;  %13425 = vst [vmem:[#allocation11_spill] sm:$0xff] %v9813_v56  ;;  %v573_v24 = vpack.c.bf16 %v475_v63, %v474_v60  ;;  %v574_v20 = vpack.c.bf16 %v477_v7, %v476_v10 }
  0x81   : > { %v604_v57 = vpack.c.bf16 %v9813_v56, %v9810_v25  ;;  %v9833_v25 = vld [vmem:[%s9420_s25 + $0x3e8] sm:$0xff]  ;;  %v9849_v56 = vld [vmem:[%s9420_s25 + $0x3f8] sm:$0xff] }
  0x82   : > { %8173 = vmatmul.mubr.msk.bf16.gmra.mxu1 %vm616_vm1, %v603_v0 }
  0x83   : > { %1773 = vperm.xlu1 %8495, %v473_v42   ;;  %v478_v42 = vld [vmem:[%s9420_s25 + $0x1f0] sm:$0xff]  ;;  %8176 = vmatprep.mubr.msk.bf16.mxu1 %vm616_vm1, %v604_v57 }
  0x84   : > { %1768 = vperm.xlu0 %8494, %v472_v45   ;;  %v479_v45 = vld [vmem:[%s9420_s25 + $0x1f8] sm:$0xff]  ;;  %v9846_v57 = vld [vmem:[%s9420_s25 + $0x3f0] sm:$0xff] }
  0x85   : > { %v575_v0 = vpack.c.bf16 %v479_v45, %v478_v42 }
  0x87   : > { %8113 = vmatmul.mubr.msk.bf16.gmra.mxu0 %vm616_vm1, %v573_v24  ;;  %1783 = vperm.xlu1 %8495, %v475_v63   ;;  %v605_v63 = vpack.c.bf16 %v9823_v33, %v9820_v21 }
  0x88   : > { %1778 = vperm.xlu0 %8494, %v474_v60   ;;  %8116 = vmatprep.mubr.msk.bf16.mxu0 %vm616_vm1, %v574_v20  ;;  %v606_v60 = vpack.c.bf16 %v9833_v25, %v9830_v37 }
  0x8a   : > { %8177 = vmatmul.mubr.msk.bf16.gmra.mxu1 %vm616_vm1, %v605_v63 }
  0x8b   : > { %1793 = vperm.xlu1 %8495, %v477_v7   ;;  %8180 = vmatprep.mubr.msk.bf16.mxu1 %vm616_vm1, %v606_v60 }
  0x8c   : > { %1788 = vperm.xlu0 %8494, %v476_v10   ;;  %v607_v10 = vpack.c.bf16 %v9849_v56, %v9846_v57 }
  0x8e   : > { %v9839_v24 = vpop.permute.xlu1 %1498  ;;  %v9841_v20 = vpop.permute.xlu0 %1488 }
  0x8f   : > { %8117 = vmatmul.mubr.msk.bf16.gmra.mxu0 %vm616_vm1, %v575_v0  ;;  %1803 = vperm.xlu1 %8495, %v479_v45  }
  0x90   : > { %1798 = vperm.xlu0 %8494, %v478_v42   ;;  %v13393_v42 = vmov 0  }
  0x92   : > { %v9852_v7 = vpop.permute.xlu1 %1503  ;;  %8181 = vmatmul.mubr.msk.bf16.gmra.mxu1 %vm616_vm1, %v607_v10 }
  0x93   : > { %v9856_v37 = vpop.permute.xlu0 %1493  ;;  %1813 = vperm.xlu1 %8495, %v9439_v19   ;;  %2458 = vmatprep.mubr.bf16.mxu1 %v13393_v42 }
  0x94   : > { %1808 = vperm.xlu0 %8494, %v9436_v18  }
  0x96   : > { %v9860_v63 = vpop.permute.xlu1 %1513 }
  0x97   : > { %v9863_v45 = vpop.permute.xlu0 %1508  ;;  %1823 = vperm.xlu1 %8495, %v9447_v23  }
  0x98   : > { %1818 = vperm.xlu0 %8494, %v9444_v22  }
  0x9a   : > { %v9868_v0 = vpop.permute.xlu1 %1523 }
  0x9b   : > { %v9870_v60 = vpop.permute.xlu0 %1518  ;;  %1833 = vperm.xlu1 %8495, %v9456_v27  }
  0x9c   : > { %1828 = vperm.xlu0 %8494, %v9452_v26  }
  0x9e   : > { %v9874_v18 = vpop.permute.xlu1 %1533 }
  0x9f   : > { %v9876_v19 = vpop.permute.xlu0 %1528  ;;  %1843 = vperm.xlu1 %8495, %v9472_v32  }
  0xa0   : > { %1838 = vperm.xlu0 %8494, %v9469_v31  }
  0xa2   : > { %v9880_v23 = vpop.permute.xlu1 %1543 }
  0xa3   : > { %v9882_v10 = vpop.permute.xlu0 %1538  ;;  %1853 = vperm.xlu1 %8495, %v9489_v40  }
  0xa4   : > { %1848 = vperm.xlu0 %8494, %v9486_v39  }
  0xa6   : > { %v9886_v22 = vpop.permute.xlu1 %1553 }
  0xa7   : > { %v9888_v27 = vpop.permute.xlu0 %1548  ;;  %1863 = vperm.xlu1 %8495, %v9505_v47  }
  0xa8   : > { %1858 = vperm.xlu0 %8494, %v9502_v46  }
  0xaa   : > { %v9892_v26 = vpop.permute.xlu1 %1563 }
  0xab   : > { %v9894_v32 = vpop.permute.xlu0 %1558  ;;  %1873 = vperm.xlu1 %8495, %v9519_v54  }
  0xac   : > { %1868 = vperm.xlu0 %8494, %v9516_v53  }
  0xae   : > { %v9898_v31 = vpop.permute.xlu1 %1573 }
  0xaf   : > { %v9900_v40 = vpop.permute.xlu0 %1568  ;;  %1883 = vperm.xlu1 %8495, %v9529_v59  }
  0xb0   : > { %1878 = vperm.xlu0 %8494, %v9526_v58  }
  0xb2   : > { %v9904_v39 = vpop.permute.xlu1 %1583 }
  0xb3   : > { %v9906_v47 = vpop.permute.xlu0 %1578  ;;  %1893 = vperm.xlu1 %8495, %v9543_v2  }
  0xb4   : > { %1888 = vperm.xlu0 %8494, %v9540_v1  }
  0xb6   : > { %v9910_v46 = vpop.permute.xlu1 %1593 }
  0xb7   : > { %v9912_v54 = vpop.permute.xlu0 %1588  ;;  %1903 = vperm.xlu1 %8495, %v9559_v9  }
  0xb8   : > { %1898 = vperm.xlu0 %8494, %v9556_v8  }
  0xba   : > { %v9916_v53 = vpop.permute.xlu1 %1603 }
  0xbb   : > { %v9918_v59 = vpop.permute.xlu0 %1598  ;;  %1913 = vperm.xlu1 %8495, %v9573_v16  }
  0xbc   : > { %1908 = vperm.xlu0 %8494, %v9570_v15  }
  0xbe   : > { %v9922_v58 = vpop.permute.xlu1 %1613 }
  0xbf   : > { %v9924_v2 = vpop.permute.xlu0 %1608  ;;  %1923 = vperm.xlu1 %8495, %v9596_v36  }
  0xc0   : > { %1918 = vperm.xlu0 %8494, %v9587_v30  }
  0xc2   : > { %v9928_v1 = vpop.permute.xlu1 %1623 }
  0xc3   : > { %v9930_v9 = vpop.permute.xlu0 %1618  ;;  %1933 = vperm.xlu1 %8495, %v9606_v41  }
  0xc4   : > { %1928 = vperm.xlu0 %8494, %v9603_v38  }
  0xc6   : > { %v9934_v8 = vpop.permute.xlu1 %1633 }
  0xc7   : > { %v9936_v16 = vpop.permute.xlu0 %1628  ;;  %1943 = vperm.xlu1 %8495, %v9623_v51  }
  0xc8   : > { %1938 = vperm.xlu0 %8494, %v9620_v50  }
  0xca   : > { %v9940_v15 = vpop.permute.xlu1 %1643 }
  0xcb   : > { %v9942_v36 = vpop.permute.xlu0 %1638  ;;  %1953 = vperm.xlu1 %8495, %v9639_v62  }
  0xcc   : > { %13427 = vst [vmem:[#allocation13_spill] sm:$0xff] %v9942_v36  ;;  %1948 = vperm.xlu0 %8494, %v9636_v61  }
  0xce   : > { %v9946_v30 = vpop.permute.xlu1 %1653 }
  0xcf   : > { %13428 = vst [vmem:[#allocation14_spill] sm:$0xff] %v9946_v30  ;;  %v9948_v41 = vpop.permute.xlu0 %1648  ;;  %1963 = vperm.xlu1 %8495, %v9649_v5  }
  0xd0   : > { %13429 = vst [vmem:[#allocation15_spill] sm:$0xff] %v9948_v41  ;;  %1958 = vperm.xlu0 %8494, %v9646_v4   ;;  %v9967_v4 = vld [vmem:[%s13375_s3] ss:$0 sm:$0xff] }
  0xd2   : > { %v9952_v38 = vpop.permute.xlu1 %1663 }
  0xd3   : > { %13430 = vst [vmem:[#allocation16_spill] sm:$0xff] %v9952_v38  ;;  %v9954_v51 = vpop.permute.xlu0 %1658  ;;  %1973 = vperm.xlu1 %8495, %v9663_v14  }
  0xd4   : > { %13431 = vst [vmem:[#allocation17_spill] sm:$0xff] %v9954_v51  ;;  %1968 = vperm.xlu0 %8494, %v9660_v13  }
  0xd6   : > { %v9958_v50 = vpop.permute.xlu1 %1673 }
  0xd7   : > { %13432 = vst [vmem:[#allocation18_spill] sm:$0xff] %v9958_v50  ;;  %v9960_v62 = vpop.permute.xlu0 %1668  ;;  %v8058_v61 = vpop.f32.mrf.mxu0  ;;  %1983 = vperm.xlu1 %8495, %v9679_v29  }
  0xd8   : > { %13433 = vst [vmem:[#allocation19_spill] sm:$0xff] %v9960_v62  ;;  %1978 = vperm.xlu0 %8494, %v9676_v28  }
  0xd9   : > { %v847_v5 = vpop.f32.mrf.mxu0 }
  0xda   : > { %v848_v42 = vadd.f32 %v9967_v4, %v847_v5  ;;  %v9970_v14 = vpop.permute.xlu1 %1683  ;;  %v9979_v38 = vpop.f32.mrf.mxu1 }
  0xdb   : > { %13434 = vst [vmem:[#allocation20_spill] sm:$0xff] %v9970_v14  ;;  %v9972_v13 = vpop.permute.xlu0 %1678  ;;  %v8059_v50 = vpop.f32.mrf.mxu0  ;;  %1993 = vperm.xlu1 %8495, %v9693_v44  }
  0xdc   : > { %13435 = vst [vmem:[#allocation21_spill] sm:$0xff] %v9972_v13  ;;  %1988 = vperm.xlu0 %8494, %v9690_v43   ;;  %v1358_v62 = vmax.f32 %v848_v42, 0.0  ;;  %v859_v13 = vadd.f32 %v8059_v50, %v9967_v4  ;;  %v9986_v44 = vpop.f32.mrf.mxu1  ;;  %v856_v42 = vadd.f32 %v8058_v61, %v9967_v4 }
  0xdd   : > { %v850_v29 = vpop.f32.mrf.mxu0  ;;  %13438 = vst [vmem:[#allocation24_spill] sm:$0xff] %v9986_v44 }
  0xde   : > { %v851_v28 = vadd.f32 %v9967_v4, %v850_v29  ;;  %v9977_v51 = vpop.permute.xlu1 %1693  ;;  %v2126_v29 = vmul.f32 %v9841_v20, %v1358_v62  ;;  %v1361_v50 = vmax.f32 %v859_v13, 0.0  ;;  %v1360_v44 = vmax.f32 %v856_v42, 0.0 }
  0xdf   : > { %13436 = vst [vmem:[#allocation22_spill] sm:$0xff] %v9977_v51  ;;  %v9981_v41 = vpop.permute.xlu0 %1688  ;;  %v8062_v5 = vpop.f32.mrf.mxu0  ;;  %2003 = vperm.xlu1 %8495, %v9703_v55  }
  0xe0   : > { %13437 = vst [vmem:[#allocation23_spill] sm:$0xff] %v9981_v41  ;;  %v1359_v14 = vmax.f32 %v851_v28, 0.0  ;;  %1998 = vperm.xlu0 %8494, %v9700_v52   ;;  %v9993_v41 = vpop.f32.mrf.mxu1  ;;  %v2128_v42 = vmul.f32 %v9839_v24, %v1360_v44 }
  0xe1   : > { %v863_v43 = vpop.f32.mrf.mxu0 }
  0xe2   : > { %v2127_v51 = vmul.f32 %v9856_v37, %v1359_v14  ;;  %v9991_v30 = vpop.permute.xlu1 %1703  ;;  %v9999_v28 = vpop.f32.mrf.mxu1  ;;  %v13440_v14 = vmov 0  }
  0xe3   : > { %v9995_v36 = vpop.permute.xlu0 %1698  ;;  %v8063_v55 = vpop.f32.mrf.mxu0  ;;  %2013 = vperm.xlu1 %8495, %v9717_v6   ;;  %13439 = vst [vmem:[#allocation25_spill] sm:$0xff] %v9999_v28  ;;  %v2129_v6 = vmul.f32 %v9852_v7, %v1361_v50 }
  0xe4   : > { %v2254_v52 = vpack.c.bf16 %v2127_v51, %v2126_v29  ;;  %2008 = vperm.xlu0 %8494, %v9714_v3   ;;  %v10003_v37 = vpop.f32.mrf.mxu1  ;;  %v864_v29 = vadd.f32 %v9967_v4, %v863_v43 }
  0xe5   : > { %v866_v61 = vpop.f32.mrf.mxu0 }
  0xe6   : > { %2459 = vmatmul.mubr.bf16.vlgmr.msra.gmra.mxu1 %v2254_v52  ;;  %v10001_v20 = vpop.permute.xlu1 %1713  ;;  %v867_v51 = vadd.f32 %v9967_v4, %v866_v61  ;;  %v10012_v3 = vpop.f32.mrf.mxu1 }
  0xe7   : > { %v10005_v62 = vpop.permute.xlu0 %1708  ;;  %2023 = vperm.xlu1 %8495, %v9727_v17   ;;  %2468 = vmatprep.mubr.bf16.mxu1 %v13440_v14  ;;  %13441 = vst [vmem:[#allocation26_spill] sm:$0xff] %v10012_v3  ;;  %v10014_v13 = vpop.f32.mrf.mxu0  ;;  %v1362_v3 = vmax.f32 %v864_v29, 0.0 }
  0xe8   : > { %2018 = vperm.xlu0 %8494, %v9724_v12   ;;  %v10020_v28 = vpop.f32.mrf.mxu1  ;;  %v1363_v7 = vmax.f32 %v867_v51, 0.0  ;;  %v2255_v12 = vpack.c.bf16 %v2129_v6, %v2128_v42  ;;  %v872_v42 = vadd.f32 %v8062_v5, %v9967_v4 }
  0xe9   : > { %v879_v61 = vpop.f32.mrf.mxu0  ;;  %v2130_v29 = vmul.f32 %v9863_v45, %v1362_v3 }
  0xea   : > { %v10018_v52 = vpop.permute.xlu1 %1723  ;;  %v10026_v50 = vpop.f32.mrf.mxu1 }
  0xeb   : > { %v10022_v17 = vpop.permute.xlu0 %1718  ;;  %2033 = vperm.xlu1 %8495, %v9741_v35   ;;  %13442 = vst [vmem:[#allocation27_spill] sm:$0xff] %v10026_v50  ;;  %v875_v35 = vadd.f32 %v8063_v55, %v9967_v4  ;;  %v8067_v51 = vpop.f32.mrf.mxu0 }
  0xec   : > { %2028 = vperm.xlu0 %8494, %v9738_v34   ;;  %v10030_v44 = vpop.f32.mrf.mxu1  ;;  %v2131_v34 = vmul.f32 %v9860_v63, %v1363_v7 }
  0xed   : > { %v1365_v55 = vmax.f32 %v875_v35, 0.0  ;;  %v882_v7 = vpop.f32.mrf.mxu0  ;;  %v13454_v35 = vld [vmem:[#allocation5_spill] sm:$0xff] }
  0xee   : > { %2469 = vmatmul.mubr.bf16.gmra.mxu1 %v2255_v12  ;;  %v10028_v24 = vpop.permute.xlu1 %1733  ;;  %v10039_v6 = vpop.f32.mrf.mxu1  ;;  %v2256_v63 = vpack.c.bf16 %v2131_v34, %v2130_v29 }
  0xef   : > { %13443 = vst [vmem:[#allocation28_spill] sm:$0xff] %v10028_v24  ;;  %v10032_v43 = vpop.permute.xlu0 %1728  ;;  %2043 = vperm.xlu1 %8495, %v9751_v49   ;;  %2478 = vmatprep.mubr.bf16.mxu1 %v13440_v14  ;;  %13445 = vst [vmem:[#allocation30_spill] sm:$0xff] %v10039_v6  ;;  %v13449_v24 = vld [vmem:[#allocation3_spill] sm:$0xff]  ;;  %v1364_v6 = vmax.f32 %v872_v42, 0.0  ;;  %v10066_v42 = vpop.f32.mrf.mxu0 }
  0xf0   : > { %13444 = vst [vmem:[#allocation29_spill] sm:$0xff] %v10032_v43  ;;  %2038 = vperm.xlu0 %8494, %v9748_v48   ;;  %v10045_v50 = vpop.f32.mrf.mxu1  ;;  %v13448_v43 = vld [vmem:[#allocation4_spill] sm:$0xff] }
  0xf1   : > { %v2132_v29 = vmul.f32 %v9870_v60, %v1364_v6 }
  0xf2   : > { %v10043_v12 = vpop.permute.xlu1 %1743  ;;  %v10051_v48 = vpop.f32.mrf.mxu1 }
  0xf3   : > { %13446 = vst [vmem:[#allocation31_spill] sm:$0xff] %v10043_v12  ;;  %v10047_v49 = vpop.permute.xlu0 %1738  ;;  %2053 = vperm.xlu1 %8495, %v13448_v43   ;;  %13450 = vst [vmem:[#allocation4_spill] sm:$0xff] %v10051_v48  ;;  %v13453_v12 = vld [vmem:[#allocation6_spill] sm:$0xff]  ;;  %v2133_v43 = vmul.f32 %v9868_v0, %v1365_v55  ;;  %v13457_v55 = vld [vmem:[#allocation7_spill] sm:$0xff] }
  0xf4   : > { %13447 = vst [vmem:[#allocation32_spill] sm:$0xff] %v10047_v49  ;;  %2048 = vperm.xlu0 %8494, %v13449_v24   ;;  %v10055_v45 = vpop.f32.mrf.mxu1  ;;  %v883_v24 = vadd.f32 %v9967_v4, %v882_v7 }
  0xf5   : > { %v2257_v7 = vpack.c.bf16 %v2133_v43, %v2132_v29  ;;  %v13462_v43 = vld [vmem:[#allocation8_spill] sm:$0xff] }
  0xf6   : > { %2479 = vmatmul.mubr.bf16.gmra.mxu1 %v2256_v63  ;;  %v10053_v5 = vpop.permute.xlu1 %1753  ;;  %v10064_v34 = vpop.f32.mrf.mxu1  ;;  %v880_v63 = vadd.f32 %v9967_v4, %v879_v61  ;;  %v1367_v0 = vmax.f32 %v883_v24, 0.0 }
  0xf7   : > { %13451 = vst [vmem:[#allocation3_spill] sm:$0xff] %v10053_v5  ;;  %v10057_v3 = vpop.permute.xlu0 %1748  ;;  %2063 = vperm.xlu1 %8495, %v13453_v12   ;;  %2488 = vmatprep.mubr.bf16.mxu1 %v13440_v14  ;;  %v895_v5 = vpop.f32.mrf.mxu0 }
  0xf8   : > { %13452 = vst [vmem:[#allocation33_spill] sm:$0xff] %v10057_v3  ;;  %2058 = vperm.xlu0 %8494, %v13454_v35   ;;  %v10072_v3 = vpop.f32.mrf.mxu1  ;;  %v1366_v49 = vmax.f32 %v880_v63, 0.0  ;;  %v2135_v24 = vmul.f32 %v9874_v18, %v1367_v0  ;;  %v13465_v18 = vld [vmem:[#allocation10_spill] sm:$0xff] }
  0xf9   : > { %v8071_v63 = vpop.f32.mrf.mxu0 }
  0xfa   : > { %v10070_v48 = vpop.permute.xlu1 %1763  ;;  %v10078_v35 = vpop.f32.mrf.mxu1 }
  0xfb   : > { %13455 = vst [vmem:[#allocation6_spill] sm:$0xff] %v10070_v48  ;;  %v10074_v12 = vpop.permute.xlu0 %1758  ;;  %2073 = vperm.xlu1 %8495, %v9789_v11   ;;  %13458 = vst [vmem:[#allocation7_spill] sm:$0xff] %v10078_v35  ;;  %v13461_v48 = vld [vmem:[#allocation9_spill] sm:$0xff]  ;;  %v891_v11 = vadd.f32 %v8067_v51, %v9967_v4 }
  0xfc   : > { %13456 = vst [vmem:[#allocation5_spill] sm:$0xff] %v10074_v12  ;;  %2068 = vperm.xlu0 %8494, %v13457_v55   ;;  %v10082_v61 = vpop.f32.mrf.mxu1  ;;  %v888_v55 = vadd.f32 %v10014_v13, %v9967_v4 }
  0xfd   : > { %v1369_v51 = vmax.f32 %v891_v11, 0.0 }
  0xfe   : > { %2489 = vmatmul.mubr.bf16.gmra.mxu1 %v2257_v7  ;;  %v10080_v60 = vpop.permute.xlu1 %1773  ;;  %v10091_v29 = vpop.f32.mrf.mxu1  ;;  %v2134_v7 = vmul.f32 %v9876_v19, %v1366_v49  ;;  %v1368_v12 = vmax.f32 %v888_v55, 0.0 }
  0xff   : > { %13459 = vst [vmem:[#allocation34_spill] sm:$0xff] %v10080_v60  ;;  %v10084_v6 = vpop.permute.xlu0 %1768  ;;  %2083 = vperm.xlu1 %8495, %v13461_v48   ;;  %2498 = vmatprep.mubr.bf16.mxu1 %v13440_v14  ;;  %13463 = vst [vmem:[#allocation9_spill] sm:$0xff] %v10091_v29  ;;  %v13464_v60 = vld [vmem:[#allocation11_spill] sm:$0xff]  ;;  %v898_v29 = vpop.f32.mrf.mxu0 }
 0x100   : > { %13460 = vst [vmem:[#allocation35_spill] sm:$0xff] %v10084_v6  ;;  %2078 = vperm.xlu0 %8494, %v13462_v43   ;;  %v10098_v6 = vpop.f32.mrf.mxu1  ;;  %v2258_v0 = vpack.c.bf16 %v2135_v24, %v2134_v7  ;;  %v899_v11 = vadd.f32 %v9967_v4, %v898_v29  ;;  %v2136_v7 = vmul.f32 %v9882_v10, %v1368_v12 }
 0x101   : > { %v10119_v55 = vpop.f32.mrf.mxu0  ;;  %v1112_v29 = vadd.f32 %v9979_v38, %v9967_v4 }
 0x102   : > { %v10096_v35 = vpop.permute.xlu1 %1783  ;;  %v10104_v43 = vpop.f32.mrf.mxu1 }
 0x103   : > { %v10100_v48 = vpop.permute.xlu0 %1778  ;;  %2093 = vperm.xlu1 %8495, %v13464_v60   ;;  %13466 = vst [vmem:[#allocation8_spill] sm:$0xff] %v10104_v43  ;;  %v2137_v60 = vmul.f32 %v9880_v23, %v1369_v51  ;;  %v13471_v51 = vld [vmem:[#allocation12_spill] sm:$0xff] }
 0x104   : > { %2088 = vperm.xlu0 %8494, %v13465_v18   ;;  %v10108_v19 = vpop.f32.mrf.mxu1  ;;  %v896_v18 = vadd.f32 %v9967_v4, %v895_v5  ;;  %v911_v5 = vpop.f32.mrf.mxu0 }
 0x105   : > { %v2259_v10 = vpack.c.bf16 %v2137_v60, %v2136_v7  ;;  %v1424_v60 = vmax.f32 %v1112_v29, 0.0 }
 0x106   : > { %2499 = vmatmul.mubr.bf16.gmra.mxu1 %v2258_v0  ;;  %v10106_v13 = vpop.permute.xlu1 %1793  ;;  %v10117_v24 = vpop.f32.mrf.mxu1 }
 0x107   : > { %v10110_v49 = vpop.permute.xlu0 %1788  ;;  %2103 = vperm.xlu1 %8495, %v9823_v33   ;;  %2508 = vmatprep.mubr.bf16.mxu1 %v13440_v14  ;;  %13468 = vst [vmem:[#allocation10_spill] sm:$0xff] %v10117_v24  ;;  %v1115_v33 = vadd.f32 %v9993_v41, %v9967_v4  ;;  %v1370_v24 = vmax.f32 %v896_v18, 0.0  ;;  %v8075_v7 = vpop.f32.mrf.mxu0  ;;  %v904_v18 = vadd.f32 %v10066_v42, %v9967_v4 }
 0x108   : > { %13467 = vst [vmem:[#allocation11_spill] sm:$0xff] %v10110_v49  ;;  %2098 = vperm.xlu0 %8494, %v9820_v21   ;;  %v10125_v43 = vpop.f32.mrf.mxu1  ;;  %v1371_v21 = vmax.f32 %v899_v11, 0.0 }
 0x109   : > { %v1425_v41 = vmax.f32 %v1115_v33, 0.0  ;;  %v2138_v33 = vmul.f32 %v9888_v27, %v1370_v24  ;;  %v914_v42 = vpop.f32.mrf.mxu0  ;;  %v1372_v27 = vmax.f32 %v904_v18, 0.0 }
 0x10a   : > { %v10123_v0 = vpop.permute.xlu1 %1803  ;;  %v10135_v12 = vpop.f32.mrf.mxu1  ;;  %v2139_v38 = vmul.f32 %v9886_v22, %v1371_v21 }
 0x10b   : > { %13469 = vst [vmem:[#allocation36_spill] sm:$0xff] %v10123_v0  ;;  %v10129_v23 = vpop.permute.xlu0 %1798  ;;  %2113 = vperm.xlu1 %8495, %v9833_v25   ;;  %13472 = vst [vmem:[#allocation12_spill] sm:$0xff] %v10135_v12  ;;  %v907_v25 = vadd.f32 %v8071_v63, %v9967_v4  ;;  %v10178_v18 = vpop.f32.mrf.mxu0 }
 0x10c   : > { %13470 = vst [vmem:[#allocation37_spill] sm:$0xff] %v10129_v23  ;;  %2108 = vperm.xlu0 %8494, %v13471_v51   ;;  %v10139_v49 = vpop.f32.mrf.mxu1 }
 0x10d   : > { %v1373_v21 = vmax.f32 %v907_v25, 0.0 }
 0x10e   : > { %2509 = vmatmul.mubr.bf16.gmra.mxu1 %v2259_v10  ;;  %v10137_v0 = vpop.permute.xlu1 %1813  ;;  %v10148_v11 = vpop.f32.mrf.mxu1 }
 0x10f   : > { %v10141_v23 = vpop.permute.xlu0 %1808  ;;  %2123 = vperm.xlu1 %8495, %v9849_v56   ;;  %2518 = vmatprep.mubr.bf16.mxu1 %v13440_v14  ;;  %13474 = vst [vmem:[#allocation39_spill] sm:$0xff] %v10148_v11  ;;  %v1131_v56 = vadd.f32 %v10020_v28, %v9967_v4  ;;  %v2260_v11 = vpack.c.bf16 %v2139_v38, %v2138_v33 }
 0x110   : > { %13473 = vst [vmem:[#allocation38_spill] sm:$0xff] %v10141_v23  ;;  %2118 = vperm.xlu0 %8494, %v9846_v57   ;;  %v10153_v10 = vpop.f32.mrf.mxu1  ;;  %v1128_v57 = vadd.f32 %v10003_v37, %v9967_v4  ;;  %v2141_v37 = vmul.f32 %v9892_v26, %v1373_v21  ;;  %v915_v38 = vadd.f32 %v9967_v4, %v914_v42 }
 0x112   : > { %v1824_v51 = vpop.permute.xlu1 %1823  ;;  %v10163_v12 = vpop.f32.mrf.mxu1  ;;  %v1375_v21 = vmax.f32 %v915_v38, 0.0 }
 0x113   : > { %v10157_v63 = vmul.f32 %v1824_v51, %v1425_v41  ;;  %v1819_v22 = vpop.permute.xlu0 %1818  ;;  %13475 = vst [vmem:[#allocation40_spill] sm:$0xff] %v10163_v12  ;;  %v1429_v41 = vmax.f32 %v1131_v56, 0.0  ;;  %v912_v51 = vadd.f32 %v9967_v4, %v911_v5  ;;  %v1147_v56 = vadd.f32 %v10045_v50, %v9967_v4 }
 0x114   : > { %v10161_v29 = vmul.f32 %v1819_v22, %v1424_v60  ;;  %v10169_v28 = vpop.f32.mrf.mxu1  ;;  %v1428_v60 = vmax.f32 %v1128_v57, 0.0  ;;  %v1144_v57 = vadd.f32 %v10030_v44, %v9967_v4  ;;  %v923_v44 = vadd.f32 %v8075_v7, %v9967_v4 }
 0x115   : > { %v1374_v5 = vmax.f32 %v912_v51, 0.0  ;;  %v1160_v7 = vadd.f32 %v10055_v45, %v9967_v4 }
 0x116   : > { %2519 = vmatmul.mubr.bf16.gmra.mxu1 %v2260_v11  ;;  %v10167_v23 = vpop.permute.xlu1 %1833  ;;  %v10176_v33 = vpop.f32.mrf.mxu1  ;;  %v2140_v11 = vmul.f32 %v9894_v32, %v1372_v27 }
 0x117   : > { %13476 = vst [vmem:[#allocation41_spill] sm:$0xff] %v10167_v23  ;;  %v10171_v25 = vpop.permute.xlu0 %1828  ;;  %2528 = vmatprep.mubr.bf16.mxu1 %v13440_v14  ;;  %13478 = vst [vmem:[#allocation43_spill] sm:$0xff] %v10176_v33  ;;  %v927_v32 = vpop.f32.mrf.mxu0 }
 0x118   : > { %13477 = vst [vmem:[#allocation42_spill] sm:$0xff] %v10171_v25  ;;  %v10182_v24 = vpop.f32.mrf.mxu1  ;;  %v2261_v33 = vpack.c.bf16 %v2141_v37, %v2140_v11  ;;  %v2143_v37 = vmul.f32 %v9898_v31, %v1375_v21  ;;  %v1152_v11 = vadd.f32 %v9967_v4, %v10064_v34  ;;  %v1163_v31 = vadd.f32 %v10072_v3, %v9967_v4 }
 0x11a   : > { %v1844_v22 = vpop.permute.xlu1 %1843  ;;  %v10192_v25 = vpop.f32.mrf.mxu1  ;;  %v1437_v3 = vmax.f32 %v1163_v31, 0.0  ;;  %v928_v31 = vadd.f32 %v9967_v4, %v927_v32 }
 0x11b   : > { %v10186_v12 = vmul.f32 %v1844_v22, %v1429_v41  ;;  %v1839_v26 = vpop.permute.xlu0 %1838  ;;  %13480 = vst [vmem:[#allocation45_spill] sm:$0xff] %v10192_v25  ;;  %v1433_v41 = vmax.f32 %v1147_v56, 0.0  ;;  %v920_v22 = vadd.f32 %v10119_v55, %v9967_v4  ;;  %v2142_v56 = vmul.f32 %v9900_v40, %v1374_v5 }
 0x11c   : > { %v10190_v42 = vmul.f32 %v1839_v26, %v1428_v60  ;;  %v10198_v50 = vpop.f32.mrf.mxu1  ;;  %v1432_v60 = vmax.f32 %v1144_v57, 0.0  ;;  %v1377_v57 = vmax.f32 %v923_v44, 0.0  ;;  %v2336_v44 = vlaneseq }
 0x11d   : > { %v1376_v5 = vmax.f32 %v920_v22, 0.0 }
 0x11e   : > { %13479 = vst [vmem:[#allocation44_spill] sm:$0xff] %v10190_v42  ;;  %2529 = vmatmul.mubr.bf16.gmra.mxu1 %v2261_v33  ;;  %v10196_v23 = vpop.permute.xlu1 %1853  ;;  %v10207_v51 = vpop.f32.mrf.mxu1 }
 0x11f   : > { %13481 = vst [vmem:[#allocation46_spill] sm:$0xff] %v10196_v23  ;;  %v10200_v38 = vpop.permute.xlu0 %1848  ;;  %2538 = vmatprep.mubr.bf16.mxu1 %v13440_v14  ;;  %13483 = vst [vmem:[#allocation48_spill] sm:$0xff] %v10207_v51  ;;  %v8079_v33 = vpop.f32.mrf.mxu0  ;;  %v1434_v51 = vmax.f32 %v1152_v11, 0.0  ;;  %v1436_v11 = vmax.f32 %v1160_v7, 0.0 }
 0x120   : > { %13482 = vst [vmem:[#allocation47_spill] sm:$0xff] %v10200_v38  ;;  %v10212_v27 = vpop.f32.mrf.mxu1  ;;  %v2262_v38 = vpack.c.bf16 %v2143_v37, %v2142_v56 }
 0x121   : > { %v930_v40 = vpop.f32.mrf.mxu0 }
 0x122   : > { %v1864_v26 = vpop.permute.xlu1 %1863  ;;  %v10222_v55 = vpop.f32.mrf.mxu1  ;;  %v931_v37 = vadd.f32 %v9967_v4, %v930_v40 }
 0x123   : > { %v10218_v21 = vmul.f32 %v1864_v26, %v1433_v41  ;;  %v1859_v34 = vpop.permute.xlu0 %1858  ;;  %13484 = vst [vmem:[#allocation49_spill] sm:$0xff] %v10222_v55  ;;  %v2144_v26 = vmul.f32 %v9906_v47, %v1376_v5  ;;  %v936_v55 = vadd.f32 %v10178_v18, %v9967_v4 }
 0x124   : > { %v10220_v25 = vmul.f32 %v1859_v34, %v1432_v60  ;;  %v10228_v42 = vpop.f32.mrf.mxu1  ;;  %v2145_v60 = vmul.f32 %v9904_v39, %v1377_v57  ;;  %v1179_v39 = vadd.f32 %v10098_v6, %v9967_v4  ;;  %v1379_v40 = vmax.f32 %v931_v37, 0.0 }
 0x126   : > { %2539 = vmatmul.mubr.bf16.gmra.mxu1 %v2262_v38  ;;  %v10226_v45 = vpop.permute.xlu1 %1873  ;;  %v10235_v22 = vpop.f32.mrf.mxu1  ;;  %v2263_v47 = vpack.c.bf16 %v2145_v60, %v2144_v26  ;;  %v10269_v26 = vld [vmem:[%s404_s29] sm:$0x1] }
 0x127   : > { %v1869_v41 = vpop.permute.xlu0 %1868  ;;  %2548 = vmatprep.mubr.bf16.mxu1 %v13440_v14  ;;  %13486 = vst [vmem:[#allocation51_spill] sm:$0xff] %v10235_v22  ;;  %v10237_v38 = vpop.f32.mrf.mxu0 }
 0x128   : > { %v10233_v56 = vmul.f32 %v1869_v41, %v1434_v51  ;;  %v10241_v23 = vpop.f32.mrf.mxu1  ;;  %v10247_v51 = vshrl.u32 %v2336_v44, 7  ;;  %v1176_v41 = vadd.f32 %v10082_v61, %v9967_v4 }
 0x129   : > { %v943_v32 = vpop.f32.mrf.mxu0 }
 0x12a   : > { %13485 = vst [vmem:[#allocation50_spill] sm:$0xff] %v10233_v56  ;;  %v1884_v34 = vpop.permute.xlu1 %1883  ;;  %v10253_v5 = vpop.f32.mrf.mxu1  ;;  %v2342_v6 = vsub.s32 1, %v10247_v51 }
 0x12b   : > { %v10245_v57 = vmul.f32 %v1884_v34, %v1437_v3  ;;  %v1879_v7 = vpop.permute.xlu0 %1878  ;;  %13489 = vst [vmem:[#allocation54_spill] sm:$0xff] %v10253_v5  ;;  %v1378_v3 = vmax.f32 %v928_v31, 0.0  ;;  %v939_v34 = vadd.f32 %v8079_v33, %v9967_v4  ;;  %v1440_v31 = vmax.f32 %v1176_v41, 0.0  ;;  %v8083_v44 = vpop.f32.mrf.mxu0 }
 0x12c   : > { %v10251_v22 = vmul.f32 %v1879_v7, %v1436_v11  ;;  %v10264_v61 = vpop.f32.mrf.mxu1  ;;  %v1441_v11 = vmax.f32 %v1179_v39, 0.0  ;;  %v2147_v7 = vmul.f32 %v9910_v46, %v1379_v40  ;;  %v3356_v46 = vmul.f32 %v10269_v26, %v10269_v26 }
 0x12d   : > { %13487 = vst [vmem:[#allocation52_spill] sm:$0xff] %v10245_v57  ;;  %v1195_v40 = vadd.f32 %v10125_v43, %v9967_v4 }
 0x12e   : > { %13488 = vst [vmem:[#allocation53_spill] sm:$0xff] %v10251_v22  ;;  %2549 = vmatmul.mubr.bf16.gmra.mxu1 %v2263_v47  ;;  %v10262_v37 = vpop.permute.xlu1 %1893  ;;  %v10273_v5 = vpop.f32.mrf.mxu1  ;;  %v10278_v47 = vld [vmem:[%s13377_s5] sm:$0x3]  ;;  %v1381_v22 = vmax.f32 %v939_v34, 0.0 }
 0x12f   : > { %13490 = vst [vmem:[#allocation55_spill] sm:$0xff] %v10262_v37  ;;  %v10266_v60 = vpop.permute.xlu0 %1888  ;;  %2558 = vmatprep.mubr.bf16.mxu1 %v13440_v14  ;;  %13492 = vst [vmem:[#allocation57_spill] sm:$0xff] %v10273_v5  ;;  %v10281_v39 = vrot.slane %v10278_v47, %v2342_v6  ;;  %v1192_v6 = vadd.f32 %v10108_v19, %v9967_v4 }
 0x130   : > { %13491 = vst [vmem:[#allocation56_spill] sm:$0xff] %v10266_v60  ;;  %v2146_v60 = vmul.f32 %v9912_v54, %v1378_v3  ;;  %v10286_v37 = vpop.f32.mrf.mxu1  ;;  %v946_v54 = vpop.f32.mrf.mxu0  ;;  %v1380_v3 = vmax.f32 %v936_v55, 0.0  ;;  %v2149_v19 = vmul.f32 %v9916_v53, %v1381_v22  ;;  %v1208_v53 = vadd.f32 %v10139_v49, %v9967_v4 }
 0x131   : > { %13493 = vst [vmem:[#allocation58_spill] sm:$0xff] %v10281_v39  ;;  %v1444_v55 = vmax.f32 %v1192_v6, 0.0  ;;  %v955_v49 = vadd.f32 %v8083_v44, %v9967_v4 }
 0x132   : > { %v1904_v33 = vpop.permute.xlu1 %1903  ;;  %v2264_v18 = vpack.c.bf16 %v2147_v7, %v2146_v60  ;;  %v10302_v43 = vpop.f32.mrf.mxu1  ;;  %v2148_v7 = vmul.f32 %v9918_v59, %v1380_v3 }
 0x133   : > { %v10292_v41 = vmul.f32 %v1904_v33, %v1441_v11  ;;  %v1899_v5 = vpop.permute.xlu0 %1898  ;;  %13494 = vst [vmem:[#allocation59_spill] sm:$0xff] %v10302_v43  ;;  %v3358_v11 = vsel %vm3357_vm2, %v3356_v46, 0.0  ;;  %v1445_v33 = vmax.f32 %v1195_v40, 0.0  ;;  %v10309_v60 = vpop.f32.mrf.mxu0  ;;  %v1211_v46 = vadd.f32 %v10153_v10, %v9967_v4 }
 0x134   : > { %v10296_v39 = vmul.f32 %v1899_v5, %v1440_v31  ;;  %3359 = vadd.xlane.f32.xlu0 %v3358_v11  ;;  %v947_v5 = vadd.f32 %v9967_v4, %v946_v54  ;;  %v944_v31 = vadd.f32 %v9967_v4, %v943_v32  ;;  %v10313_v57 = vpop.f32.mrf.mxu1  ;;  %v2265_v6 = vpack.c.bf16 %v2149_v19, %v2148_v7 }
 0x135   : > { %v959_v54 = vpop.f32.mrf.mxu0  ;;  %v1449_v10 = vmax.f32 %v1211_v46, 0.0  ;;  %v1448_v19 = vmax.f32 %v1208_v53, 0.0  ;;  %v952_v7 = vadd.f32 %v10237_v38, %v9967_v4  ;;  %v1227_v46 = vadd.f32 %v10182_v24, %v9967_v4 }
 0x136   : > { %2559 = vmatmul.mubr.bf16.gmra.mxu1 %v2264_v18  ;;  %v10300_v56 = vpop.permute.xlu1 %1913  ;;  %v1383_v43 = vmax.f32 %v947_v5, 0.0  ;;  %v1382_v59 = vmax.f32 %v944_v31, 0.0 }
 0x137   : > { %v10304_v34 = vpop.permute.xlu0 %1908  ;;  %2568 = vmatprep.mubr.bf16.mxu1 %v13440_v14  ;;  %v1384_v38 = vmax.f32 %v952_v7, 0.0  ;;  %v1453_v24 = vmax.f32 %v1227_v46, 0.0  ;;  %v960_v7 = vadd.f32 %v9967_v4, %v959_v54  ;;  %v1243_v46 = vadd.f32 %v10212_v27, %v9967_v4 }
 0x138   : > { %13495 = vst [vmem:[#allocation60_spill] sm:$0xff] %v10304_v34  ;;  %v10327_v34 = vpop.f32.mrf.mxu1  ;;  %v2151_v5 = vmul.f32 %v9922_v58, %v1383_v43  ;;  %v2150_v31 = vmul.f32 %v9924_v2, %v1382_v59  ;;  %v1224_v58 = vadd.f32 %v10169_v28, %v9967_v4 }
 0x139   : > { %13496 = vst [vmem:[#allocation61_spill] sm:$0xff] %v10327_v34  ;;  %v1385_v34 = vmax.f32 %v955_v49, 0.0  ;;  %v1457_v27 = vmax.f32 %v1243_v46, 0.0 }
 0x13a   : > { %v1924_v18 = vpop.permute.xlu1 %1923  ;;  %v2266_v44 = vpack.c.bf16 %v2151_v5, %v2150_v31 }
 0x13b   : > { %v10317_v40 = vmul.f32 %v1924_v18, %v1445_v33  ;;  %v1919_v11 = vpop.permute.xlu0 %1918  ;;  %v2153_v49 = vmul.f32 %v9928_v1, %v1385_v34  ;;  %v1240_v34 = vadd.f32 %v10198_v50, %v9967_v4 }
 0x13c   : > { %v10321_v22 = vmul.f32 %v1919_v11, %v1444_v55  ;;  %v8087_v55 = vpop.f32.mrf.mxu0  ;;  %v10337_v11 = vpop.f32.mrf.mxu1 }
 0x13e   : > { %2569 = vmatmul.mubr.bf16.gmra.mxu1 %v2265_v6  ;;  %v10325_v3 = vpop.permute.xlu1 %1933  ;;  %v962_v53 = vpop.f32.mrf.mxu0 }
 0x13f   : > { %v10329_v33 = vpop.permute.xlu0 %1928  ;;  %2578 = vmatprep.mubr.bf16.mxu1 %v13440_v14  ;;  %v963_v28 = vadd.f32 %v9967_v4, %v962_v53 }
 0x140   : > { %13497 = vst [vmem:[#allocation62_spill] sm:$0xff] %v10329_v33  ;;  %v10351_v33 = vpop.f32.mrf.mxu1  ;;  %v10358_v5 = vpop.f32.mrf.mxu0 }
 0x141   : > { %13498 = vst [vmem:[#allocation63_spill] sm:$0xff] %v10351_v33  ;;  %v1387_v1 = vmax.f32 %v963_v28, 0.0 }
 0x142   : > { %v1944_v18 = vpop.permute.xlu1 %1943  ;;  %v975_v53 = vpop.f32.mrf.mxu0 }
 0x143   : > { %v10341_v6 = vmul.f32 %v1944_v18, %v1449_v10  ;;  %v1939_v32 = vpop.permute.xlu0 %1938  ;;  %v10362_v18 = vpop.f32.mrf.mxu1  ;;  %v2155_v50 = vmul.f32 %v9934_v8, %v1387_v1  ;;  %v1256_v8 = vadd.f32 %v10228_v42, %v9967_v4 }
 0x144   : > { %v10345_v43 = vmul.f32 %v1939_v32, %v1448_v19  ;;  %v1452_v32 = vmax.f32 %v1224_v58, 0.0  ;;  %v2152_v19 = vmul.f32 %v9930_v9, %v1384_v38  ;;  %v1386_v9 = vmax.f32 %v960_v7, 0.0  ;;  %v8091_v28 = vpop.f32.mrf.mxu0 }
 0x146   : > { %2579 = vmatmul.mubr.bf16.gmra.mxu1 %v2266_v44  ;;  %v10349_v59 = vpop.permute.xlu1 %1953  ;;  %v2267_v33 = vpack.c.bf16 %v2153_v49, %v2152_v19  ;;  %v971_v49 = vadd.f32 %v8087_v55, %v9967_v4 }
 0x147   : > { %v10353_v10 = vpop.permute.xlu0 %1948  ;;  %2588 = vmatprep.mubr.bf16.mxu1 %v13440_v14 }
 0x148   : > { %13499 = vst [vmem:[#allocation64_spill] sm:$0xff] %v10353_v10  ;;  %v10376_v10 = vpop.f32.mrf.mxu1 }
 0x14a   : > { %v1964_v31 = vpop.permute.xlu1 %1963  ;;  %v10386_v7 = vpop.f32.mrf.mxu1 }
 0x14b   : > { %v10366_v44 = vmul.f32 %v1964_v31, %v1453_v24  ;;  %v1959_v2 = vpop.permute.xlu0 %1958  ;;  %v1259_v31 = vadd.f32 %v10241_v23, %v9967_v4 }
 0x14c   : > { %v10370_v58 = vmul.f32 %v1959_v2, %v1452_v32  ;;  %v1456_v2 = vmax.f32 %v1240_v34, 0.0  ;;  %v968_v32 = vadd.f32 %v10309_v60, %v9967_v4  ;;  %v978_v34 = vpop.f32.mrf.mxu0 }
 0x14d   : > { %13500 = vst [vmem:[#allocation65_spill] sm:$0xff] %v10366_v44  ;;  %v10400_v44 = vpop.f32.mrf.mxu1  ;;  %v1461_v23 = vmax.f32 %v1259_v31, 0.0  ;;  %v979_v42 = vadd.f32 %v9967_v4, %v978_v34  ;;  %v1275_v31 = vadd.f32 %v10286_v37, %v9967_v4 }
 0x14e   : > { %13501 = vst [vmem:[#allocation66_spill] sm:$0xff] %v10370_v58  ;;  %2589 = vmatmul.mubr.bf16.gmra.mxu1 %v2267_v33  ;;  %v10374_v38 = vpop.permute.xlu1 %1973  ;;  %v2154_v33 = vmul.f32 %v9936_v16, %v1386_v9  ;;  %v1389_v58 = vmax.f32 %v971_v49, 0.0  ;;  %v1388_v60 = vmax.f32 %v968_v32, 0.0 }
 0x14f   : > { %v10378_v24 = vpop.permute.xlu0 %1968  ;;  %2598 = vmatprep.mubr.bf16.mxu1 %v13440_v14  ;;  %v1465_v37 = vmax.f32 %v1275_v31, 0.0  ;;  %v1291_v31 = vadd.f32 %v10337_v11, %v9967_v4 }
 0x150   : > { %v2268_v55 = vpack.c.bf16 %v2155_v50, %v2154_v33  ;;  %v2157_v49 = vmul.f32 %v9940_v15, %v1389_v58  ;;  %v10407_v50 = vpop.f32.mrf.mxu0  ;;  %v976_v33 = vadd.f32 %v9967_v4, %v975_v53  ;;  %v1391_v15 = vmax.f32 %v979_v42, 0.0 }
 0x151   : > { %v1272_v58 = vadd.f32 %v10264_v61, %v9967_v4  ;;  %v13510_v61 = vld [vmem:[#allocation14_spill] sm:$0xff]  ;;  %v1469_v11 = vmax.f32 %v1291_v31, 0.0  ;;  %v1307_v31 = vadd.f32 %v10386_v7, %v9967_v4 }
 0x152   : > { %v1984_v19 = vpop.permute.xlu1 %1983  ;;  %v991_v34 = vpop.f32.mrf.mxu0 }
 0x153   : > { %v10390_v46 = vmul.f32 %v1984_v19, %v1457_v27  ;;  %v1979_v54 = vpop.permute.xlu0 %1978  ;;  %v1464_v42 = vmax.f32 %v1272_v58, 0.0  ;;  %v1473_v7 = vmax.f32 %v1307_v31, 0.0 }
 0x154   : > { %v10394_v1 = vmul.f32 %v1979_v54, %v1456_v2  ;;  %v1460_v54 = vmax.f32 %v1256_v8, 0.0  ;;  %v13505_v2 = vld [vmem:[#allocation13_spill] sm:$0xff] }
 0x155   : > { %13502 = vst [vmem:[#allocation67_spill] sm:$0xff] %v10390_v46  ;;  %v2156_v32 = vmul.f32 %v13505_v2, %v1388_v60  ;;  %v1390_v60 = vmax.f32 %v976_v33, 0.0  ;;  %v13511_v33 = vld [vmem:[#allocation15_spill] sm:$0xff] }
 0x156   : > { %13503 = vst [vmem:[#allocation68_spill] sm:$0xff] %v10394_v1  ;;  %2599 = vmatmul.mubr.bf16.gmra.mxu1 %v2268_v55  ;;  %v10398_v9 = vpop.permute.xlu1 %1993  ;;  %v10411_v55 = vpop.f32.mrf.mxu1 }
 0x157   : > { %v10402_v27 = vpop.permute.xlu0 %1988  ;;  %2608 = vmatprep.mubr.bf16.mxu1 %v13440_v14  ;;  %v2269_v46 = vpack.c.bf16 %v2157_v49, %v2156_v32  ;;  %v987_v49 = vadd.f32 %v8091_v28, %v9967_v4  ;;  %v984_v32 = vadd.f32 %v10358_v5, %v9967_v4  ;;  %v1288_v28 = vadd.f32 %v10313_v57, %v9967_v4 }
 0x158   : > { %13504 = vst [vmem:[#allocation69_spill] sm:$0xff] %v10402_v27  ;;  %v10425_v27 = vpop.f32.mrf.mxu1 }
 0x15a   : > { %v2004_v19 = vpop.permute.xlu1 %2003  ;;  %v8175_v53 = vpop.f32.mrf.mxu1 }
 0x15b   : > { %v10415_v16 = vmul.f32 %v2004_v19, %v1461_v23  ;;  %v1999_v1 = vpop.permute.xlu0 %1998 }
 0x15c   : > { %v10419_v8 = vmul.f32 %v1999_v1, %v1460_v54  ;;  %v2159_v1 = vmul.f32 %v13510_v61, %v1391_v15  ;;  %v8095_v54 = vpop.f32.mrf.mxu0  ;;  %v1392_v61 = vmax.f32 %v984_v32, 0.0  ;;  %v13517_v32 = vld [vmem:[#allocation17_spill] sm:$0xff] }
 0x15d   : > { %13506 = vst [vmem:[#allocation13_spill] sm:$0xff] %v10415_v16 }
 0x15e   : > { %13507 = vst [vmem:[#allocation70_spill] sm:$0xff] %v10419_v8  ;;  %2609 = vmatmul.mubr.bf16.gmra.mxu1 %v2269_v46  ;;  %v10423_v2 = vpop.permute.xlu1 %2013  ;;  %v2158_v46 = vmul.f32 %v13511_v33, %v1390_v60  ;;  %v994_v58 = vpop.f32.mrf.mxu0 }
 0x15f   : > { %13508 = vst [vmem:[#allocation71_spill] sm:$0xff] %v10423_v2  ;;  %v10427_v23 = vpop.permute.xlu0 %2008  ;;  %2618 = vmatprep.mubr.bf16.mxu1 %v13440_v14  ;;  %v10447_v33 = vpop.f32.mrf.mxu1  ;;  %v995_v57 = vadd.f32 %v9967_v4, %v994_v58 }
 0x160   : > { %13509 = vst [vmem:[#allocation72_spill] sm:$0xff] %v10427_v23  ;;  %v1393_v23 = vmax.f32 %v987_v49, 0.0  ;;  %v2270_v2 = vpack.c.bf16 %v2159_v1, %v2158_v46  ;;  %v13516_v49 = vld [vmem:[#allocation16_spill] sm:$0xff]  ;;  %v2160_v46 = vmul.f32 %v13517_v32, %v1392_v61 }
 0x161   : > { %v8178_v5 = vpop.f32.mrf.mxu1 }
 0x162   : > { %v2024_v19 = vpop.permute.xlu1 %2023  ;;  %v2161_v1 = vmul.f32 %v13516_v49, %v1393_v23  ;;  %v1304_v23 = vadd.f32 %v10362_v18, %v9967_v4  ;;  %v13522_v18 = vld [vmem:[#allocation18_spill] sm:$0xff] }
 0x163   : > { %v10437_v8 = vmul.f32 %v2024_v19, %v1465_v37  ;;  %v2019_v16 = vpop.permute.xlu0 %2018  ;;  %v10470_v32 = vpop.f32.mrf.mxu1 }
 0x164   : > { %v10441_v15 = vmul.f32 %v2019_v16, %v1464_v42  ;;  %v1468_v16 = vmax.f32 %v1288_v28, 0.0  ;;  %v10454_v42 = vpop.f32.mrf.mxu0 }
 0x165   : > { %13512 = vst [vmem:[#allocation14_spill] sm:$0xff] %v10437_v8 }
 0x166   : > { %13513 = vst [vmem:[#allocation15_spill] sm:$0xff] %v10441_v15  ;;  %2619 = vmatmul.mubr.bf16.gmra.mxu1 %v2270_v2  ;;  %v10445_v60 = vpop.permute.xlu1 %2033  ;;  %v992_v2 = vadd.f32 %v9967_v4, %v991_v34  ;;  %v1007_v58 = vpop.f32.mrf.mxu0 }
 0x167   : > { %13514 = vst [vmem:[#allocation73_spill] sm:$0xff] %v10445_v60  ;;  %v10449_v37 = vpop.permute.xlu0 %2028  ;;  %2628 = vmatprep.mubr.bf16.mxu1 %v13440_v14  ;;  %v1395_v60 = vmax.f32 %v995_v57, 0.0  ;;  %v1472_v57 = vmax.f32 %v1304_v23, 0.0  ;;  %v8179_v34 = vpop.f32.mrf.mxu1 }
 0x168   : > { %13515 = vst [vmem:[#allocation74_spill] sm:$0xff] %v10449_v37  ;;  %v2271_v37 = vpack.c.bf16 %v2161_v1, %v2160_v46  ;;  %v1394_v49 = vmax.f32 %v992_v2, 0.0  ;;  %v1003_v1 = vadd.f32 %v8095_v54, %v9967_v4  ;;  %v1000_v46 = vadd.f32 %v10407_v50, %v9967_v4  ;;  %v13523_v2 = vld [vmem:[#allocation19_spill] sm:$0xff] }
 0x169   : > { %v1320_v54 = vadd.f32 %v10411_v55, %v9967_v4 }
 0x16a   : > { %v2044_v19 = vpop.permute.xlu1 %2043 }
 0x16b   : > { %v10460_v15 = vmul.f32 %v2044_v19, %v1469_v11  ;;  %v2039_v8 = vpop.permute.xlu0 %2038 }
 0x16c   : > { %v10464_v28 = vmul.f32 %v2039_v8, %v1468_v16  ;;  %v2163_v8 = vmul.f32 %v13522_v18, %v1395_v60  ;;  %v8099_v16 = vpop.f32.mrf.mxu0  ;;  %v1396_v18 = vmax.f32 %v1000_v46, 0.0  ;;  %v13529_v46 = vld [vmem:[#allocation21_spill] sm:$0xff] }
 0x16d   : > { %13518 = vst [vmem:[#allocation16_spill] sm:$0xff] %v10460_v15 }
 0x16e   : > { %13519 = vst [vmem:[#allocation17_spill] sm:$0xff] %v10464_v28  ;;  %2629 = vmatmul.mubr.bf16.gmra.mxu1 %v2271_v37  ;;  %v10468_v61 = vpop.permute.xlu1 %2053  ;;  %v2162_v37 = vmul.f32 %v13523_v2, %v1394_v49  ;;  %v1323_v28 = vadd.f32 %v8175_v53, %v9967_v4  ;;  %v1010_v23 = vpop.f32.mrf.mxu0 }
 0x16f   : > { %13520 = vst [vmem:[#allocation75_spill] sm:$0xff] %v10468_v61  ;;  %v10472_v11 = vpop.permute.xlu0 %2048  ;;  %2638 = vmatprep.mubr.bf16.mxu1 %v13440_v14  ;;  %v10491_v2 = vpop.f32.mrf.mxu1  ;;  %v1011_v55 = vadd.f32 %v9967_v4, %v1010_v23 }
 0x170   : > { %13521 = vst [vmem:[#allocation76_spill] sm:$0xff] %v10472_v11  ;;  %v1397_v11 = vmax.f32 %v1003_v1, 0.0  ;;  %v2272_v61 = vpack.c.bf16 %v2163_v8, %v2162_v37  ;;  %v1477_v53 = vmax.f32 %v1323_v28, 0.0  ;;  %v13528_v1 = vld [vmem:[#allocation20_spill] sm:$0xff]  ;;  %v2164_v37 = vmul.f32 %v13529_v46, %v1396_v18 }
 0x171   : > { %v8182_v50 = vpop.f32.mrf.mxu1 }
 0x172   : > { %v2064_v19 = vpop.permute.xlu1 %2063  ;;  %v2165_v8 = vmul.f32 %v13528_v1, %v1397_v11  ;;  %v1336_v11 = vadd.f32 %v8178_v5, %v9967_v4 }
 0x173   : > { %v10481_v31 = vmul.f32 %v2064_v19, %v1473_v7  ;;  %v2059_v15 = vpop.permute.xlu0 %2058 }
 0x174   : > { %v10485_v60 = vmul.f32 %v2059_v15, %v1472_v57  ;;  %v1476_v15 = vmax.f32 %v1320_v54, 0.0  ;;  %v10498_v57 = vpop.f32.mrf.mxu0 }
 0x175   : > { %13524 = vst [vmem:[#allocation18_spill] sm:$0xff] %v10481_v31 }
 0x176   : > { %13525 = vst [vmem:[#allocation19_spill] sm:$0xff] %v10485_v60  ;;  %2639 = vmatmul.mubr.bf16.gmra.mxu1 %v2272_v61  ;;  %v10489_v49 = vpop.permute.xlu1 %2073  ;;  %v1008_v61 = vadd.f32 %v9967_v4, %v1007_v58  ;;  %v1339_v60 = vadd.f32 %v8179_v34, %v9967_v4  ;;  %v1023_v54 = vpop.f32.mrf.mxu0  ;;  %v10520_v4 = vld [vmem:[%s13375_s3] ss:$0 sm:$0xff] }
 0x177   : > { %13526 = vst [vmem:[#allocation77_spill] sm:$0xff] %v10489_v49  ;;  %v10493_v7 = vpop.permute.xlu0 %2068  ;;  %2648 = vmatprep.mubr.bf16.mxu1 %v13440_v14  ;;  %v1399_v49 = vmax.f32 %v1011_v55, 0.0  ;;  %v10510_v58 = vpop.f32.mrf.mxu1  ;;  %v1019_v5 = vadd.f32 %v10520_v4, %v8099_v16  ;;  %v1480_v55 = vmax.f32 %v1336_v11, 0.0  ;;  %v1352_v16 = vadd.f32 %v10520_v4, %v8182_v50 }
 0x178   : > { %13527 = vst [vmem:[#allocation78_spill] sm:$0xff] %v10493_v7  ;;  %v2273_v7 = vpack.c.bf16 %v2165_v8, %v2164_v37  ;;  %v1398_v23 = vmax.f32 %v1008_v61, 0.0  ;;  %13532 = vst [vmem:[#allocation79_spill] sm:$0xff] %v10510_v58  ;;  %v1481_v34 = vmax.f32 %v1339_v60, 0.0  ;;  %v13536_v37 = vld [vmem:[#allocation23_spill] sm:$0xff] }
 0x179   : > { %v8183_v61 = vpop.f32.mrf.mxu1  ;;  %v1484_v50 = vmax.f32 %v1352_v16, 0.0  ;;  %v1032_v16 = vadd.f32 %v10520_v4, %v10498_v57 }
 0x17a   : > { %v2084_v19 = vpop.permute.xlu1 %2083  ;;  %v2166_v60 = vmul.f32 %v13536_v37, %v1398_v23  ;;  %v1355_v18 = vadd.f32 %v10520_v4, %v8183_v61 }
 0x17b   : > { %v10503_v28 = vmul.f32 %v2084_v19, %v1477_v53  ;;  %v2079_v31 = vpop.permute.xlu0 %2078 }
 0x17c   : > { %v10506_v1 = vmul.f32 %v2079_v31, %v1476_v15  ;;  %v13535_v31 = vld [vmem:[#allocation22_spill] sm:$0xff]  ;;  %v1016_v15 = vadd.f32 %v10520_v4, %v10454_v42 }
 0x17d   : > { %13530 = vst [vmem:[#allocation20_spill] sm:$0xff] %v10503_v28  ;;  %v2167_v8 = vmul.f32 %v13535_v31, %v1399_v49  ;;  %v1485_v31 = vmax.f32 %v1355_v18, 0.0 }
 0x17e   : > { %13531 = vst [vmem:[#allocation21_spill] sm:$0xff] %v10506_v1  ;;  %2649 = vmatmul.mubr.bf16.gmra.mxu1 %v2273_v7  ;;  %v10512_v46 = vpop.permute.xlu1 %2093  ;;  %v8103_v7 = vpop.f32.mrf.mxu0  ;;  %v1400_v11 = vmax.f32 %v1016_v15, 0.0 }
 0x17f   : > { %13533 = vst [vmem:[#allocation80_spill] sm:$0xff] %v10512_v46  ;;  %v10514_v53 = vpop.permute.xlu0 %2088  ;;  %2658 = vmatprep.mubr.bf16.mxu1 %v13440_v14  ;;  %v2274_v46 = vpack.c.bf16 %v2167_v8, %v2166_v60 }
 0x180   : > { %13534 = vst [vmem:[#allocation81_spill] sm:$0xff] %v10514_v53  ;;  %v1401_v53 = vmax.f32 %v1019_v5, 0.0  ;;  %v1026_v49 = vpop.f32.mrf.mxu0  ;;  %v2168_v8 = vmul.f32 %v9995_v36, %v1400_v11  ;;  %v1035_v36 = vadd.f32 %v10520_v4, %v8103_v7 }
 0x181   : > { %v1027_v5 = vadd.f32 %v10520_v4, %v1026_v49 }
 0x182   : > { %v2104_v19 = vpop.permute.xlu1 %2103  ;;  %v1405_v11 = vmax.f32 %v1035_v36, 0.0 }
 0x183   : > { %v10528_v1 = vmul.f32 %v2104_v19, %v1481_v34  ;;  %v2099_v28 = vpop.permute.xlu0 %2098  ;;  %v2169_v34 = vmul.f32 %v9991_v30, %v1401_v53  ;;  %v1403_v18 = vmax.f32 %v1027_v5, 0.0  ;;  %v1404_v5 = vmax.f32 %v1032_v16, 0.0 }
 0x184   : > { %v10531_v58 = vmul.f32 %v2099_v28, %v1480_v55  ;;  %v8106_v28 = vpop.f32.mrf.mxu0  ;;  %v1024_v55 = vadd.f32 %v10520_v4, %v1023_v54 }
 0x185   : > { %13537 = vst [vmem:[#allocation22_spill] sm:$0xff] %v10528_v1  ;;  %v2275_v61 = vpack.c.bf16 %v2169_v34, %v2168_v8  ;;  %v2171_v54 = vmul.f32 %v10001_v20, %v1403_v18  ;;  %v2172_v20 = vmul.f32 %v10022_v17, %v1404_v5  ;;  %v13544_v17 = vld [vmem:[#allocation29_spill] sm:$0xff] }
 0x186   : > { %13538 = vst [vmem:[#allocation23_spill] sm:$0xff] %v10531_v58  ;;  %2659 = vmatmul.mubr.bf16.gmra.mxu1 %v2274_v46  ;;  %v10535_v23 = vpop.permute.xlu1 %2113  ;;  %v1039_v42 = vpop.f32.mrf.mxu0  ;;  %v1402_v58 = vmax.f32 %v1024_v55, 0.0 }
 0x187   : > { %13539 = vst [vmem:[#allocation82_spill] sm:$0xff] %v10535_v23  ;;  %v10537_v37 = vpop.permute.xlu0 %2108  ;;  %2668 = vmatprep.mubr.bf16.mxu1 %v13440_v14  ;;  %v1040_v55 = vadd.f32 %v10520_v4, %v1039_v42 }
 0x188   : > { %13540 = vst [vmem:[#allocation83_spill] sm:$0xff] %v10537_v37  ;;  %v8107_v53 = vpop.f32.mrf.mxu0  ;;  %v2170_v49 = vmul.f32 %v10005_v62, %v1402_v58  ;;  %v10563_v58 = vsub.s32 0, %v10247_v51 }
 0x189   : > { %v1406_v62 = vmax.f32 %v1040_v55, 0.0 }
 0x18a   : > { %v2124_v15 = vpop.permute.xlu1 %2123  ;;  %v1042_v34 = vpop.f32.mrf.mxu0  ;;  %v10571_v42 = vrot.slane %v10278_v47, %v10563_v58 }
 0x18b   : > { %v10544_v60 = vmul.f32 %v2124_v15, %v1485_v31  ;;  %v2119_v46 = vpop.permute.xlu0 %2118  ;;  %v2276_v31 = vpack.c.bf16 %v2171_v54, %v2170_v49  ;;  %v1043_v8 = vadd.f32 %v10520_v4, %v1042_v34  ;;  %v1048_v54 = vadd.f32 %v10520_v4, %v8106_v28  ;;  %v13545_v28 = vld [vmem:[#allocation31_spill] sm:$0xff] }
 0x18c   : > { %v10546_v19 = vmul.f32 %v2119_v46, %v1484_v50  ;;  %v2173_v50 = vmul.f32 %v10018_v52, %v1405_v11  ;;  %v8110_v7 = vpop.f32.mrf.mxu0  ;;  %v13543_v52 = vld [vmem:[#allocation28_spill] sm:$0xff]  ;;  %v2174_v16 = vmul.f32 %v13544_v17, %v1406_v62 }
 0x18d   : > { %13541 = vst [vmem:[#allocation84_spill] sm:$0xff] %v10544_v60  ;;  %v1407_v57 = vmax.f32 %v1043_v8, 0.0  ;;  %v1408_v51 = vmax.f32 %v1048_v54, 0.0 }
 0x18e   : > { %13542 = vst [vmem:[#allocation85_spill] sm:$0xff] %v10546_v19  ;;  %2669 = vmatmul.mubr.bf16.gmra.mxu1 %v2275_v61  ;;  %v2277_v15 = vpack.c.bf16 %v2173_v50, %v2172_v20  ;;  %v1055_v46 = vpop.f32.mrf.mxu0  ;;  %v1051_v61 = vadd.f32 %v10520_v4, %v8107_v53  ;;  %v10578_v50 = vrot.slane %v10269_v26, %v10563_v58 }
 0x18f   : > { %2678 = vmatprep.mubr.bf16.mxu1 %v13440_v14  ;;  %v2175_v18 = vmul.f32 %v13543_v52, %v1407_v57  ;;  %v13546_v57 = vld [vmem:[#allocation32_spill] sm:$0xff] }
 0x190   : > { %v8111_v36 = vpop.f32.mrf.mxu0  ;;  %v1409_v49 = vmax.f32 %v1051_v61, 0.0  ;;  %v2176_v62 = vmul.f32 %v13546_v57, %v1408_v51  ;;  %v1056_v61 = vadd.f32 %v10520_v4, %v1055_v46 }
 0x191   : > { %v2278_v11 = vpack.c.bf16 %v2175_v18, %v2174_v16 }
 0x192   : > { %v1058_v34 = vpop.f32.mrf.mxu0  ;;  %v2177_v8 = vmul.f32 %v13545_v28, %v1409_v49 }
 0x193   : > { %v1059_v47 = vadd.f32 %v10520_v4, %v1058_v34 }
 0x194   : > { %v10585_v55 = vpop.f32.mrf.mxu0  ;;  %v2279_v17 = vpack.c.bf16 %v2177_v8, %v2176_v62  ;;  %v13547_v8 = vld [vmem:[#allocation3_spill] sm:$0xff] }
 0x195   : > { %v1411_v16 = vmax.f32 %v1059_v47, 0.0 }
 0x196   : > { %2679 = vmatmul.mubr.bf16.gmra.mxu1 %v2276_v31  ;;  %v10573_v31 = vpop.f32.mrf.mxu1 }
 0x197   : > { %2688 = vmatprep.mubr.bf16.mxu1 %v13440_v14  ;;  %v2179_v47 = vmul.f32 %v13547_v8, %v1411_v16 }
 0x19e   : > { %2689 = vmatmul.mubr.bf16.gmra.mxu1 %v2277_v15 }
 0x19f   : > { %2698 = vmatprep.mubr.bf16.mxu1 %v13440_v14 }
 0x1a6   : > { %v2460_v5 = vpop.f32.mrf.mxu1  ;;  %2699 = vmatmul.mubr.bf16.gmra.mxu1 %v2278_v11  ;;  %v1071_v11 = vpop.f32.mrf.mxu0 }
 0x1a7   : > { %v2461_v53 = vadd.f32 %v2460_v5, %v10571_v42  ;;  %2708 = vmatprep.mubr.bf16.mxu1 %v13440_v14  ;;  %v1410_v5 = vmax.f32 %v1056_v61, 0.0  ;;  %v1064_v61 = vadd.f32 %v10520_v4, %v8110_v7 }
 0x1a8   : > { %v10583_v20 = vpop.f32.mrf.mxu1  ;;  %v8115_v62 = vpop.f32.mrf.mxu0 }
 0x1a9   : > { %v3099_v15 = vmax.f32 %v2461_v53, 0.0  ;;  %v1412_v8 = vmax.f32 %v1064_v61, 0.0  ;;  %v13550_v61 = vld [vmem:[#allocation5_spill] sm:$0xff] }
 0x1aa   : > { %v2464_v52 = vpop.f32.mrf.mxu1 }
 0x1ab   : > { %v3367_v18 = vmul.f32 %v10578_v50, %v3099_v15  ;;  %v3751_v26 = vmul.f32 %v3099_v15, %v3099_v15  ;;  %v2465_v54 = vadd.f32 %v2464_v52, %v10571_v42  ;;  %v1067_v15 = vadd.f32 %v10520_v4, %v8111_v36  ;;  %v1074_v36 = vpop.f32.mrf.mxu0 }
 0x1ac   : > { %v10591_v49 = vpop.f32.mrf.mxu1 }
 0x1ad   : > { %v3101_v34 = vmax.f32 %v2465_v54, 0.0  ;;  %3879 = vadd.xlane.f32.xlu1 %v3751_v26  ;;  %3495 = vadd.xlane.f32.xlu0 %v3367_v18  ;;  %v13548_v18 = vld [vmem:[#allocation33_spill] sm:$0xff] }
 0x1ae   : > { %v2470_v53 = vpop.f32.mrf.mxu1  ;;  %2709 = vmatmul.mubr.bf16.gmra.mxu1 %v2279_v17  ;;  %v2178_v26 = vmul.f32 %v13548_v18, %v1410_v5  ;;  %v13549_v5 = vld [vmem:[#allocation6_spill] sm:$0xff]  ;;  %v10612_v18 = vpop.f32.mrf.mxu0 }
 0x1af   : > { %v3368_v51 = vmul.f32 %v10578_v50, %v3101_v34  ;;  %v3752_v46 = vmul.f32 %v3101_v34, %v3101_v34  ;;  %v2471_v28 = vadd.f32 %v2470_v53, %v10571_v42  ;;  %2718 = vmatprep.mubr.bf16.mxu1 %v13440_v14  ;;  %v1413_v53 = vmax.f32 %v1067_v15, 0.0 }
 0x1b0   : > { %v10598_v57 = vpop.f32.mrf.mxu1  ;;  %v2280_v30 = vpack.c.bf16 %v2179_v47, %v2178_v26  ;;  %v1075_v15 = vadd.f32 %v10520_v4, %v1074_v36  ;;  %v1087_v1 = vpop.f32.mrf.mxu0 }
 0x1b1   : > { %v3103_v52 = vmax.f32 %v2471_v28, 0.0  ;;  %3497 = vadd.xlane.f32.xlu1 %v3368_v51  ;;  %3881 = vadd.xlane.f32.xlu0 %v3752_v46  ;;  %v2181_v28 = vmul.f32 %v13549_v5, %v1413_v53 }
 0x1b2   : > { %v2474_v54 = vpop.f32.mrf.mxu1  ;;  %v1415_v5 = vmax.f32 %v1075_v15, 0.0 }
 0x1b3   : > { %v3753_v17 = vmul.f32 %v3103_v52, %v3103_v52  ;;  %v2475_v34 = vadd.f32 %v2474_v54, %v10571_v42  ;;  %v3369_v51 = vmul.f32 %v10578_v50, %v3103_v52  ;;  %v1072_v52 = vadd.f32 %v10520_v4, %v1071_v11 }
 0x1b4   : > { %v10603_v19 = vpop.f32.mrf.mxu1 }
 0x1b5   : > { %v3105_v16 = vmax.f32 %v2475_v34, 0.0  ;;  %3883 = vadd.xlane.f32.xlu0 %v3753_v17 }
 0x1b6   : > { %v2480_v60 = vpop.f32.mrf.mxu1  ;;  %2719 = vmatmul.mubr.bf16.gmra.mxu1 %v2280_v30  ;;  %v2180_v30 = vmul.f32 %v13550_v61, %v1412_v8 }
 0x1b7   : > { %v3754_v46 = vmul.f32 %v3105_v16, %v3105_v16  ;;  %v2481_v7 = vadd.f32 %v2480_v60, %v10571_v42  ;;  %2728 = vmatprep.mubr.bf16.mxu1 %v13440_v14  ;;  %v3370_v60 = vmul.f32 %v10578_v50, %v3105_v16  ;;  %v1083_v16 = vadd.f32 %v10520_v4, %v8115_v62 }
 0x1b8   : > { %v10610_v47 = vpop.f32.mrf.mxu1  ;;  %v2281_v53 = vpack.c.bf16 %v2181_v28, %v2180_v30  ;;  %v13551_v28 = vld [vmem:[#allocation34_spill] sm:$0xff]  ;;  %v8119_v30 = vpop.f32.mrf.mxu0 }
 0x1b9   : > { %v3107_v26 = vmax.f32 %v2481_v7, 0.0  ;;  %3885 = vadd.xlane.f32.xlu1 %v3754_v46  ;;  %3499 = vadd.xlane.f32.xlu0 %v3369_v51  ;;  %v1414_v46 = vmax.f32 %v1072_v52, 0.0  ;;  %v2183_v15 = vmul.f32 %v13551_v28, %v1415_v5  ;;  %v1080_v52 = vadd.f32 %v10520_v4, %v10585_v55 }
 0x1ba   : > { %v2484_v54 = vpop.f32.mrf.mxu1  ;;  %v1417_v62 = vmax.f32 %v1083_v16, 0.0  ;;  %v1090_v28 = vpop.f32.mrf.mxu0 }
 0x1bb   : > { %v3755_v17 = vmul.f32 %v3107_v26, %v3107_v26  ;;  %v2485_v34 = vadd.f32 %v2484_v54, %v10571_v42  ;;  %v3371_v8 = vmul.f32 %v10578_v50, %v3107_v26  ;;  %v1091_v16 = vadd.f32 %v10520_v4, %v1090_v28 }
 0x1bc   : > { %v10618_v36 = vpop.f32.mrf.mxu1 }
 0x1bd   : > { %v3109_v37 = vmax.f32 %v2485_v34, 0.0  ;;  %3501 = vadd.xlane.f32.xlu1 %v3370_v60  ;;  %3887 = vadd.xlane.f32.xlu0 %v3755_v17  ;;  %v13553_v60 = vld [vmem:[#allocation35_spill] sm:$0xff] }
 0x1be   : > { %v2490_v51 = vpop.f32.mrf.mxu1  ;;  %2729 = vmatmul.mubr.bf16.gmra.mxu1 %v2281_v53  ;;  %v2182_v26 = vmul.f32 %v13553_v60, %v1414_v46 }
 0x1bf   : > { %v3756_v11 = vmul.f32 %v3109_v37, %v3109_v37  ;;  %v2491_v7 = vadd.f32 %v2490_v51, %v10571_v42  ;;  %2738 = vmatprep.mubr.bf16.mxu1 %v13440_v14  ;;  %v3372_v34 = vmul.f32 %v10578_v50, %v3109_v37  ;;  %v2185_v37 = vmul.f32 %v10096_v35, %v1417_v62 }
 0x1c0   : > { %v10625_v61 = vpop.f32.mrf.mxu1  ;;  %v2282_v23 = vpack.c.bf16 %v2183_v15, %v2182_v26 }
 0x1c1   : > { %13552 = vst [vmem:[#allocation28_spill] sm:$0xff] %v10625_v61  ;;  %v3111_v54 = vmax.f32 %v2491_v7, 0.0  ;;  %3889 = vadd.xlane.f32.xlu1 %v3756_v11  ;;  %3503 = vadd.xlane.f32.xlu0 %v3371_v8  ;;  %v1416_v8 = vmax.f32 %v1080_v52, 0.0 }
 0x1c2   : > { %v2494_v17 = vpop.f32.mrf.mxu1 }
 0x1c3   : > { %v3757_v53 = vmul.f32 %v3111_v54, %v3111_v54  ;;  %v2495_v51 = vadd.f32 %v2494_v17, %v10571_v42  ;;  %v3373_v55 = vmul.f32 %v10578_v50, %v3111_v54  ;;  %v2184_v52 = vmul.f32 %v10100_v48, %v1416_v8 }
 0x1c4   : > { %v10632_v5 = vpop.f32.mrf.mxu1 }
 0x1c5   : > { %v3113_v61 = vmax.f32 %v2495_v51, 0.0  ;;  %3505 = vadd.xlane.f32.xlu1 %v3372_v34  ;;  %3891 = vadd.xlane.f32.xlu0 %v3757_v53  ;;  %v2283_v53 = vpack.c.bf16 %v2185_v37, %v2184_v52  ;;  %v1419_v51 = vmax.f32 %v1091_v16, 0.0  ;;  %v1096_v37 = vadd.f32 %v10520_v4, %v10612_v18  ;;  %v13554_v16 = vld [vmem:[#allocation11_spill] sm:$0xff] }
 0x1c6   : > { %v2500_v11 = vpop.f32.mrf.mxu1  ;;  %2739 = vmatmul.mubr.bf16.gmra.mxu1 %v2282_v23  ;;  %v1088_v23 = vadd.f32 %v10520_v4, %v1087_v1 }
 0x1c7   : > { %v3758_v46 = vmul.f32 %v3113_v61, %v3113_v61  ;;  %v2501_v7 = vadd.f32 %v2500_v11, %v10571_v42  ;;  %2748 = vmatprep.mubr.bf16.mxu1 %v13440_v14  ;;  %v3374_v54 = vmul.f32 %v10578_v50, %v3113_v61  ;;  %v1099_v61 = vadd.f32 %v10520_v4, %v8119_v30 }
 0x1c8   : > { %v10639_v15 = vpop.f32.mrf.mxu1  ;;  %v1418_v28 = vmax.f32 %v1088_v23, 0.0 }
 0x1c9   : > { %v3115_v60 = vmax.f32 %v2501_v7, 0.0  ;;  %3893 = vadd.xlane.f32.xlu1 %v3758_v46  ;;  %3507 = vadd.xlane.f32.xlu0 %v3373_v55  ;;  %v2187_v55 = vmul.f32 %v10106_v13, %v1419_v51 }
 0x1ca   : > { %v2504_v26 = vpop.f32.mrf.mxu1  ;;  %v2186_v52 = vmul.f32 %v13554_v16, %v1418_v28 }
 0x1cb   : > { %v3759_v17 = vmul.f32 %v3115_v60, %v3115_v60  ;;  %v2505_v34 = vadd.f32 %v2504_v26, %v10571_v42  ;;  %v3375_v48 = vmul.f32 %v10578_v50, %v3115_v60 }
 0x1cc   : > { %v10645_v35 = vpop.f32.mrf.mxu1  ;;  %v2284_v30 = vpack.c.bf16 %v2187_v55, %v2186_v52  ;;  %v13558_v52 = vld [vmem:[#allocation37_spill] sm:$0xff] }
 0x1cd   : > { %v3117_v62 = vmax.f32 %v2505_v34, 0.0  ;;  %3509 = vadd.xlane.f32.xlu1 %v3374_v54  ;;  %3895 = vadd.xlane.f32.xlu0 %v3759_v17  ;;  %v1421_v17 = vmax.f32 %v1099_v61, 0.0  ;;  %v13557_v61 = vld [vmem:[#allocation36_spill] sm:$0xff] }
 0x1ce   : > { %v2510_v11 = vpop.f32.mrf.mxu1  ;;  %2749 = vmatmul.mubr.bf16.gmra.mxu1 %v2283_v53  ;;  %v1420_v53 = vmax.f32 %v1096_v37, 0.0 }
 0x1cf   : > { %v3760_v8 = vmul.f32 %v3117_v62, %v3117_v62  ;;  %v2511_v1 = vadd.f32 %v2510_v11, %v10571_v42  ;;  %2758 = vmatprep.mubr.bf16.mxu1 %v13440_v14  ;;  %v3376_v23 = vmul.f32 %v10578_v50, %v3117_v62  ;;  %v13555_v62 = vld [vmem:[#allocation24_spill] sm:$0xff]  ;;  %v2189_v55 = vmul.f32 %v13557_v61, %v1421_v17  ;;  %v13559_v61 = vld [vmem:[#allocation38_spill] sm:$0xff] }
 0x1d0   : > { %v10652_v46 = vpop.f32.mrf.mxu1 }
 0x1d1   : > { %v3119_v7 = vmax.f32 %v2511_v1, 0.0  ;;  %3897 = vadd.xlane.f32.xlu1 %v3760_v8  ;;  %3511 = vadd.xlane.f32.xlu0 %v3375_v48  ;;  %v1104_v48 = vadd.f32 %v10520_v4, %v13555_v62  ;;  %v13556_v8 = vld [vmem:[#allocation25_spill] sm:$0xff] }
 0x1d2   : > { %v2514_v60 = vpop.f32.mrf.mxu1  ;;  %v1107_v1 = vadd.f32 %v10520_v4, %v13556_v8 }
 0x1d3   : > { %v3761_v26 = vmul.f32 %v3119_v7, %v3119_v7  ;;  %v2515_v54 = vadd.f32 %v2514_v60, %v10571_v42  ;;  %v3377_v18 = vmul.f32 %v10578_v50, %v3119_v7  ;;  %v2188_v7 = vmul.f32 %v13558_v52, %v1420_v53 }
 0x1d4   : > { %v10659_v34 = vpop.f32.mrf.mxu1  ;;  %v1423_v62 = vmax.f32 %v1107_v1, 0.0 }
 0x1d5   : > { %v3121_v13 = vmax.f32 %v2515_v54, 0.0  ;;  %3513 = vadd.xlane.f32.xlu1 %v3376_v23  ;;  %3899 = vadd.xlane.f32.xlu0 %v3761_v26  ;;  %v2285_v17 = vpack.c.bf16 %v2189_v55, %v2188_v7 }
 0x1d6   : > { %v2520_v51 = vpop.f32.mrf.mxu1  ;;  %2759 = vmatmul.mubr.bf16.gmra.mxu1 %v2284_v30  ;;  %v8520_v30 = vld [vmem:[%s13378_s6 + $0x38] sm:$0xff]   ;;  %v2191_v1 = vmul.f32 %v10137_v0, %v1423_v62  ;;  %v8522_v0 = vld [vmem:[%s13378_s6 + $0x28] sm:$0xff]  }
 0x1d7   : > { %v3762_v11 = vmul.f32 %v3121_v13, %v3121_v13  ;;  %v2521_v28 = vadd.f32 %v2520_v51, %v10571_v42  ;;  %2768 = vmatprep.mubr.bf16.mxu1 %v13440_v14  ;;  %v3378_v23 = vmul.f32 %v10578_v50, %v3121_v13  ;;  %v1422_v51 = vmax.f32 %v1104_v48, 0.0  ;;  %8184 = vmatprep.subr.bf16.mxu0 %v8520_v30  ;;  %v8521_v48 = vld [vmem:[%s13378_s6 + $0x30] sm:$0xff]  }
 0x1d8   : > { %v10669_v16 = vpop.f32.mrf.mxu1  ;;  %8185 = vmatpush3.bf16.msra.mxu0 %v8520_v30 }
 0x1d9   : > { %v3123_v37 = vmax.f32 %v2521_v28, 0.0  ;;  %3901 = vadd.xlane.f32.xlu1 %v3762_v11  ;;  %3515 = vadd.xlane.f32.xlu0 %v3377_v18  ;;  %v2190_v55 = vmul.f32 %v13559_v61, %v1422_v51  ;;  %v8523_v61 = vld [vmem:[%s13378_s6 + $0x20] sm:$0xff]  }
 0x1da   : > { %v2524_v60 = vpop.f32.mrf.mxu1  ;;  %8186 = vmatprep.subr.bf16.mxu0 %v8521_v48 }
 0x1db   : > { %v3763_v26 = vmul.f32 %v3123_v37, %v3123_v37  ;;  %v2525_v54 = vadd.f32 %v2524_v60, %v10571_v42  ;;  %v3379_v13 = vmul.f32 %v10578_v50, %v3123_v37 }
 0x1dc   : > { %v10677_v8 = vpop.f32.mrf.mxu1  ;;  %8187 = vmatpush3.bf16.msra.mxu0 %v8521_v48 }
 0x1dd   : > { %v3125_v28 = vmax.f32 %v2525_v54, 0.0  ;;  %3517 = vadd.xlane.f32.xlu1 %v3378_v23  ;;  %3903 = vadd.xlane.f32.xlu0 %v3763_v26  ;;  %v2286_v54 = vpack.c.bf16 %v2191_v1, %v2190_v55 }
 0x1de   : > { %v2530_v18 = vpop.f32.mrf.mxu1  ;;  %2769 = vmatmul.mubr.bf16.gmra.mxu1 %v2285_v17  ;;  %8188 = vmatprep.subr.bf16.mxu0 %v8522_v0 }
 0x1df   : > { %v3764_v53 = vmul.f32 %v3125_v28, %v3125_v28  ;;  %v2531_v11 = vadd.f32 %v2530_v18, %v10571_v42  ;;  %2778 = vmatprep.mubr.bf16.mxu1 %v13440_v14  ;;  %v3380_v60 = vmul.f32 %v10578_v50, %v3125_v28 }
 0x1e0   : > { %v10687_v52 = vpop.f32.mrf.mxu1  ;;  %8189 = vmatpush3.bf16.msra.mxu0 %v8522_v0 }
 0x1e1   : > { %v3127_v7 = vmax.f32 %v2531_v11, 0.0  ;;  %3905 = vadd.xlane.f32.xlu1 %v3764_v53  ;;  %3519 = vadd.xlane.f32.xlu0 %v3379_v13  ;;  %v13560_v13 = vld [vmem:[#allocation26_spill] sm:$0xff]  ;;  %v13561_v11 = vld [vmem:[#allocation27_spill] sm:$0xff] }
 0x1e2   : > { %v2534_v37 = vpop.f32.mrf.mxu1  ;;  %v1120_v53 = vadd.f32 %v10520_v4, %v13560_v13  ;;  %v1123_v48 = vadd.f32 %v10520_v4, %v13561_v11  ;;  %8190 = vmatprep.subr.bf16.mxu0 %v8523_v61  ;;  %v13563_v11 = vld [vmem:[#allocation41_spill] sm:$0xff] }
 0x1e3   : > { %v3765_v23 = vmul.f32 %v3127_v7, %v3127_v7  ;;  %v2535_v26 = vadd.f32 %v2534_v37, %v10571_v42  ;;  %v3381_v17 = vmul.f32 %v10578_v50, %v3127_v7 }
 0x1e4   : > { %v10691_v30 = vpop.f32.mrf.mxu1  ;;  %8191 = vmatpush3.bf16.msra.mxu0 %v8523_v61  ;;  %v13564_v61 = vld [vmem:[#allocation42_spill] sm:$0xff] }
 0x1e5   : > { %v3129_v51 = vmax.f32 %v2535_v26, 0.0  ;;  %3521 = vadd.xlane.f32.xlu1 %v3380_v60  ;;  %3907 = vadd.xlane.f32.xlu0 %v3765_v23  ;;  %v1426_v26 = vmax.f32 %v1120_v53, 0.0 }
 0x1e6   : > { %v2540_v62 = vpop.f32.mrf.mxu1  ;;  %2779 = vmatmul.mubr.bf16.gmra.mxu1 %v2286_v54  ;;  %v1427_v54 = vmax.f32 %v1123_v48, 0.0 }
 0x1e7   : > { %v3766_v28 = vmul.f32 %v3129_v51, %v3129_v51  ;;  %v2541_v18 = vadd.f32 %v2540_v62, %v10571_v42  ;;  %2788 = vmatprep.mubr.bf16.mxu1 %v13440_v14  ;;  %v3382_v37 = vmul.f32 %v10578_v50, %v3129_v51  ;;  %v8524_v62 = vld [vmem:[%s13378_s6 + $0x18] sm:$0xff]  }
 0x1e8   : > { %v10703_v1 = vpop.f32.mrf.mxu1  ;;  %8192 = vmatprep.subr.bf16.mxu0 %v8524_v62  ;;  %v2195_v48 = vmul.f32 %v13563_v11, %v1427_v54  ;;  %v13566_v11 = vld [vmem:[#allocation30_spill] sm:$0xff] }
 0x1e9   : > { %v3131_v55 = vmax.f32 %v2541_v18, 0.0  ;;  %3909 = vadd.xlane.f32.xlu1 %v3766_v28  ;;  %3523 = vadd.xlane.f32.xlu0 %v3381_v17  ;;  %v13562_v28 = vpack.c.bf16 %v10157_v63, %v10161_v29  ;;  %v8525_v63 = vld [vmem:[%s13378_s6 + $0x10] sm:$0xff]  }
 0x1ea   : > { %v2544_v7 = vpop.f32.mrf.mxu1  ;;  %8193 = vmatpush3.bf16.msra.mxu0 %v8524_v62 }
 0x1eb   : > { %v3767_v60 = vmul.f32 %v3131_v55, %v3131_v55  ;;  %v2545_v23 = vadd.f32 %v2544_v7, %v10571_v42  ;;  %v3383_v51 = vmul.f32 %v10578_v50, %v3131_v55  ;;  %v2194_v7 = vmul.f32 %v13564_v61, %v1426_v26  ;;  %8194 = vmatprep.subr.bf16.mxu0 %v8525_v63  ;;  %v8526_v26 = vld [vmem:[%s13378_s6 + $0x8] sm:$0xff]  }
 0x1ec   : > { %v10710_v0 = vpop.f32.mrf.mxu1  ;;  %v13567_v61 = vld [vmem:[#allocation4_spill] sm:$0xff] }
 0x1ed   : > { %v3133_v13 = vmax.f32 %v2545_v23, 0.0  ;;  %3525 = vadd.xlane.f32.xlu1 %v3382_v37  ;;  %3911 = vadd.xlane.f32.xlu0 %v3767_v60  ;;  %v2288_v54 = vpack.c.bf16 %v2195_v48, %v2194_v7  ;;  %v1136_v48 = vadd.f32 %v10520_v4, %v13566_v11  ;;  %v1139_v7 = vadd.f32 %v10520_v4, %v13567_v61 }
 0x1ee   : > { %v2550_v17 = vpop.f32.mrf.mxu1  ;;  %2789 = vmatmul.mubr.bf16.gmra.mxu1 %v13562_v28  ;;  %8195 = vmatpush3.bf16.msra.mxu0 %v8525_v63 }
 0x1ef   : > { %v3768_v18 = vmul.f32 %v3133_v13, %v3133_v13  ;;  %v2551_v53 = vadd.f32 %v2550_v17, %v10571_v42  ;;  %2798 = vmatprep.mubr.bf16.mxu1 %v13440_v14  ;;  %v3384_v60 = vmul.f32 %v10578_v50, %v3133_v13  ;;  %8196 = vmatprep.subr.bf16.mxu0 %v8526_v26 }
 0x1f0   : > { %v10723_v37 = vpop.f32.mrf.mxu1 }
 0x1f1   : > { %v3135_v29 = vmax.f32 %v2551_v53, 0.0  ;;  %3913 = vadd.xlane.f32.xlu1 %v3768_v18  ;;  %3527 = vadd.xlane.f32.xlu0 %v3383_v51 }
 0x1f2   : > { %v2554_v55 = vpop.f32.mrf.mxu1  ;;  %8197 = vmatpush3.bf16.msra.mxu0 %v8526_v26  ;;  %v1430_v26 = vmax.f32 %v1136_v48, 0.0  ;;  %v13572_v48 = vld [vmem:[#allocation46_spill] sm:$0xff] }
 0x1f3   : > { %v3769_v23 = vmul.f32 %v3135_v29, %v3135_v29  ;;  %v2555_v62 = vadd.f32 %v2554_v55, %v10571_v42  ;;  %v3385_v51 = vmul.f32 %v10578_v50, %v3135_v29  ;;  %v8527_v29 = vld [vmem:[%s13378_s6] sm:$0xff]  }
 0x1f4   : > { %v10730_v17 = vpop.f32.mrf.mxu1  ;;  %8198 = vmatprep.subr.bf16.mxu0 %v8527_v29 }
 0x1f5   : > { %13565 = vst [vmem:[#allocation29_spill] sm:$0xff] %v10730_v17  ;;  %v3137_v28 = vmax.f32 %v2555_v62, 0.0  ;;  %3529 = vadd.xlane.f32.xlu1 %v3384_v60  ;;  %3915 = vadd.xlane.f32.xlu0 %v3769_v23 }
 0x1f6   : > { %v2560_v18 = vpop.f32.mrf.mxu1  ;;  %2799 = vmatmul.mubr.bf16.gmra.mxu1 %v2288_v54  ;;  %8199 = vmatpush3.bf16.msra.mxu0 %v8527_v29 }
 0x1f7   : > { %v3770_v13 = vmul.f32 %v3137_v28, %v3137_v28  ;;  %v2561_v53 = vadd.f32 %v2560_v18, %v10571_v42  ;;  %2808 = vmatprep.mubr.bf16.mxu1 %v13440_v14  ;;  %v3386_v23 = vmul.f32 %v10578_v50, %v3137_v28  ;;  %v1431_v18 = vmax.f32 %v1139_v7, 0.0 }
 0x1f8   : > { %v10742_v63 = vpop.f32.mrf.mxu1 }
 0x1f9   : > { %13568 = vst [vmem:[#allocation31_spill] sm:$0xff] %v10742_v63  ;;  %v3139_v55 = vmax.f32 %v2561_v53, 0.0  ;;  %3917 = vadd.xlane.f32.xlu1 %v3770_v13  ;;  %3531 = vadd.xlane.f32.xlu0 %v3385_v51  ;;  %v13570_v51 = vld [vmem:[#allocation44_spill] sm:$0xff]  ;;  %v2199_v7 = vmul.f32 %v13572_v48, %v1431_v18 }
 0x1fa   : > { %v2564_v60 = vpop.f32.mrf.mxu1  ;;  %v13571_v53 = vpack.c.bf16 %v10186_v12, %v13570_v51 }
 0x1fb   : > { %v3771_v62 = vmul.f32 %v3139_v55, %v3139_v55  ;;  %v2565_v54 = vadd.f32 %v2564_v60, %v10571_v42  ;;  %v3387_v63 = vmul.f32 %v10578_v50, %v3139_v55  ;;  %v13573_v60 = vld [vmem:[#allocation47_spill] sm:$0xff] }
 0x1fc   : > { %v10749_v11 = vpop.f32.mrf.mxu1 }
 0x1fd   : > { %13569 = vst [vmem:[#allocation32_spill] sm:$0xff] %v10749_v11  ;;  %v3141_v61 = vmax.f32 %v2565_v54, 0.0  ;;  %3533 = vadd.xlane.f32.xlu1 %v3386_v23  ;;  %3919 = vadd.xlane.f32.xlu0 %v3771_v62  ;;  %v2198_v11 = vmul.f32 %v13573_v60, %v1430_v26 }
 0x1fe   : > { %v2570_v13 = vpop.f32.mrf.mxu1  ;;  %2809 = vmatmul.mubr.bf16.gmra.mxu1 %v13571_v53 }
 0x1ff   : > { %v3772_v28 = vmul.f32 %v3141_v61, %v3141_v61  ;;  %v2571_v17 = vadd.f32 %v2570_v13, %v10571_v42  ;;  %2818 = vmatprep.mubr.bf16.mxu1 %v13440_v14  ;;  %v3388_v12 = vmul.f32 %v10578_v50, %v3141_v61  ;;  %v2290_v51 = vpack.c.bf16 %v2199_v7, %v2198_v11 }
 0x200   : > { %v10759_v54 = vpop.f32.mrf.mxu1 }
 0x201   : > { %13574 = vst [vmem:[#allocation3_spill] sm:$0xff] %v10759_v54  ;;  %v3143_v23 = vmax.f32 %v2571_v17, 0.0  ;;  %3921 = vadd.xlane.f32.xlu1 %v3772_v28  ;;  %3535 = vadd.xlane.f32.xlu0 %v3387_v63  ;;  %v13576_v63 = vld [vmem:[#allocation7_spill] sm:$0xff] }
 0x202   : > { %v2574_v62 = vpop.f32.mrf.mxu1  ;;  %v1155_v61 = vadd.f32 %v10520_v4, %v13576_v63 }
 0x203   : > { %v3773_v29 = vmul.f32 %v3143_v23, %v3143_v23  ;;  %v2575_v55 = vadd.f32 %v2574_v62, %v10571_v42  ;;  %v3389_v26 = vmul.f32 %v10578_v50, %v3143_v23 }
 0x204   : > { %v10763_v53 = vpop.f32.mrf.mxu1  ;;  %v1435_v23 = vmax.f32 %v1155_v61, 0.0 }
 0x205   : > { %13575 = vst [vmem:[#allocation33_spill] sm:$0xff] %v10763_v53  ;;  %v3145_v13 = vmax.f32 %v2575_v55, 0.0  ;;  %3537 = vadd.xlane.f32.xlu1 %v3388_v12  ;;  %3923 = vadd.xlane.f32.xlu0 %v3773_v29 }
 0x206   : > { %v2580_v18 = vpop.f32.mrf.mxu1  ;;  %2819 = vmatmul.mubr.bf16.gmra.mxu1 %v2290_v51 }
 0x207   : > { %v3774_v48 = vmul.f32 %v3145_v13, %v3145_v13  ;;  %v2581_v17 = vadd.f32 %v2580_v18, %v10571_v42  ;;  %2828 = vmatprep.mubr.bf16.mxu1 %v13440_v14  ;;  %v3390_v60 = vmul.f32 %v10578_v50, %v3145_v13  ;;  %v13579_v18 = vpack.c.bf16 %v10218_v21, %v10220_v25  ;;  %v13581_v21 = vld [vmem:[#allocation50_spill] sm:$0xff] }
 0x208   : > { %v10770_v28 = vpop.f32.mrf.mxu1  ;;  %v2203_v13 = vmul.f32 %v10226_v45, %v1435_v23 }
 0x209   : > { %13577 = vst [vmem:[#allocation6_spill] sm:$0xff] %v10770_v28  ;;  %v3147_v11 = vmax.f32 %v2581_v17, 0.0  ;;  %3925 = vadd.xlane.f32.xlu1 %v3774_v48  ;;  %3539 = vadd.xlane.f32.xlu0 %v3389_v26 }
 0x20a   : > { %v2584_v7 = vpop.f32.mrf.mxu1 }
 0x20b   : > { %v3775_v62 = vmul.f32 %v3147_v11, %v3147_v11  ;;  %v2585_v12 = vadd.f32 %v2584_v7, %v10571_v42  ;;  %v3391_v48 = vmul.f32 %v10578_v50, %v3147_v11  ;;  %v2292_v11 = vpack.c.bf16 %v2203_v13, %v13581_v21 }
 0x20c   : > { %v10774_v29 = vpop.f32.mrf.mxu1 }
 0x20d   : > { %13578 = vst [vmem:[#allocation5_spill] sm:$0xff] %v10774_v29  ;;  %v3149_v55 = vmax.f32 %v2585_v12, 0.0  ;;  %3541 = vadd.xlane.f32.xlu1 %v3390_v60  ;;  %3927 = vadd.xlane.f32.xlu0 %v3775_v62  ;;  %v13588_v29 = vld [vmem:[#allocation53_spill] sm:$0xff] }
 0x20e   : > { %v2590_v51 = vpop.f32.mrf.mxu1  ;;  %2829 = vmatmul.mubr.bf16.gmra.mxu1 %v13579_v18 }
 0x20f   : > { %v3776_v26 = vmul.f32 %v3149_v55, %v3149_v55  ;;  %v2591_v17 = vadd.f32 %v2590_v51, %v10571_v42  ;;  %2838 = vmatprep.mubr.bf16.mxu1 %v13440_v14  ;;  %v3392_v60 = vmul.f32 %v10578_v50, %v3149_v55  ;;  %v13583_v55 = vld [vmem:[#allocation9_spill] sm:$0xff] }
 0x210   : > { %v10783_v63 = vpop.f32.mrf.mxu1 }
 0x211   : > { %13580 = vst [vmem:[#allocation34_spill] sm:$0xff] %v10783_v63  ;;  %v3151_v61 = vmax.f32 %v2591_v17, 0.0  ;;  %3929 = vadd.xlane.f32.xlu1 %v3776_v26  ;;  %3543 = vadd.xlane.f32.xlu0 %v3391_v48  ;;  %v1168_v26 = vadd.f32 %v10520_v4, %v13583_v55  ;;  %v13584_v17 = vld [vmem:[#allocation8_spill] sm:$0xff] }
 0x212   : > { %v2594_v7 = vpop.f32.mrf.mxu1  ;;  %v1171_v13 = vadd.f32 %v10520_v4, %v13584_v17  ;;  %v13587_v17 = vld [vmem:[#allocation52_spill] sm:$0xff] }
 0x213   : > { %v3777_v62 = vmul.f32 %v3151_v61, %v3151_v61  ;;  %v2595_v25 = vadd.f32 %v2594_v7, %v10571_v42  ;;  %v3393_v45 = vmul.f32 %v10578_v50, %v3151_v61 }
 0x214   : > { %v10788_v12 = vpop.f32.mrf.mxu1 }
 0x215   : > { %13582 = vst [vmem:[#allocation35_spill] sm:$0xff] %v10788_v12  ;;  %v3153_v51 = vmax.f32 %v2595_v25, 0.0  ;;  %3545 = vadd.xlane.f32.xlu1 %v3392_v60  ;;  %3931 = vadd.xlane.f32.xlu0 %v3777_v62 }
 0x216   : > { %v2600_v18 = vpop.f32.mrf.mxu1  ;;  %2839 = vmatmul.mubr.bf16.gmra.mxu1 %v2292_v11  ;;  %v1438_v11 = vmax.f32 %v1168_v26, 0.0 }
 0x217   : > { %v3778_v23 = vmul.f32 %v3153_v51, %v3153_v51  ;;  %v2601_v48 = vadd.f32 %v2600_v18, %v10571_v42  ;;  %2848 = vmatprep.mubr.bf16.mxu1 %v13440_v14  ;;  %v3394_v62 = vmul.f32 %v10578_v50, %v3153_v51  ;;  %v1439_v18 = vmax.f32 %v1171_v13, 0.0  ;;  %v13591_v13 = vld [vmem:[#allocation56_spill] sm:$0xff] }
 0x218   : > { %v10797_v7 = vpop.f32.mrf.mxu1 }
 0x219   : > { %13585 = vst [vmem:[#allocation11_spill] sm:$0xff] %v10797_v7  ;;  %v3155_v25 = vmax.f32 %v2601_v48, 0.0  ;;  %3933 = vadd.xlane.f32.xlu1 %v3778_v23  ;;  %3547 = vadd.xlane.f32.xlu0 %v3393_v45  ;;  %v13589_v7 = vpack.c.bf16 %v13587_v17, %v13588_v29  ;;  %v13590_v48 = vld [vmem:[#allocation55_spill] sm:$0xff] }
 0x21a   : > { %v2604_v60 = vpop.f32.mrf.mxu1  ;;  %v2207_v26 = vmul.f32 %v13590_v48, %v1439_v18 }
 0x21b   : > { %v3779_v61 = vmul.f32 %v3155_v25, %v3155_v25  ;;  %v2605_v21 = vadd.f32 %v2604_v60, %v10571_v42  ;;  %v3395_v45 = vmul.f32 %v10578_v50, %v3155_v25  ;;  %v2206_v60 = vmul.f32 %v13591_v13, %v1438_v11 }
 0x21c   : > { %v10801_v12 = vpop.f32.mrf.mxu1 }
 0x21d   : > { %13586 = vst [vmem:[#allocation24_spill] sm:$0xff] %v10801_v12  ;;  %v3157_v63 = vmax.f32 %v2605_v21, 0.0  ;;  %3549 = vadd.xlane.f32.xlu1 %v3394_v62  ;;  %3935 = vadd.xlane.f32.xlu0 %v3779_v61  ;;  %v2294_v21 = vpack.c.bf16 %v2207_v26, %v2206_v60 }
 0x21e   : > { %v2610_v55 = vpop.f32.mrf.mxu1  ;;  %2849 = vmatmul.mubr.bf16.gmra.mxu1 %v13589_v7 }
 0x21f   : > { %v3780_v23 = vmul.f32 %v3157_v63, %v3157_v63  ;;  %v2611_v51 = vadd.f32 %v2610_v55, %v10571_v42  ;;  %2858 = vmatprep.mubr.bf16.mxu1 %v13440_v14  ;;  %v3396_v29 = vmul.f32 %v10578_v50, %v3157_v63 }
 0x220   : > { %v10811_v12 = vpop.f32.mrf.mxu1 }
 0x221   : > { %13592 = vst [vmem:[#allocation25_spill] sm:$0xff] %v10811_v12  ;;  %v3159_v62 = vmax.f32 %v2611_v51, 0.0  ;;  %3937 = vadd.xlane.f32.xlu1 %v3780_v23  ;;  %3551 = vadd.xlane.f32.xlu0 %v3395_v45  ;;  %v13594_v45 = vld [vmem:[#allocation10_spill] sm:$0xff]  ;;  %v13595_v51 = vld [vmem:[#allocation12_spill] sm:$0xff] }
 0x222   : > { %v2614_v61 = vpop.f32.mrf.mxu1  ;;  %v1184_v63 = vadd.f32 %v10520_v4, %v13594_v45  ;;  %v1187_v26 = vadd.f32 %v10520_v4, %v13595_v51  ;;  %v13598_v4 = vpack.c.bf16 %v10292_v41, %v10296_v39 }
 0x223   : > { %v3781_v7 = vmul.f32 %v3159_v62, %v3159_v62  ;;  %v2615_v25 = vadd.f32 %v2614_v61, %v10571_v42  ;;  %v3397_v11 = vmul.f32 %v10578_v50, %v3159_v62 }
 0x224   : > { %v10815_v17 = vpop.f32.mrf.mxu1 }
 0x225   : > { %13593 = vst [vmem:[#allocation36_spill] sm:$0xff] %v10815_v17  ;;  %v3161_v55 = vmax.f32 %v2615_v25, 0.0  ;;  %3553 = vadd.xlane.f32.xlu1 %v3396_v29  ;;  %3939 = vadd.xlane.f32.xlu0 %v3781_v7  ;;  %v1442_v25 = vmax.f32 %v1184_v63, 0.0  ;;  %v13599_v63 = vld [vmem:[#allocation60_spill] sm:$0xff] }
 0x226   : > { %v2620_v18 = vpop.f32.mrf.mxu1  ;;  %2859 = vmatmul.mubr.bf16.gmra.mxu1 %v2294_v21  ;;  %v1443_v21 = vmax.f32 %v1187_v26, 0.0 }
 0x227   : > { %v3782_v48 = vmul.f32 %v3161_v55, %v3161_v55  ;;  %v2621_v23 = vadd.f32 %v2620_v18, %v10571_v42  ;;  %2868 = vmatprep.mubr.bf16.mxu1 %v13440_v14  ;;  %v3398_v29 = vmul.f32 %v10578_v50, %v3161_v55  ;;  %v2210_v51 = vmul.f32 %v13599_v63, %v1442_v25 }
 0x228   : > { %v10824_v13 = vpop.f32.mrf.mxu1 }
 0x229   : > { %13596 = vst [vmem:[#allocation37_spill] sm:$0xff] %v10824_v13  ;;  %v3163_v60 = vmax.f32 %v2621_v23, 0.0  ;;  %3941 = vadd.xlane.f32.xlu1 %v3782_v48  ;;  %3555 = vadd.xlane.f32.xlu0 %v3397_v11  ;;  %v2211_v23 = vmul.f32 %v10300_v56, %v1443_v21 }
 0x22a   : > { %v2624_v61 = vpop.f32.mrf.mxu1 }
 0x22b   : > { %v3783_v62 = vmul.f32 %v3163_v60, %v3163_v60  ;;  %v2625_v7 = vadd.f32 %v2624_v61, %v10571_v42  ;;  %v3399_v11 = vmul.f32 %v10578_v50, %v3163_v60 }
 0x22c   : > { %v10828_v18 = vpop.f32.mrf.mxu1 }
 0x22d   : > { %13597 = vst [vmem:[#allocation38_spill] sm:$0xff] %v10828_v18  ;;  %v3165_v17 = vmax.f32 %v2625_v7, 0.0  ;;  %3557 = vadd.xlane.f32.xlu1 %v3398_v29  ;;  %3943 = vadd.xlane.f32.xlu0 %v3783_v62  ;;  %v3360_v29 = vpop.xlane.xlu0 %3359  ;;  %v2296_v7 = vpack.c.bf16 %v2211_v23, %v2210_v51  ;;  %v13602_v23 = vld [vmem:[#allocation39_spill] sm:$0xff]  ;;  %v13603_v51 = vld [vmem:[#allocation40_spill] sm:$0xff] }
 0x22e   : > { %v2630_v45 = vpop.f32.mrf.mxu1  ;;  %2869 = vmatmul.mubr.bf16.gmra.mxu1 %v13598_v4 }
 0x22f   : > { %v3784_v48 = vmul.f32 %v3165_v17, %v3165_v17  ;;  %v2631_v55 = vadd.f32 %v2630_v45, %v10571_v42  ;;  %2878 = vmatprep.mubr.bf16.mxu1 %v13440_v14  ;;  %v3400_v39 = vmul.f32 %v10578_v50, %v3165_v17  ;;  %v10843_v45 = vrot.slane %v3360_v29, %v10563_v58  ;;  %v10855_v58 = vld [vmem:[%s13375_s3] ss:$0 sm:$0xff] }
 0x230   : > { %v10838_v26 = vpop.f32.mrf.mxu1  ;;  %v1200_v63 = vadd.f32 %v10855_v58, %v13602_v23  ;;  %v1203_v29 = vadd.f32 %v10855_v58, %v13603_v51 }
 0x231   : > { %13600 = vst [vmem:[#allocation26_spill] sm:$0xff] %v10838_v26  ;;  %v3167_v61 = vmax.f32 %v2631_v55, 0.0  ;;  %3945 = vadd.xlane.f32.xlu1 %v3784_v48  ;;  %3559 = vadd.xlane.f32.xlu0 %v3399_v11 }
 0x232   : > { %v2634_v62 = vpop.f32.mrf.mxu1  ;;  %v1446_v18 = vmax.f32 %v1200_v63, 0.0  ;;  %v1447_v23 = vmax.f32 %v1203_v29, 0.0 }
 0x233   : > { %v3785_v41 = vmul.f32 %v3167_v61, %v3167_v61  ;;  %v2635_v60 = vadd.f32 %v2634_v62, %v10571_v42  ;;  %v3401_v11 = vmul.f32 %v10578_v50, %v3167_v61 }
 0x234   : > { %v10845_v4 = vpop.f32.mrf.mxu1 }
 0x235   : > { %13601 = vst [vmem:[#allocation27_spill] sm:$0xff] %v10845_v4  ;;  %v3169_v56 = vmax.f32 %v2635_v60, 0.0  ;;  %3561 = vadd.xlane.f32.xlu1 %v3400_v39  ;;  %3947 = vadd.xlane.f32.xlu0 %v3785_v41 }
 0x236   : > { %v2640_v25 = vpop.f32.mrf.mxu1  ;;  %2879 = vmatmul.mubr.bf16.gmra.mxu1 %v2296_v7  ;;  %v3880_v21 = vpop.xlane.xlu1 %3879 }
 0x237   : > { %v3786_v48 = vmul.f32 %v3169_v56, %v3169_v56  ;;  %v2641_v17 = vadd.f32 %v2640_v25, %v10571_v42  ;;  %v10849_v55 = vpop.xlane.xlu0 %3495  ;;  %2888 = vmatprep.mubr.bf16.mxu1 %v13440_v14  ;;  %v4139_v61 = vmul.f32 %v10843_v45, %v3880_v21  ;;  %v3402_v7 = vmul.f32 %v10578_v50, %v3169_v56 }
 0x238   : > { %v10862_v62 = vpop.f32.mrf.mxu1  ;;  %v13606_v56 = vpack.c.bf16 %v10317_v40, %v10321_v22 }
 0x239   : > { %13604 = vst [vmem:[#allocation41_spill] sm:$0xff] %v10862_v62  ;;  %v3171_v39 = vmax.f32 %v2641_v17, 0.0  ;;  %3949 = vadd.xlane.f32.xlu1 %v3786_v48  ;;  %3563 = vadd.xlane.f32.xlu0 %v3401_v11  ;;  %v4267_v41 = vadd.f32 1e-12, %v4139_v61 }
 0x23a   : > { %v2644_v60 = vpop.f32.mrf.mxu1  ;;  %v10869_v48 = vpop.xlane.xlu1 %3497 }
 0x23b   : > { %v3787_v25 = vmul.f32 %v3171_v39, %v3171_v39  ;;  %v2645_v4 = vadd.f32 %v2644_v60, %v10571_v42  ;;  %v3882_v26 = vpop.xlane.xlu0 %3881  ;;  %8532 = vrsqrt.f32 %v4267_v41  ;;  %v3403_v61 = vmul.f32 %v10578_v50, %v3171_v39 }
 0x23c   : > { %v4140_v51 = vmul.f32 %v10843_v45, %v3882_v26  ;;  %v10867_v13 = vpop.f32.mrf.mxu1  ;;  %v2215_v26 = vmul.f32 %v10325_v3, %v1447_v23 }
 0x23d   : > { %13605 = vst [vmem:[#allocation42_spill] sm:$0xff] %v10867_v13  ;;  %v3173_v21 = vmax.f32 %v2645_v4, 0.0  ;;  %3565 = vadd.xlane.f32.xlu1 %v3402_v7  ;;  %3951 = vadd.xlane.f32.xlu0 %v3787_v25  ;;  %v13607_v4 = vld [vmem:[#allocation62_spill] sm:$0xff] }
 0x23e   : > { %v4268_v11 = vadd.f32 1e-12, %v4140_v51  ;;  %v2650_v17 = vpop.f32.mrf.mxu1  ;;  %2889 = vmatmul.mubr.bf16.gmra.mxu1 %v13606_v56  ;;  %v2214_v60 = vmul.f32 %v13607_v4, %v1446_v18 }
 0x23f   : > { %v3788_v63 = vmul.f32 %v3173_v21, %v3173_v21  ;;  %v2651_v29 = vadd.f32 %v2650_v17, %v10571_v42  ;;  %v3884_v41 = vpop.xlane.xlu0 %3883  ;;  %2898 = vmatprep.mubr.bf16.mxu1 %v13440_v14  ;;  %v3404_v17 = vmul.f32 %v10578_v50, %v3173_v21  ;;  %v13610_v21 = vld [vmem:[#allocation45_spill] sm:$0xff] }
 0x240   : > { %8534 = vrsqrt.f32 %v4268_v11  ;;  %v4141_v7 = vmul.f32 %v10843_v45, %v3884_v41  ;;  %v10880_v25 = vpop.f32.mrf.mxu1  ;;  %v2298_v3 = vpack.c.bf16 %v2215_v26, %v2214_v60  ;;  %v1219_v41 = vadd.f32 %v10855_v58, %v13610_v21 }
 0x241   : > { %13608 = vst [vmem:[#allocation30_spill] sm:$0xff] %v10880_v25  ;;  %v3175_v51 = vmax.f32 %v2651_v29, 0.0  ;;  %3953 = vadd.xlane.f32.xlu1 %v3788_v63  ;;  %3567 = vadd.xlane.f32.xlu0 %v3403_v61 }
 0x242   : > { %v4269_v40 = vadd.f32 1e-12, %v4141_v7  ;;  %v2654_v22 = vpop.f32.mrf.mxu1  ;;  %v3886_v39 = vpop.xlane.xlu1 %3885  ;;  %v1451_v25 = vmax.f32 %v1219_v41, 0.0 }
 0x243   : > { %v3789_v56 = vmul.f32 %v3175_v51, %v3175_v51  ;;  %v2655_v13 = vadd.f32 %v2654_v22, %v10571_v42  ;;  %v10884_v62 = vpop.xlane.xlu0 %3499  ;;  %v4142_v18 = vmul.f32 %v10843_v45, %v3886_v39  ;;  %v3405_v4 = vmul.f32 %v10578_v50, %v3175_v51  ;;  %v13614_v51 = vld [vmem:[#allocation49_spill] sm:$0xff] }
 0x244   : > { %8536 = vrsqrt.f32 %v4269_v40  ;;  %v10887_v23 = vpop.f32.mrf.mxu1  ;;  %v13611_v40 = vld [vmem:[#allocation43_spill] sm:$0xff]  ;;  %v2219_v41 = vmul.f32 %v10349_v59, %v1451_v25 }
 0x245   : > { %13609 = vst [vmem:[#allocation4_spill] sm:$0xff] %v10887_v23  ;;  %v3177_v11 = vmax.f32 %v2655_v13, 0.0  ;;  %3569 = vadd.xlane.f32.xlu1 %v3404_v17  ;;  %3955 = vadd.xlane.f32.xlu0 %v3789_v56  ;;  %v4270_v61 = vadd.f32 1e-12, %v4142_v18  ;;  %v1216_v13 = vadd.f32 %v10855_v58, %v13611_v40  ;;  %v13613_v56 = vld [vmem:[#allocation48_spill] sm:$0xff]  ;;  %v10907_v18 = vadd.f32 %v10855_v58, %v13614_v51  ;;  %v13622_v25 = vld [vmem:[#allocation59_spill] sm:$0xff] }
 0x246   : > { %v2660_v63 = vpop.f32.mrf.mxu1  ;;  %2899 = vmatmul.mubr.bf16.gmra.mxu1 %v2298_v3  ;;  %v10889_v29 = vpop.xlane.xlu1 %3501  ;;  %v10903_v3 = vadd.f32 %v10855_v58, %v13613_v56 }
 0x247   : > { %v3790_v7 = vmul.f32 %v3177_v11, %v3177_v11  ;;  %v2661_v26 = vadd.f32 %v2660_v63, %v10571_v42  ;;  %v3888_v60 = vpop.xlane.xlu0 %3887  ;;  %2908 = vmatprep.mubr.bf16.mxu1 %v13440_v14  ;;  %8538 = vrsqrt.f32 %v4270_v61  ;;  %v13615_v63 = vld [vmem:[#allocation51_spill] sm:$0xff]  ;;  %v3406_v56 = vmul.f32 %v10578_v50, %v3177_v11 }
 0x248   : > { %v4143_v22 = vmul.f32 %v10843_v45, %v3888_v60  ;;  %v10899_v39 = vpop.f32.mrf.mxu1  ;;  %v8533_v17 = vpop.eup %8532  ;;  %v10911_v21 = vadd.f32 %v10855_v58, %v13615_v63  ;;  %v1450_v53 = vmax.f32 %v1216_v13, 0.0 }
 0x249   : > { %13612 = vst [vmem:[#allocation44_spill] sm:$0xff] %v10899_v39  ;;  %v3179_v23 = vmax.f32 %v2661_v26, 0.0  ;;  %3957 = vadd.xlane.f32.xlu1 %v3790_v7  ;;  %3571 = vadd.xlane.f32.xlu0 %v3405_v4  ;;  %v4523_v61 = vmul.f32 %v8533_v17, %v10849_v55  ;;  %v13617_v17 = vld [vmem:[#allocation54_spill] sm:$0xff] }
 0x24a   : > { %v4271_v60 = vadd.f32 1e-12, %v4143_v22  ;;  %v2664_v40 = vpop.f32.mrf.mxu1  ;;  %v3890_v39 = vpop.xlane.xlu1 %3889  ;;  %v10926_v63 = vadd.f32 %v10855_v58, %v13617_v17 }
 0x24b   : > { %v3791_v12 = vmul.f32 %v3179_v23, %v3179_v23  ;;  %v2665_v28 = vadd.f32 %v2664_v40, %v10571_v42  ;;  %v10916_v51 = vpop.xlane.xlu0 %3503  ;;  %v7639_v54 = vmul.f32 -1.442695, %v4523_v61  ;;  %v4144_v26 = vmul.f32 %v10843_v45, %v3890_v39 }
 0x24c   : > { %8540 = vrsqrt.f32 %v4271_v60  ;;  %v10919_v7 = vpop.f32.mrf.mxu1  ;;  %v13618_v60 = vpack.c.bf16 %v10341_v6, %v10345_v43 }
 0x24d   : > { %13616 = vst [vmem:[#allocation46_spill] sm:$0xff] %v10919_v7  ;;  %v8535_v4 = vpop.eup %8534  ;;  %v3181_v11 = vmax.f32 %v2665_v28, 0.0  ;;  %3573 = vadd.xlane.f32.xlu1 %v3406_v56  ;;  %3959 = vadd.xlane.f32.xlu0 %v3791_v12  ;;  %8542 = vpow2.f32 %v7639_v54  ;;  %v4272_v39 = vadd.f32 1e-12, %v4144_v26  ;;  %v3407_v28 = vmul.f32 %v10578_v50, %v3179_v23  ;;  %v13619_v54 = vld [vmem:[#allocation64_spill] sm:$0xff] }
 0x24e   : > { %v4524_v13 = vmul.f32 %v8535_v4, %v10869_v48  ;;  %v2670_v61 = vpop.f32.mrf.mxu1  ;;  %2909 = vmatmul.mubr.bf16.gmra.mxu1 %v13618_v60  ;;  %v10932_v40 = vpop.xlane.xlu1 %3505  ;;  %v2218_v48 = vmul.f32 %v13619_v54, %v1450_v53  ;;  %v13621_v60 = vld [vmem:[#allocation57_spill] sm:$0xff]  ;;  %v10948_v23 = vadd.f32 %v10855_v58, %v13622_v25 }
 0x24f   : > { %v3792_v12 = vmul.f32 %v3181_v11, %v3181_v11  ;;  %v2671_v56 = vadd.f32 %v2670_v61, %v10571_v42  ;;  %v3892_v17 = vpop.xlane.xlu0 %3891  ;;  %2918 = vmatprep.mubr.bf16.mxu1 %v13440_v14  ;;  %8544 = vrsqrt.f32 %v4272_v39  ;;  %v10944_v59 = vadd.f32 %v10855_v58, %v13621_v60  ;;  %v13623_v61 = vld [vmem:[#allocation61_spill] sm:$0xff] }
 0x250   : > { %v7640_v26 = vmul.f32 -1.442695, %v4524_v13  ;;  %v4145_v4 = vmul.f32 %v10843_v45, %v3892_v17  ;;  %v10940_v6 = vpop.f32.mrf.mxu1  ;;  %v10952_v55 = vadd.f32 %v10855_v58, %v13623_v61  ;;  %v13624_v13 = vld [vmem:[#allocation63_spill] sm:$0xff] }
 0x251   : > { %13620 = vst [vmem:[#allocation47_spill] sm:$0xff] %v10940_v6  ;;  %v8537_v43 = vpop.eup %8536  ;;  %v3183_v53 = vmax.f32 %v2671_v56, 0.0  ;;  %3961 = vadd.xlane.f32.xlu1 %v3792_v12  ;;  %3575 = vadd.xlane.f32.xlu0 %v3407_v28  ;;  %v10956_v39 = vadd.f32 %v10855_v58, %v13624_v13  ;;  %v3408_v6 = vmul.f32 %v10578_v50, %v3181_v11 }
 0x252   : > { %8546 = vpow2.f32 %v7640_v26  ;;  %v4525_v17 = vmul.f32 %v8537_v43, %v10884_v62  ;;  %v4273_v54 = vadd.f32 1e-12, %v4145_v4  ;;  %v2674_v60 = vpop.f32.mrf.mxu1  ;;  %v3894_v22 = vpop.xlane.xlu1 %3893  ;;  %v2300_v28 = vpack.c.bf16 %v2219_v41, %v2218_v48 }
 0x253   : > { %v3793_v7 = vmul.f32 %v3183_v53, %v3183_v53  ;;  %v2675_v61 = vadd.f32 %v2674_v60, %v10571_v42  ;;  %v10962_v56 = vpop.xlane.xlu0 %3507  ;;  %v4146_v13 = vmul.f32 %v10843_v45, %v3894_v22  ;;  %v3409_v4 = vmul.f32 %v10578_v50, %v3183_v53 }
 0x254   : > { %v7641_v12 = vmul.f32 -1.442695, %v4525_v17  ;;  %8548 = vrsqrt.f32 %v4273_v54  ;;  %v10965_v26 = vpop.f32.mrf.mxu1  ;;  %v8539_v62 = vpop.eup %8538  ;;  %v10976_v54 = vadd.f32 %v10855_v58, %v10376_v10 }
 0x255   : > { %v3185_v11 = vmax.f32 %v2675_v61, 0.0  ;;  %3577 = vadd.xlane.f32.xlu1 %v3408_v6  ;;  %3963 = vadd.xlane.f32.xlu0 %v3793_v7  ;;  %v4526_v41 = vmul.f32 %v8539_v62, %v10889_v29  ;;  %v4274_v48 = vadd.f32 1e-12, %v4146_v13  ;;  %v10983_v29 = vadd.f32 %v10855_v58, %v10400_v44 }
 0x256   : > { %8550 = vpow2.f32 %v7641_v12  ;;  %v2680_v17 = vpop.f32.mrf.mxu1  ;;  %2919 = vmatmul.mubr.bf16.gmra.mxu1 %v2300_v28  ;;  %v10972_v22 = vpop.xlane.xlu1 %3509  ;;  %v13625_v13 = vmax.f32 %v10907_v18, 0.0  ;;  %v10995_v62 = vadd.f32 %v10855_v58, %v10425_v27  ;;  %v10999_v44 = vadd.f32 %v10855_v58, %v10447_v33 }
 0x257   : > { %v3794_v25 = vmul.f32 %v3185_v11, %v3185_v11  ;;  %v2681_v6 = vadd.f32 %v2680_v17, %v10571_v42  ;;  %v3896_v7 = vpop.xlane.xlu0 %3895  ;;  %2928 = vmatprep.mubr.bf16.mxu1 %v13440_v14  ;;  %v7642_v61 = vmul.f32 -1.442695, %v4526_v41  ;;  %8552 = vrsqrt.f32 %v4274_v48 }
 0x258   : > { %v4147_v28 = vmul.f32 %v10843_v45, %v3896_v7  ;;  %v10986_v12 = vpop.f32.mrf.mxu1  ;;  %v10991_v53 = vmul.f32 %v10374_v38, %v13625_v13  ;;  %v13626_v48 = vmax.f32 %v10903_v3, 0.0  ;;  %v3410_v33 = vmul.f32 %v10578_v50, %v3185_v11  ;;  %v13628_v3 = vld [vmem:[#allocation65_spill] sm:$0xff] }
 0x259   : > { %v8541_v10 = vpop.eup %8540  ;;  %v3187_v41 = vmax.f32 %v2681_v6, 0.0  ;;  %3965 = vadd.xlane.f32.xlu1 %v3794_v25  ;;  %3579 = vadd.xlane.f32.xlu0 %v3409_v4  ;;  %8554 = vpow2.f32 %v7642_v61 }
 0x25a   : > { %v11004_v17 = vmul.f32 %v10378_v24, %v13626_v48  ;;  %v4527_v38 = vmul.f32 %v8541_v10, %v10916_v51  ;;  %v4275_v18 = vadd.f32 1e-12, %v4147_v28  ;;  %v2684_v7 = vpop.f32.mrf.mxu1  ;;  %v3898_v13 = vpop.xlane.xlu1 %3897 }
 0x25b   : > { %v8543_v27 = vpop.eup %8542  ;;  %v3795_v43 = vmul.f32 %v3187_v41, %v3187_v41  ;;  %v2685_v25 = vadd.f32 %v2684_v7, %v10571_v42  ;;  %v11010_v4 = vpop.xlane.xlu0 %3511  ;;  %v4148_v6 = vmul.f32 %v10843_v45, %v3898_v13 }
 0x25c   : > { %v7643_v24 = vmul.f32 -1.442695, %v4527_v38  ;;  %8556 = vrsqrt.f32 %v4275_v18  ;;  %v11014_v51 = vpop.f32.mrf.mxu1  ;;  %v8545_v61 = vpop.eup %8544  ;;  %v5035_v48 = vadd.f32 1.0, %v8543_v27  ;;  %v2302_v7 = vpack.c.bf16 %v10991_v53, %v11004_v17 }
 0x25d   : > { %13627 = vst [vmem:[#allocation7_spill] sm:$0xff] %v11014_v51  ;;  %v3189_v11 = vmax.f32 %v2685_v25, 0.0  ;;  %3581 = vadd.xlane.f32.xlu1 %v3410_v33  ;;  %3967 = vadd.xlane.f32.xlu0 %v3795_v43  ;;  %v11022_v38 = vadd.f32 %v10855_v58, %v10470_v32  ;;  %v4528_v18 = vmul.f32 %v8545_v61, %v10932_v40  ;;  %v4276_v13 = vadd.f32 1e-12, %v4148_v6  ;;  %v13629_v51 = vld [vmem:[#allocation66_spill] sm:$0xff] }
 0x25e   : > { %v2690_v60 = vpop.f32.mrf.mxu1  ;;  %v13630_v28 = vpack.c.bf16 %v13628_v3, %v13629_v51  ;;  %v11028_v10 = vpop.xlane.xlu1 %3513  ;;  %v11032_v43 = vadd.f32 %v10855_v58, %v10491_v2  ;;  %8558 = vpow2.f32 %v7643_v24  ;;  %v3411_v53 = vmul.f32 %v10578_v50, %v3187_v41  ;;  %v13634_v24 = vld [vmem:[#allocation69_spill] sm:$0xff] }
 0x25f   : > { %v8547_v27 = vpop.eup %8546  ;;  %v3796_v32 = vmul.f32 %v3189_v11, %v3189_v11  ;;  %v3900_v17 = vpop.xlane.xlu0 %3899  ;;  %v7644_v40 = vmul.f32 -1.442695, %v4528_v18  ;;  %8560 = vrsqrt.f32 %v4276_v13  ;;  %v2691_v33 = vadd.f32 %v2690_v60, %v10571_v42 }
 0x260   : > { %2929 = vmatmul.mubr.bf16.gmra.mxu1 %v13630_v28  ;;  %v4149_v25 = vmul.f32 %v10843_v45, %v3900_v17  ;;  %v11038_v3 = vpop.f32.mrf.mxu1  ;;  %v13632_v51 = vmax.f32 %v10926_v63, 0.0  ;;  %v13633_v41 = vmax.f32 %v10911_v21, 0.0  ;;  %8562 = vrcp.f32 %v5035_v48 }
 0x261   : > { %2938 = vmatprep.mubr.bf16.mxu1 %v13440_v14  ;;  %13631 = vst [vmem:[#allocation50_spill] sm:$0xff] %v11038_v3  ;;  %v8549_v6 = vpop.eup %8548  ;;  %3969 = vadd.xlane.f32.xlu1 %v3796_v32  ;;  %v5036_v28 = vadd.f32 1.0, %v8547_v27  ;;  %8564 = vpow2.f32 %v7644_v40  ;;  %v3191_v18 = vmax.f32 %v2691_v33, 0.0  ;;  %v13635_v27 = vld [vmem:[#allocation79_spill] sm:$0xff] }
 0x262   : > { %v11043_v2 = vmul.f32 %v10398_v9, %v13632_v51  ;;  %v11048_v61 = vmul.f32 %v13634_v24, %v13633_v41  ;;  %3583 = vadd.xlane.f32.xlu0 %v3411_v53  ;;  %v4529_v60 = vmul.f32 %v8549_v6, %v10962_v56  ;;  %v4277_v13 = vadd.f32 1e-12, %v4149_v25  ;;  %v2694_v17 = vpop.f32.mrf.mxu1  ;;  %v3902_v3 = vpop.xlane.xlu1 %3901 }
 0x263   : > { %v8551_v63 = vpop.eup %8550  ;;  %v3412_v9 = vmul.f32 %v10578_v50, %v3189_v11  ;;  %v2695_v51 = vadd.f32 %v2694_v17, %v10571_v42  ;;  %v4150_v21 = vmul.f32 %v10843_v45, %v3902_v3  ;;  %v11054_v41 = vpop.xlane.xlu0 %3515  ;;  %8566 = vrcp.f32 %v5036_v28 }
 0x264   : > { %v11059_v53 = vadd.f32 %v10855_v58, %v13635_v27  ;;  %v7645_v56 = vmul.f32 -1.442695, %v4529_v60  ;;  %v3797_v32 = vmul.f32 %v3191_v18, %v3191_v18  ;;  %v11061_v40 = vpop.f32.mrf.mxu1  ;;  %v8553_v33 = vpop.eup %8552  ;;  %v5037_v25 = vadd.f32 1.0, %v8551_v63 }
 0x265   : > { %13636 = vst [vmem:[#allocation9_spill] sm:$0xff] %v11061_v40  ;;  %8568 = vrsqrt.f32 %v4277_v13  ;;  %v3193_v11 = vmax.f32 %v2695_v51, 0.0  ;;  %v4278_v6 = vadd.f32 1e-12, %v4150_v21  ;;  %3585 = vadd.xlane.f32.xlu1 %v3412_v9  ;;  %v11068_v28 = vadd.f32 %v10855_v58, %v10573_v31  ;;  %v13638_v9 = vld [vmem:[#allocation71_spill] sm:$0xff] }
 0x266   : > { %v4530_v60 = vmul.f32 %v8553_v33, %v10972_v22  ;;  %3971 = vadd.xlane.f32.xlu0 %v3797_v32  ;;  %v2700_v17 = vpop.f32.mrf.mxu1  ;;  %v11071_v27 = vpop.xlane.xlu1 %3517  ;;  %v13637_v63 = vmax.f32 %v10948_v23, 0.0  ;;  %8570 = vpow2.f32 %v7645_v56  ;;  %v3413_v21 = vmul.f32 %v10578_v50, %v3191_v18  ;;  %v13641_v33 = vld [vmem:[#allocation72_spill] sm:$0xff]  ;;  %v13642_v56 = vld [vmem:[#allocation58_spill] sm:$0xff] }
 0x267   : > { %v8555_v13 = vpop.eup %8554  ;;  %v3798_v48 = vmul.f32 %v3193_v11, %v3193_v11  ;;  %v3904_v24 = vpop.xlane.xlu0 %3903  ;;  %8572 = vrsqrt.f32 %v4278_v6  ;;  %v2701_v22 = vadd.f32 %v2700_v17, %v10571_v42  ;;  %v13640_v23 = vmax.f32 %v10944_v59, 0.0 }
 0x268   : > { %2939 = vmatmul.mubr.bf16.gmra.mxu1 %v2302_v7  ;;  %v11076_v51 = vmul.f32 %v13638_v9, %v13637_v63  ;;  %v5038_v31 = vadd.f32 1.0, %v8555_v13  ;;  %v7646_v58 = vmul.f32 -1.442695, %v4530_v60  ;;  %v11081_v7 = vpop.f32.mrf.mxu1  ;;  %v11090_v18 = vadd.f32 %v10583_v20, %v13642_v56 }
 0x269   : > { %2948 = vmatprep.mubr.bf16.mxu1 %v13440_v14  ;;  %13639 = vst [vmem:[#allocation8_spill] sm:$0xff] %v11081_v7  ;;  %v8557_v32 = vpop.eup %8556  ;;  %v11086_v63 = vmul.f32 %v13641_v33, %v13640_v23  ;;  %8574 = vrcp.f32 %v5037_v25  ;;  %v4151_v9 = vmul.f32 %v10843_v45, %v3904_v24  ;;  %3973 = vadd.xlane.f32.xlu1 %v3798_v48  ;;  %v3195_v17 = vmax.f32 %v2701_v22, 0.0  ;;  %v13645_v7 = vld [vmem:[#allocation68_spill] sm:$0xff] }
 0x26a   : > { %v2467_v6 = vadd.f32 %v10591_v49, %v13642_v56  ;;  %8576 = vrcp.f32 %v5038_v31  ;;  %v4531_v60 = vmul.f32 %v8557_v32, %v11010_v4  ;;  %3587 = vadd.xlane.f32.xlu0 %v3413_v21  ;;  %v2704_v59 = vpop.f32.mrf.mxu1  ;;  %v3906_v13 = vpop.xlane.xlu1 %3905  ;;  %v3414_v23 = vmul.f32 %v10578_v50, %v3193_v11 }
 0x26b   : > { %8578 = vpow2.f32 %v7646_v58  ;;  %v4279_v33 = vadd.f32 1e-12, %v4151_v9  ;;  %v2705_v20 = vadd.f32 %v2704_v59, %v10571_v42  ;;  %v11098_v25 = vpop.xlane.xlu0 %3519  ;;  %v8559_v24 = vpop.eup %8558  ;;  %v3799_v49 = vmul.f32 %v3195_v17, %v3195_v17 }
 0x26c   : > { %v7647_v3 = vmul.f32 -1.442695, %v4531_v60  ;;  %v4152_v31 = vmul.f32 %v10843_v45, %v3906_v13  ;;  %v11102_v4 = vpop.f32.mrf.mxu1  ;;  %v8561_v21 = vpop.eup %8560  ;;  %v5039_v58 = vadd.f32 1.0, %v8559_v24  ;;  %v13644_v13 = vld [vmem:[#allocation67_spill] sm:$0xff] }
 0x26d   : > { %13643 = vst [vmem:[#allocation52_spill] sm:$0xff] %v11102_v4  ;;  %8580 = vrsqrt.f32 %v4279_v33  ;;  %v3197_v11 = vmax.f32 %v2705_v20, 0.0  ;;  %3589 = vadd.xlane.f32.xlu1 %v3414_v23  ;;  %v8563_v32 = vpop.eup %8562  ;;  %v4532_v59 = vmul.f32 %v8561_v21, %v11028_v10  ;;  %v13646_v4 = vpack.c.bf16 %v13644_v13, %v13645_v7 }
 0x26e   : > { %8582 = vpow2.f32 %v7647_v3  ;;  %v4280_v60 = vadd.f32 1e-12, %v4152_v31  ;;  %3975 = vadd.xlane.f32.xlu0 %v3799_v49  ;;  %v2710_v48 = vpop.f32.mrf.mxu1  ;;  %v11111_v40 = vpop.xlane.xlu1 %3521  ;;  %v3100_v33 = vmax.f32 %v11090_v18, 0.0  ;;  %v3102_v23 = vmax.f32 %v2467_v6, 0.0 }
 0x26f   : > { %v8565_v24 = vpop.eup %8564  ;;  %v3415_v20 = vmul.f32 %v10578_v50, %v3195_v17  ;;  %v3800_v22 = vmul.f32 %v3197_v11, %v3197_v11  ;;  %v3908_v9 = vpop.xlane.xlu0 %3907  ;;  %v7648_v49 = vmul.f32 -1.442695, %v4532_v59  ;;  %v2711_v31 = vadd.f32 %v2710_v48, %v10571_v42 }
 0x270   : > { %2949 = vmatmul.mubr.bf16.gmra.mxu1 %v13646_v4  ;;  %v8567_v10 = vpop.eup %8566  ;;  %v5040_v3 = vadd.f32 1.0, %v8565_v24  ;;  %8584 = vrsqrt.f32 %v4280_v60  ;;  %v11117_v7 = vpop.f32.mrf.mxu1  ;;  %v11121_v4 = vadd.f32 %v10598_v57, %v13642_v56  ;;  %v4153_v18 = vmul.f32 %v10843_v45, %v3908_v9 }
 0x271   : > { %2958 = vmatprep.mubr.bf16.mxu1 %v13440_v14  ;;  %13647 = vst [vmem:[#allocation53_spill] sm:$0xff] %v11117_v7  ;;  %8586 = vrcp.f32 %v5039_v58  ;;  %3977 = vadd.xlane.f32.xlu1 %v3800_v22  ;;  %v5420_v6 = vmul.f32 %v8567_v10, %v3102_v23  ;;  %v2477_v21 = vadd.f32 %v10603_v19, %v13642_v56  ;;  %v3199_v59 = vmax.f32 %v2711_v31, 0.0  ;;  %v13649_v23 = vld [vmem:[#allocation73_spill] sm:$0xff] }
 0x272   : > { %v8569_v17 = vpop.eup %8568  ;;  %8588 = vrcp.f32 %v5040_v3  ;;  %3591 = vadd.xlane.f32.xlu0 %v3415_v20  ;;  %v2714_v60 = vpop.f32.mrf.mxu1  ;;  %v5419_v13 = vmul.f32 %v8563_v32, %v3100_v33  ;;  %v3416_v57 = vmul.f32 %v10578_v50, %v3197_v11  ;;  %v4281_v58 = vadd.f32 1e-12, %v4153_v18 }
 0x273   : > { %v3910_v48 = vpop.xlane.xlu1 %3909  ;;  %8590 = vpow2.f32 %v7648_v49  ;;  %v4533_v24 = vmul.f32 %v8569_v17, %v11054_v41  ;;  %v11128_v7 = vpop.xlane.xlu0 %3523  ;;  %v13648_v9 = vmax.f32 %v10956_v39, 0.0  ;;  %v3801_v19 = vmul.f32 %v3199_v59, %v3199_v59  ;;  %v13652_v39 = vld [vmem:[#allocation74_spill] sm:$0xff] }
 0x274   : > { %v8571_v22 = vpop.eup %8570  ;;  %v2715_v20 = vadd.f32 %v2714_v60, %v10571_v42  ;;  %v4154_v3 = vmul.f32 %v10843_v45, %v3910_v48  ;;  %v11137_v32 = vpop.f32.mrf.mxu1  ;;  %8592 = vrsqrt.f32 %v4281_v58  ;;  %v5547_v11 = vpack.c.bf16 %v5420_v6, %v5419_v13 }
 0x275   : > { %v11133_v10 = vmul.f32 %v13649_v23, %v13648_v9  ;;  %13650 = vst [vmem:[#allocation55_spill] sm:$0xff] %v11137_v32  ;;  %v8573_v33 = vpop.eup %8572  ;;  %v5041_v41 = vadd.f32 1.0, %v8571_v22  ;;  %v7649_v49 = vmul.f32 -1.442695, %v4533_v24  ;;  %3593 = vadd.xlane.f32.xlu1 %v3416_v57  ;;  %v13651_v18 = vmax.f32 %v10952_v55, 0.0 }
 0x276   : > { %v8575_v31 = vpop.eup %8574  ;;  %v4534_v9 = vmul.f32 %v8573_v33, %v11071_v27  ;;  %v3201_v23 = vmax.f32 %v2715_v20, 0.0  ;;  %v4282_v60 = vadd.f32 1e-12, %v4154_v3  ;;  %3979 = vadd.xlane.f32.xlu0 %v3801_v19  ;;  %v2720_v48 = vpop.f32.mrf.mxu1  ;;  %v13653_v32 = vpack.c.bf16 %v11043_v2, %v11048_v61  ;;  %8200 = vmatprep.mubr.bf16.mxu0 %v5547_v11 }
 0x277   : > { %v11142_v17 = vmul.f32 %v13652_v39, %v13651_v18  ;;  %v11148_v24 = vpop.xlane.xlu1 %3525  ;;  %v8577_v6 = vpop.eup %8576  ;;  %v3104_v13 = vmax.f32 %v11121_v4, 0.0  ;;  %v3106_v57 = vmax.f32 %v2477_v21, 0.0  ;;  %8594 = vrcp.f32 %v5041_v41 }
 0x278   : > { %2959 = vmatmul.mubr.bf16.gmra.mxu1 %v13653_v32  ;;  %v2721_v55 = vadd.f32 %v2720_v48, %v10571_v42  ;;  %v3912_v58 = vpop.xlane.xlu0 %3911  ;;  %v8579_v27 = vpop.eup %8578  ;;  %8596 = vpow2.f32 %v7649_v49  ;;  %v7650_v22 = vmul.f32 -1.442695, %v4534_v9  ;;  %v3417_v19 = vmul.f32 %v10578_v50, %v3199_v59 }
 0x279   : > { %2968 = vmatprep.mubr.bf16.mxu1 %v13440_v14  ;;  %v3802_v2 = vmul.f32 %v3201_v23, %v3201_v23  ;;  %v11154_v61 = vpop.f32.mrf.mxu1  ;;  %v11158_v20 = vadd.f32 %v10610_v47, %v13642_v56  ;;  %v5042_v4 = vadd.f32 1.0, %v8579_v27  ;;  %8598 = vrsqrt.f32 %v4282_v60 }
 0x27a   : > { %v3203_v21 = vmax.f32 %v2721_v55, 0.0  ;;  %v8581_v3 = vpop.eup %8580  ;;  %v2487_v32 = vadd.f32 %v10618_v36, %v13642_v56  ;;  %8600 = vpow2.f32 %v7650_v22  ;;  %v4155_v33 = vmul.f32 %v10843_v45, %v3912_v58  ;;  %3595 = vadd.xlane.f32.xlu0 %v3417_v19 }
 0x27b   : > { %3981 = vadd.xlane.f32.xlu1 %v3802_v2  ;;  %v2724_v59 = vpop.f32.mrf.mxu1  ;;  %v3914_v41 = vpop.xlane.xlu1 %3913  ;;  %v5422_v49 = vmul.f32 %v8577_v6, %v3106_v57  ;;  %8602 = vrcp.f32 %v5042_v4  ;;  %v4535_v47 = vmul.f32 %v8581_v3, %v11098_v25  ;;  %v5421_v9 = vmul.f32 %v8575_v31, %v3104_v13 }
 0x27c   : > { %v8583_v11 = vpop.eup %8582  ;;  %v3803_v18 = vmul.f32 %v3203_v21, %v3203_v21  ;;  %v11164_v39 = vpop.xlane.xlu0 %3527  ;;  %v3418_v48 = vmul.f32 %v10578_v50, %v3201_v23  ;;  %v4283_v36 = vadd.f32 1e-12, %v4155_v33  ;;  %v2725_v55 = vadd.f32 %v2724_v59, %v10571_v42  ;;  %v13654_v33 = vld [vmem:[#allocation28_spill] sm:$0xff] }
 0x27d   : > { %v5043_v60 = vadd.f32 1.0, %v8583_v11  ;;  %v11168_v58 = vpop.f32.mrf.mxu1  ;;  %v8585_v27 = vpop.eup %8584  ;;  %v3108_v22 = vmax.f32 %v11158_v20, 0.0  ;;  %v7651_v6 = vmul.f32 -1.442695, %v4535_v47  ;;  %v4156_v57 = vmul.f32 %v10843_v45, %v3914_v41 }
 0x27e   : > { %v5548_v19 = vpack.c.bf16 %v5422_v49, %v5421_v9  ;;  %v8587_v25 = vpop.eup %8586  ;;  %v3110_v2 = vmax.f32 %v2487_v32, 0.0  ;;  %v4536_v31 = vmul.f32 %v8585_v27, %v11111_v40  ;;  %v3205_v13 = vmax.f32 %v2725_v55, 0.0  ;;  %3983 = vadd.xlane.f32.xlu0 %v3803_v18  ;;  %v13655_v32 = vld [vmem:[#allocation13_spill] sm:$0xff]  ;;  %v13656_v49 = vld [vmem:[#allocation70_spill] sm:$0xff] }
 0x27f   : > { %8604 = vrcp.f32 %v5043_v60  ;;  %3597 = vadd.xlane.f32.xlu1 %v3418_v48  ;;  %v2730_v23 = vpop.f32.mrf.mxu1  ;;  %v11173_v4 = vpop.xlane.xlu1 %3529  ;;  %v11177_v59 = vadd.f32 %v13654_v33, %v13642_v56  ;;  %v4284_v20 = vadd.f32 1e-12, %v4156_v57  ;;  %v13657_v11 = vpack.c.bf16 %v13655_v32, %v13656_v49 }
 0x280   : > { %v8589_v3 = vpop.eup %8588  ;;  %8606 = vpow2.f32 %v7651_v6  ;;  %8201 = vmatmul.mubr.bf16.vlgmr.msra.gmra.mxu0 %v5548_v19  ;;  %v2731_v41 = vadd.f32 %v2730_v23, %v10571_v42  ;;  %v3916_v40 = vpop.xlane.xlu0 %3915  ;;  %v7652_v18 = vmul.f32 -1.442695, %v4536_v31  ;;  %v3419_v9 = vmul.f32 %v10578_v50, %v3203_v21  ;;  %v13659_v23 = vld [vmem:[#allocation75_spill] sm:$0xff] }
 0x281   : > { %2969 = vmatmul.mubr.bf16.gmra.mxu1 %v13657_v11  ;;  %v8591_v47 = vpop.eup %8590  ;;  %8608 = vrsqrt.f32 %v4283_v36  ;;  %v3804_v60 = vmul.f32 %v3205_v13, %v3205_v13  ;;  %v11184_v48 = vpop.f32.mrf.mxu1  ;;  %v4157_v6 = vmul.f32 %v10843_v45, %v3916_v40  ;;  %v13658_v19 = vmax.f32 %v10983_v29, 0.0 }
 0x282   : > { %2978 = vmatprep.mubr.bf16.mxu1 %v13440_v14  ;;  %v5044_v55 = vadd.f32 1.0, %v8591_v47  ;;  %8610 = vrsqrt.f32 %v4284_v20  ;;  %v3207_v27 = vmax.f32 %v2731_v41, 0.0  ;;  %v8593_v57 = vpop.eup %8592  ;;  %v2497_v21 = vadd.f32 %v10632_v5, %v13642_v56  ;;  %3599 = vadd.xlane.f32.xlu0 %v3419_v9 }
 0x283   : > { %v11191_v33 = vmul.f32 %v13659_v23, %v13658_v19  ;;  %8612 = vpow2.f32 %v7652_v18  ;;  %3985 = vadd.xlane.f32.xlu1 %v3804_v60  ;;  %v2734_v36 = vpop.f32.mrf.mxu1  ;;  %v3918_v31 = vpop.xlane.xlu1 %3917  ;;  %v5424_v32 = vmul.f32 %v8589_v3, %v3110_v2  ;;  %v4537_v20 = vmul.f32 %v8593_v57, %v11128_v7  ;;  %v13662_v3 = vld [vmem:[#allocation76_spill] sm:$0xff] }
 0x284   : > { %8614 = vrcp.f32 %v5044_v55  ;;  %v3805_v41 = vmul.f32 %v3207_v27, %v3207_v27  ;;  %v11196_v49 = vpop.xlane.xlu0 %3531  ;;  %v5423_v11 = vmul.f32 %v8587_v25, %v3108_v22  ;;  %v8595_v29 = vpop.eup %8594  ;;  %v3420_v40 = vmul.f32 %v10578_v50, %v3205_v13 }
 0x285   : > { %v4285_v47 = vadd.f32 1e-12, %v4157_v6  ;;  %v2735_v19 = vadd.f32 %v2734_v36, %v10571_v42  ;;  %v4158_v5 = vmul.f32 %v10843_v45, %v3918_v31  ;;  %v11201_v18 = vpop.f32.mrf.mxu1  ;;  %v8597_v9 = vpop.eup %8596  ;;  %v13661_v2 = vmax.f32 %v10976_v54, 0.0 }
 0x286   : > { %13660 = vst [vmem:[#allocation56_spill] sm:$0xff] %v11201_v18  ;;  %v3112_v7 = vmax.f32 %v11177_v59, 0.0  ;;  %v7653_v55 = vmul.f32 -1.442695, %v4537_v20  ;;  %v5549_v22 = vpack.c.bf16 %v5424_v32, %v5423_v11  ;;  %v8599_v25 = vpop.eup %8598  ;;  %v5045_v57 = vadd.f32 1.0, %v8597_v9  ;;  %3987 = vadd.xlane.f32.xlu0 %v3805_v41 }
 0x287   : > { %v11206_v60 = vmul.f32 %v13662_v3, %v13661_v2  ;;  %8616 = vrsqrt.f32 %v4285_v47  ;;  %v3209_v13 = vmax.f32 %v2735_v19, 0.0  ;;  %v4286_v6 = vadd.f32 1e-12, %v4158_v5  ;;  %3601 = vadd.xlane.f32.xlu1 %v3420_v40  ;;  %v2740_v23 = vpop.f32.mrf.mxu1  ;;  %v11209_v36 = vpop.xlane.xlu1 %3533 }
 0x288   : > { %v8601_v31 = vpop.eup %8600  ;;  %v3114_v18 = vmax.f32 %v2497_v21, 0.0  ;;  %8618 = vpow2.f32 %v7653_v55  ;;  %v4538_v54 = vmul.f32 %v8599_v25, %v11148_v24  ;;  %8204 = vmatprep.mubr.bf16.mxu0 %v5549_v22  ;;  %v2741_v59 = vadd.f32 %v2740_v23, %v10571_v42  ;;  %v3920_v20 = vpop.xlane.xlu0 %3919 }
 0x289   : > { %v13663_v32 = vpack.c.bf16 %v11076_v51, %v11086_v63  ;;  %v8603_v11 = vpop.eup %8602  ;;  %8620 = vrcp.f32 %v5045_v57  ;;  %v5046_v40 = vadd.f32 1.0, %v8601_v31  ;;  %v3421_v41 = vmul.f32 %v10578_v50, %v3207_v27  ;;  %v11217_v19 = vpop.f32.mrf.mxu1 }
 0x28a   : > { %v3806_v47 = vmul.f32 %v3209_v13, %v3209_v13  ;;  %v7654_v21 = vmul.f32 -1.442695, %v4538_v54  ;;  %8622 = vrsqrt.f32 %v4286_v6  ;;  %v3211_v24 = vmax.f32 %v2741_v59, 0.0 }
 0x28b   : > { %2979 = vmatmul.mubr.bf16.gmra.mxu1 %v13663_v32  ;;  %v4159_v5 = vmul.f32 %v10843_v45, %v3920_v20  ;;  %v11223_v51 = vadd.f32 %v10639_v15, %v13642_v56  ;;  %8624 = vrcp.f32 %v5046_v40  ;;  %3603 = vadd.xlane.f32.xlu0 %v3421_v41  ;;  %v2744_v63 = vpop.f32.mrf.mxu1  ;;  %v3922_v9 = vpop.xlane.xlu1 %3921  ;;  %v5425_v27 = vmul.f32 %v8595_v29, %v3112_v7 }
 0x28c   : > { %2988 = vmatprep.mubr.bf16.mxu1 %v13440_v14  ;;  %3989 = vadd.xlane.f32.xlu1 %v3806_v47  ;;  %v5426_v2 = vmul.f32 %v8603_v11, %v3114_v18  ;;  %v8605_v3 = vpop.eup %8604  ;;  %v2507_v55 = vadd.f32 %v10645_v35, %v13642_v56  ;;  %8626 = vpow2.f32 %v7654_v21  ;;  %v3807_v22 = vmul.f32 %v3211_v24, %v3211_v24  ;;  %v11227_v57 = vpop.xlane.xlu0 %3535 }
 0x28d   : > { %v4287_v25 = vadd.f32 1e-12, %v4159_v5  ;;  %v8607_v6 = vpop.eup %8606  ;;  %v3422_v15 = vmul.f32 %v10578_v50, %v3209_v13  ;;  %v2745_v23 = vadd.f32 %v2744_v63, %v10571_v42  ;;  %v4160_v31 = vmul.f32 %v10843_v45, %v3922_v9  ;;  %v11232_v59 = vpop.f32.mrf.mxu1 }
 0x28e   : > { %v5550_v54 = vpack.c.bf16 %v5426_v2, %v5425_v27  ;;  %v8609_v29 = vpop.eup %8608  ;;  %v2308_v18 = vpack.c.bf16 %v11133_v10, %v11142_v17  ;;  %v2310_v35 = vpack.c.bf16 %v11191_v33, %v11206_v60  ;;  %v5047_v7 = vadd.f32 1.0, %v8607_v6  ;;  %v13664_v2 = vld [vmem:[#allocation14_spill] sm:$0xff] }
 0x28f   : > { %8628 = vrsqrt.f32 %v4287_v25  ;;  %v8611_v32 = vpop.eup %8610  ;;  %v3116_v20 = vmax.f32 %v11223_v51, 0.0  ;;  %v4539_v13 = vmul.f32 %v8609_v29, %v11164_v39  ;;  %v3213_v11 = vmax.f32 %v2745_v23, 0.0  ;;  %v2750_v41 = vpop.f32.mrf.mxu1  ;;  %3991 = vadd.xlane.f32.xlu0 %v3807_v22  ;;  %v13665_v51 = vld [vmem:[#allocation15_spill] sm:$0xff] }
 0x290   : > { %v4288_v40 = vadd.f32 1e-12, %v4160_v31  ;;  %8205 = vmatmul.mubr.bf16.gmra.mxu0 %v5550_v54  ;;  %3605 = vadd.xlane.f32.xlu1 %v3422_v15  ;;  %v11240_v47 = vpop.xlane.xlu1 %3537  ;;  %v8613_v21 = vpop.eup %8612  ;;  %v3118_v5 = vmax.f32 %v2507_v55, 0.0  ;;  %v4540_v63 = vmul.f32 %v8611_v32, %v11173_v4  ;;  %v3423_v9 = vmul.f32 %v10578_v50, %v3211_v24 }
 0x291   : > { %v2751_v27 = vadd.f32 %v2750_v41, %v10571_v42  ;;  %v13666_v25 = vpack.c.bf16 %v13664_v2, %v13665_v51  ;;  %v3924_v39 = vpop.xlane.xlu0 %3923  ;;  %v8615_v6 = vpop.eup %8614  ;;  %8630 = vrcp.f32 %v5047_v7  ;;  %v5048_v15 = vadd.f32 1.0, %v8613_v21 }
 0x292   : > { %v7655_v23 = vmul.f32 -1.442695, %v4539_v13  ;;  %v3808_v31 = vmul.f32 %v3213_v11, %v3213_v11  ;;  %v11248_v54 = vpop.f32.mrf.mxu1  ;;  %v7656_v4 = vmul.f32 -1.442695, %v4540_v63  ;;  %8632 = vrsqrt.f32 %v4288_v40 }
 0x293   : > { %2989 = vmatmul.mubr.bf16.gmra.mxu1 %v13666_v25  ;;  %v3215_v24 = vmax.f32 %v2751_v27, 0.0  ;;  %v4161_v55 = vmul.f32 %v10843_v45, %v3924_v39  ;;  %v11254_v22 = vadd.f32 %v10652_v46, %v13642_v56  ;;  %v2517_v29 = vadd.f32 %v10659_v34, %v13642_v56  ;;  %3607 = vadd.xlane.f32.xlu0 %v3423_v9 }
 0x294   : > { %2998 = vmatprep.mubr.bf16.mxu1 %v13440_v14  ;;  %8634 = vrcp.f32 %v5048_v15  ;;  %3993 = vadd.xlane.f32.xlu1 %v3808_v31  ;;  %v2754_v7 = vpop.f32.mrf.mxu1  ;;  %v3926_v32 = vpop.xlane.xlu1 %3925  ;;  %v5428_v13 = vmul.f32 %v8615_v6, %v3118_v5  ;;  %v5427_v27 = vmul.f32 %v8605_v3, %v3116_v20  ;;  %v3424_v51 = vmul.f32 %v10578_v50, %v3213_v11  ;;  %v13668_v6 = vld [vmem:[#allocation77_spill] sm:$0xff] }
 0x295   : > { %v8617_v41 = vpop.eup %8616  ;;  %8636 = vpow2.f32 %v7655_v23  ;;  %v3809_v21 = vmul.f32 %v3215_v24, %v3215_v24  ;;  %v4289_v63 = vadd.f32 1e-12, %v4161_v55  ;;  %v11258_v40 = vpop.xlane.xlu0 %3539  ;;  %v2755_v34 = vadd.f32 %v2754_v7, %v10571_v42 }
 0x296   : > { %v8619_v2 = vpop.eup %8618  ;;  %8638 = vpow2.f32 %v7656_v4  ;;  %v4541_v46 = vmul.f32 %v8617_v41, %v11196_v49  ;;  %v11263_v25 = vpop.f32.mrf.mxu1  ;;  %v13667_v5 = vmax.f32 %v10999_v44, 0.0  ;;  %v4162_v9 = vmul.f32 %v10843_v45, %v3926_v32 }
 0x297   : > { %v8621_v39 = vpop.eup %8620  ;;  %8640 = vrsqrt.f32 %v4289_v63  ;;  %v5551_v3 = vpack.c.bf16 %v5428_v13, %v5427_v27  ;;  %v3120_v23 = vmax.f32 %v11254_v22, 0.0  ;;  %v5049_v49 = vadd.f32 1.0, %v8619_v2  ;;  %3995 = vadd.xlane.f32.xlu0 %v3809_v21 }
 0x298   : > { %v11268_v15 = vmul.f32 %v13668_v6, %v13667_v5  ;;  %v8623_v20 = vpop.eup %8622  ;;  %v7657_v31 = vmul.f32 -1.442695, %v4541_v46  ;;  %v3217_v11 = vmax.f32 %v2755_v34, 0.0  ;;  %3609 = vadd.xlane.f32.xlu1 %v3424_v51  ;;  %v2760_v4 = vpop.f32.mrf.mxu1  ;;  %v3122_v41 = vmax.f32 %v2517_v29, 0.0 }
 0x299   : > { %v11272_v55 = vpop.xlane.xlu1 %3541  ;;  %v8625_v7 = vpop.eup %8624  ;;  %v4542_v44 = vmul.f32 %v8623_v20, %v11209_v36  ;;  %v4290_v5 = vadd.f32 1e-12, %v4162_v9  ;;  %8208 = vmatprep.mubr.bf16.mxu0 %v5551_v3  ;;  %v2761_v32 = vadd.f32 %v2760_v4, %v10571_v42  ;;  %v11278_v22 = vadd.f32 %v10669_v16, %v13642_v56 }
 0x29a   : > { %v3928_v13 = vpop.xlane.xlu0 %3927  ;;  %v8627_v63 = vpop.eup %8626  ;;  %8642 = vpow2.f32 %v7657_v31  ;;  %v3425_v27 = vmul.f32 %v10578_v50, %v3215_v24  ;;  %v3810_v2 = vmul.f32 %v3217_v11, %v3217_v11  ;;  %v2527_v16 = vadd.f32 %v10677_v8, %v13642_v56 }
 0x29b   : > { %2999 = vmatmul.mubr.bf16.gmra.mxu1 %v2308_v18  ;;  %v11284_v36 = vpop.f32.mrf.mxu1  ;;  %v5050_v29 = vadd.f32 1.0, %v8627_v63  ;;  %v7658_v21 = vmul.f32 -1.442695, %v4542_v44  ;;  %8644 = vrsqrt.f32 %v4290_v5  ;;  %v3219_v46 = vmax.f32 %v2761_v32, 0.0 }
 0x29c   : > { %3008 = vmatprep.mubr.bf16.mxu1 %v13440_v14  ;;  %v8629_v51 = vpop.eup %8628  ;;  %8646 = vrcp.f32 %v5049_v49  ;;  %v4163_v24 = vmul.f32 %v10843_v45, %v3928_v13  ;;  %3997 = vadd.xlane.f32.xlu1 %v3810_v2  ;;  %v5430_v10 = vmul.f32 %v8625_v7, %v3122_v41  ;;  %v5429_v3 = vmul.f32 %v8621_v39, %v3120_v23  ;;  %v13670_v7 = vld [vmem:[#allocation78_spill] sm:$0xff] }
 0x29d   : > { %v2764_v34 = vpop.f32.mrf.mxu1  ;;  %v3930_v6 = vpop.xlane.xlu1 %3929  ;;  %8648 = vrcp.f32 %v5050_v29  ;;  %v4543_v17 = vmul.f32 %v8629_v51, %v11227_v57  ;;  %v3811_v18 = vmul.f32 %v3219_v46, %v3219_v46  ;;  %3611 = vadd.xlane.f32.xlu0 %v3425_v27  ;;  %v3426_v20 = vmul.f32 %v10578_v50, %v3217_v11 }
 0x29e   : > { %v11291_v9 = vpop.xlane.xlu0 %3543  ;;  %8650 = vpow2.f32 %v7658_v21  ;;  %v4291_v31 = vadd.f32 1e-12, %v4163_v24  ;;  %v2765_v8 = vadd.f32 %v2764_v34, %v10571_v42  ;;  %v8631_v4 = vpop.eup %8630  ;;  %v13669_v44 = vmax.f32 %v10995_v62, 0.0 }
 0x29f   : > { %v11295_v49 = vpop.f32.mrf.mxu1  ;;  %v7659_v57 = vmul.f32 -1.442695, %v4543_v17  ;;  %v4164_v5 = vmul.f32 %v10843_v45, %v3930_v6  ;;  %v5552_v32 = vpack.c.bf16 %v5430_v10, %v5429_v3  ;;  %v8633_v13 = vpop.eup %8632  ;;  %v3124_v39 = vmax.f32 %v11278_v22, 0.0  ;;  %v13671_v6 = vld [vmem:[#allocation16_spill] sm:$0xff]  ;;  %v13672_v10 = vld [vmem:[#allocation17_spill] sm:$0xff] }
 0x2a0   : > { %v11300_v41 = vmul.f32 %v13670_v7, %v13669_v44  ;;  %v3126_v23 = vmax.f32 %v2527_v16, 0.0  ;;  %8652 = vrsqrt.f32 %v4291_v31  ;;  %v3221_v11 = vmax.f32 %v2765_v8, 0.0  ;;  %3613 = vadd.xlane.f32.xlu1 %v3426_v20 }
 0x2a1   : > { %v2770_v63 = vpop.f32.mrf.mxu1  ;;  %v11304_v27 = vpop.xlane.xlu1 %3545  ;;  %v11308_v62 = vadd.f32 %v10687_v52, %v13642_v56  ;;  %v11312_v29 = vadd.f32 %v10691_v30, %v13642_v56  ;;  %v4544_v21 = vmul.f32 %v8633_v13, %v11240_v47  ;;  %v4292_v51 = vadd.f32 1e-12, %v4164_v5  ;;  %8209 = vmatmul.mubr.bf16.gmra.mxu0 %v5552_v32  ;;  %3999 = vadd.xlane.f32.xlu0 %v3811_v18 }
 0x2a2   : > { %v8635_v2 = vpop.eup %8634  ;;  %v3932_v22 = vpop.xlane.xlu0 %3931  ;;  %8654 = vpow2.f32 %v7659_v57  ;;  %v3812_v24 = vmul.f32 %v3221_v11, %v3221_v11  ;;  %v2771_v34 = vadd.f32 %v2770_v63, %v10571_v42  ;;  %v13673_v17 = vpack.c.bf16 %v13671_v6, %v13672_v10 }
 0x2a3   : > { %v8637_v16 = vpop.eup %8636  ;;  %v4165_v52 = vmul.f32 %v10843_v45, %v3932_v22  ;;  %v11320_v3 = vpop.f32.mrf.mxu1  ;;  %v7660_v47 = vmul.f32 -1.442695, %v4544_v21  ;;  %v3427_v31 = vmul.f32 %v10578_v50, %v3219_v46  ;;  %8656 = vrsqrt.f32 %v4292_v51 }
 0x2a4   : > { %3009 = vmatmul.mubr.bf16.gmra.mxu1 %v13673_v17  ;;  %v8639_v30 = vpop.eup %8638  ;;  %v5051_v20 = vadd.f32 1.0, %v8637_v16  ;;  %v3223_v44 = vmax.f32 %v2771_v34, 0.0  ;;  %4001 = vadd.xlane.f32.xlu1 %v3812_v24  ;;  %v5432_v32 = vmul.f32 %v8635_v2, %v3126_v23  ;;  %v5431_v46 = vmul.f32 %v8631_v4, %v3124_v39 }
 0x2a5   : > { %3018 = vmatprep.mubr.bf16.mxu1 %v13440_v14  ;;  %v8641_v18 = vpop.eup %8640  ;;  %v5052_v8 = vadd.f32 1.0, %v8639_v30  ;;  %v4293_v7 = vadd.f32 1e-12, %v4165_v52  ;;  %v2774_v57 = vpop.f32.mrf.mxu1  ;;  %3615 = vadd.xlane.f32.xlu0 %v3427_v31  ;;  %v3428_v51 = vmul.f32 %v10578_v50, %v3221_v11  ;;  %v3128_v10 = vmax.f32 %v11308_v62, 0.0 }
 0x2a6   : > { %v3934_v5 = vpop.xlane.xlu1 %3933  ;;  %8658 = vrcp.f32 %v5051_v20  ;;  %v4545_v13 = vmul.f32 %v8641_v18, %v11258_v40  ;;  %v2775_v63 = vadd.f32 %v2774_v57, %v10571_v42  ;;  %v11326_v21 = vpop.xlane.xlu0 %3547  ;;  %v3813_v22 = vmul.f32 %v3223_v44, %v3223_v44 }
 0x2a7   : > { %8660 = vrcp.f32 %v5052_v8  ;;  %v4166_v16 = vmul.f32 %v10843_v45, %v3934_v5  ;;  %v11330_v34 = vpop.f32.mrf.mxu1  ;;  %v8643_v24 = vpop.eup %8642  ;;  %v5553_v6 = vpack.c.bf16 %v5432_v32, %v5431_v46  ;;  %v3130_v30 = vmax.f32 %v11312_v29, 0.0 }
 0x2a8   : > { %8662 = vpow2.f32 %v7660_v47  ;;  %v7661_v23 = vmul.f32 -1.442695, %v4545_v13  ;;  %v3225_v2 = vmax.f32 %v2775_v63, 0.0  ;;  %v8645_v40 = vpop.eup %8644  ;;  %v5053_v17 = vadd.f32 1.0, %v8643_v24  ;;  %3617 = vadd.xlane.f32.xlu1 %v3428_v51 }
 0x2a9   : > { %8664 = vrsqrt.f32 %v4293_v7  ;;  %v4294_v52 = vadd.f32 1e-12, %v4166_v16  ;;  %v2780_v4 = vpop.f32.mrf.mxu1  ;;  %v8647_v11 = vpop.eup %8646  ;;  %v4546_v20 = vmul.f32 %v8645_v40, %v11272_v55  ;;  %8212 = vmatprep.mubr.bf16.mxu0 %v5553_v6  ;;  %4003 = vadd.xlane.f32.xlu0 %v3813_v22  ;;  %v11339_v62 = vadd.f32 %v10703_v1, %v13642_v56 }
 0x2aa   : > { %v11333_v39 = vpop.xlane.xlu1 %3549  ;;  %8666 = vpow2.f32 %v7661_v23  ;;  %v3814_v47 = vmul.f32 %v3225_v2, %v3225_v2  ;;  %v3936_v31 = vpop.xlane.xlu0 %3935  ;;  %v2781_v8 = vadd.f32 %v2780_v4, %v10571_v42  ;;  %v11350_v57 = vadd.f32 %v10710_v0, %v13642_v56 }
 0x2ab   : > { %v8649_v18 = vpop.eup %8648  ;;  %8668 = vrcp.f32 %v5053_v17  ;;  %v4167_v29 = vmul.f32 %v10843_v45, %v3936_v31  ;;  %v11346_v7 = vpop.f32.mrf.mxu1  ;;  %v7662_v5 = vmul.f32 -1.442695, %v4546_v20  ;;  %v3429_v1 = vmul.f32 %v10578_v50, %v3223_v44  ;;  %v13675_v20 = vld [vmem:[#allocation80_spill] sm:$0xff] }
 0x2ac   : > { %3019 = vmatmul.mubr.bf16.gmra.mxu1 %v2310_v35  ;;  %v8651_v55 = vpop.eup %8650  ;;  %8670 = vrsqrt.f32 %v4294_v52  ;;  %v3227_v13 = vmax.f32 %v2781_v8, 0.0  ;;  %4005 = vadd.xlane.f32.xlu1 %v3814_v47  ;;  %v5434_v35 = vmul.f32 %v8649_v18, %v3130_v30  ;;  %v3430_v51 = vmul.f32 %v10578_v50, %v3225_v2 }
 0x2ad   : > { %3028 = vmatprep.mubr.bf16.mxu1 %v13440_v14  ;;  %v5054_v32 = vadd.f32 1.0, %v8651_v55  ;;  %v4295_v63 = vadd.f32 1e-12, %v4167_v29  ;;  %v2784_v33 = vpop.f32.mrf.mxu1  ;;  %v8653_v46 = vpop.eup %8652  ;;  %8672 = vpow2.f32 %v7662_v5  ;;  %3619 = vadd.xlane.f32.xlu0 %v3429_v1  ;;  %v5433_v23 = vmul.f32 %v8647_v11, %v3128_v10 }
 0x2ae   : > { %v3938_v60 = vpop.xlane.xlu1 %3937  ;;  %v2785_v0 = vadd.f32 %v2784_v33, %v10571_v42  ;;  %v11357_v44 = vpop.xlane.xlu0 %3551  ;;  %v4547_v16 = vmul.f32 %v8653_v46, %v11291_v9  ;;  %v3815_v24 = vmul.f32 %v3227_v13, %v3227_v13  ;;  %v2312_v17 = vpack.c.bf16 %v11268_v15, %v11300_v41  ;;  %v13677_v9 = vld [vmem:[#allocation81_spill] sm:$0xff] }
 0x2af   : > { %v4168_v22 = vmul.f32 %v10843_v45, %v3938_v60  ;;  %8674 = vrcp.f32 %v5054_v32  ;;  %v11360_v6 = vpop.f32.mrf.mxu1  ;;  %v8655_v40 = vpop.eup %8654  ;;  %v13674_v30 = vmax.f32 %v11032_v43, 0.0  ;;  %v13676_v31 = vmax.f32 %v11022_v38, 0.0  ;;  %v13678_v60 = vld [vmem:[#allocation18_spill] sm:$0xff] }
 0x2b0   : > { %8676 = vrsqrt.f32 %v4295_v63  ;;  %v3229_v2 = vmax.f32 %v2785_v0, 0.0  ;;  %v8657_v4 = vpop.eup %8656  ;;  %v7663_v10 = vmul.f32 -1.442695, %v4547_v16  ;;  %v5554_v11 = vpack.c.bf16 %v5434_v35, %v5433_v23  ;;  %3621 = vadd.xlane.f32.xlu1 %v3430_v51  ;;  %v13679_v35 = vld [vmem:[#allocation19_spill] sm:$0xff]  ;;  %v13681_v51 = vld [vmem:[#allocation29_spill] sm:$0xff] }
 0x2b1   : > { %v4296_v52 = vadd.f32 1e-12, %v4168_v22  ;;  %v11367_v47 = vmul.f32 %v13675_v20, %v13674_v30  ;;  %v11372_v18 = vmul.f32 %v13677_v9, %v13676_v31  ;;  %v2790_v8 = vpop.f32.mrf.mxu1  ;;  %v3132_v55 = vmax.f32 %v11339_v62, 0.0  ;;  %4007 = vadd.xlane.f32.xlu0 %v3815_v24 }
 0x2b2   : > { %v11374_v29 = vpop.xlane.xlu1 %3553  ;;  %v3134_v5 = vmax.f32 %v11350_v57, 0.0  ;;  %v4548_v43 = vmul.f32 %v8657_v4, %v11304_v27  ;;  %v3816_v1 = vmul.f32 %v3229_v2, %v3229_v2  ;;  %v3940_v32 = vpop.xlane.xlu0 %3939  ;;  %v11381_v38 = vadd.f32 %v10723_v37, %v13642_v56  ;;  %8213 = vmatmul.mubr.bf16.gmra.mxu0 %v5554_v11 }
 0x2b3   : > { %v8659_v63 = vpop.eup %8658  ;;  %8678 = vpow2.f32 %v7663_v10  ;;  %v2791_v33 = vadd.f32 %v2790_v8, %v10571_v42  ;;  %v13680_v46 = vpack.c.bf16 %v13678_v60, %v13679_v35  ;;  %v4169_v62 = vmul.f32 %v10843_v45, %v3940_v32  ;;  %v11388_v57 = vpop.f32.mrf.mxu1 }
 0x2b4   : > { %v8661_v27 = vpop.eup %8660  ;;  %v11392_v0 = vadd.f32 %v13681_v51, %v13642_v56  ;;  %v7664_v22 = vmul.f32 -1.442695, %v4548_v43  ;;  %v3431_v37 = vmul.f32 %v10578_v50, %v3227_v13  ;;  %8680 = vrsqrt.f32 %v4296_v52  ;;  %4009 = vadd.xlane.f32.xlu1 %v3816_v1 }
 0x2b5   : > { %3029 = vmatmul.mubr.bf16.gmra.mxu1 %v13680_v46  ;;  %v8663_v16 = vpop.eup %8662  ;;  %v5055_v24 = vadd.f32 1.0, %v8655_v40  ;;  %v3231_v23 = vmax.f32 %v2791_v33, 0.0  ;;  %v4297_v4 = vadd.f32 1e-12, %v4169_v62  ;;  %v2794_v30 = vpop.f32.mrf.mxu1  ;;  %v5436_v31 = vmul.f32 %v8661_v27, %v3134_v5 }
 0x2b6   : > { %3038 = vmatprep.mubr.bf16.mxu1 %v13440_v14  ;;  %v3942_v20 = vpop.xlane.xlu1 %3941  ;;  %v8665_v9 = vpop.eup %8664  ;;  %v5056_v10 = vadd.f32 1.0, %v8663_v16  ;;  %8682 = vpow2.f32 %v7664_v22  ;;  %v3432_v11 = vmul.f32 %v10578_v50, %v3229_v2  ;;  %3623 = vadd.xlane.f32.xlu0 %v3431_v37  ;;  %v2795_v8 = vadd.f32 %v2794_v30, %v10571_v42 }
 0x2b7   : > { %v11398_v13 = vpop.xlane.xlu0 %3555  ;;  %v8667_v52 = vpop.eup %8666  ;;  %v4549_v43 = vmul.f32 %v8665_v9, %v11326_v21  ;;  %v3817_v40 = vmul.f32 %v3231_v23, %v3231_v23  ;;  %8684 = vrsqrt.f32 %v4297_v4  ;;  %v5435_v32 = vmul.f32 %v8659_v63, %v3132_v55 }
 0x2b8   : > { %v11401_v1 = vpop.f32.mrf.mxu1  ;;  %v8669_v33 = vpop.eup %8668  ;;  %8686 = vrcp.f32 %v5056_v10  ;;  %v5057_v5 = vadd.f32 1.0, %v8667_v52  ;;  %v3233_v60 = vmax.f32 %v2795_v8, 0.0  ;;  %v4170_v35 = vmul.f32 %v10843_v45, %v3942_v20  ;;  %3625 = vadd.xlane.f32.xlu1 %v3432_v11 }
 0x2b9   : > { %v8671_v2 = vpop.eup %8670  ;;  %v2314_v46 = vpack.c.bf16 %v11367_v47, %v11372_v18  ;;  %8688 = vrcp.f32 %v5055_v24  ;;  %v7665_v62 = vmul.f32 -1.442695, %v4549_v43  ;;  %v5555_v27 = vpack.c.bf16 %v5436_v31, %v5435_v32 }
 0x2ba   : > { %v2800_v21 = vpop.f32.mrf.mxu1  ;;  %v11406_v51 = vpop.xlane.xlu1 %3557  ;;  %v3136_v55 = vmax.f32 %v11381_v38, 0.0  ;;  %v3138_v63 = vmax.f32 %v11392_v0, 0.0  ;;  %v4550_v22 = vmul.f32 %v8671_v2, %v11333_v39  ;;  %v3818_v37 = vmul.f32 %v3233_v60, %v3233_v60  ;;  %4011 = vadd.xlane.f32.xlu0 %v3817_v40 }
 0x2bb   : > { %v3944_v16 = vpop.xlane.xlu0 %3943  ;;  %v8673_v4 = vpop.eup %8672  ;;  %8690 = vpow2.f32 %v7665_v62  ;;  %v3433_v30 = vmul.f32 %v10578_v50, %v3231_v23  ;;  %v4298_v24 = vadd.f32 1e-12, %v4170_v35  ;;  %8216 = vmatprep.mubr.bf16.mxu0 %v5555_v27  ;;  %v2801_v20 = vadd.f32 %v2800_v21, %v10571_v42  ;;  %v13682_v23 = vld [vmem:[#allocation31_spill] sm:$0xff] }
 0x2bc   : > { %v11416_v38 = vpop.f32.mrf.mxu1  ;;  %v8675_v0 = vpop.eup %8674  ;;  %8692 = vrcp.f32 %v5057_v5  ;;  %v5058_v39 = vadd.f32 1.0, %v8673_v4  ;;  %v7666_v31 = vmul.f32 -1.442695, %v4550_v22  ;;  %v4171_v9 = vmul.f32 %v10843_v45, %v3944_v16  ;;  %4013 = vadd.xlane.f32.xlu1 %v3818_v37  ;;  %v13684_v16 = vld [vmem:[#allocation82_spill] sm:$0xff] }
 0x2bd   : > { %3039 = vmatmul.mubr.bf16.gmra.mxu1 %v2312_v17  ;;  %v8677_v10 = vpop.eup %8676  ;;  %v11422_v11 = vadd.f32 %v13682_v23, %v13642_v56  ;;  %8694 = vrsqrt.f32 %v4298_v24  ;;  %v3235_v8 = vmax.f32 %v2801_v20, 0.0  ;;  %v5438_v17 = vmul.f32 %v8675_v0, %v3138_v63  ;;  %v13687_v23 = vld [vmem:[#allocation83_spill] sm:$0xff] }
 0x2be   : > { %3048 = vmatprep.mubr.bf16.mxu1 %v13440_v14  ;;  %v2804_v15 = vpop.f32.mrf.mxu1  ;;  %v3946_v41 = vpop.xlane.xlu1 %3945  ;;  %8696 = vrcp.f32 %v5058_v39  ;;  %v4551_v52 = vmul.f32 %v8677_v10, %v11357_v44  ;;  %v4299_v43 = vadd.f32 1e-12, %v4171_v9  ;;  %3627 = vadd.xlane.f32.xlu0 %v3433_v30  ;;  %v5437_v32 = vmul.f32 %v8669_v33, %v3136_v55  ;;  %v13685_v33 = vld [vmem:[#allocation32_spill] sm:$0xff] }
 0x2bf   : > { %v11425_v40 = vpop.xlane.xlu0 %3559  ;;  %8698 = vpow2.f32 %v7666_v31  ;;  %v3434_v5 = vmul.f32 %v10578_v50, %v3233_v60  ;;  %v3819_v35 = vmul.f32 %v3235_v8, %v3235_v8  ;;  %v2805_v2 = vadd.f32 %v2804_v15, %v10571_v42 }
 0x2c0   : > { %v11429_v62 = vpop.f32.mrf.mxu1  ;;  %v8679_v27 = vpop.eup %8678  ;;  %v7667_v21 = vmul.f32 -1.442695, %v4551_v52  ;;  %8700 = vrsqrt.f32 %v4299_v43  ;;  %v4172_v63 = vmul.f32 %v10843_v45, %v3946_v41  ;;  %v5556_v22 = vpack.c.bf16 %v5438_v17, %v5437_v32  ;;  %v13688_v43 = vld [vmem:[#allocation20_spill] sm:$0xff]  ;;  %v13689_v32 = vld [vmem:[#allocation21_spill] sm:$0xff] }
 0x2c1   : > { %v8681_v44 = vpop.eup %8680  ;;  %v13683_v37 = vmax.f32 %v11068_v28, 0.0  ;;  %v2567_v60 = vadd.f32 %v13685_v33, %v13642_v56  ;;  %v5059_v55 = vadd.f32 1.0, %v8679_v27  ;;  %v3237_v30 = vmax.f32 %v2805_v2, 0.0  ;;  %3629 = vadd.xlane.f32.xlu1 %v3434_v5 }
 0x2c2   : > { %v2810_v24 = vpop.f32.mrf.mxu1  ;;  %v11439_v20 = vpop.xlane.xlu1 %3561  ;;  %8702 = vpow2.f32 %v7667_v21  ;;  %v4552_v0 = vmul.f32 %v8681_v44, %v11374_v29  ;;  %v4300_v39 = vadd.f32 1e-12, %v4172_v63  ;;  %8217 = vmatmul.mubr.bf16.gmra.mxu0 %v5556_v22  ;;  %4015 = vadd.xlane.f32.xlu0 %v3819_v35  ;;  %v13686_v10 = vmax.f32 %v11059_v53, 0.0  ;;  %v13691_v63 = vld [vmem:[#allocation3_spill] sm:$0xff] }
 0x2c3   : > { %v11435_v4 = vmul.f32 %v13684_v16, %v13683_v37  ;;  %v2811_v28 = vadd.f32 %v2810_v24, %v10571_v42  ;;  %v3948_v31 = vpop.xlane.xlu0 %3947  ;;  %v8683_v9 = vpop.eup %8682  ;;  %v3140_v41 = vmax.f32 %v11422_v11, 0.0  ;;  %v3435_v17 = vmul.f32 %v10578_v50, %v3235_v8  ;;  %v13692_v8 = vld [vmem:[#allocation33_spill] sm:$0xff] }
 0x2c4   : > { %v11446_v15 = vmul.f32 %v13687_v23, %v13686_v10  ;;  %v3820_v52 = vmul.f32 %v3237_v30, %v3237_v30  ;;  %v13690_v29 = vpack.c.bf16 %v13688_v43, %v13689_v32  ;;  %v11453_v5 = vpop.f32.mrf.mxu1  ;;  %v8685_v35 = vpop.eup %8684  ;;  %v5060_v2 = vadd.f32 1.0, %v8683_v9 }
 0x2c5   : > { %v7668_v27 = vmul.f32 -1.442695, %v4552_v0  ;;  %8704 = vrsqrt.f32 %v4300_v39  ;;  %v3239_v21 = vmax.f32 %v2811_v28, 0.0  ;;  %v8687_v53 = vpop.eup %8686  ;;  %v2573_v11 = vadd.f32 %v13691_v63, %v13642_v56 }
 0x2c6   : > { %3049 = vmatmul.mubr.bf16.gmra.mxu1 %v13690_v29  ;;  %v2577_v22 = vadd.f32 %v13692_v8, %v13642_v56  ;;  %v4553_v44 = vmul.f32 %v8685_v35, %v11398_v13  ;;  %v4173_v37 = vmul.f32 %v10843_v45, %v3948_v31  ;;  %4017 = vadd.xlane.f32.xlu1 %v3820_v52  ;;  %v2814_v16 = vpop.f32.mrf.mxu1  ;;  %v3950_v33 = vpop.xlane.xlu1 %3949  ;;  %v3142_v0 = vmax.f32 %v2567_v60, 0.0 }
 0x2c7   : > { %3058 = vmatprep.mubr.bf16.mxu1 %v13440_v14  ;;  %v8689_v24 = vpop.eup %8688  ;;  %8706 = vrcp.f32 %v5059_v55  ;;  %v3821_v39 = vmul.f32 %v3239_v21, %v3239_v21  ;;  %3631 = vadd.xlane.f32.xlu0 %v3435_v17  ;;  %v2815_v28 = vadd.f32 %v2814_v16, %v10571_v42  ;;  %v11463_v9 = vpop.xlane.xlu0 %3563  ;;  %v3436_v23 = vmul.f32 %v10578_v50, %v3237_v30 }
 0x2c8   : > { %8708 = vpow2.f32 %v7668_v27  ;;  %v7669_v10 = vmul.f32 -1.442695, %v4553_v44  ;;  %v4301_v43 = vadd.f32 1e-12, %v4173_v37  ;;  %v11466_v13 = vpop.f32.mrf.mxu1  ;;  %v8691_v31 = vpop.eup %8690  ;;  %v4174_v32 = vmul.f32 %v10843_v45, %v3950_v33  ;;  %v13693_v33 = vld [vmem:[#allocation6_spill] sm:$0xff] }
 0x2c9   : > { %8710 = vrcp.f32 %v5060_v2  ;;  %v3241_v52 = vmax.f32 %v2815_v28, 0.0  ;;  %v5440_v60 = vmul.f32 %v8687_v53, %v3142_v0  ;;  %v8693_v55 = vpop.eup %8692  ;;  %v3144_v29 = vmax.f32 %v2573_v11, 0.0 }
 0x2ca   : > { %v3146_v17 = vmax.f32 %v2577_v22, 0.0  ;;  %8712 = vpow2.f32 %v7669_v10  ;;  %v5439_v35 = vmul.f32 %v8689_v24, %v3140_v41  ;;  %3633 = vadd.xlane.f32.xlu1 %v3436_v23  ;;  %v2820_v63 = vpop.f32.mrf.mxu1  ;;  %v11469_v27 = vpop.xlane.xlu1 %3565  ;;  %v5061_v30 = vadd.f32 1.0, %v8691_v31 }
 0x2cb   : > { %v8695_v8 = vpop.eup %8694  ;;  %8714 = vrsqrt.f32 %v4301_v43  ;;  %v3822_v44 = vmul.f32 %v3241_v52, %v3241_v52  ;;  %v4302_v37 = vadd.f32 1e-12, %v4174_v32  ;;  %4019 = vadd.xlane.f32.xlu0 %v3821_v39  ;;  %v3952_v2 = vpop.xlane.xlu0 %3951  ;;  %v11473_v53 = vadd.f32 %v13693_v33, %v13642_v56 }
 0x2cc   : > { %v8697_v16 = vpop.eup %8696  ;;  %v4554_v11 = vmul.f32 %v8695_v8, %v11406_v51  ;;  %v3437_v41 = vmul.f32 %v10578_v50, %v3239_v21  ;;  %v5557_v22 = vpack.c.bf16 %v5440_v60, %v5439_v35  ;;  %v11480_v24 = vpop.f32.mrf.mxu1  ;;  %v2821_v39 = vadd.f32 %v2820_v63, %v10571_v42 }
 0x2cd   : > { %v8699_v0 = vpop.eup %8698  ;;  %8716 = vrsqrt.f32 %v4302_v37  ;;  %v4175_v28 = vmul.f32 %v10843_v45, %v3952_v2  ;;  %v5441_v10 = vmul.f32 %v8693_v55, %v3144_v29  ;;  %v3438_v21 = vmul.f32 %v10578_v50, %v3241_v52 }
 0x2ce   : > { %3059 = vmatmul.mubr.bf16.gmra.mxu1 %v2314_v46  ;;  %v8701_v23 = vpop.eup %8700  ;;  %v5062_v51 = vadd.f32 1.0, %v8699_v0  ;;  %v7670_v43 = vmul.f32 -1.442695, %v4554_v11  ;;  %8220 = vmatprep.mubr.bf16.mxu0 %v5557_v22  ;;  %v2824_v47 = vpop.f32.mrf.mxu1  ;;  %v5442_v46 = vmul.f32 %v8697_v16, %v3146_v17  ;;  %8718 = vrcp.f32 %v5061_v30 }
 0x2cf   : > { %3068 = vmatprep.mubr.bf16.mxu1 %v13440_v14  ;;  %4021 = vadd.xlane.f32.xlu1 %v3822_v44  ;;  %v3954_v18 = vpop.xlane.xlu1 %3953  ;;  %v4555_v31 = vmul.f32 %v8701_v23, %v11425_v40  ;;  %v3243_v32 = vmax.f32 %v2821_v39, 0.0  ;;  %v4303_v60 = vadd.f32 1e-12, %v4175_v28  ;;  %v11487_v35 = vpop.xlane.xlu0 %3567  ;;  %v2825_v29 = vadd.f32 %v2824_v47, %v10571_v42 }
 0x2d0   : > { %3635 = vadd.xlane.f32.xlu0 %v3437_v41  ;;  %v8703_v55 = vpop.eup %8702  ;;  %8720 = vrcp.f32 %v5062_v51  ;;  %v4176_v63 = vmul.f32 %v10843_v45, %v3954_v18  ;;  %v5558_v52 = vpack.c.bf16 %v5442_v46, %v5441_v10  ;;  %v11491_v8 = vpop.f32.mrf.mxu1  ;;  %v13694_v41 = vld [vmem:[#allocation5_spill] sm:$0xff]  ;;  %v3148_v23 = vmax.f32 %v11473_v53, 0.0 }
 0x2d1   : > { %v5063_v44 = vadd.f32 1.0, %v8703_v55  ;;  %8722 = vpow2.f32 %v7670_v43  ;;  %v7671_v17 = vmul.f32 -1.442695, %v4555_v31  ;;  %v3823_v37 = vmul.f32 %v3243_v32, %v3243_v32  ;;  %v13695_v43 = vld [vmem:[#allocation22_spill] sm:$0xff] }
 0x2d2   : > { %v8705_v30 = vpop.eup %8704  ;;  %8724 = vrsqrt.f32 %v4303_v60  ;;  %v3245_v40 = vmax.f32 %v2825_v29, 0.0  ;;  %v4304_v2 = vadd.f32 1e-12, %v4176_v63  ;;  %8221 = vmatmul.mubr.bf16.gmra.mxu0 %v5558_v52  ;;  %v2830_v16 = vpop.f32.mrf.mxu1  ;;  %v2587_v22 = vadd.f32 %v13694_v41, %v13642_v56 }
 0x2d3   : > { %3637 = vadd.xlane.f32.xlu1 %v3438_v21  ;;  %v11493_v33 = vpop.xlane.xlu1 %3569  ;;  %v4556_v0 = vmul.f32 %v8705_v30, %v11439_v20  ;;  %v2831_v39 = vadd.f32 %v2830_v16, %v10571_v42  ;;  %v3956_v28 = vpop.xlane.xlu0 %3955  ;;  %8726 = vpow2.f32 %v7671_v17  ;;  %v13696_v21 = vld [vmem:[#allocation23_spill] sm:$0xff]  ;;  %v13699_v20 = vld [vmem:[#allocation34_spill] sm:$0xff]  ;;  %v3439_v52 = vmul.f32 %v10578_v50, %v3243_v32 }
 0x2d4   : > { %v8707_v10 = vpop.eup %8706  ;;  %v3824_v51 = vmul.f32 %v3245_v40, %v3245_v40  ;;  %4023 = vadd.xlane.f32.xlu0 %v3823_v37  ;;  %v13697_v47 = vpack.c.bf16 %v13695_v43, %v13696_v21  ;;  %v4177_v18 = vmul.f32 %v10843_v45, %v3956_v28  ;;  %v11506_v46 = vpop.f32.mrf.mxu1  ;;  %v11510_v60 = vadd.f32 %v13699_v20, %v13642_v56  ;;  %v13700_v28 = vld [vmem:[#allocation35_spill] sm:$0xff] }
 0x2d5   : > { %13698 = vst [vmem:[#allocation10_spill] sm:$0xff] %v11506_v46  ;;  %v8709_v31 = vpop.eup %8708  ;;  %v7672_v55 = vmul.f32 -1.442695, %v4556_v0  ;;  %8728 = vrsqrt.f32 %v4304_v2  ;;  %v3247_v29 = vmax.f32 %v2831_v39, 0.0  ;;  %v3150_v41 = vmax.f32 %v2587_v22, 0.0 }
 0x2d6   : > { %3069 = vmatmul.mubr.bf16.gmra.mxu1 %v13697_v47  ;;  %v8711_v53 = vpop.eup %8710  ;;  %8730 = vrcp.f32 %v5063_v44  ;;  %v5064_v63 = vadd.f32 1.0, %v8709_v31  ;;  %v4305_v17 = vadd.f32 1e-12, %v4177_v18  ;;  %v2834_v30 = vpop.f32.mrf.mxu1  ;;  %v2597_v43 = vadd.f32 %v13700_v28, %v13642_v56 }
 0x2d7   : > { %3078 = vmatprep.mubr.bf16.mxu1 %v13440_v14  ;;  %4025 = vadd.xlane.f32.xlu1 %v3824_v51  ;;  %v3958_v37 = vpop.xlane.xlu1 %3957  ;;  %v8713_v16 = vpop.eup %8712  ;;  %8732 = vpow2.f32 %v7672_v55  ;;  %v2835_v2 = vadd.f32 %v2834_v30, %v10571_v42  ;;  %v3440_v44 = vmul.f32 %v10578_v50, %v3245_v40  ;;  %v3825_v21 = vmul.f32 %v3247_v29, %v3247_v29 }
 0x2d8   : > { %v11517_v0 = vpop.xlane.xlu0 %3571  ;;  %v8715_v39 = vpop.eup %8714  ;;  %8734 = vrcp.f32 %v5064_v63  ;;  %3639 = vadd.xlane.f32.xlu0 %v3439_v52  ;;  %v4178_v32 = vmul.f32 %v10843_v45, %v3958_v37  ;;  %v5444_v18 = vmul.f32 %v8711_v53, %v3150_v41  ;;  %v3152_v20 = vmax.f32 %v11510_v60, 0.0 }
 0x2d9   : > { %v11521_v51 = vpop.f32.mrf.mxu1  ;;  %v4557_v22 = vmul.f32 %v8715_v39, %v11463_v9  ;;  %8736 = vrsqrt.f32 %v4305_v17  ;;  %v3249_v47 = vmax.f32 %v2835_v2, 0.0  ;;  %v5065_v55 = vadd.f32 1.0, %v8713_v16  ;;  %v13702_v17 = vld [vmem:[#allocation11_spill] sm:$0xff] }
 0x2da   : > { %13701 = vst [vmem:[#allocation12_spill] sm:$0xff] %v11521_v51  ;;  %v8717_v31 = vpop.eup %8716  ;;  %v4306_v30 = vadd.f32 1e-12, %v4178_v32  ;;  %v5443_v28 = vmul.f32 %v8707_v10, %v3148_v23  ;;  %v3154_v52 = vmax.f32 %v2597_v43, 0.0  ;;  %v11530_v53 = vadd.f32 %v13702_v17, %v13642_v56 }
 0x2db   : > { %3641 = vadd.xlane.f32.xlu1 %v3440_v44  ;;  %v2840_v63 = vpop.f32.mrf.mxu1  ;;  %v11525_v40 = vpop.xlane.xlu1 %3573  ;;  %v7673_v11 = vmul.f32 -1.442695, %v4557_v22  ;;  %v4558_v37 = vmul.f32 %v8717_v31, %v11469_v27  ;;  %v3826_v51 = vmul.f32 %v3249_v47, %v3249_v47  ;;  %v13703_v23 = vpack.c.bf16 %v11435_v4, %v11446_v15  ;;  %v13704_v27 = vld [vmem:[#allocation24_spill] sm:$0xff] }
 0x2dc   : > { %v3960_v46 = vpop.xlane.xlu0 %3959  ;;  %v8719_v9 = vpop.eup %8718  ;;  %8738 = vrsqrt.f32 %v4306_v30  ;;  %v5559_v60 = vpack.c.bf16 %v5444_v18, %v5443_v28  ;;  %4027 = vadd.xlane.f32.xlu0 %v3825_v21  ;;  %v2841_v10 = vadd.f32 %v2840_v63, %v10571_v42  ;;  %v11540_v43 = vadd.f32 %v13704_v27, %v13642_v56 }
 0x2dd   : > { %v11536_v16 = vpop.f32.mrf.mxu1  ;;  %v8721_v41 = vpop.eup %8720  ;;  %8740 = vpow2.f32 %v7673_v11  ;;  %v7674_v2 = vmul.f32 -1.442695, %v4558_v37  ;;  %v4179_v39 = vmul.f32 %v10843_v45, %v3960_v46  ;;  %v3441_v21 = vmul.f32 %v10578_v50, %v3247_v29 }
 0x2de   : > { %3079 = vmatmul.mubr.bf16.gmra.mxu1 %v13703_v23  ;;  %v8723_v44 = vpop.eup %8722  ;;  %8742 = vrcp.f32 %v5065_v55  ;;  %8224 = vmatprep.mubr.bf16.mxu0 %v5559_v60  ;;  %v3251_v4 = vmax.f32 %v2841_v10, 0.0  ;;  %v5446_v22 = vmul.f32 %v8721_v41, %v3154_v52  ;;  %v5445_v28 = vmul.f32 %v8719_v9, %v3152_v20 }
 0x2df   : > { %3088 = vmatprep.mubr.bf16.mxu1 %v13440_v14  ;;  %4029 = vadd.xlane.f32.xlu1 %v3826_v51  ;;  %v2844_v15 = vpop.f32.mrf.mxu1  ;;  %v3962_v32 = vpop.xlane.xlu1 %3961  ;;  %v5066_v31 = vadd.f32 1.0, %v8723_v44  ;;  %8744 = vpow2.f32 %v7674_v2  ;;  %v4307_v30 = vadd.f32 1e-12, %v4179_v39  ;;  %v3442_v14 = vmul.f32 %v10578_v50, %v3249_v47 }
 0x2e0   : > { %v8725_v18 = vpop.eup %8724  ;;  %v11545_v11 = vpop.xlane.xlu0 %3575  ;;  %v3827_v55 = vmul.f32 %v3251_v4, %v3251_v4  ;;  %3643 = vadd.xlane.f32.xlu0 %v3441_v21  ;;  %v2845_v29 = vadd.f32 %v2844_v15, %v10571_v42  ;;  %v4180_v52 = vmul.f32 %v10843_v45, %v3962_v32  ;;  %v5560_v37 = vpack.c.bf16 %v5446_v22, %v5445_v28  ;;  %v13705_v32 = vld [vmem:[#allocation84_spill] sm:$0xff]  ;;  %v13706_v22 = vld [vmem:[#allocation85_spill] sm:$0xff] }
 0x2e1   : > { %v4559_v46 = vmul.f32 %v8725_v18, %v11487_v35  ;;  %v11550_v63 = vpop.f32.mrf.mxu1  ;;  %v8727_v51 = vpop.eup %8726  ;;  %8746 = vrcp.f32 %v5066_v31  ;;  %v3156_v23 = vmax.f32 %v11530_v53, 0.0  ;;  %v3158_v21 = vmax.f32 %v11540_v43, 0.0 }
 0x2e2   : > { %v8729_v17 = vpop.eup %8728  ;;  %v5067_v60 = vadd.f32 1.0, %v8727_v51  ;;  %8748 = vrsqrt.f32 %v4307_v30  ;;  %v3253_v20 = vmax.f32 %v2845_v29, 0.0  ;;  %v4308_v27 = vadd.f32 1e-12, %v4180_v52  ;;  %8225 = vmatmul.mubr.bf16.gmra.mxu0 %v5560_v37  ;;  %v13708_v29 = vld [vmem:[#allocation25_spill] sm:$0xff] }
 0x2e3   : > { %v7675_v10 = vmul.f32 -1.442695, %v4559_v46  ;;  %3645 = vadd.xlane.f32.xlu1 %v3442_v14  ;;  %v2850_v35 = vpop.f32.mrf.mxu1  ;;  %v11553_v9 = vpop.xlane.xlu1 %3577  ;;  %v4560_v41 = vmul.f32 %v8729_v17, %v11493_v33  ;;  %v13707_v18 = vpack.c.bf16 %v13705_v32, %v13706_v22  ;;  %v2613_v43 = vadd.f32 %v13708_v29, %v13642_v56  ;;  %v13709_v17 = vld [vmem:[#allocation36_spill] sm:$0xff] }
 0x2e4   : > { %v8731_v47 = vpop.eup %8730  ;;  %v2851_v2 = vadd.f32 %v2850_v35, %v10571_v42  ;;  %v3964_v39 = vpop.xlane.xlu0 %3963  ;;  %8750 = vrcp.f32 %v5067_v60  ;;  %v3828_v15 = vmul.f32 %v3253_v20, %v3253_v20  ;;  %4031 = vadd.xlane.f32.xlu0 %v3827_v55  ;;  %v3443_v51 = vmul.f32 %v10578_v50, %v3251_v4 }
 0x2e5   : > { %v8733_v44 = vpop.eup %8732  ;;  %v4181_v31 = vmul.f32 %v10843_v45, %v3964_v39  ;;  %v11563_v53 = vpop.f32.mrf.mxu1  ;;  %8752 = vpow2.f32 %v7675_v10  ;;  %v7676_v28 = vmul.f32 -1.442695, %v4560_v41  ;;  %v2617_v60 = vadd.f32 %v13709_v17, %v13642_v56 }
 0x2e6   : > { %3089 = vmatmul.mubr.bf16.gmra.mxu1 %v13707_v18  ;;  %v8735_v33 = vpop.eup %8734  ;;  %v5068_v30 = vadd.f32 1.0, %v8733_v44  ;;  %v3255_v46 = vmax.f32 %v2851_v2, 0.0  ;;  %8754 = vrsqrt.f32 %v4308_v27  ;;  %v3444_v10 = vmul.f32 %v10578_v50, %v3253_v20 }
 0x2e7   : > { %v8737_v14 = vpop.eup %8736  ;;  %v4309_v55 = vadd.f32 1e-12, %v4181_v31  ;;  %4033 = vadd.xlane.f32.xlu1 %v3828_v15  ;;  %v2854_v52 = vpop.f32.mrf.mxu1  ;;  %v5447_v32 = vmul.f32 %v8731_v47, %v3156_v23  ;;  %v5448_v22 = vmul.f32 %v8735_v33, %v3158_v21  ;;  %v13710_v47 = vld [vmem:[#allocation37_spill] sm:$0xff] }
 0x2e8   : > { %v3966_v37 = vpop.xlane.xlu1 %3965  ;;  %8756 = vrcp.f32 %v5068_v30  ;;  %v4561_v35 = vmul.f32 %v8737_v14, %v11517_v0  ;;  %v11572_v41 = vpop.xlane.xlu0 %3579  ;;  %v3829_v2 = vmul.f32 %v3255_v46, %v3255_v46  ;;  %3647 = vadd.xlane.f32.xlu0 %v3443_v51  ;;  %v2855_v4 = vadd.f32 %v2854_v52, %v10571_v42 }
 0x2e9   : > { %8758 = vpow2.f32 %v7676_v28  ;;  %v4182_v27 = vmul.f32 %v10843_v45, %v3966_v37  ;;  %v11576_v39 = vpop.f32.mrf.mxu1  ;;  %v8739_v44 = vpop.eup %8738  ;;  %v3160_v0 = vmax.f32 %v2613_v43, 0.0  ;;  %v3162_v51 = vmax.f32 %v2617_v60, 0.0 }
 0x2ea   : > { %v7677_v15 = vmul.f32 -1.442695, %v4561_v35  ;;  %8760 = vrsqrt.f32 %v4309_v55  ;;  %v8741_v18 = vpop.eup %8740  ;;  %v4562_v20 = vmul.f32 %v8739_v44, %v11525_v40  ;;  %v3257_v31 = vmax.f32 %v2855_v4, 0.0  ;;  %v13712_v4 = vld [vmem:[#allocation38_spill] sm:$0xff] }
 0x2eb   : > { %v4310_v30 = vadd.f32 1e-12, %v4182_v27  ;;  %3649 = vadd.xlane.f32.xlu1 %v3444_v10  ;;  %v2860_v28 = vpop.f32.mrf.mxu1  ;;  %v8743_v29 = vpop.eup %8742  ;;  %v5069_v52 = vadd.f32 1.0, %v8741_v18  ;;  %v5561_v37 = vpack.c.bf16 %v5448_v22, %v5447_v32  ;;  %v11583_v23 = vadd.f32 %v13710_v47, %v13642_v56 }
 0x2ec   : > { %v11579_v14 = vpop.xlane.xlu1 %3581  ;;  %8762 = vpow2.f32 %v7677_v15  ;;  %v3968_v17 = vpop.xlane.xlu0 %3967  ;;  %v7678_v21 = vmul.f32 -1.442695, %v4562_v20  ;;  %v3830_v33 = vmul.f32 %v3257_v31, %v3257_v31  ;;  %4035 = vadd.xlane.f32.xlu0 %v3829_v2  ;;  %v2861_v55 = vadd.f32 %v2860_v28, %v10571_v42 }
 0x2ed   : > { %v8745_v35 = vpop.eup %8744  ;;  %8764 = vrsqrt.f32 %v4310_v30  ;;  %v11585_v40 = vpop.f32.mrf.mxu1  ;;  %8228 = vmatprep.mubr.bf16.mxu0 %v5561_v37  ;;  %v4183_v60 = vmul.f32 %v10843_v45, %v3968_v17  ;;  %v11591_v27 = vadd.f32 %v13712_v4, %v13642_v56  ;;  %v3445_v44 = vmul.f32 %v10578_v50, %v3255_v46 }
 0x2ee   : > { %13711 = vst [vmem:[#allocation60_spill] sm:$0xff] %v11585_v40  ;;  %8766 = vrcp.f32 %v5069_v52  ;;  %v5070_v43 = vadd.f32 1.0, %v8745_v35  ;;  %v8747_v10 = vpop.eup %8746  ;;  %v5449_v32 = vmul.f32 %v8743_v29, %v3160_v0  ;;  %v3259_v18 = vmax.f32 %v2861_v55, 0.0 }
 0x2ef   : > { %8768 = vpow2.f32 %v7678_v21  ;;  %4037 = vadd.xlane.f32.xlu1 %v3830_v33  ;;  %v2864_v15 = vpop.f32.mrf.mxu1  ;;  %v8749_v22 = vpop.eup %8748  ;;  %v4311_v20 = vadd.f32 1e-12, %v4183_v60  ;;  %v3446_v37 = vmul.f32 %v10578_v50, %v3257_v31  ;;  %v5450_v46 = vmul.f32 %v8747_v10, %v3162_v51 }
 0x2f0   : > { %v3970_v2 = vpop.xlane.xlu1 %3969  ;;  %8770 = vrcp.f32 %v5070_v43  ;;  %v2865_v30 = vadd.f32 %v2864_v15, %v10571_v42  ;;  %v11595_v28 = vpop.xlane.xlu0 %3583  ;;  %v4563_v52 = vmul.f32 %v8749_v22, %v11545_v11  ;;  %3651 = vadd.xlane.f32.xlu0 %v3445_v44  ;;  %v3831_v0 = vmul.f32 %v3259_v18, %v3259_v18 }
 0x2f1   : > { %v4184_v17 = vmul.f32 %v10843_v45, %v3970_v2  ;;  %v11600_v35 = vpop.f32.mrf.mxu1  ;;  %v8751_v47 = vpop.eup %8750  ;;  %8772 = vrsqrt.f32 %v4311_v20  ;;  %v5562_v55 = vpack.c.bf16 %v5450_v46, %v5449_v32  ;;  %v3164_v31 = vmax.f32 %v11583_v23, 0.0  ;;  %v13715_v23 = vld [vmem:[#allocation26_spill] sm:$0xff] }
 0x2f2   : > { %13713 = vst [vmem:[#allocation39_spill] sm:$0xff] %v11600_v35  ;;  %v3261_v29 = vmax.f32 %v2865_v30, 0.0  ;;  %v8753_v21 = vpop.eup %8752  ;;  %v7679_v33 = vmul.f32 -1.442695, %v4563_v52  ;;  %v3166_v22 = vmax.f32 %v11591_v27, 0.0 }
 0x2f3   : > { %v4312_v43 = vadd.f32 1e-12, %v4184_v17  ;;  %3653 = vadd.xlane.f32.xlu1 %v3446_v37  ;;  %v2870_v60 = vpop.f32.mrf.mxu1  ;;  %v8755_v11 = vpop.eup %8754  ;;  %v5071_v44 = vadd.f32 1.0, %v8753_v21  ;;  %8229 = vmatmul.mubr.bf16.gmra.mxu0 %v5562_v55  ;;  %v11613_v37 = vadd.f32 %v13715_v23, %v13642_v56  ;;  %v13716_v17 = vld [vmem:[#allocation27_spill] sm:$0xff]  ;;  %v3447_v21 = vmul.f32 %v10578_v50, %v3259_v18 }
 0x2f4   : > { %v11602_v4 = vpop.xlane.xlu1 %3585  ;;  %v3832_v15 = vmul.f32 %v3261_v29, %v3261_v29  ;;  %v2871_v51 = vadd.f32 %v2870_v60, %v10571_v42  ;;  %v3972_v10 = vpop.xlane.xlu0 %3971  ;;  %8774 = vpow2.f32 %v7679_v33  ;;  %v4564_v20 = vmul.f32 %v8755_v11, %v11553_v9  ;;  %4039 = vadd.xlane.f32.xlu0 %v3831_v0 }
 0x2f5   : > { %v8757_v2 = vpop.eup %8756  ;;  %v4185_v32 = vmul.f32 %v10843_v45, %v3972_v10  ;;  %v11609_v30 = vpop.f32.mrf.mxu1  ;;  %v2637_v46 = vadd.f32 %v13716_v17, %v13642_v56  ;;  %8776 = vrsqrt.f32 %v4312_v43  ;;  %v3448_v23 = vmul.f32 %v10578_v50, %v3261_v29 }
 0x2f6   : > { %13714 = vst [vmem:[#allocation40_spill] sm:$0xff] %v11609_v30  ;;  %v8759_v52 = vpop.eup %8758  ;;  %v3263_v27 = vmax.f32 %v2871_v51, 0.0  ;;  %v7680_v9 = vmul.f32 -1.442695, %v4564_v20  ;;  %8778 = vrcp.f32 %v5071_v44  ;;  %v5452_v43 = vmul.f32 %v8757_v2, %v3166_v22 }
 0x2f7   : > { %v8761_v33 = vpop.eup %8760  ;;  %v5072_v60 = vadd.f32 1.0, %v8759_v52  ;;  %v4313_v0 = vadd.f32 1e-12, %v4185_v32  ;;  %4041 = vadd.xlane.f32.xlu1 %v3832_v15  ;;  %v2874_v55 = vpop.f32.mrf.mxu1  ;;  %v3168_v2 = vmax.f32 %v11613_v37, 0.0  ;;  %v13718_v37 = vld [vmem:[#allocation41_spill] sm:$0xff] }
 0x2f8   : > { %v3974_v11 = vpop.xlane.xlu1 %3973  ;;  %v4565_v10 = vmul.f32 %v8761_v33, %v11572_v41  ;;  %v3833_v30 = vmul.f32 %v3263_v27, %v3263_v27  ;;  %v11620_v35 = vpop.xlane.xlu0 %3587  ;;  %3655 = vadd.xlane.f32.xlu0 %v3447_v21  ;;  %v2875_v18 = vadd.f32 %v2874_v55, %v10571_v42  ;;  %v5451_v41 = vmul.f32 %v8751_v47, %v3164_v31 }
 0x2f9   : > { %v8763_v17 = vpop.eup %8762  ;;  %8780 = vrcp.f32 %v5072_v60  ;;  %v4186_v51 = vmul.f32 %v10843_v45, %v3974_v11  ;;  %v11624_v20 = vpop.f32.mrf.mxu1 }
 0x2fa   : > { %v8765_v15 = vpop.eup %8764  ;;  %v5073_v32 = vadd.f32 1.0, %v8763_v17  ;;  %8782 = vpow2.f32 %v7680_v9  ;;  %v7681_v44 = vmul.f32 -1.442695, %v4565_v10  ;;  %v3265_v33 = vmax.f32 %v2875_v18, 0.0 }
 0x2fb   : > { %v8767_v52 = vpop.eup %8766  ;;  %v4566_v29 = vmul.f32 %v8765_v15, %v11579_v14  ;;  %8784 = vrsqrt.f32 %v4313_v0  ;;  %v4314_v40 = vadd.f32 1e-12, %v4186_v51  ;;  %3657 = vadd.xlane.f32.xlu1 %v3448_v23  ;;  %v2880_v21 = vpop.f32.mrf.mxu1  ;;  %v5563_v22 = vpack.c.bf16 %v5452_v43, %v5451_v41 }
 0x2fc   : > { %v11627_v60 = vpop.xlane.xlu1 %3589  ;;  %v8769_v55 = vpop.eup %8768  ;;  %v2881_v11 = vadd.f32 %v2880_v21, %v10571_v42  ;;  %v3170_v10 = vmax.f32 %v2637_v46, 0.0  ;;  %8786 = vpow2.f32 %v7681_v44  ;;  %4043 = vadd.xlane.f32.xlu0 %v3833_v30  ;;  %v3834_v0 = vmul.f32 %v3265_v33, %v3265_v33  ;;  %v13719_v30 = vld [vmem:[#allocation42_spill] sm:$0xff] }
 0x2fd   : > { %v3976_v17 = vpop.xlane.xlu0 %3975  ;;  %v8771_v9 = vpop.eup %8770  ;;  %v5074_v47 = vadd.f32 1.0, %v8769_v55  ;;  %v7682_v31 = vmul.f32 -1.442695, %v4566_v29  ;;  %8788 = vrsqrt.f32 %v4314_v40  ;;  %8232 = vmatprep.mubr.bf16.mxu0 %v5563_v22  ;;  %v2643_v43 = vadd.f32 %v13718_v37, %v13642_v56 }
 0x2fe   : > { %v11631_v14 = vpop.f32.mrf.mxu1  ;;  %v3267_v23 = vmax.f32 %v2881_v11, 0.0  ;;  %v4187_v18 = vmul.f32 %v10843_v45, %v3976_v17  ;;  %v8773_v51 = vpop.eup %8772  ;;  %8790 = vrcp.f32 %v5073_v32  ;;  %v3449_v15 = vmul.f32 %v10578_v50, %v3263_v27 }
 0x2ff   : > { %13717 = vst [vmem:[#allocation62_spill] sm:$0xff] %v11631_v14  ;;  %v5454_v44 = vmul.f32 %v8771_v9, %v3170_v10  ;;  %v2647_v29 = vadd.f32 %v13719_v30, %v13642_v56  ;;  %8792 = vpow2.f32 %v7682_v31  ;;  %v4567_v40 = vmul.f32 %v8773_v51, %v11595_v28  ;;  %4045 = vadd.xlane.f32.xlu1 %v3834_v0 }
 0x300   : > { %v2884_v46 = vpop.f32.mrf.mxu1  ;;  %v3978_v41 = vpop.xlane.xlu1 %3977  ;;  %v5453_v55 = vmul.f32 %v8767_v52, %v3168_v2  ;;  %v3835_v22 = vmul.f32 %v3267_v23, %v3267_v23  ;;  %v4315_v11 = vadd.f32 1e-12, %v4187_v18  ;;  %3659 = vadd.xlane.f32.xlu0 %v3449_v15  ;;  %8794 = vrcp.f32 %v5074_v47 }
 0x301   : > { %v11640_v21 = vpop.xlane.xlu0 %3591  ;;  %v2885_v32 = vadd.f32 %v2884_v46, %v10571_v42  ;;  %v4188_v27 = vmul.f32 %v10843_v45, %v3978_v41  ;;  %v8775_v9 = vpop.eup %8774  ;;  %v7683_v10 = vmul.f32 -1.442695, %v4567_v40  ;;  %v3450_v31 = vmul.f32 %v10578_v50, %v3265_v33 }
 0x302   : > { %v11644_v17 = vpop.f32.mrf.mxu1  ;;  %v5564_v37 = vpack.c.bf16 %v5454_v44, %v5453_v55  ;;  %8796 = vrsqrt.f32 %v4315_v11  ;;  %v8777_v2 = vpop.eup %8776  ;;  %v5075_v18 = vadd.f32 1.0, %v8775_v9  ;;  %v3174_v47 = vmax.f32 %v2647_v29, 0.0  ;;  %v13722_v9 = vld [vmem:[#allocation30_spill] sm:$0xff] }
 0x303   : > { %13720 = vst [vmem:[#allocation45_spill] sm:$0xff] %v11644_v17  ;;  %v3269_v28 = vmax.f32 %v2885_v32, 0.0  ;;  %v4316_v0 = vadd.f32 1e-12, %v4188_v27  ;;  %8798 = vpow2.f32 %v7683_v10  ;;  %3661 = vadd.xlane.f32.xlu1 %v3450_v31  ;;  %v8779_v41 = vpop.eup %8778  ;;  %v4568_v30 = vmul.f32 %v8777_v2, %v11602_v4 }
 0x304   : > { %v2890_v51 = vpop.f32.mrf.mxu1  ;;  %v11647_v52 = vpop.xlane.xlu1 %3593  ;;  %8233 = vmatmul.mubr.bf16.gmra.mxu0 %v5564_v37  ;;  %4047 = vadd.xlane.f32.xlu0 %v3835_v22  ;;  %v3172_v55 = vmax.f32 %v2643_v43, 0.0  ;;  %v11656_v10 = vadd.f32 %v13722_v9, %v13642_v56  ;;  %v3451_v29 = vmul.f32 %v10578_v50, %v3267_v23 }
 0x305   : > { %v2891_v15 = vadd.f32 %v2890_v51, %v10571_v42  ;;  %v3980_v46 = vpop.xlane.xlu0 %3979  ;;  %v3836_v33 = vmul.f32 %v3269_v28, %v3269_v28  ;;  %8800 = vrsqrt.f32 %v4316_v0  ;;  %v7684_v31 = vmul.f32 -1.442695, %v4568_v30 }
 0x306   : > { %v11651_v44 = vpop.f32.mrf.mxu1  ;;  %v8781_v40 = vpop.eup %8780  ;;  %v4189_v32 = vmul.f32 %v10843_v45, %v3980_v46  ;;  %8802 = vrcp.f32 %v5075_v18  ;;  %v3452_v18 = vmul.f32 %v10578_v50, %v3269_v28 }
 0x307   : > { %13721 = vst [vmem:[#allocation43_spill] sm:$0xff] %v11651_v44  ;;  %v3271_v11 = vmax.f32 %v2891_v15, 0.0  ;;  %v8783_v27 = vpop.eup %8782  ;;  %v5456_v4 = vmul.f32 %v8781_v40, %v3174_v47  ;;  %4049 = vadd.xlane.f32.xlu1 %v3836_v33  ;;  %v5455_v15 = vmul.f32 %v8779_v41, %v3172_v55  ;;  %8804 = vpow2.f32 %v7684_v31  ;;  %v13724_v31 = vld [vmem:[#allocation4_spill] sm:$0xff] }
 0x308   : > { %v2894_v37 = vpop.f32.mrf.mxu1  ;;  %v8785_v51 = vpop.eup %8784  ;;  %v5076_v22 = vadd.f32 1.0, %v8783_v27  ;;  %v4317_v2 = vadd.f32 1e-12, %v4189_v32  ;;  %3663 = vadd.xlane.f32.xlu0 %v3451_v29  ;;  %v2657_v29 = vadd.f32 %v13724_v31, %v13642_v56 }
 0x309   : > { %v3982_v43 = vpop.xlane.xlu1 %3981  ;;  %v11659_v0 = vpop.xlane.xlu0 %3595  ;;  %v4569_v46 = vmul.f32 %v8785_v51, %v11620_v35  ;;  %v3837_v44 = vmul.f32 %v3271_v11, %v3271_v11  ;;  %v2895_v30 = vadd.f32 %v2894_v37, %v10571_v42  ;;  %v5565_v33 = vpack.c.bf16 %v5456_v4, %v5455_v15 }
 0x30a   : > { %v11663_v9 = vpop.f32.mrf.mxu1  ;;  %v8787_v23 = vpop.eup %8786  ;;  %8806 = vrcp.f32 %v5076_v22  ;;  %v4190_v47 = vmul.f32 %v10843_v45, %v3982_v43 }
 0x30b   : > { %13723 = vst [vmem:[#allocation48_spill] sm:$0xff] %v11663_v9  ;;  %v8789_v40 = vpop.eup %8788  ;;  %v5077_v32 = vadd.f32 1.0, %v8787_v23  ;;  %v7685_v27 = vmul.f32 -1.442695, %v4569_v46  ;;  %8808 = vrsqrt.f32 %v4317_v2  ;;  %v3273_v41 = vmax.f32 %v2895_v30, 0.0  ;;  %8236 = vmatprep.mubr.bf16.mxu0 %v5565_v33  ;;  %3665 = vadd.xlane.f32.xlu1 %v3452_v18 }
 0x30c   : > { %v2900_v55 = vpop.f32.mrf.mxu1  ;;  %v8791_v35 = vpop.eup %8790  ;;  %v4570_v37 = vmul.f32 %v8789_v40, %v11627_v60  ;;  %v4318_v51 = vadd.f32 1e-12, %v4190_v47  ;;  %4051 = vadd.xlane.f32.xlu0 %v3837_v44  ;;  %v3176_v18 = vmax.f32 %v11656_v10, 0.0  ;;  %v3453_v33 = vmul.f32 %v10578_v50, %v3271_v11  ;;  %v13726_v44 = vld [vmem:[#allocation44_spill] sm:$0xff] }
 0x30d   : > { %v2901_v28 = vadd.f32 %v2900_v55, %v10571_v42  ;;  %v11671_v22 = vpop.xlane.xlu1 %3597  ;;  %v3984_v4 = vpop.xlane.xlu0 %3983  ;;  %8810 = vrcp.f32 %v5077_v32  ;;  %v3838_v15 = vmul.f32 %v3273_v41, %v3273_v41  ;;  %v3178_v32 = vmax.f32 %v2657_v29, 0.0 }
 0x30e   : > { %v8793_v43 = vpop.eup %8792  ;;  %v4191_v2 = vmul.f32 %v10843_v45, %v3984_v4  ;;  %v11674_v46 = vpop.f32.mrf.mxu1  ;;  %8812 = vpow2.f32 %v7685_v27  ;;  %v7686_v23 = vmul.f32 -1.442695, %v4570_v37  ;;  %v11680_v9 = vadd.f32 %v13726_v44, %v13642_v56 }
 0x30f   : > { %13725 = vst [vmem:[#allocation49_spill] sm:$0xff] %v11674_v46  ;;  %v5078_v30 = vadd.f32 1.0, %v8793_v43  ;;  %v3275_v60 = vmax.f32 %v2901_v28, 0.0  ;;  %v8795_v47 = vpop.eup %8794  ;;  %8814 = vrsqrt.f32 %v4318_v51  ;;  %4053 = vadd.xlane.f32.xlu1 %v3838_v15  ;;  %v3454_v43 = vmul.f32 %v10578_v50, %v3273_v41 }
 0x310   : > { %v4319_v40 = vadd.f32 1e-12, %v4191_v2  ;;  %v2904_v55 = vpop.f32.mrf.mxu1  ;;  %v8797_v31 = vpop.eup %8796  ;;  %3667 = vadd.xlane.f32.xlu0 %v3453_v33  ;;  %v5458_v15 = vmul.f32 %v8795_v47, %v3178_v32  ;;  %v5457_v17 = vmul.f32 %v8791_v35, %v3176_v18  ;;  %v13729_v47 = vld [vmem:[#allocation47_spill] sm:$0xff] }
 0x311   : > { %8816 = vrcp.f32 %v5078_v30  ;;  %v2905_v27 = vadd.f32 %v2904_v55, %v10571_v42  ;;  %v3986_v37 = vpop.xlane.xlu1 %3985  ;;  %v11683_v28 = vpop.xlane.xlu0 %3599  ;;  %v4571_v11 = vmul.f32 %v8797_v31, %v11640_v21  ;;  %v3839_v10 = vmul.f32 %v3275_v60, %v3275_v60  ;;  %v13728_v21 = vld [vmem:[#allocation46_spill] sm:$0xff] }
 0x312   : > { %v8799_v4 = vpop.eup %8798  ;;  %8818 = vpow2.f32 %v7686_v23  ;;  %v4192_v51 = vmul.f32 %v10843_v45, %v3986_v37  ;;  %v11687_v29 = vpop.f32.mrf.mxu1  ;;  %v3180_v23 = vmax.f32 %v11680_v9, 0.0  ;;  %v2667_v33 = vadd.f32 %v13728_v21, %v13642_v56 }
 0x313   : > { %13727 = vst [vmem:[#allocation51_spill] sm:$0xff] %v11687_v29  ;;  %8820 = vrsqrt.f32 %v4319_v40  ;;  %v3277_v2 = vmax.f32 %v2905_v27, 0.0  ;;  %v8801_v30 = vpop.eup %8800  ;;  %v5079_v55 = vadd.f32 1.0, %v8799_v4  ;;  %v7687_v44 = vmul.f32 -1.442695, %v4571_v11  ;;  %3669 = vadd.xlane.f32.xlu1 %v3454_v43 }
 0x314   : > { %v4320_v46 = vadd.f32 1e-12, %v4192_v51  ;;  %v2910_v14 = vpop.f32.mrf.mxu1  ;;  %v4572_v31 = vmul.f32 %v8801_v30, %v11647_v52  ;;  %v8803_v40 = vpop.eup %8802  ;;  %v11698_v32 = vadd.f32 %v13729_v47, %v13642_v56  ;;  %v5566_v35 = vpack.c.bf16 %v5458_v15, %v5457_v17  ;;  %4055 = vadd.xlane.f32.xlu0 %v3839_v10 }
 0x315   : > { %v3840_v37 = vmul.f32 %v3277_v2, %v3277_v2  ;;  %v11694_v29 = vpop.xlane.xlu1 %3601  ;;  %v3988_v41 = vpop.xlane.xlu0 %3987  ;;  %8822 = vpow2.f32 %v7687_v44  ;;  %v2911_v9 = vadd.f32 %v2910_v14, %v10571_v42  ;;  %v11705_v52 = vadd.f32 %v10965_v26, %v13642_v56 }
 0x316   : > { %v11701_v18 = vpop.f32.mrf.mxu1  ;;  %v8805_v27 = vpop.eup %8804  ;;  %v7688_v4 = vmul.f32 -1.442695, %v4572_v31  ;;  %8824 = vrsqrt.f32 %v4320_v46  ;;  %v4193_v11 = vmul.f32 %v10843_v45, %v3988_v41  ;;  %v3455_v30 = vmul.f32 %v10578_v50, %v3275_v60  ;;  %8237 = vmatmul.mubr.bf16.gmra.mxu0 %v5566_v35 }
 0x317   : > { %13730 = vst [vmem:[#allocation54_spill] sm:$0xff] %v11701_v18  ;;  %v8807_v51 = vpop.eup %8806  ;;  %8826 = vrcp.f32 %v5079_v55  ;;  %v5080_v43 = vadd.f32 1.0, %v8805_v27  ;;  %v3279_v17 = vmax.f32 %v2911_v9, 0.0  ;;  %v3182_v15 = vmax.f32 %v2667_v33, 0.0  ;;  %4057 = vadd.xlane.f32.xlu1 %v3840_v37 }
 0x318   : > { %v2914_v10 = vpop.f32.mrf.mxu1  ;;  %v8809_v14 = vpop.eup %8808  ;;  %8828 = vpow2.f32 %v7688_v4  ;;  %v4321_v44 = vadd.f32 1e-12, %v4193_v11  ;;  %v3456_v55 = vmul.f32 %v10578_v50, %v3277_v2  ;;  %3671 = vadd.xlane.f32.xlu0 %v3455_v30  ;;  %v3184_v27 = vmax.f32 %v11698_v32, 0.0 }
 0x319   : > { %v2915_v26 = vadd.f32 %v2914_v10, %v10571_v42  ;;  %v3990_v21 = vpop.xlane.xlu1 %3989  ;;  %v11710_v31 = vpop.xlane.xlu0 %3603  ;;  %8830 = vrcp.f32 %v5080_v43  ;;  %v4573_v46 = vmul.f32 %v8809_v14, %v11659_v0  ;;  %v3841_v41 = vmul.f32 %v3279_v17, %v3279_v17 }
 0x31a   : > { %v11714_v60 = vpop.f32.mrf.mxu1  ;;  %v8811_v47 = vpop.eup %8810  ;;  %8832 = vrsqrt.f32 %v4321_v44  ;;  %v4194_v35 = vmul.f32 %v10843_v45, %v3990_v21  ;;  %v5460_v37 = vmul.f32 %v8807_v51, %v3182_v15  ;;  %v3186_v4 = vmax.f32 %v11705_v52, 0.0  ;;  %v13732_v15 = vld [vmem:[#allocation7_spill] sm:$0xff] }
 0x31b   : > { %13731 = vst [vmem:[#allocation64_spill] sm:$0xff] %v11714_v60  ;;  %v3281_v33 = vmax.f32 %v2915_v26, 0.0  ;;  %v8813_v9 = vpop.eup %8812  ;;  %v7689_v11 = vmul.f32 -1.442695, %v4573_v46  ;;  %v5459_v43 = vmul.f32 %v8803_v40, %v3180_v23  ;;  %v11721_v2 = vadd.f32 %v10986_v12, %v13642_v56  ;;  %3673 = vadd.xlane.f32.xlu1 %v3456_v55 }
 0x31c   : > { %v2920_v0 = vpop.f32.mrf.mxu1  ;;  %v8815_v10 = vpop.eup %8814  ;;  %v5081_v30 = vadd.f32 1.0, %v8813_v9  ;;  %v4322_v44 = vadd.f32 1e-12, %v4194_v35  ;;  %v11727_v32 = vadd.f32 %v13732_v15, %v13642_v56  ;;  %4059 = vadd.xlane.f32.xlu0 %v3841_v41  ;;  %v3457_v46 = vmul.f32 %v10578_v50, %v3279_v17 }
 0x31d   : > { %v3842_v14 = vmul.f32 %v3281_v33, %v3281_v33  ;;  %v11723_v26 = vpop.xlane.xlu1 %3605  ;;  %8834 = vpow2.f32 %v7689_v11  ;;  %v4574_v23 = vmul.f32 %v8815_v10, %v11671_v22  ;;  %v5567_v40 = vpack.c.bf16 %v5460_v37, %v5459_v43  ;;  %v3992_v52 = vpop.xlane.xlu0 %3991 }
 0x31e   : > { %v8817_v51 = vpop.eup %8816  ;;  %v11730_v21 = vpop.f32.mrf.mxu1  ;;  %v2921_v55 = vadd.f32 %v2920_v0, %v10571_v42  ;;  %v4195_v35 = vmul.f32 %v10843_v45, %v3992_v52  ;;  %v5461_v9 = vmul.f32 %v8811_v47, %v3184_v27  ;;  %8836 = vrsqrt.f32 %v4322_v44 }
 0x31f   : > { %v8819_v12 = vpop.eup %8818  ;;  %v7690_v15 = vmul.f32 -1.442695, %v4574_v23  ;;  %8240 = vmatprep.mubr.bf16.mxu0 %v5567_v40  ;;  %v5462_v22 = vmul.f32 %v8817_v51, %v3186_v4  ;;  %8838 = vrcp.f32 %v5081_v30  ;;  %4061 = vadd.xlane.f32.xlu1 %v3842_v14 }
 0x320   : > { %v8821_v60 = vpop.eup %8820  ;;  %v5082_v18 = vadd.f32 1.0, %v8819_v12  ;;  %v2924_v11 = vpop.f32.mrf.mxu1  ;;  %v3283_v37 = vmax.f32 %v2921_v55, 0.0  ;;  %v4323_v43 = vadd.f32 1e-12, %v4195_v35  ;;  %3675 = vadd.xlane.f32.xlu0 %v3457_v46 }
 0x321   : > { %v4575_v41 = vmul.f32 %v8821_v60, %v11683_v28  ;;  %v3994_v10 = vpop.xlane.xlu1 %3993  ;;  %v2925_v17 = vadd.f32 %v2924_v11, %v10571_v42  ;;  %v11738_v27 = vpop.xlane.xlu0 %3607  ;;  %v5568_v0 = vpack.c.bf16 %v5462_v22, %v5461_v9  ;;  %v3458_v28 = vmul.f32 %v10578_v50, %v3281_v33  ;;  %v8528_v33 = vld [vmem:[%s13380_s8 + $0x18] sm:$0xff]  }
 0x322   : > { %8840 = vrcp.f32 %v5082_v18  ;;  %v4196_v47 = vmul.f32 %v10843_v45, %v3994_v10  ;;  %v11740_v44 = vpop.f32.mrf.mxu1  ;;  %v8823_v23 = vpop.eup %8822  ;;  %v3843_v60 = vmul.f32 %v3283_v37, %v3283_v37  ;;  %v3188_v9 = vmax.f32 %v11721_v2, 0.0  ;;  %v13733_v11 = vld [vmem:[#allocation50_spill] sm:$0xff]  ;;  %8328 = vmatprep.subr.bf16.mxu0 %v8528_v33 }
 0x323   : > { %8842 = vpow2.f32 %v7690_v15  ;;  %v7691_v4 = vmul.f32 -1.442695, %v4575_v41  ;;  %v8825_v30 = vpop.eup %8824  ;;  %v5083_v14 = vadd.f32 1.0, %v8823_v23  ;;  %v3285_v18 = vmax.f32 %v2925_v17, 0.0  ;;  %8241 = vmatmul.mubr.bf16.gmra.mxu0 %v5568_v0  ;;  %3677 = vadd.xlane.f32.xlu1 %v3458_v28 }
 0x324   : > { %8844 = vrsqrt.f32 %v4323_v43  ;;  %v4324_v51 = vadd.f32 1e-12, %v4196_v47  ;;  %v2930_v40 = vpop.f32.mrf.mxu1  ;;  %v8827_v52 = vpop.eup %8826  ;;  %v4576_v12 = vmul.f32 %v8825_v30, %v11694_v29  ;;  %v3190_v15 = vmax.f32 %v11727_v32, 0.0  ;;  %4063 = vadd.xlane.f32.xlu0 %v3843_v60  ;;  %8329 = vmatpush3.bf16.msra.mxu0 %v8528_v33  ;;  %v13735_v60 = vld [vmem:[#allocation9_spill] sm:$0xff] }
 0x325   : > { %8846 = vpow2.f32 %v7691_v4  ;;  %v2931_v46 = vadd.f32 %v2930_v40, %v10571_v42  ;;  %v11745_v55 = vpop.xlane.xlu1 %3609  ;;  %v8829_v35 = vpop.eup %8828  ;;  %v11754_v22 = vadd.f32 %v13733_v11, %v13642_v56  ;;  %v3844_v41 = vmul.f32 %v3285_v18, %v3285_v18 }
 0x326   : > { %v3996_v29 = vpop.xlane.xlu0 %3995  ;;  %v11756_v43 = vpop.f32.mrf.mxu1  ;;  %v5084_v17 = vadd.f32 1.0, %v8829_v35  ;;  %v7692_v47 = vmul.f32 -1.442695, %v4576_v12  ;;  %v3459_v0 = vmul.f32 %v10578_v50, %v3283_v37  ;;  %8848 = vrsqrt.f32 %v4324_v51 }
 0x327   : > { %13734 = vst [vmem:[#allocation57_spill] sm:$0xff] %v11756_v43  ;;  %v8831_v10 = vpop.eup %8830  ;;  %8850 = vrcp.f32 %v5083_v14  ;;  %v3287_v2 = vmax.f32 %v2931_v46, 0.0  ;;  %v4197_v32 = vmul.f32 %v10843_v45, %v3996_v29  ;;  %v2697_v30 = vadd.f32 %v13735_v60, %v13642_v56  ;;  %4065 = vadd.xlane.f32.xlu1 %v3844_v41 }
 0x328   : > { %v8833_v23 = vpop.eup %8832  ;;  %v2934_v4 = vpop.f32.mrf.mxu1  ;;  %v5464_v28 = vmul.f32 %v8831_v10, %v3190_v15  ;;  %8852 = vrcp.f32 %v5084_v17  ;;  %3679 = vadd.xlane.f32.xlu0 %v3459_v0  ;;  %v5463_v46 = vmul.f32 %v8827_v52, %v3188_v9  ;;  %v3460_v29 = vmul.f32 %v10578_v50, %v3285_v18 }
 0x329   : > { %v4577_v40 = vmul.f32 %v8833_v23, %v11710_v31  ;;  %v2935_v12 = vadd.f32 %v2934_v4, %v10571_v42  ;;  %v3998_v37 = vpop.xlane.xlu1 %3997  ;;  %8854 = vpow2.f32 %v7692_v47  ;;  %v3845_v51 = vmul.f32 %v3287_v2, %v3287_v2 }
 0x32a   : > { %v4325_v35 = vadd.f32 1e-12, %v4197_v32  ;;  %v11764_v14 = vpop.xlane.xlu0 %3611  ;;  %v11766_v11 = vpop.f32.mrf.mxu1  ;;  %v4198_v31 = vmul.f32 %v10843_v45, %v3998_v37  ;;  %v5569_v17 = vpack.c.bf16 %v5464_v28, %v5463_v46  ;;  %v3194_v9 = vmax.f32 %v2697_v30, 0.0 }
 0x32b   : > { %13736 = vst [vmem:[#allocation59_spill] sm:$0xff] %v11766_v11  ;;  %v8835_v33 = vpop.eup %8834  ;;  %v7693_v15 = vmul.f32 -1.442695, %v4577_v40  ;;  %v3289_v10 = vmax.f32 %v2935_v12, 0.0  ;;  %3681 = vadd.xlane.f32.xlu1 %v3460_v29  ;;  %v3192_v37 = vmax.f32 %v11754_v22, 0.0 }
 0x32c   : > { %v5085_v41 = vadd.f32 1.0, %v8835_v33  ;;  %8856 = vrsqrt.f32 %v4325_v35  ;;  %v2940_v23 = vpop.f32.mrf.mxu1  ;;  %v8837_v47 = vpop.eup %8836  ;;  %v4326_v32 = vadd.f32 1e-12, %v4198_v31  ;;  %8244 = vmatprep.mubr.bf16.mxu0 %v5569_v17  ;;  %4067 = vadd.xlane.f32.xlu0 %v3845_v51  ;;  %v13738_v35 = vld [vmem:[#allocation8_spill] sm:$0xff] }
 0x32d   : > { %v3846_v4 = vmul.f32 %v3289_v10, %v3289_v10  ;;  %v11770_v0 = vpop.xlane.xlu1 %3613  ;;  %v8839_v52 = vpop.eup %8838  ;;  %8858 = vpow2.f32 %v7693_v15  ;;  %v4578_v60 = vmul.f32 %v8837_v47, %v11723_v26  ;;  %v2941_v18 = vadd.f32 %v2940_v23, %v10571_v42 }
 0x32e   : > { %v4000_v40 = vpop.xlane.xlu0 %3999  ;;  %v11774_v12 = vpop.f32.mrf.mxu1  ;;  %v11779_v46 = vadd.f32 %v13738_v35, %v13642_v56  ;;  %8860 = vrsqrt.f32 %v4326_v32  ;;  %v3461_v26 = vmul.f32 %v10578_v50, %v3287_v2  ;;  %v13739_v32 = vld [vmem:[#allocation52_spill] sm:$0xff] }
 0x32f   : > { %13737 = vst [vmem:[#allocation61_spill] sm:$0xff] %v11774_v12  ;;  %v8841_v28 = vpop.eup %8840  ;;  %v4199_v30 = vmul.f32 %v10843_v45, %v4000_v40  ;;  %8862 = vrcp.f32 %v5085_v41  ;;  %v3291_v51 = vmax.f32 %v2941_v18, 0.0  ;;  %v7694_v23 = vmul.f32 -1.442695, %v4578_v60  ;;  %4069 = vadd.xlane.f32.xlu1 %v3846_v4 }
 0x330   : > { %v8843_v33 = vpop.eup %8842  ;;  %v2944_v15 = vpop.f32.mrf.mxu1  ;;  %v5466_v29 = vmul.f32 %v8841_v28, %v3194_v9  ;;  %v2707_v11 = vadd.f32 %v13739_v32, %v13642_v56  ;;  %3683 = vadd.xlane.f32.xlu0 %v3461_v26  ;;  %v5465_v18 = vmul.f32 %v8839_v52, %v3192_v37  ;;  %v3462_v60 = vmul.f32 %v10578_v50, %v3289_v10 }
 0x331   : > { %v8845_v31 = vpop.eup %8844  ;;  %v5086_v17 = vadd.f32 1.0, %v8843_v33  ;;  %v4327_v47 = vadd.f32 1e-12, %v4199_v30  ;;  %v2945_v22 = vadd.f32 %v2944_v15, %v10571_v42  ;;  %v4002_v12 = vpop.xlane.xlu1 %4001  ;;  %v3847_v41 = vmul.f32 %v3291_v51, %v3291_v51 }
 0x332   : > { %v8847_v35 = vpop.eup %8846  ;;  %v4579_v40 = vmul.f32 %v8845_v31, %v11738_v27  ;;  %v11787_v2 = vpop.xlane.xlu0 %3615  ;;  %v4200_v28 = vmul.f32 %v10843_v45, %v4002_v12  ;;  %v5570_v33 = vpack.c.bf16 %v5466_v29, %v5465_v18  ;;  %v3198_v31 = vmax.f32 %v2707_v11, 0.0 }
 0x333   : > { %v11789_v9 = vpop.f32.mrf.mxu1  ;;  %8864 = vrcp.f32 %v5086_v17  ;;  %v3293_v4 = vmax.f32 %v2945_v22, 0.0  ;;  %v8849_v30 = vpop.eup %8848  ;;  %v5087_v43 = vadd.f32 1.0, %v8847_v35  ;;  %3685 = vadd.xlane.f32.xlu1 %v3462_v60  ;;  %v3463_v11 = vmul.f32 %v10578_v50, %v3291_v51 }
 0x334   : > { %8866 = vrsqrt.f32 %v4327_v47  ;;  %v8851_v32 = vpop.eup %8850  ;;  %v4580_v27 = vmul.f32 %v8849_v30, %v11745_v55  ;;  %v7695_v17 = vmul.f32 -1.442695, %v4579_v40  ;;  %v4328_v10 = vadd.f32 1e-12, %v4200_v28  ;;  %8245 = vmatmul.mubr.bf16.gmra.mxu0 %v5570_v33  ;;  %4071 = vadd.xlane.f32.xlu0 %v3847_v41  ;;  %v13741_v55 = vld [vmem:[#allocation53_spill] sm:$0xff] }
 0x335   : > { %v2950_v15 = vpop.f32.mrf.mxu1  ;;  %8868 = vpow2.f32 %v7694_v23  ;;  %v3848_v26 = vmul.f32 %v3293_v4, %v3293_v4  ;;  %v11794_v52 = vpop.xlane.xlu1 %3617  ;;  %v3196_v23 = vmax.f32 %v11779_v46, 0.0  ;;  %v2713_v35 = vadd.f32 %v13741_v55, %v13642_v56 }
 0x336   : > { %v8853_v37 = vpop.eup %8852  ;;  %v2951_v12 = vadd.f32 %v2950_v15, %v10571_v42  ;;  %v4004_v47 = vpop.xlane.xlu0 %4003  ;;  %v7696_v18 = vmul.f32 -1.442695, %v4580_v27  ;;  %8870 = vrsqrt.f32 %v4328_v10 }
 0x337   : > { %v11797_v29 = vpop.f32.mrf.mxu1  ;;  %v8855_v22 = vpop.eup %8854  ;;  %v4201_v60 = vmul.f32 %v10843_v45, %v4004_v47  ;;  %v5468_v41 = vmul.f32 %v8853_v37, %v3198_v31  ;;  %8872 = vrcp.f32 %v5087_v43  ;;  %4073 = vadd.xlane.f32.xlu1 %v3848_v26  ;;  %v5467_v51 = vmul.f32 %v8851_v32, %v3196_v23 }
 0x338   : > { %13740 = vst [vmem:[#allocation63_spill] sm:$0xff] %v11797_v29  ;;  %v3295_v40 = vmax.f32 %v2951_v12, 0.0  ;;  %v5088_v33 = vadd.f32 1.0, %v8855_v22  ;;  %8874 = vpow2.f32 %v7695_v17  ;;  %3687 = vadd.xlane.f32.xlu0 %v3463_v11  ;;  %v3464_v43 = vmul.f32 %v10578_v50, %v3293_v4  ;;  %v13743_v22 = vld [vmem:[#allocation55_spill] sm:$0xff] }
 0x339   : > { %v2954_v28 = vpop.f32.mrf.mxu1  ;;  %v8857_v30 = vpop.eup %8856  ;;  %v4329_v15 = vadd.f32 1e-12, %v4201_v60  ;;  %8876 = vpow2.f32 %v7696_v18  ;;  %v2717_v17 = vadd.f32 %v13743_v22, %v13642_v56 }
 0x33a   : > { %v2955_v29 = vadd.f32 %v2954_v28, %v10571_v42  ;;  %v4006_v46 = vpop.xlane.xlu1 %4005  ;;  %v4581_v55 = vmul.f32 %v8857_v30, %v11764_v14  ;;  %v3849_v27 = vmul.f32 %v3295_v40, %v3295_v40  ;;  %v11806_v47 = vpop.xlane.xlu0 %3619  ;;  %v5571_v14 = vpack.c.bf16 %v5468_v41, %v5467_v51 }
 0x33b   : > { %v11808_v10 = vpop.f32.mrf.mxu1  ;;  %v8859_v12 = vpop.eup %8858  ;;  %v4202_v26 = vmul.f32 %v10843_v45, %v4006_v46  ;;  %8878 = vrsqrt.f32 %v4329_v15  ;;  %3689 = vadd.xlane.f32.xlu1 %v3464_v43  ;;  %v3200_v15 = vmax.f32 %v2713_v35, 0.0  ;;  %v3465_v43 = vmul.f32 %v10578_v50, %v3295_v40 }
 0x33c   : > { %13742 = vst [vmem:[#allocation65_spill] sm:$0xff] %v11808_v10  ;;  %v3297_v37 = vmax.f32 %v2955_v29, 0.0  ;;  %v8861_v31 = vpop.eup %8860  ;;  %8880 = vrcp.f32 %v5088_v33  ;;  %v7697_v23 = vmul.f32 -1.442695, %v4581_v55  ;;  %8248 = vmatprep.mubr.bf16.mxu0 %v5571_v14  ;;  %4075 = vadd.xlane.f32.xlu0 %v3849_v27  ;;  %v3202_v33 = vmax.f32 %v2717_v17, 0.0 }
 0x33d   : > { %v2960_v60 = vpop.f32.mrf.mxu1  ;;  %v8863_v11 = vpop.eup %8862  ;;  %v4582_v18 = vmul.f32 %v8861_v31, %v11770_v0  ;;  %v4330_v4 = vadd.f32 1e-12, %v4202_v26  ;;  %v5089_v0 = vadd.f32 1.0, %v8859_v12 }
 0x33e   : > { %v3850_v28 = vmul.f32 %v3297_v37, %v3297_v37  ;;  %v11814_v32 = vpop.xlane.xlu1 %3621  ;;  %v2961_v29 = vadd.f32 %v2960_v60, %v10571_v42  ;;  %v4008_v30 = vpop.xlane.xlu0 %4007  ;;  %v5469_v14 = vmul.f32 %v8863_v11, %v3200_v15 }
 0x33f   : > { %v11818_v46 = vpop.f32.mrf.mxu1  ;;  %v4203_v41 = vmul.f32 %v10843_v45, %v4008_v30  ;;  %8882 = vrsqrt.f32 %v4330_v4  ;;  %v7698_v35 = vmul.f32 -1.442695, %v4582_v18  ;;  %v3466_v30 = vmul.f32 %v10578_v50, %v3297_v37 }
 0x340   : > { %13744 = vst [vmem:[#allocation66_spill] sm:$0xff] %v11818_v46  ;;  %v8865_v51 = vpop.eup %8864  ;;  %v3299_v22 = vmax.f32 %v2961_v29, 0.0  ;;  %4077 = vadd.xlane.f32.xlu1 %v3850_v28  ;;  %8884 = vpow2.f32 %v7697_v23  ;;  %3691 = vadd.xlane.f32.xlu0 %v3465_v43  ;;  %v2723_v43 = vadd.f32 %v11154_v61, %v13642_v56 }
 0x341   : > { %v2964_v55 = vpop.f32.mrf.mxu1  ;;  %v8867_v10 = vpop.eup %8866  ;;  %v4331_v26 = vadd.f32 1e-12, %v4203_v41  ;;  %v5470_v28 = vmul.f32 %v8865_v51, %v3202_v33 }
 0x342   : > { %v2965_v27 = vadd.f32 %v2964_v55, %v10571_v42  ;;  %v4010_v31 = vpop.xlane.xlu1 %4009  ;;  %v8869_v60 = vpop.eup %8868  ;;  %v3851_v46 = vmul.f32 %v3299_v22, %v3299_v22  ;;  %v4583_v29 = vmul.f32 %v8867_v10, %v11787_v2  ;;  %v2727_v2 = vadd.f32 %v11168_v58, %v13642_v56 }
 0x343   : > { %v11824_v17 = vpop.xlane.xlu0 %3623  ;;  %v11826_v40 = vpop.f32.mrf.mxu1  ;;  %8886 = vrsqrt.f32 %v4331_v26  ;;  %v4204_v12 = vmul.f32 %v10843_v45, %v4010_v31  ;;  %v5090_v11 = vadd.f32 1.0, %v8869_v60  ;;  %v5572_v18 = vpack.c.bf16 %v5470_v28, %v5469_v14 }
 0x344   : > { %v3301_v4 = vmax.f32 %v2965_v27, 0.0  ;;  %v8871_v41 = vpop.eup %8870  ;;  %3693 = vadd.xlane.f32.xlu1 %v3466_v30  ;;  %8888 = vpow2.f32 %v7698_v35  ;;  %4079 = vadd.xlane.f32.xlu0 %v3851_v46  ;;  %v7699_v60 = vmul.f32 -1.442695, %v4583_v29 }
 0x345   : > { %v4332_v23 = vadd.f32 1e-12, %v4204_v12  ;;  %v2970_v37 = vpop.f32.mrf.mxu1  ;;  %v8873_v55 = vpop.eup %8872  ;;  %v4584_v26 = vmul.f32 %v8871_v41, %v11794_v52  ;;  %8890 = vrcp.f32 %v5089_v0  ;;  %8249 = vmatmul.mubr.bf16.gmra.mxu0 %v5572_v18  ;;  %v3467_v52 = vmul.f32 %v10578_v50, %v3299_v22 }
 0x346   : > { %v3852_v15 = vmul.f32 %v3301_v4, %v3301_v4  ;;  %v11833_v27 = vpop.xlane.xlu1 %3625  ;;  %v8875_v33 = vpop.eup %8874  ;;  %v2971_v10 = vadd.f32 %v2970_v37, %v10571_v42  ;;  %v3204_v0 = vmax.f32 %v2723_v43, 0.0  ;;  %v3206_v37 = vmax.f32 %v2727_v2, 0.0 }
 0x347   : > { %v4012_v51 = vpop.xlane.xlu0 %4011  ;;  %v11839_v14 = vpop.f32.mrf.mxu1  ;;  %8892 = vrsqrt.f32 %v4332_v23  ;;  %v7700_v28 = vmul.f32 -1.442695, %v4584_v26  ;;  %v3468_v29 = vmul.f32 %v10578_v50, %v3301_v4 }
 0x348   : > { %v4205_v31 = vmul.f32 %v10843_v45, %v4012_v51  ;;  %13745 = vst [vmem:[#allocation69_spill] sm:$0xff] %v11839_v14  ;;  %v8877_v61 = vpop.eup %8876  ;;  %8894 = vrcp.f32 %v5090_v11  ;;  %v3303_v35 = vmax.f32 %v2971_v10, 0.0  ;;  %4081 = vadd.xlane.f32.xlu1 %v3852_v15  ;;  %3695 = vadd.xlane.f32.xlu0 %v3467_v52  ;;  %v5091_v51 = vadd.f32 1.0, %v8875_v33 }
 0x349   : > { %v8879_v46 = vpop.eup %8878  ;;  %v2974_v12 = vpop.f32.mrf.mxu1  ;;  %v5092_v23 = vadd.f32 1.0, %v8877_v61  ;;  %8896 = vpow2.f32 %v7699_v60  ;;  %v5471_v15 = vmul.f32 %v8873_v55, %v3204_v0 }
 0x34a   : > { %v4333_v30 = vadd.f32 1e-12, %v4205_v31  ;;  %v8881_v58 = vpop.eup %8880  ;;  %v4014_v41 = vpop.xlane.xlu1 %4013  ;;  %v3853_v14 = vmul.f32 %v3303_v35, %v3303_v35  ;;  %v4585_v11 = vmul.f32 %v8879_v46, %v11806_v47  ;;  %v2975_v43 = vadd.f32 %v2974_v12, %v10571_v42 }
 0x34b   : > { %v11842_v18 = vpop.xlane.xlu0 %3627  ;;  %v11845_v22 = vpop.f32.mrf.mxu1  ;;  %v4206_v26 = vmul.f32 %v10843_v45, %v4014_v41  ;;  %v5472_v31 = vmul.f32 %v8881_v58, %v3206_v37  ;;  %v3469_v12 = vmul.f32 %v10578_v50, %v3303_v35 }
 0x34c   : > { %v8883_v10 = vpop.eup %8882  ;;  %8898 = vrsqrt.f32 %v4333_v30  ;;  %3697 = vadd.xlane.f32.xlu1 %v3468_v29  ;;  %4083 = vadd.xlane.f32.xlu0 %v3853_v14  ;;  %v3305_v60 = vmax.f32 %v2975_v43, 0.0  ;;  %v2733_v14 = vadd.f32 %v11184_v48, %v13642_v56  ;;  %v7701_v0 = vmul.f32 -1.442695, %v4585_v11 }
 0x34d   : > { %v2980_v2 = vpop.f32.mrf.mxu1  ;;  %8900 = vpow2.f32 %v7700_v28  ;;  %v8885_v52 = vpop.eup %8884  ;;  %v4586_v61 = vmul.f32 %v8883_v10, %v11814_v32  ;;  %v4334_v47 = vadd.f32 1e-12, %v4206_v26  ;;  %v5573_v55 = vpack.c.bf16 %v5472_v31, %v5471_v15  ;;  %v13747_v32 = vld [vmem:[#allocation56_spill] sm:$0xff] }
 0x34e   : > { %v11850_v4 = vpop.xlane.xlu1 %3629  ;;  %8902 = vrcp.f32 %v5091_v51  ;;  %v2981_v58 = vadd.f32 %v2980_v2, %v10571_v42  ;;  %v3854_v28 = vmul.f32 %v3305_v60, %v3305_v60  ;;  %v2737_v37 = vadd.f32 %v13747_v32, %v13642_v56 }
 0x34f   : > { %v4016_v33 = vpop.xlane.xlu0 %4015  ;;  %v11853_v46 = vpop.f32.mrf.mxu1  ;;  %8904 = vrcp.f32 %v5092_v23  ;;  %8252 = vmatprep.mubr.bf16.mxu0 %v5573_v55  ;;  %v5093_v29 = vadd.f32 1.0, %v8885_v52  ;;  %v7702_v26 = vmul.f32 -1.442695, %v4586_v61 }
 0x350   : > { %13746 = vst [vmem:[#allocation79_spill] sm:$0xff] %v11853_v46  ;;  %v8887_v30 = vpop.eup %8886  ;;  %v3307_v15 = vmax.f32 %v2981_v58, 0.0  ;;  %v4207_v10 = vmul.f32 %v10843_v45, %v4016_v33  ;;  %3699 = vadd.xlane.f32.xlu0 %v3469_v12  ;;  %8906 = vrsqrt.f32 %v4334_v47  ;;  %4085 = vadd.xlane.f32.xlu1 %v3854_v28  ;;  %v3208_v12 = vmax.f32 %v2733_v14, 0.0 }
 0x351   : > { %v2984_v41 = vpop.f32.mrf.mxu1  ;;  %v8889_v43 = vpop.eup %8888  ;;  %v4587_v48 = vmul.f32 %v8887_v30, %v11824_v17  ;;  %8908 = vpow2.f32 %v7701_v0  ;;  %v3470_v58 = vmul.f32 %v10578_v50, %v3305_v60 }
 0x352   : > { %v4018_v51 = vpop.xlane.xlu1 %4017  ;;  %v2985_v23 = vadd.f32 %v2984_v41, %v10571_v42  ;;  %v8891_v31 = vpop.eup %8890  ;;  %v3855_v2 = vmul.f32 %v3307_v15, %v3307_v15  ;;  %v4335_v52 = vadd.f32 1e-12, %v4207_v10  ;;  %8910 = vrcp.f32 %v5093_v29 }
 0x353   : > { %v11862_v35 = vpop.xlane.xlu0 %3631  ;;  %v11866_v11 = vpop.f32.mrf.mxu1  ;;  %v4208_v55 = vmul.f32 %v10843_v45, %v4018_v51  ;;  %v5094_v17 = vadd.f32 1.0, %v8889_v43  ;;  %v3210_v41 = vmax.f32 %v2737_v37, 0.0  ;;  %8912 = vpow2.f32 %v7702_v26 }
 0x354   : > { %v8893_v33 = vpop.eup %8892  ;;  %v3309_v32 = vmax.f32 %v2985_v23, 0.0  ;;  %4087 = vadd.xlane.f32.xlu0 %v3855_v2  ;;  %v7703_v10 = vmul.f32 -1.442695, %v4587_v48  ;;  %3701 = vadd.xlane.f32.xlu1 %v3470_v58  ;;  %v3471_v60 = vmul.f32 %v10578_v50, %v3307_v15  ;;  %8914 = vrsqrt.f32 %v4335_v52 }
 0x355   : > { %v2990_v61 = vpop.f32.mrf.mxu1  ;;  %v8895_v46 = vpop.eup %8894  ;;  %v4588_v47 = vmul.f32 %v8893_v33, %v11833_v27  ;;  %v4336_v30 = vadd.f32 1e-12, %v4208_v55  ;;  %v5473_v29 = vmul.f32 %v8891_v31, %v3208_v12  ;;  %v2743_v58 = vadd.f32 %v11217_v19, %v13642_v56 }
 0x356   : > { %v11871_v28 = vpop.xlane.xlu1 %3633  ;;  %v3856_v51 = vmul.f32 %v3309_v32, %v3309_v32  ;;  %v8897_v23 = vpop.eup %8896  ;;  %v5474_v43 = vmul.f32 %v8895_v46, %v3210_v41  ;;  %v2991_v37 = vadd.f32 %v2990_v61, %v10571_v42  ;;  %v2747_v15 = vadd.f32 %v11232_v59, %v13642_v56 }
 0x357   : > { %v4020_v14 = vpop.xlane.xlu0 %4019  ;;  %v11873_v0 = vpop.f32.mrf.mxu1  ;;  %8916 = vrsqrt.f32 %v4336_v30  ;;  %v7704_v2 = vmul.f32 -1.442695, %v4588_v47  ;;  %v3472_v30 = vmul.f32 %v10578_v50, %v3309_v32  ;;  %v5095_v19 = vadd.f32 1.0, %v8897_v23 }
 0x358   : > { %13748 = vst [vmem:[#allocation71_spill] sm:$0xff] %v11873_v0  ;;  %8918 = vrcp.f32 %v5094_v17  ;;  %v4209_v26 = vmul.f32 %v10843_v45, %v4020_v14  ;;  %3703 = vadd.xlane.f32.xlu0 %v3471_v60  ;;  %v5574_v31 = vpack.c.bf16 %v5474_v43, %v5473_v29  ;;  %4089 = vadd.xlane.f32.xlu1 %v3856_v51  ;;  %v3311_v12 = vmax.f32 %v2991_v37, 0.0 }
 0x359   : > { %v2994_v27 = vpop.f32.mrf.mxu1  ;;  %v8899_v55 = vpop.eup %8898  ;;  %8920 = vpow2.f32 %v7703_v10  ;;  %v3212_v60 = vmax.f32 %v2743_v58, 0.0  ;;  %v3214_v29 = vmax.f32 %v2747_v15, 0.0 }
 0x35a   : > { %v4022_v48 = vpop.xlane.xlu1 %4021  ;;  %v8901_v33 = vpop.eup %8900  ;;  %v4337_v61 = vadd.f32 1e-12, %v4209_v26  ;;  %v4589_v47 = vmul.f32 %v8899_v55, %v11842_v18  ;;  %8253 = vmatmul.mubr.bf16.gmra.mxu0 %v5574_v31  ;;  %8922 = vpow2.f32 %v7704_v2  ;;  %v3857_v14 = vmul.f32 %v3311_v12, %v3311_v12 }
 0x35b   : > { %v11882_v46 = vpop.xlane.xlu0 %3635  ;;  %v11884_v52 = vpop.f32.mrf.mxu1  ;;  %v2995_v59 = vadd.f32 %v2994_v27, %v10571_v42  ;;  %v5096_v43 = vadd.f32 1.0, %v8901_v33  ;;  %v2753_v18 = vadd.f32 %v11248_v54, %v13642_v56  ;;  %v4210_v23 = vmul.f32 %v10843_v45, %v4022_v48 }
 0x35c   : > { %13749 = vst [vmem:[#allocation72_spill] sm:$0xff] %v11884_v52  ;;  %v8903_v17 = vpop.eup %8902  ;;  %8924 = vrsqrt.f32 %v4337_v61  ;;  %3705 = vadd.xlane.f32.xlu1 %v3472_v30  ;;  %4091 = vadd.xlane.f32.xlu0 %v3857_v14  ;;  %v7705_v27 = vmul.f32 -1.442695, %v4589_v47  ;;  %v3473_v33 = vmul.f32 %v10578_v50, %v3311_v12 }
 0x35d   : > { %v8905_v41 = vpop.eup %8904  ;;  %v3000_v10 = vpop.f32.mrf.mxu1  ;;  %v3313_v32 = vmax.f32 %v2995_v59, 0.0  ;;  %v5475_v31 = vmul.f32 %v8903_v17, %v3212_v60  ;;  %8926 = vrcp.f32 %v5095_v19  ;;  %v4338_v30 = vadd.f32 1e-12, %v4210_v23 }
 0x35e   : > { %v11889_v51 = vpop.xlane.xlu1 %3637  ;;  %v8907_v26 = vpop.eup %8906  ;;  %v5476_v58 = vmul.f32 %v8905_v41, %v3214_v29  ;;  %8928 = vrcp.f32 %v5096_v43  ;;  %v3001_v17 = vadd.f32 %v3000_v10, %v10571_v42  ;;  %v3216_v43 = vmax.f32 %v2753_v18, 0.0 }
 0x35f   : > { %v4024_v37 = vpop.xlane.xlu0 %4023  ;;  %v11894_v55 = vpop.f32.mrf.mxu1  ;;  %v4590_v2 = vmul.f32 %v8907_v26, %v11850_v4  ;;  %v3858_v61 = vmul.f32 %v3313_v32, %v3313_v32  ;;  %v2757_v4 = vadd.f32 %v11263_v25, %v13642_v56  ;;  %8930 = vrsqrt.f32 %v4338_v30 }
 0x360   : > { %13750 = vst [vmem:[#allocation58_spill] sm:$0xff] %v11894_v55  ;;  %v8909_v15 = vpop.eup %8908  ;;  %v5575_v48 = vpack.c.bf16 %v5476_v58, %v5475_v31  ;;  %v4211_v47 = vmul.f32 %v10843_v45, %v4024_v37  ;;  %3707 = vadd.xlane.f32.xlu0 %v3473_v33  ;;  %8932 = vpow2.f32 %v7705_v27  ;;  %v3474_v25 = vmul.f32 %v10578_v50, %v3313_v32 }
 0x361   : > { %v3004_v52 = vpop.f32.mrf.mxu1  ;;  %v8911_v54 = vpop.eup %8910  ;;  %v7706_v59 = vmul.f32 -1.442695, %v4590_v2  ;;  %4093 = vadd.xlane.f32.xlu1 %v3858_v61  ;;  %v3315_v26 = vmax.f32 %v3001_v17, 0.0  ;;  %v5097_v2 = vadd.f32 1.0, %v8909_v15  ;;  %v3218_v61 = vmax.f32 %v2757_v4, 0.0  ;;  %v8529_v15 = vld [vmem:[%s13380_s8 + $0x10] sm:$0xff]  }
 0x362   : > { %v4026_v0 = vpop.xlane.xlu1 %4025  ;;  %v8913_v55 = vpop.eup %8912  ;;  %8256 = vmatprep.mubr.bf16.mxu0 %v5575_v48  ;;  %v3005_v19 = vadd.f32 %v3004_v52, %v10571_v42  ;;  %v4339_v31 = vadd.f32 1e-12, %v4211_v47  ;;  %v5477_v4 = vmul.f32 %v8911_v54, %v3216_v43  ;;  %8330 = vmatprep.subr.bf16.mxu0 %v8529_v15 }
 0x363   : > { %v11898_v14 = vpop.xlane.xlu0 %3639  ;;  %v11904_v12 = vpop.f32.mrf.mxu1  ;;  %v4212_v60 = vmul.f32 %v10843_v45, %v4026_v0  ;;  %8934 = vpow2.f32 %v7706_v59  ;;  %v3859_v30 = vmul.f32 %v3315_v26, %v3315_v26  ;;  %v5098_v32 = vadd.f32 1.0, %v8913_v55  ;;  %8331 = vmatpush3.bf16.msra.mxu0 %v8529_v15 }
 0x364   : > { %v8915_v41 = vpop.eup %8914  ;;  %v3317_v58 = vmax.f32 %v3005_v19, 0.0  ;;  %8936 = vrsqrt.f32 %v4339_v31  ;;  %v2763_v59 = vadd.f32 %v11284_v36, %v13642_v56  ;;  %v2767_v55 = vadd.f32 %v11295_v49, %v13642_v56 }
 0x365   : > { %v8917_v29 = vpop.eup %8916  ;;  %v3010_v23 = vpop.f32.mrf.mxu1  ;;  %v4591_v52 = vmul.f32 %v8915_v41, %v11862_v35  ;;  %v4340_v0 = vadd.f32 1e-12, %v4212_v60  ;;  %3709 = vadd.xlane.f32.xlu1 %v3474_v25  ;;  %4095 = vadd.xlane.f32.xlu0 %v3859_v30  ;;  %8938 = vrcp.f32 %v5097_v2  ;;  %v3475_v36 = vmul.f32 %v10578_v50, %v3315_v26 }
 0x366   : > { %v11909_v10 = vpop.xlane.xlu1 %3641  ;;  %v8919_v37 = vpop.eup %8918  ;;  %v4592_v48 = vmul.f32 %v8917_v29, %v11871_v28  ;;  %v3860_v17 = vmul.f32 %v3317_v58, %v3317_v58  ;;  %v3011_v60 = vadd.f32 %v3010_v23, %v10571_v42  ;;  %v3476_v23 = vmul.f32 %v10578_v50, %v3317_v58 }
 0x367   : > { %v4028_v33 = vpop.xlane.xlu0 %4027  ;;  %v8921_v27 = vpop.eup %8920  ;;  %v5478_v47 = vmul.f32 %v8919_v37, %v3218_v61  ;;  %v7707_v31 = vmul.f32 -1.442695, %v4591_v52  ;;  %8940 = vrsqrt.f32 %v4340_v0 }
 0x368   : > { %v11912_v18 = vpop.f32.mrf.mxu1  ;;  %v8923_v19 = vpop.eup %8922  ;;  %v5099_v28 = vadd.f32 1.0, %v8921_v27  ;;  %8942 = vrcp.f32 %v5098_v32  ;;  %v7708_v37 = vmul.f32 -1.442695, %v4592_v48  ;;  %v3319_v2 = vmax.f32 %v3011_v60, 0.0 }
 0x369   : > { %v8925_v25 = vpop.eup %8924  ;;  %v5576_v54 = vpack.c.bf16 %v5478_v47, %v5477_v4  ;;  %4097 = vadd.xlane.f32.xlu1 %v3860_v17  ;;  %v4213_v27 = vmul.f32 %v10843_v45, %v4028_v33  ;;  %3711 = vadd.xlane.f32.xlu0 %v3475_v36  ;;  %v5100_v30 = vadd.f32 1.0, %v8923_v19  ;;  %v3220_v33 = vmax.f32 %v2763_v59, 0.0 }
 0x36a   : > { %v3014_v35 = vpop.f32.mrf.mxu1  ;;  %v4030_v41 = vpop.xlane.xlu1 %4029  ;;  %v4593_v49 = vmul.f32 %v8925_v25, %v11882_v46  ;;  %8944 = vrcp.f32 %v5099_v28  ;;  %v3861_v0 = vmul.f32 %v3319_v2, %v3319_v2  ;;  %v3222_v47 = vmax.f32 %v2767_v55, 0.0 }
 0x36b   : > { %v11923_v29 = vpop.xlane.xlu0 %3643  ;;  %8257 = vmatmul.mubr.bf16.gmra.mxu0 %v5576_v54  ;;  %v8927_v26 = vpop.eup %8926  ;;  %8946 = vpow2.f32 %v7707_v31  ;;  %v4341_v48 = vadd.f32 1e-12, %v4213_v27  ;;  %v3015_v46 = vadd.f32 %v3014_v35, %v10571_v42  ;;  %v4214_v60 = vmul.f32 %v10843_v45, %v4030_v41 }
 0x36c   : > { %v11926_v43 = vpop.f32.mrf.mxu1  ;;  %v8929_v15 = vpop.eup %8928  ;;  %v7709_v32 = vmul.f32 -1.442695, %v4593_v49  ;;  %8948 = vpow2.f32 %v7708_v37  ;;  %v5479_v35 = vmul.f32 %v8927_v26, %v3220_v33  ;;  %v3477_v59 = vmul.f32 %v10578_v50, %v3319_v2 }
 0x36d   : > { %3713 = vadd.xlane.f32.xlu1 %v3476_v23  ;;  %v8931_v4 = vpop.eup %8930  ;;  %8950 = vrsqrt.f32 %v4341_v48  ;;  %v3321_v28 = vmax.f32 %v3015_v46, 0.0  ;;  %4099 = vadd.xlane.f32.xlu0 %v3861_v0  ;;  %v4342_v54 = vadd.f32 1e-12, %v4214_v60  ;;  %v5480_v49 = vmul.f32 %v8929_v15, %v3222_v47 }
 0x36e   : > { %v3020_v61 = vpop.f32.mrf.mxu1  ;;  %v11931_v52 = vpop.xlane.xlu1 %3645  ;;  %v4594_v19 = vmul.f32 %v8931_v4, %v11889_v51  ;;  %8952 = vrcp.f32 %v5100_v30  ;;  %v2773_v30 = vadd.f32 %v11320_v3, %v13642_v56  ;;  %v2777_v26 = vadd.f32 %v11330_v34, %v13642_v56 }
 0x36f   : > { %v4032_v17 = vpop.xlane.xlu0 %4031  ;;  %v8933_v25 = vpop.eup %8932  ;;  %8954 = vpow2.f32 %v7709_v32  ;;  %v3862_v55 = vmul.f32 %v3321_v28, %v3321_v28  ;;  %v5577_v51 = vpack.c.bf16 %v5480_v49, %v5479_v35  ;;  %v3021_v0 = vadd.f32 %v3020_v61, %v10571_v42 }
 0x370   : > { %v11934_v58 = vpop.f32.mrf.mxu1  ;;  %v8935_v27 = vpop.eup %8934  ;;  %v5101_v37 = vadd.f32 1.0, %v8933_v25  ;;  %8956 = vrsqrt.f32 %v4342_v54  ;;  %v7710_v15 = vmul.f32 -1.442695, %v4594_v19  ;;  %v4215_v32 = vmul.f32 %v10843_v45, %v4032_v17 }
 0x371   : > { %v8937_v48 = vpop.eup %8936  ;;  %4101 = vadd.xlane.f32.xlu1 %v3862_v55  ;;  %3715 = vadd.xlane.f32.xlu0 %v3477_v59  ;;  %v5102_v46 = vadd.f32 1.0, %v8935_v27  ;;  %v3323_v33 = vmax.f32 %v3021_v0, 0.0  ;;  %v3478_v25 = vmul.f32 %v10578_v50, %v3321_v28  ;;  %v3224_v27 = vmax.f32 %v2773_v30, 0.0 }
 0x372   : > { %v3024_v31 = vpop.f32.mrf.mxu1  ;;  %v4034_v36 = vpop.xlane.xlu1 %4033  ;;  %v4595_v4 = vmul.f32 %v8937_v48, %v11898_v14  ;;  %8260 = vmatprep.mubr.bf16.mxu0 %v5577_v51  ;;  %v4343_v34 = vadd.f32 1e-12, %v4215_v32  ;;  %8958 = vrcp.f32 %v5101_v37  ;;  %v3226_v55 = vmax.f32 %v2777_v26, 0.0 }
 0x373   : > { %v11938_v23 = vpop.xlane.xlu0 %3647  ;;  %v3025_v61 = vadd.f32 %v3024_v31, %v10571_v42  ;;  %v8939_v3 = vpop.eup %8938  ;;  %v3863_v54 = vmul.f32 %v3323_v33, %v3323_v33  ;;  %8960 = vpow2.f32 %v7710_v15  ;;  %v4216_v59 = vmul.f32 %v10843_v45, %v4034_v36 }
 0x374   : > { %v11941_v41 = vpop.f32.mrf.mxu1  ;;  %v8941_v17 = vpop.eup %8940  ;;  %v7711_v14 = vmul.f32 -1.442695, %v4595_v4  ;;  %8962 = vrcp.f32 %v5102_v46  ;;  %v3479_v15 = vmul.f32 %v10578_v50, %v3323_v33  ;;  %v5481_v36 = vmul.f32 %v8939_v3, %v3224_v27 }
 0x375   : > { %13751 = vst [vmem:[#allocation67_spill] sm:$0xff] %v11941_v41  ;;  %v3325_v35 = vmax.f32 %v3025_v61, 0.0  ;;  %v8943_v49 = vpop.eup %8942  ;;  %3717 = vadd.xlane.f32.xlu1 %v3478_v25  ;;  %v4596_v51 = vmul.f32 %v8941_v17, %v11909_v10  ;;  %4103 = vadd.xlane.f32.xlu0 %v3863_v54  ;;  %8964 = vrsqrt.f32 %v4343_v34  ;;  %v4344_v32 = vadd.f32 1e-12, %v4216_v59 }
 0x376   : > { %v3030_v2 = vpop.f32.mrf.mxu1  ;;  %v11951_v47 = vpop.xlane.xlu1 %3649  ;;  %v5482_v4 = vmul.f32 %v8943_v49, %v3226_v55  ;;  %v2783_v10 = vadd.f32 %v11346_v7, %v13642_v56  ;;  %v2787_v25 = vadd.f32 %v11360_v6, %v13642_v56  ;;  %8966 = vpow2.f32 %v7711_v14 }
 0x377   : > { %v4036_v60 = vpop.xlane.xlu0 %4035  ;;  %v3864_v28 = vmul.f32 %v3325_v35, %v3325_v35  ;;  %v8945_v37 = vpop.eup %8944  ;;  %v3031_v26 = vadd.f32 %v3030_v2, %v10571_v42  ;;  %v7712_v59 = vmul.f32 -1.442695, %v4596_v51  ;;  %8968 = vrsqrt.f32 %v4344_v32 }
 0x378   : > { %v11954_v19 = vpop.f32.mrf.mxu1  ;;  %v8947_v30 = vpop.eup %8946  ;;  %v4217_v34 = vmul.f32 %v10843_v45, %v4036_v60  ;;  %v5578_v33 = vpack.c.bf16 %v5482_v4, %v5481_v36  ;;  %v3480_v27 = vmul.f32 %v10578_v50, %v3325_v35  ;;  %v3228_v51 = vmax.f32 %v2783_v10, 0.0 }
 0x379   : > { %13752 = vst [vmem:[#allocation68_spill] sm:$0xff] %v11954_v19  ;;  %v8949_v46 = vpop.eup %8948  ;;  %4105 = vadd.xlane.f32.xlu1 %v3864_v28  ;;  %3719 = vadd.xlane.f32.xlu0 %v3479_v15  ;;  %v3327_v7 = vmax.f32 %v3031_v26, 0.0  ;;  %v5103_v14 = vadd.f32 1.0, %v8947_v30  ;;  %v3230_v32 = vmax.f32 %v2787_v25, 0.0 }
 0x37a   : > { %v3034_v31 = vpop.f32.mrf.mxu1  ;;  %v4038_v0 = vpop.xlane.xlu1 %4037  ;;  %v4345_v55 = vadd.f32 1e-12, %v4217_v34  ;;  %8261 = vmatmul.mubr.bf16.gmra.mxu0 %v5578_v33  ;;  %v5104_v4 = vadd.f32 1.0, %v8949_v46  ;;  %v5483_v19 = vmul.f32 %v8945_v37, %v3228_v51 }
 0x37b   : > { %v11958_v48 = vpop.xlane.xlu0 %3651  ;;  %v8951_v54 = vpop.eup %8950  ;;  %v3865_v36 = vmul.f32 %v3327_v7, %v3327_v7  ;;  %v3035_v35 = vadd.f32 %v3034_v31, %v10571_v42  ;;  %v4218_v30 = vmul.f32 %v10843_v45, %v4038_v0 }
 0x37c   : > { %v11960_v61 = vpop.f32.mrf.mxu1  ;;  %v8953_v49 = vpop.eup %8952  ;;  %v4597_v60 = vmul.f32 %v8951_v54, %v11923_v29  ;;  %8970 = vrsqrt.f32 %v4345_v55 }
 0x37d   : > { %13753 = vst [vmem:[#allocation73_spill] sm:$0xff] %v11960_v61  ;;  %v8955_v6 = vpop.eup %8954  ;;  %3721 = vadd.xlane.f32.xlu1 %v3480_v27  ;;  %8972 = vpow2.f32 %v7712_v59  ;;  %v5484_v29 = vmul.f32 %v8953_v49, %v3230_v32  ;;  %4107 = vadd.xlane.f32.xlu0 %v3865_v36  ;;  %v3329_v33 = vmax.f32 %v3035_v35, 0.0  ;;  %v3481_v59 = vmul.f32 %v10578_v50, %v3327_v7 }
 0x37e   : > { %v3040_v17 = vpop.f32.mrf.mxu1  ;;  %v11969_v3 = vpop.xlane.xlu1 %3653  ;;  %8974 = vrcp.f32 %v5103_v14  ;;  %v7713_v10 = vmul.f32 -1.442695, %v4597_v60  ;;  %v4346_v31 = vadd.f32 1e-12, %v4218_v30  ;;  %v2797_v60 = vadd.f32 %v11401_v1, %v13642_v56 }
 0x37f   : > { %v4040_v2 = vpop.xlane.xlu0 %4039  ;;  %v8957_v28 = vpop.eup %8956  ;;  %v5579_v27 = vpack.c.bf16 %v5484_v29, %v5483_v19  ;;  %v3041_v55 = vadd.f32 %v3040_v17, %v10571_v42  ;;  %8976 = vrcp.f32 %v5104_v4  ;;  %v3866_v0 = vmul.f32 %v3329_v33, %v3329_v33 }
 0x380   : > { %v11972_v61 = vpop.f32.mrf.mxu1  ;;  %v4598_v25 = vmul.f32 %v8957_v28, %v11931_v52  ;;  %v8959_v46 = vpop.eup %8958  ;;  %v4219_v37 = vmul.f32 %v10843_v45, %v4040_v2  ;;  %v2793_v52 = vadd.f32 %v11388_v57, %v13642_v56 }
 0x381   : > { %13754 = vst [vmem:[#allocation74_spill] sm:$0xff] %v11972_v61  ;;  %v5105_v61 = vadd.f32 1.0, %v8955_v6  ;;  %v8961_v41 = vpop.eup %8960  ;;  %8264 = vmatprep.mubr.bf16.mxu0 %v5579_v27  ;;  %v3331_v19 = vmax.f32 %v3041_v55, 0.0  ;;  %3723 = vadd.xlane.f32.xlu0 %v3481_v59 }
 0x382   : > { %v3044_v15 = vpop.f32.mrf.mxu1  ;;  %v4042_v26 = vpop.xlane.xlu1 %4041  ;;  %v7714_v51 = vmul.f32 -1.442695, %v4598_v25  ;;  %v4347_v2 = vadd.f32 1e-12, %v4219_v37  ;;  %4109 = vadd.xlane.f32.xlu1 %v3866_v0  ;;  %v5106_v36 = vadd.f32 1.0, %v8961_v41  ;;  %v3232_v25 = vmax.f32 %v2793_v52, 0.0 }
 0x383   : > { %v11976_v34 = vpop.xlane.xlu0 %3655  ;;  %v8963_v14 = vpop.eup %8962  ;;  %8978 = vrcp.f32 %v5105_v61  ;;  %v3045_v32 = vadd.f32 %v3044_v15, %v10571_v42  ;;  %v3867_v57 = vmul.f32 %v3331_v19, %v3331_v19  ;;  %v3482_v61 = vmul.f32 %v10578_v50, %v3329_v33 }
 0x384   : > { %v11979_v54 = vpop.f32.mrf.mxu1  ;;  %v8965_v28 = vpop.eup %8964  ;;  %8980 = vrsqrt.f32 %v4346_v31  ;;  %v4220_v29 = vmul.f32 %v10843_v45, %v4042_v26  ;;  %v3234_v31 = vmax.f32 %v2797_v60, 0.0  ;;  %v3483_v0 = vmul.f32 %v10578_v50, %v3331_v19 }
 0x385   : > { %8982 = vpow2.f32 %v7713_v10  ;;  %v8967_v35 = vpop.eup %8966  ;;  %v4599_v1 = vmul.f32 %v8965_v28, %v11938_v23  ;;  %v3333_v30 = vmax.f32 %v3045_v32, 0.0  ;;  %4111 = vadd.xlane.f32.xlu0 %v3867_v57  ;;  %v5485_v26 = vmul.f32 %v8959_v46, %v3232_v25 }
 0x386   : > { %v3050_v6 = vpop.f32.mrf.mxu1  ;;  %v11985_v49 = vpop.xlane.xlu1 %3657  ;;  %8984 = vrsqrt.f32 %v4347_v2  ;;  %v4348_v23 = vadd.f32 1e-12, %v4220_v29  ;;  %3725 = vadd.xlane.f32.xlu1 %v3482_v61  ;;  %v5107_v33 = vadd.f32 1.0, %v8967_v35  ;;  %v5486_v37 = vmul.f32 %v8963_v14, %v3234_v31 }
 0x387   : > { %v4044_v17 = vpop.xlane.xlu0 %4043  ;;  %v8969_v27 = vpop.eup %8968  ;;  %8986 = vpow2.f32 %v7714_v51  ;;  %v3868_v10 = vmul.f32 %v3333_v30, %v3333_v30  ;;  %v7715_v60 = vmul.f32 -1.442695, %v4599_v1  ;;  %v3051_v2 = vadd.f32 %v3050_v6, %v10571_v42 }
 0x388   : > { %v11991_v7 = vpop.f32.mrf.mxu1  ;;  %v4600_v15 = vmul.f32 %v8969_v27, %v11951_v47  ;;  %8988 = vrcp.f32 %v5106_v36  ;;  %v5580_v29 = vpack.c.bf16 %v5486_v37, %v5485_v26  ;;  %v2803_v46 = vadd.f32 %v11416_v38, %v13642_v56 }
 0x389   : > { %v8971_v52 = vpop.eup %8970  ;;  %8990 = vrsqrt.f32 %v4348_v23  ;;  %3727 = vadd.xlane.f32.xlu0 %v3483_v0  ;;  %v2807_v14 = vadd.f32 %v11429_v62, %v13642_v56  ;;  %v12013_v19 = vmax.f32 %v3051_v2, 0.0  ;;  %v4221_v6 = vmul.f32 %v10843_v45, %v4044_v17 }
 0x38a   : > { %v3054_v4 = vpop.f32.mrf.mxu1  ;;  %v4046_v59 = vpop.xlane.xlu1 %4045  ;;  %v7716_v51 = vmul.f32 -1.442695, %v4600_v15  ;;  %v4601_v47 = vmul.f32 %v8971_v52, %v11958_v48  ;;  %4113 = vadd.xlane.f32.xlu1 %v3868_v10  ;;  %8992 = vrcp.f32 %v5107_v33  ;;  %8265 = vmatmul.mubr.bf16.gmra.mxu0 %v5580_v29  ;;  %v3484_v27 = vmul.f32 %v10578_v50, %v3333_v30 }
 0x38b   : > { %v11997_v55 = vpop.xlane.xlu0 %3659  ;;  %v8973_v57 = vpop.eup %8972  ;;  %8994 = vpow2.f32 %v7715_v60  ;;  %v3869_v25 = vmul.f32 %v12013_v19, %v12013_v19  ;;  %v4349_v38 = vadd.f32 1e-12, %v4221_v6  ;;  %v3055_v23 = vadd.f32 %v3054_v4, %v10571_v42 }
 0x38c   : > { %v11999_v41 = vpop.f32.mrf.mxu1  ;;  %v8975_v36 = vpop.eup %8974  ;;  %v7717_v48 = vmul.f32 -1.442695, %v4601_v47  ;;  %v5108_v62 = vadd.f32 1.0, %v8973_v57  ;;  %8996 = vpow2.f32 %v7716_v51  ;;  %v3236_v33 = vmax.f32 %v2803_v46, 0.0 }
 0x38d   : > { %v8977_v15 = vpop.eup %8976  ;;  %v3238_v0 = vmax.f32 %v2807_v14, 0.0  ;;  %v4222_v26 = vmul.f32 %v10843_v45, %v4046_v59  ;;  %4115 = vadd.xlane.f32.xlu0 %v3869_v25  ;;  %v12027_v52 = vmax.f32 %v3055_v23, 0.0  ;;  %v2813_v59 = vadd.f32 %v11453_v5, %v13642_v56 }
 0x38e   : > { %v3060_v28 = vpop.f32.mrf.mxu1  ;;  %v12004_v32 = vpop.xlane.xlu1 %3661  ;;  %8998 = vpow2.f32 %v7717_v48  ;;  %3729 = vadd.xlane.f32.xlu1 %v3484_v27  ;;  %v5487_v57 = vmul.f32 %v8975_v36, %v3236_v33 }
 0x38f   : > { %v4048_v35 = vpop.xlane.xlu0 %4047  ;;  %9000 = vrsqrt.f32 %v4349_v38  ;;  %v4350_v2 = vadd.f32 1e-12, %v4222_v26  ;;  %v5488_v51 = vmul.f32 %v8977_v15, %v3238_v0  ;;  %v3870_v46 = vmul.f32 %v12027_v52, %v12027_v52  ;;  %v12041_v15 = vpop.f32.mrf.mxu0 }
 0x390   : > { %v12007_v61 = vpop.f32.mrf.mxu1  ;;  %v12022_v10 = vpop.eup %8978  ;;  %9002 = vrcp.f32 %v5108_v62  ;;  %v2817_v38 = vadd.f32 %v11466_v13, %v13642_v56  ;;  %13756 = vst [vmem:[#allocation13_spill] sm:$0xff] %v12041_v15  ;;  %v4223_v23 = vmul.f32 %v10843_v45, %v4048_v35 }
 0x391   : > { %v8981_v37 = vpop.eup %8980  ;;  %9004 = vrsqrt.f32 %v4350_v2  ;;  %v5581_v27 = vpack.c.bf16 %v5488_v51, %v5487_v57 }
 0x392   : > { %v3064_v1 = vpop.f32.mrf.mxu1  ;;  %v4050_v31 = vpop.xlane.xlu1 %4049  ;;  %v4602_v4 = vmul.f32 %v8981_v37, %v11969_v3  ;;  %v3061_v3 = vadd.f32 %v3060_v28, %v10571_v42  ;;  %4117 = vadd.xlane.f32.xlu1 %v3870_v46  ;;  %v4351_v2 = vadd.f32 1e-12, %v4223_v23 }
 0x393   : > { %v12020_v17 = vpop.xlane.xlu0 %3663  ;;  %v8983_v60 = vpop.eup %8982  ;;  %8268 = vmatprep.mubr.bf16.mxu0 %v5581_v27  ;;  %v3065_v28 = vadd.f32 %v3064_v1, %v10571_v42  ;;  %v4224_v0 = vmul.f32 %v10843_v45, %v4050_v31  ;;  %v3240_v1 = vmax.f32 %v2813_v59, 0.0 }
 0x394   : > { %v12025_v30 = vpop.f32.mrf.mxu1  ;;  %v8985_v6 = vpop.eup %8984  ;;  %v7718_v48 = vmul.f32 -1.442695, %v4602_v4  ;;  %v5109_v5 = vadd.f32 1.0, %v8983_v60  ;;  %v12045_v33 = vmax.f32 %v3061_v3, 0.0 }
 0x395   : > { %v8987_v36 = vpop.eup %8986  ;;  %v4603_v62 = vmul.f32 %v8985_v6, %v11976_v34  ;;  %v12055_v51 = vmax.f32 %v3065_v28, 0.0  ;;  %v3242_v6 = vmax.f32 %v2817_v38, 0.0  ;;  %v12059_v31 = vpop.f32.mrf.mxu0  ;;  %v5489_v59 = vmul.f32 %v12022_v10, %v3240_v1 }
 0x396   : > { %v3070_v47 = vpop.f32.mrf.mxu1  ;;  %v12030_v29 = vpop.xlane.xlu1 %3665  ;;  %9006 = vpow2.f32 %v7718_v48  ;;  %v5110_v57 = vadd.f32 1.0, %v8987_v36  ;;  %v3871_v35 = vmul.f32 %v12045_v33, %v12045_v33  ;;  %13758 = vst [vmem:[#allocation75_spill] sm:$0xff] %v12059_v31  ;;  %v4352_v36 = vadd.f32 1e-12, %v4224_v0 }
 0x397   : > { %v4052_v14 = vpop.xlane.xlu0 %4051  ;;  %v8989_v13 = vpop.eup %8988  ;;  %v7719_v4 = vmul.f32 -1.442695, %v4603_v62  ;;  %v3872_v3 = vmul.f32 %v12055_v51, %v12055_v51  ;;  %v2827_v10 = vadd.f32 %v11491_v8, %v13642_v56 }
 0x398   : > { %v12037_v25 = vpop.f32.mrf.mxu1  ;;  %v8991_v34 = vpop.eup %8990  ;;  %4119 = vadd.xlane.f32.xlu0 %v3871_v35  ;;  %v5490_v38 = vmul.f32 %v8989_v13, %v3242_v6  ;;  %v4225_v35 = vmul.f32 %v10843_v45, %v4052_v14 }
 0x399   : > { %13755 = vst [vmem:[#allocation28_spill] sm:$0xff] %v12037_v25  ;;  %9008 = vpow2.f32 %v7719_v4  ;;  %v4604_v48 = vmul.f32 %v8991_v34, %v11985_v49  ;;  %v8993_v27 = vpop.eup %8992  ;;  %v3071_v49 = vadd.f32 %v3070_v47, %v10571_v42  ;;  %4121 = vadd.xlane.f32.xlu1 %v3872_v3  ;;  %v12077_v13 = vpop.f32.mrf.mxu0 }
 0x39a   : > { %v3074_v26 = vpop.f32.mrf.mxu1  ;;  %v12049_v37 = vpop.xlane.xlu1 %4053  ;;  %9010 = vrcp.f32 %v5109_v5  ;;  %v5582_v34 = vpack.c.bf16 %v5490_v38, %v5489_v59  ;;  %13760 = vst [vmem:[#allocation14_spill] sm:$0xff] %v12077_v13 }
 0x39b   : > { %v12051_v60 = vpop.xlane.xlu0 %3667  ;;  %v8995_v28 = vpop.eup %8994  ;;  %v7720_v15 = vmul.f32 -1.442695, %v4604_v48  ;;  %9012 = vrsqrt.f32 %v4351_v2  ;;  %v2823_v2 = vadd.f32 %v11480_v24, %v13642_v56  ;;  %v12082_v1 = vmax.f32 %v3071_v49, 0.0  ;;  %v8530_v24 = vld [vmem:[%s13380_s8 + $0x8] sm:$0xff]  }
 0x39c   : > { %v12057_v46 = vpop.f32.mrf.mxu1  ;;  %v8997_v31 = vpop.eup %8996  ;;  %9014 = vrcp.f32 %v5110_v57  ;;  %8269 = vmatmul.mubr.bf16.gmra.mxu0 %v5582_v34  ;;  %v5111_v48 = vadd.f32 1.0, %v8995_v28  ;;  %v3075_v8 = vadd.f32 %v3074_v26, %v10571_v42  ;;  %8332 = vmatprep.subr.bf16.mxu0 %v8530_v24  ;;  %v3246_v49 = vmax.f32 %v2827_v10, 0.0  ;;  %v13762_v26 = vld [vmem:[#allocation10_spill] sm:$0xff] }
 0x39d   : > { %13757 = vst [vmem:[#allocation70_spill] sm:$0xff] %v12057_v46  ;;  %v8999_v0 = vpop.eup %8998  ;;  %9016 = vpow2.f32 %v7720_v15  ;;  %v4353_v15 = vadd.f32 1e-12, %v4225_v35  ;;  %v5112_v59 = vadd.f32 1.0, %v8997_v31  ;;  %v12092_v34 = vpop.f32.mrf.mxu0  ;;  %8333 = vmatpush3.bf16.msra.mxu0 %v8530_v24 }
 0x39e   : > { %v12064_v62 = vpop.f32.mrf.mxu1  ;;  %v12066_v23 = vpop.xlane.xlu1 %3669  ;;  %9018 = vrsqrt.f32 %v4352_v36  ;;  %13761 = vst [vmem:[#allocation15_spill] sm:$0xff] %v12092_v34  ;;  %v5113_v35 = vadd.f32 1.0, %v8999_v0  ;;  %v12097_v31 = vmax.f32 %v3075_v8, 0.0 }
 0x39f   : > { %v4056_v4 = vpop.xlane.xlu0 %4055  ;;  %v9001_v46 = vpop.eup %9000  ;;  %9020 = vrsqrt.f32 %v4353_v15  ;;  %v3081_v34 = vadd.f32 %v12064_v62, %v10571_v42 }
 0x3a0   : > { %v12070_v5 = vpop.f32.mrf.mxu1  ;;  %v4605_v47 = vmul.f32 %v9001_v46, %v11997_v55  ;;  %v9003_v14 = vpop.eup %9002  ;;  %v3873_v55 = vmul.f32 %v12082_v1, %v12082_v1  ;;  %v3244_v46 = vmax.f32 %v2823_v2, 0.0  ;;  %v3874_v8 = vmul.f32 %v12097_v31, %v12097_v31 }
 0x3a1   : > { %13759 = vst [vmem:[#allocation76_spill] sm:$0xff] %v12070_v5  ;;  %v9005_v36 = vpop.eup %9004  ;;  %v2833_v5 = vadd.f32 %v13762_v26, %v13642_v56 }
 0x3a2   : > { %v12079_v57 = vpop.xlane.xlu1 %4057  ;;  %v3084_v3 = vpop.f32.mrf.mxu1  ;;  %v7721_v38 = vmul.f32 -1.442695, %v4605_v47  ;;  %v4606_v13 = vmul.f32 %v9005_v36, %v12004_v32  ;;  %v4226_v47 = vmul.f32 %v10843_v45, %v12049_v37  ;;  %4123 = vadd.xlane.f32.xlu0 %v3873_v55  ;;  %v5491_v10 = vmul.f32 %v8993_v27, %v3244_v46  ;;  %4125 = vadd.xlane.f32.xlu1 %v3874_v8 }
 0x3a3   : > { %v12084_v6 = vpop.xlane.xlu0 %3671  ;;  %v9007_v28 = vpop.eup %9006  ;;  %v5492_v32 = vmul.f32 %v9003_v14, %v3246_v49  ;;  %v13765_v14 = vld [vmem:[#allocation12_spill] sm:$0xff]  ;;  %v3085_v62 = vadd.f32 %v3084_v3, %v10571_v42  ;;  %v4228_v8 = vmul.f32 %v10843_v45, %v12079_v57 }
 0x3a4   : > { %9022 = vpow2.f32 %v7721_v38  ;;  %v7722_v0 = vmul.f32 -1.442695, %v4606_v13  ;;  %v12105_v24 = vpop.f32.mrf.mxu1  ;;  %v12107_v36 = vpop.f32.mrf.mxu0  ;;  %v5114_v38 = vadd.f32 1.0, %v9007_v28  ;;  %v4354_v26 = vadd.f32 1e-12, %v4226_v47 }
 0x3a5   : > { %9024 = vrcp.f32 %v5111_v48  ;;  %13763 = vst [vmem:[#allocation77_spill] sm:$0xff] %v12105_v24  ;;  %13764 = vst [vmem:[#allocation78_spill] sm:$0xff] %v12107_v36  ;;  %v5583_v55 = vpack.c.bf16 %v5492_v32, %v5491_v10  ;;  %v4227_v13 = vmul.f32 %v10843_v45, %v4056_v4  ;;  %v2837_v48 = vadd.f32 %v13765_v14, %v13642_v56 }
 0x3a6   : > { %v12101_v15 = vpop.xlane.xlu1 %3673  ;;  %9026 = vrcp.f32 %v5112_v59  ;;  %v9009_v37 = vpop.eup %9008  ;;  %v3248_v14 = vmax.f32 %v2833_v5, 0.0  ;;  %v4356_v24 = vadd.f32 1e-12, %v4228_v8 }
 0x3a7   : > { %v12103_v2 = vpop.xlane.xlu0 %4059  ;;  %9028 = vrcp.f32 %v5113_v35  ;;  %v9011_v27 = vpop.eup %9010  ;;  %v5115_v46 = vadd.f32 1.0, %v9009_v37  ;;  %8272 = vmatprep.mubr.bf16.mxu0 %v5583_v55  ;;  %v12120_v35 = vmax.f32 %v3081_v34, 0.0  ;;  %v4355_v47 = vadd.f32 1e-12, %v4227_v13 }
 0x3a8   : > { %9030 = vpow2.f32 %v7722_v0  ;;  %v9013_v28 = vpop.eup %9012  ;;  %v3090_v4 = vpop.f32.mrf.mxu1  ;;  %v12130_v34 = vmax.f32 %v3085_v62, 0.0  ;;  %v3250_v3 = vmax.f32 %v2837_v48, 0.0 }
 0x3a9   : > { %9032 = vrsqrt.f32 %v4354_v26  ;;  %v9015_v10 = vpop.eup %9014  ;;  %v12123_v32 = vpop.f32.mrf.mxu0  ;;  %v4607_v0 = vmul.f32 %v9013_v28, %v12020_v17  ;;  %v3875_v26 = vmul.f32 %v12120_v35, %v12120_v35  ;;  %v2843_v28 = vadd.f32 %v11536_v16, %v13642_v56 }
 0x3aa   : > { %v12116_v59 = vpop.xlane.xlu1 %4061  ;;  %13766 = vst [vmem:[#allocation16_spill] sm:$0xff] %v12123_v32  ;;  %9034 = vrcp.f32 %v5114_v38  ;;  %v9017_v37 = vpop.eup %9016  ;;  %v3876_v5 = vmul.f32 %v12130_v34, %v12130_v34  ;;  %v5494_v62 = vmul.f32 %v9015_v10, %v3250_v3  ;;  %v3091_v8 = vadd.f32 %v3090_v4, %v10571_v42 }
 0x3ab   : > { %v12118_v49 = vpop.xlane.xlu0 %3675  ;;  %9036 = vrsqrt.f32 %v4355_v47  ;;  %v9019_v55 = vpop.eup %9018  ;;  %v5116_v13 = vadd.f32 1.0, %v9017_v37  ;;  %v7723_v36 = vmul.f32 -1.442695, %v4607_v0  ;;  %4127 = vadd.xlane.f32.xlu0 %v3875_v26  ;;  %v5493_v47 = vmul.f32 %v9011_v27, %v3248_v14 }
 0x3ac   : > { %9038 = vrcp.f32 %v5115_v46  ;;  %v4608_v17 = vmul.f32 %v9019_v55, %v12030_v29  ;;  %v12139_v57 = vpop.f32.mrf.mxu1  ;;  %v12143_v48 = vpop.f32.mrf.mxu0  ;;  %v2847_v46 = vadd.f32 %v11550_v63, %v13642_v56  ;;  %4129 = vadd.xlane.f32.xlu1 %v3876_v5  ;;  %v12150_v37 = vadd.f32 %v11563_v53, %v13642_v56 }
 0x3ad   : > { %13767 = vst [vmem:[#allocation17_spill] sm:$0xff] %v12139_v57  ;;  %13768 = vst [vmem:[#allocation80_spill] sm:$0xff] %v12143_v48  ;;  %9040 = vrcp.f32 %v5116_v13  ;;  %v9021_v0 = vpop.eup %9020  ;;  %v5584_v26 = vpack.c.bf16 %v5494_v62, %v5493_v47  ;;  %v12157_v63 = vadd.f32 %v11576_v39, %v13642_v56  ;;  %v4229_v4 = vmul.f32 %v10843_v45, %v12103_v2 }
 0x3ae   : > { %v12132_v32 = vpop.xlane.xlu1 %3677  ;;  %9042 = vpow2.f32 %v7723_v36  ;;  %v7724_v29 = vmul.f32 -1.442695, %v4608_v17  ;;  %v4609_v16 = vmul.f32 %v9021_v0, %v12051_v60  ;;  %v12159_v36 = vmax.f32 %v3091_v8, 0.0  ;;  %v3094_v53 = vpop.f32.mrf.mxu1  ;;  %v13770_v0 = vld [vmem:[#allocation60_spill] sm:$0xff] }
 0x3af   : > { %v12134_v38 = vpop.xlane.xlu0 %4063  ;;  %9044 = vrsqrt.f32 %v4356_v24  ;;  %v12163_v3 = vpop.f32.mrf.mxu0  ;;  %8273 = vmatmul.mubr.bf16.gmra.mxu0 %v5584_v26  ;;  %v3252_v17 = vmax.f32 %v2843_v28, 0.0  ;;  %v4357_v39 = vadd.f32 1e-12, %v4229_v4  ;;  %v3254_v62 = vmax.f32 %v2847_v46, 0.0 }
 0x3b0   : > { %9046 = vpow2.f32 %v7724_v29  ;;  %13769 = vst [vmem:[#allocation81_spill] sm:$0xff] %v12163_v3  ;;  %v7725_v24 = vmul.f32 -1.442695, %v4609_v16  ;;  %v3877_v5 = vmul.f32 %v12159_v36, %v12159_v36  ;;  %v12169_v29 = vadd.f32 %v13770_v0, %v13642_v56 }
 0x3b1   : > { %v9023_v10 = vpop.eup %9022  ;;  %v12171_v2 = vpop.f32.mrf.mxu0  ;;  %v3095_v8 = vadd.f32 %v3094_v53, %v10571_v42  ;;  %v3256_v28 = vmax.f32 %v12150_v37, 0.0  ;;  %v3258_v26 = vmax.f32 %v12157_v63, 0.0  ;;  %v4230_v46 = vmul.f32 %v10843_v45, %v12116_v59  ;;  %v13772_v59 = vld [vmem:[#allocation39_spill] sm:$0xff] }
 0x3b2   : > { %v4066_v55 = vpop.xlane.xlu1 %4065  ;;  %v9025_v14 = vpop.eup %9024  ;;  %v5117_v60 = vadd.f32 1.0, %v9023_v10  ;;  %13771 = vst [vmem:[#allocation18_spill] sm:$0xff] %v12171_v2  ;;  %4131 = vadd.xlane.f32.xlu0 %v3877_v5  ;;  %v3485_v2 = vmul.f32 %v10578_v50, %v12013_v19  ;;  %v3260_v57 = vmax.f32 %v12169_v29, 0.0  ;;  %v2867_v5 = vadd.f32 %v13772_v59, %v13642_v56 }
 0x3b3   : > { %v12153_v27 = vpop.xlane.xlu0 %3679  ;;  %v9027_v13 = vpop.eup %9026  ;;  %v12182_v42 = vmax.f32 %v3095_v8, 0.0  ;;  %v4358_v37 = vadd.f32 1e-12, %v4230_v46  ;;  %v5495_v3 = vmul.f32 %v9025_v14, %v3252_v17  ;;  %v13773_v17 = vld [vmem:[#allocation40_spill] sm:$0xff]  ;;  %v3487_v29 = vmul.f32 %v10578_v50, %v12045_v33 }
 0x3b4   : > { %v9029_v47 = vpop.eup %9028  ;;  %9048 = vrcp.f32 %v5117_v60  ;;  %v5496_v63 = vmul.f32 %v9027_v13, %v3254_v62  ;;  %v12188_v25 = vpop.f32.mrf.mxu0  ;;  %v12197_v62 = vadd.f32 %v13773_v17, %v13642_v56  ;;  %v4231_v46 = vmul.f32 %v10843_v45, %v12134_v38 }
 0x3b5   : > { %v9031_v16 = vpop.eup %9030  ;;  %9050 = vpow2.f32 %v7725_v24  ;;  %v3878_v19 = vmul.f32 %v12182_v42, %v12182_v42  ;;  %v3486_v33 = vmul.f32 %v10578_v50, %v12027_v52  ;;  %v3489_v52 = vmul.f32 %v10578_v50, %v12082_v1 }
 0x3b6   : > { %v12174_v10 = vpop.xlane.xlu1 %3681  ;;  %v9033_v0 = vpop.eup %9032  ;;  %v5118_v60 = vadd.f32 1.0, %v9031_v16  ;;  %9052 = vrsqrt.f32 %v4357_v39  ;;  %3731 = vadd.xlane.f32.xlu0 %v3485_v2  ;;  %v5497_v2 = vmul.f32 %v9029_v47, %v3256_v28  ;;  %v4359_v38 = vadd.f32 1e-12, %v4231_v46 }
 0x3b7   : > { %v4068_v4 = vpop.xlane.xlu0 %4067  ;;  %v9035_v53 = vpop.eup %9034  ;;  %v4610_v48 = vmul.f32 %v9033_v0, %v12066_v23  ;;  %v5585_v23 = vpack.c.bf16 %v5496_v63, %v5495_v3  ;;  %4133 = vadd.xlane.f32.xlu1 %v3878_v19 }
 0x3b8   : > { %v9037_v24 = vpop.eup %9036  ;;  %9054 = vrcp.f32 %v5118_v60  ;;  %v5498_v0 = vmul.f32 %v9035_v53, %v3258_v26  ;;  %v12208_v63 = vpop.f32.mrf.mxu0  ;;  %v4233_v47 = vmul.f32 %v10843_v45, %v4068_v4  ;;  %v3264_v53 = vmax.f32 %v12197_v62, 0.0 }
 0x3b9   : > { %v7726_v8 = vmul.f32 -1.442695, %v4610_v48  ;;  %v4611_v16 = vmul.f32 %v9037_v24, %v12084_v6  ;;  %9056 = vrsqrt.f32 %v4358_v37  ;;  %v9039_v13 = vpop.eup %9038  ;;  %v4232_v48 = vmul.f32 %v10843_v45, %v4066_v55  ;;  %8276 = vmatprep.mubr.bf16.mxu0 %v5585_v23 }
 0x3ba   : > { %v4070_v39 = vpop.xlane.xlu1 %4069  ;;  %v9041_v6 = vpop.eup %9040  ;;  %v12206_v37 = vadd.f32 %v11624_v20, %v13642_v56  ;;  %3735 = vadd.xlane.f32.xlu0 %v3487_v29  ;;  %v3262_v20 = vmax.f32 %v2867_v5, 0.0  ;;  %v4361_v17 = vadd.f32 1e-12, %v4233_v47  ;;  %v3488_v4 = vmul.f32 %v10578_v50, %v12055_v51 }
 0x3bb   : > { %v12193_v14 = vpop.xlane.xlu0 %3683  ;;  %9058 = vpow2.f32 %v7726_v8  ;;  %v7727_v3 = vmul.f32 -1.442695, %v4611_v16  ;;  %v9043_v60 = vpop.eup %9042  ;;  %v4360_v24 = vadd.f32 1e-12, %v4232_v48  ;;  %v5586_v8 = vpack.c.bf16 %v5498_v0, %v5497_v2  ;;  %3733 = vadd.xlane.f32.xlu1 %v3486_v33 }
 0x3bc   : > { %v9045_v55 = vpop.eup %9044  ;;  %v5119_v19 = vadd.f32 1.0, %v9043_v60  ;;  %v12219_v46 = vpop.f32.mrf.mxu0  ;;  %v4234_v5 = vmul.f32 %v10843_v45, %v4070_v39  ;;  %v3266_v48 = vmax.f32 %v12206_v37, 0.0  ;;  %v5500_v1 = vmul.f32 %v9041_v6, %v3262_v20 }
 0x3bd   : > { %9060 = vpow2.f32 %v7727_v3  ;;  %v9047_v26 = vpop.eup %9046  ;;  %v4612_v16 = vmul.f32 %v9045_v55, %v12101_v15  ;;  %8277 = vmatmul.mubr.bf16.gmra.mxu0 %v5586_v8  ;;  %v5499_v3 = vmul.f32 %v9039_v13, %v3260_v57  ;;  %v3490_v51 = vmul.f32 %v10578_v50, %v12097_v31 }
 0x3be   : > { %v12212_v59 = vpop.xlane.xlu1 %3685  ;;  %9062 = vrsqrt.f32 %v4359_v38  ;;  %v5120_v23 = vadd.f32 1.0, %v9047_v26  ;;  %3739 = vadd.xlane.f32.xlu0 %v3489_v52  ;;  %v12227_v60 = vpop.f32.mrf.mxu0  ;;  %v4362_v33 = vadd.f32 1e-12, %v4234_v5  ;;  %v3491_v37 = vmul.f32 %v10578_v50, %v12120_v35 }
 0x3bf   : > { %v4072_v28 = vpop.xlane.xlu0 %4071  ;;  %9064 = vrcp.f32 %v5119_v19  ;;  %v7728_v29 = vmul.f32 -1.442695, %v4612_v16  ;;  %3737 = vadd.xlane.f32.xlu1 %v3488_v4  ;;  %v5587_v57 = vpack.c.bf16 %v5500_v1, %v5499_v3 }
 0x3c0   : > { %9066 = vrsqrt.f32 %v4360_v24  ;;  %v4235_v39 = vmul.f32 %v10843_v45, %v4072_v28  ;;  %v12238_v26 = vpop.f32.mrf.mxu0 }
 0x3c1   : > { %v9049_v15 = vpop.eup %9048  ;;  %9068 = vrcp.f32 %v5120_v23  ;;  %8280 = vmatprep.mubr.bf16.mxu0 %v5587_v57 }
 0x3c2   : > { %v4074_v62 = vpop.xlane.xlu1 %4073  ;;  %v9051_v0 = vpop.eup %9050  ;;  %9070 = vpow2.f32 %v7728_v29  ;;  %v4363_v6 = vadd.f32 1e-12, %v4235_v39  ;;  %3743 = vadd.xlane.f32.xlu0 %v3491_v37  ;;  %v5501_v8 = vmul.f32 %v9049_v15, %v3264_v53  ;;  %v13774_v53 = vld [vmem:[#allocation62_spill] sm:$0xff]  ;;  %v3492_v29 = vmul.f32 %v10578_v50, %v12130_v34  ;;  %v13775_v15 = vld [vmem:[#allocation45_spill] sm:$0xff] }
 0x3c3   : > { %v12225_v2 = vpop.xlane.xlu0 %3687  ;;  %v9053_v38 = vpop.eup %9052  ;;  %v5121_v24 = vadd.f32 1.0, %v9051_v0  ;;  %9072 = vrsqrt.f32 %v4361_v17  ;;  %v4236_v55 = vmul.f32 %v10843_v45, %v4074_v62  ;;  %3741 = vadd.xlane.f32.xlu1 %v3490_v51  ;;  %v2883_v4 = vadd.f32 %v13774_v53, %v13642_v56 }
 0x3c4   : > { %v4613_v13 = vmul.f32 %v9053_v38, %v12118_v49  ;;  %9074 = vrsqrt.f32 %v4362_v33  ;;  %v3493_v49 = vmul.f32 %v10578_v50, %v12159_v36  ;;  %v12252_v0 = vpop.f32.mrf.mxu0 }
 0x3c5   : > { %v9055_v31 = vpop.eup %9054  ;;  %9076 = vrsqrt.f32 %v4363_v6  ;;  %v4364_v35 = vadd.f32 1e-12, %v4236_v55  ;;  %v3268_v6 = vmax.f32 %v2883_v4, 0.0 }
 0x3c6   : > { %v12236_v19 = vpop.xlane.xlu1 %3689  ;;  %v9057_v28 = vpop.eup %9056  ;;  %v7729_v20 = vmul.f32 -1.442695, %v4613_v13  ;;  %v5502_v16 = vmul.f32 %v9055_v31, %v3266_v48  ;;  %9078 = vrcp.f32 %v5121_v24  ;;  %v2887_v48 = vadd.f32 %v13775_v15, %v13642_v56  ;;  %3747 = vadd.xlane.f32.xlu0 %v3493_v49 }
 0x3c7   : > { %v4076_v47 = vpop.xlane.xlu0 %4075  ;;  %v4614_v52 = vmul.f32 %v9057_v28, %v12132_v32  ;;  %3745 = vadd.xlane.f32.xlu1 %v3492_v29  ;;  %v3494_v24 = vmul.f32 %v10578_v50, %v12182_v42  ;;  %v12260_v28 = vpop.f32.mrf.mxu0 }
 0x3c8   : > { %v4237_v23 = vmul.f32 %v10843_v45, %v4076_v47  ;;  %v9059_v17 = vpop.eup %9058  ;;  %9080 = vpow2.f32 %v7729_v20  ;;  %v5588_v5 = vpack.c.bf16 %v5502_v16, %v5501_v8  ;;  %v3270_v55 = vmax.f32 %v2887_v48, 0.0  ;;  %v13776_v48 = vld [vmem:[#allocation43_spill] sm:$0xff] }
 0x3c9   : > { %v5122_v3 = vadd.f32 1.0, %v9059_v17  ;;  %v7730_v1 = vmul.f32 -1.442695, %v4614_v52  ;;  %9082 = vrsqrt.f32 %v4364_v35  ;;  %v12264_v52 = vpop.f32.mrf.mxu0 }
 0x3ca   : > { %v4078_v62 = vpop.xlane.xlu1 %4077  ;;  %v9061_v36 = vpop.eup %9060  ;;  %8281 = vmatmul.mubr.bf16.gmra.mxu0 %v5588_v5  ;;  %v4365_v51 = vadd.f32 1e-12, %v4237_v23 }
 0x3cb   : > { %v12250_v32 = vpop.xlane.xlu0 %3691  ;;  %v4238_v34 = vmul.f32 %v10843_v45, %v4078_v62  ;;  %v9063_v33 = vpop.eup %9062  ;;  %9084 = vrcp.f32 %v5122_v3  ;;  %v5123_v39 = vadd.f32 1.0, %v9061_v36  ;;  %3749 = vadd.xlane.f32.xlu1 %v3494_v24  ;;  %v2893_v3 = vadd.f32 %v13776_v48, %v13642_v56 }
 0x3cc   : > { %v9065_v38 = vpop.eup %9064  ;;  %9086 = vpow2.f32 %v7730_v1  ;;  %v4615_v37 = vmul.f32 %v9063_v33, %v12153_v27 }
 0x3cd   : > { %v9067_v13 = vpop.eup %9066  ;;  %9088 = vrcp.f32 %v5123_v39  ;;  %v4366_v31 = vadd.f32 1e-12, %v4238_v34  ;;  %v5503_v27 = vmul.f32 %v9065_v38, %v3268_v6  ;;  %v12275_v38 = vpop.f32.mrf.mxu0 }
 0x3ce   : > { %v12258_v57 = vpop.xlane.xlu1 %3693  ;;  %v9069_v47 = vpop.eup %9068  ;;  %v7731_v20 = vmul.f32 -1.442695, %v4615_v37  ;;  %v4616_v35 = vmul.f32 %v9067_v13, %v12174_v10  ;;  %9090 = vrsqrt.f32 %v4365_v51  ;;  %v13777_v51 = vld [vmem:[#allocation48_spill] sm:$0xff] }
 0x3cf   : > { %v4080_v8 = vpop.xlane.xlu0 %4079  ;;  %v9071_v42 = vpop.eup %9070  ;;  %9092 = vrsqrt.f32 %v4366_v31  ;;  %v5504_v16 = vmul.f32 %v9069_v47, %v3270_v55  ;;  %v2897_v34 = vadd.f32 %v13777_v51, %v13642_v56 }
 0x3d0   : > { %v4239_v50 = vmul.f32 %v10843_v45, %v4080_v8  ;;  %v9073_v49 = vpop.eup %9072  ;;  %v5124_v23 = vadd.f32 1.0, %v9071_v42  ;;  %9094 = vpow2.f32 %v7731_v20  ;;  %v7732_v17 = vmul.f32 -1.442695, %v4616_v35 }
 0x3d1   : > { %v9075_v29 = vpop.eup %9074  ;;  %v4617_v5 = vmul.f32 %v9073_v49, %v12193_v14  ;;  %v5589_v10 = vpack.c.bf16 %v5504_v16, %v5503_v27  ;;  %v3272_v20 = vmax.f32 %v2893_v3, 0.0  ;;  %v3274_v35 = vmax.f32 %v2897_v34, 0.0  ;;  %v13778_v27 = vld [vmem:[#allocation49_spill] sm:$0xff]  ;;  %v12287_v49 = vpop.f32.mrf.mxu0 }
 0x3d2   : > { %v4367_v53 = vadd.f32 1e-12, %v4239_v50  ;;  %v4082_v4 = vpop.xlane.xlu1 %4081  ;;  %9096 = vrcp.f32 %v5124_v23  ;;  %v4618_v1 = vmul.f32 %v9075_v29, %v12212_v59  ;;  %v9077_v36 = vpop.eup %9076  ;;  %v2903_v16 = vadd.f32 %v13778_v27, %v13642_v56 }
 0x3d3   : > { %v4240_v62 = vmul.f32 %v10843_v45, %v4082_v4  ;;  %v12268_v15 = vpop.xlane.xlu0 %3695  ;;  %9098 = vpow2.f32 %v7732_v17  ;;  %v7733_v33 = vmul.f32 -1.442695, %v4617_v5  ;;  %8284 = vmatprep.mubr.bf16.mxu0 %v5589_v10  ;;  %v9079_v14 = vpop.eup %9078  ;;  %v4619_v37 = vmul.f32 %v9077_v36, %v12225_v2  ;;  %v8531_v2 = vld [vmem:[%s13380_s8] sm:$0xff]  }
 0x3d4   : > { %v7734_v24 = vmul.f32 -1.442695, %v4618_v1  ;;  %9100 = vrsqrt.f32 %v4367_v53  ;;  %v5505_v29 = vmul.f32 %v9079_v14, %v3272_v20  ;;  %8334 = vmatprep.subr.bf16.mxu0 %v8531_v2 }
 0x3d5   : > { %v4368_v39 = vadd.f32 1e-12, %v4240_v62  ;;  %v9081_v6 = vpop.eup %9080  ;;  %9102 = vpow2.f32 %v7733_v33  ;;  %v7735_v8 = vmul.f32 -1.442695, %v4619_v37  ;;  %v13779_v62 = vld [vmem:[#allocation51_spill] sm:$0xff]  ;;  %8335 = vmatpush3.bf16.msra.mxu0 %v8531_v2  ;;  %v12294_v33 = vpop.f32.mrf.mxu0 }
 0x3d6   : > { %v12278_v13 = vpop.xlane.xlu1 %3697  ;;  %v9083_v55 = vpop.eup %9082  ;;  %v5125_v31 = vadd.f32 1.0, %v9081_v6  ;;  %9104 = vpow2.f32 %v7734_v24  ;;  %v2907_v48 = vadd.f32 %v13779_v62, %v13642_v56  ;;  %v3276_v6 = vmax.f32 %v2903_v16, 0.0 }
 0x3d7   : > { %v4084_v59 = vpop.xlane.xlu0 %4083  ;;  %v4620_v50 = vmul.f32 %v9083_v55, %v12236_v19  ;;  %9106 = vrsqrt.f32 %v4368_v39 }
 0x3d8   : > { %v4241_v47 = vmul.f32 %v10843_v45, %v4084_v59  ;;  %v9085_v42 = vpop.eup %9084  ;;  %9108 = vrcp.f32 %v5125_v31  ;;  %v3278_v31 = vmax.f32 %v2907_v48, 0.0 }
 0x3d9   : > { %v9087_v53 = vpop.eup %9086  ;;  %9110 = vpow2.f32 %v7735_v8  ;;  %v7736_v4 = vmul.f32 -1.442695, %v4620_v50  ;;  %v5506_v5 = vmul.f32 %v9085_v42, %v3274_v35  ;;  %v12300_v8 = vpop.f32.mrf.mxu0 }
 0x3da   : > { %v4369_v23 = vadd.f32 1e-12, %v4241_v47  ;;  %v4086_v17 = vpop.xlane.xlu1 %4085  ;;  %v9089_v10 = vpop.eup %9088  ;;  %v5126_v3 = vadd.f32 1.0, %v9087_v53 }
 0x3db   : > { %v12289_v19 = vpop.xlane.xlu0 %3699  ;;  %v4242_v1 = vmul.f32 %v10843_v45, %v4086_v17  ;;  %v9091_v36 = vpop.eup %9090  ;;  %v5590_v51 = vpack.c.bf16 %v5506_v5, %v5505_v29  ;;  %v5507_v42 = vmul.f32 %v9089_v10, %v3276_v6  ;;  %v13780_v10 = vld [vmem:[#allocation54_spill] sm:$0xff] }
 0x3dc   : > { %9112 = vrsqrt.f32 %v4369_v23  ;;  %v9093_v34 = vpop.eup %9092  ;;  %v4621_v39 = vmul.f32 %v9091_v36, %v12250_v32  ;;  %v12306_v5 = vpop.f32.mrf.mxu0  ;;  %v13781_v36 = vld [vmem:[#allocation64_spill] sm:$0xff] }
 0x3dd   : > { %9114 = vpow2.f32 %v7736_v4  ;;  %v4370_v14 = vadd.f32 1e-12, %v4242_v1  ;;  %v9095_v37 = vpop.eup %9094  ;;  %v4622_v59 = vmul.f32 %v9093_v34, %v12258_v57  ;;  %8285 = vmatmul.mubr.bf16.gmra.mxu0 %v5590_v51  ;;  %v2913_v1 = vadd.f32 %v13780_v10, %v13642_v56 }
 0x3de   : > { %9116 = vrcp.f32 %v5126_v3  ;;  %v12297_v24 = vpop.xlane.xlu1 %3701  ;;  %v5127_v47 = vadd.f32 1.0, %v9095_v37  ;;  %v7737_v20 = vmul.f32 -1.442695, %v4621_v39  ;;  %v2917_v51 = vadd.f32 %v13781_v36, %v13642_v56 }
 0x3df   : > { %v4088_v55 = vpop.xlane.xlu0 %4087  ;;  %9118 = vrsqrt.f32 %v4370_v14  ;;  %v9097_v35 = vpop.eup %9096  ;;  %v7738_v50 = vmul.f32 -1.442695, %v4622_v59 }
 0x3e0   : > { %v4243_v2 = vmul.f32 %v10843_v45, %v4088_v55  ;;  %v9099_v32 = vpop.eup %9098  ;;  %9120 = vrcp.f32 %v5127_v47  ;;  %v5508_v27 = vmul.f32 %v9097_v35, %v3278_v31 }
 0x3e1   : > { %v9101_v16 = vpop.eup %9100  ;;  %v5128_v17 = vadd.f32 1.0, %v9099_v32  ;;  %9122 = vpow2.f32 %v7737_v20  ;;  %v12316_v20 = vpop.f32.mrf.mxu0 }
 0x3e2   : > { %v4090_v23 = vpop.xlane.xlu1 %4089  ;;  %v4371_v57 = vadd.f32 1e-12, %v4243_v2  ;;  %v9103_v29 = vpop.eup %9102  ;;  %9124 = vpow2.f32 %v7738_v50  ;;  %v4623_v62 = vmul.f32 %v9101_v16, %v12268_v15  ;;  %v5591_v48 = vpack.c.bf16 %v5508_v27, %v5507_v42 }
 0x3e3   : > { %v4244_v53 = vmul.f32 %v10843_v45, %v4090_v23  ;;  %v12304_v4 = vpop.xlane.xlu0 %3703  ;;  %v9105_v3 = vpop.eup %9104  ;;  %9126 = vrcp.f32 %v5128_v17  ;;  %v5129_v34 = vadd.f32 1.0, %v9103_v29  ;;  %v3280_v27 = vmax.f32 %v2913_v1, 0.0 }
 0x3e4   : > { %v9107_v39 = vpop.eup %9106  ;;  %v5130_v14 = vadd.f32 1.0, %v9105_v3  ;;  %v7739_v37 = vmul.f32 -1.442695, %v4623_v62  ;;  %8288 = vmatprep.mubr.bf16.mxu0 %v5591_v48  ;;  %9128 = vrsqrt.f32 %v4371_v57  ;;  %v3282_v23 = vmax.f32 %v2917_v51, 0.0  ;;  %v12322_v62 = vpop.f32.mrf.mxu0 }
 0x3e5   : > { %v4372_v6 = vadd.f32 1e-12, %v4244_v53  ;;  %v9109_v55 = vpop.eup %9108  ;;  %9130 = vrcp.f32 %v5129_v34  ;;  %v4624_v15 = vmul.f32 %v9107_v39, %v12278_v13  ;;  %v2923_v1 = vadd.f32 %v11730_v21, %v13642_v56  ;;  %v13782_v34 = vld [vmem:[#allocation57_spill] sm:$0xff] }
 0x3e6   : > { %v12313_v59 = vpop.xlane.xlu1 %3705  ;;  %v9111_v47 = vpop.eup %9110  ;;  %9132 = vrcp.f32 %v5130_v14  ;;  %v5509_v3 = vmul.f32 %v9109_v55, %v3280_v27  ;;  %v2933_v39 = vadd.f32 %v13782_v34, %v13642_v56 }
 0x3e7   : > { %v4092_v31 = vpop.xlane.xlu0 %4091  ;;  %v5131_v2 = vadd.f32 1.0, %v9111_v47  ;;  %9134 = vpow2.f32 %v7739_v37  ;;  %v7740_v32 = vmul.f32 -1.442695, %v4624_v15  ;;  %v12331_v14 = vpop.f32.mrf.mxu0  ;;  %v13783_v15 = vld [vmem:[#allocation59_spill] sm:$0xff] }
 0x3e8   : > { %v4245_v35 = vmul.f32 %v10843_v45, %v4092_v31  ;;  %9136 = vrsqrt.f32 %v4372_v6  ;;  %v2937_v31 = vadd.f32 %v13783_v15, %v13642_v56 }
 0x3e9   : > { %v9113_v50 = vpop.eup %9112  ;;  %9138 = vrcp.f32 %v5131_v2  ;;  %v3284_v2 = vmax.f32 %v2923_v1, 0.0 }
 0x3ea   : > { %v9115_v42 = vpop.eup %9114  ;;  %v4625_v16 = vmul.f32 %v9113_v50, %v12289_v19  ;;  %v4373_v57 = vadd.f32 1e-12, %v4245_v35  ;;  %v4094_v53 = vpop.xlane.xlu1 %4093  ;;  %9140 = vpow2.f32 %v7740_v32  ;;  %v2927_v19 = vadd.f32 %v11740_v44, %v13642_v56 }
 0x3eb   : > { %v9117_v17 = vpop.eup %9116  ;;  %v5132_v13 = vadd.f32 1.0, %v9115_v42  ;;  %v12320_v29 = vpop.xlane.xlu0 %3707  ;;  %v4246_v51 = vmul.f32 %v10843_v45, %v4094_v53  ;;  %v3290_v53 = vmax.f32 %v2937_v31, 0.0 }
 0x3ec   : > { %v7741_v48 = vmul.f32 -1.442695, %v4625_v16  ;;  %v5510_v10 = vmul.f32 %v9117_v17, %v3282_v23  ;;  %v9119_v36 = vpop.eup %9118  ;;  %v3286_v32 = vmax.f32 %v2927_v19, 0.0  ;;  %v12338_v16 = vpop.f32.mrf.mxu0 }
 0x3ed   : > { %9142 = vrcp.f32 %v5132_v13  ;;  %v4626_v37 = vmul.f32 %v9119_v36, %v12297_v24  ;;  %v9121_v55 = vpop.eup %9120  ;;  %v4374_v21 = vadd.f32 1e-12, %v4246_v51  ;;  %v3288_v24 = vmax.f32 %v2933_v39, 0.0  ;;  %v13784_v39 = vld [vmem:[#allocation61_spill] sm:$0xff] }
 0x3ee   : > { %9144 = vpow2.f32 %v7741_v48  ;;  %v5592_v6 = vpack.c.bf16 %v5510_v10, %v5509_v3  ;;  %v12336_v47 = vpop.xlane.xlu1 %3709  ;;  %v9123_v44 = vpop.eup %9122  ;;  %v5511_v48 = vmul.f32 %v9121_v55, %v3284_v2 }
 0x3ef   : > { %9146 = vrsqrt.f32 %v4373_v57  ;;  %v7742_v35 = vmul.f32 -1.442695, %v4626_v37  ;;  %v9125_v50 = vpop.eup %9124  ;;  %v5133_v42 = vadd.f32 1.0, %v9123_v44  ;;  %v4096_v27 = vpop.xlane.xlu0 %4095  ;;  %v2943_v37 = vadd.f32 %v13784_v39, %v13642_v56 }
 0x3f0   : > { %8289 = vmatmul.mubr.bf16.gmra.mxu0 %v5592_v6  ;;  %9148 = vrsqrt.f32 %v4374_v21  ;;  %v9127_v23 = vpop.eup %9126  ;;  %v5134_v17 = vadd.f32 1.0, %v9125_v50  ;;  %v4247_v13 = vmul.f32 %v10843_v45, %v4096_v27  ;;  %v2947_v6 = vadd.f32 %v11789_v9, %v13642_v56  ;;  %v12349_v44 = vpop.f32.mrf.mxu0 }
 0x3f1   : > { %9150 = vpow2.f32 %v7742_v35  ;;  %v9129_v57 = vpop.eup %9128  ;;  %v5512_v3 = vmul.f32 %v9127_v23, %v3286_v32 }
 0x3f2   : > { %9152 = vrcp.f32 %v5133_v42  ;;  %v4098_v10 = vpop.xlane.xlu1 %4097  ;;  %v9131_v36 = vpop.eup %9130  ;;  %v4627_v1 = vmul.f32 %v9129_v57, %v12304_v4  ;;  %v4375_v19 = vadd.f32 1e-12, %v4247_v13  ;;  %v3292_v13 = vmax.f32 %v2943_v37, 0.0 }
 0x3f3   : > { %9154 = vrcp.f32 %v5134_v17  ;;  %v4248_v51 = vmul.f32 %v10843_v45, %v4098_v10  ;;  %v9133_v34 = vpop.eup %9132  ;;  %v5593_v15 = vpack.c.bf16 %v5512_v3, %v5511_v48  ;;  %v12347_v31 = vpop.xlane.xlu0 %3711  ;;  %v5513_v55 = vmul.f32 %v9131_v36, %v3288_v24 }
 0x3f4   : > { %v9135_v21 = vpop.eup %9134  ;;  %v7743_v35 = vmul.f32 -1.442695, %v4627_v1  ;;  %9156 = vrsqrt.f32 %v4375_v19  ;;  %v5514_v50 = vmul.f32 %v9133_v34, %v3290_v53  ;;  %v3294_v24 = vmax.f32 %v2947_v6, 0.0  ;;  %v12354_v3 = vpop.f32.mrf.mxu0  ;;  %v13785_v19 = vld [vmem:[#allocation63_spill] sm:$0xff] }
 0x3f5   : > { %v4376_v4 = vadd.f32 1e-12, %v4248_v51  ;;  %v9137_v2 = vpop.eup %9136  ;;  %v5135_v32 = vadd.f32 1.0, %v9135_v21  ;;  %8292 = vmatprep.mubr.bf16.mxu0 %v5593_v15  ;;  %v2953_v51 = vadd.f32 %v13785_v19, %v13642_v56 }
 0x3f6   : > { %v12351_v42 = vpop.xlane.xlu1 %3713  ;;  %v9139_v27 = vpop.eup %9138  ;;  %9158 = vpow2.f32 %v7743_v35  ;;  %v4628_v9 = vmul.f32 %v9137_v2, %v12313_v59  ;;  %v5594_v23 = vpack.c.bf16 %v5514_v50, %v5513_v55  ;;  %v13786_v59 = vld [vmem:[#allocation65_spill] sm:$0xff] }
 0x3f7   : > { %v9141_v17 = vpop.eup %9140  ;;  %v4100_v57 = vpop.xlane.xlu0 %4099  ;;  %9160 = vrsqrt.f32 %v4376_v4  ;;  %v2957_v34 = vadd.f32 %v13786_v59, %v13642_v56  ;;  %v5515_v21 = vmul.f32 %v9139_v27, %v3292_v13 }
 0x3f8   : > { %v5136_v10 = vadd.f32 1.0, %v9141_v17  ;;  %v7744_v36 = vmul.f32 -1.442695, %v4628_v9  ;;  %8293 = vmatmul.mubr.bf16.gmra.mxu0 %v5594_v23  ;;  %v4249_v53 = vmul.f32 %v10843_v45, %v4100_v57  ;;  %9162 = vrcp.f32 %v5135_v32  ;;  %v12361_v6 = vpop.f32.mrf.mxu0 }
 0x3f9   : > { %v3296_v32 = vmax.f32 %v2953_v51, 0.0 }
 0x3fa   : > { %v9143_v48 = vpop.eup %9142  ;;  %9164 = vrcp.f32 %v5136_v10  ;;  %v4377_v55 = vadd.f32 1e-12, %v4249_v53  ;;  %v4102_v4 = vpop.xlane.xlu1 %4101  ;;  %v3298_v10 = vmax.f32 %v2957_v34, 0.0  ;;  %v2967_v34 = vadd.f32 %v11826_v40, %v13642_v56 }
 0x3fb   : > { %v9145_v1 = vpop.eup %9144  ;;  %v5516_v39 = vmul.f32 %v9143_v48, %v3294_v24  ;;  %9166 = vpow2.f32 %v7744_v36  ;;  %v12364_v50 = vpop.xlane.xlu0 %3715  ;;  %v4250_v9 = vmul.f32 %v10843_v45, %v4102_v4 }
 0x3fc   : > { %v9147_v37 = vpop.eup %9146  ;;  %v5137_v15 = vadd.f32 1.0, %v9145_v1  ;;  %9168 = vrsqrt.f32 %v4377_v55  ;;  %v12368_v53 = vpop.f32.mrf.mxu0 }
 0x3fd   : > { %v4629_v35 = vmul.f32 %v9147_v37, %v12320_v29  ;;  %v9149_v2 = vpop.eup %9148  ;;  %v5595_v23 = vpack.c.bf16 %v5516_v39, %v5515_v21  ;;  %v4378_v29 = vadd.f32 1e-12, %v4250_v9 }
 0x3fe   : > { %v9151_v17 = vpop.eup %9150  ;;  %v4630_v57 = vmul.f32 %v9149_v2, %v12336_v47  ;;  %9170 = vrcp.f32 %v5137_v15  ;;  %v12370_v1 = vpop.xlane.xlu1 %3717 }
 0x3ff   : > { %v7745_v24 = vmul.f32 -1.442695, %v4629_v35  ;;  %v9153_v48 = vpop.eup %9152  ;;  %v5138_v27 = vadd.f32 1.0, %v9151_v17  ;;  %8296 = vmatprep.mubr.bf16.mxu0 %v5595_v23  ;;  %v4104_v19 = vpop.xlane.xlu0 %4103  ;;  %v13787_v35 = vld [vmem:[#allocation66_spill] sm:$0xff] }
 0x400   : > { %v9155_v13 = vpop.eup %9154  ;;  %v7746_v36 = vmul.f32 -1.442695, %v4630_v57  ;;  %v5517_v51 = vmul.f32 %v9153_v48, %v3296_v32  ;;  %v4251_v47 = vmul.f32 %v10843_v45, %v4104_v19  ;;  %v12375_v37 = vpop.f32.mrf.mxu0  ;;  %v2963_v4 = vadd.f32 %v13787_v35, %v13642_v56 }
 0x401   : > { %9172 = vpow2.f32 %v7745_v24  ;;  %v5518_v59 = vmul.f32 %v9155_v13, %v3298_v10  ;;  %v9157_v39 = vpop.eup %9156  ;;  %v3302_v48 = vmax.f32 %v2967_v34, 0.0 }
 0x402   : > { %9174 = vrcp.f32 %v5138_v27  ;;  %v4631_v15 = vmul.f32 %v9157_v39, %v12347_v31  ;;  %v4379_v2 = vadd.f32 1e-12, %v4251_v47  ;;  %v4106_v9 = vpop.xlane.xlu1 %4105  ;;  %v12383_v31 = vpop.f32.mrf.mxu0  ;;  %v3300_v13 = vmax.f32 %v2963_v4, 0.0 }
 0x403   : > { %9176 = vpow2.f32 %v7746_v36  ;;  %v5596_v55 = vpack.c.bf16 %v5518_v59, %v5517_v51  ;;  %v9159_v21 = vpop.eup %9158  ;;  %v4252_v17 = vmul.f32 %v10843_v45, %v4106_v9  ;;  %v12381_v32 = vpop.xlane.xlu0 %3719  ;;  %v13788_v36 = vld [vmem:[#allocation69_spill] sm:$0xff]  ;;  %v2977_v59 = vadd.f32 %v11845_v22, %v13642_v56 }
 0x404   : > { %9178 = vrsqrt.f32 %v4378_v29  ;;  %v7747_v23 = vmul.f32 -1.442695, %v4631_v15  ;;  %v9161_v24 = vpop.eup %9160  ;;  %v5139_v40 = vadd.f32 1.0, %v9159_v21  ;;  %v2973_v19 = vadd.f32 %v13788_v36, %v13642_v56  ;;  %v12390_v39 = vpop.f32.mrf.mxu0 }
 0x405   : > { %8297 = vmatmul.mubr.bf16.gmra.mxu0 %v5596_v55  ;;  %9180 = vrsqrt.f32 %v4379_v2  ;;  %v9163_v57 = vpop.eup %9162  ;;  %v4632_v10 = vmul.f32 %v9161_v24, %v12351_v42  ;;  %v4380_v27 = vadd.f32 1e-12, %v4252_v17  ;;  %v3306_v24 = vmax.f32 %v2977_v59, 0.0 }
 0x406   : > { %9182 = vpow2.f32 %v7747_v23  ;;  %v3722_v34 = vpop.xlane.xlu1 %3721  ;;  %v5519_v21 = vmul.f32 %v9163_v57, %v3300_v13  ;;  %v3304_v17 = vmax.f32 %v2973_v19, 0.0 }
 0x407   : > { %v9165_v29 = vpop.eup %9164  ;;  %v7748_v47 = vmul.f32 -1.442695, %v4632_v10  ;;  %9184 = vrsqrt.f32 %v4380_v27  ;;  %v4108_v42 = vpop.xlane.xlu0 %4107 }
 0x408   : > { %v9167_v51 = vpop.eup %9166  ;;  %v5520_v15 = vmul.f32 %v9165_v29, %v3302_v48  ;;  %9186 = vrcp.f32 %v5139_v40  ;;  %v4253_v4 = vmul.f32 %v10843_v45, %v4108_v42  ;;  %v12394_v10 = vpop.f32.mrf.mxu0 }
 0x409   : > { %v5140_v55 = vadd.f32 1.0, %v9167_v51  ;;  %v9169_v35 = vpop.eup %9168  ;;  %9188 = vpow2.f32 %v7748_v47 }
 0x40a   : > { %v4633_v9 = vmul.f32 %v9169_v35, %v12364_v50  ;;  %v5597_v23 = vpack.c.bf16 %v5520_v15, %v5519_v21  ;;  %v4381_v27 = vadd.f32 1e-12, %v4253_v4  ;;  %v12397_v19 = vpop.f32.mrf.mxu0 }
 0x40b   : > { %v9171_v2 = vpop.eup %9170  ;;  %9190 = vrcp.f32 %v5140_v55  ;;  %v3724_v36 = vpop.xlane.xlu0 %3723 }
 0x40c   : > { %v7749_v29 = vmul.f32 -1.442695, %v4633_v9  ;;  %8300 = vmatprep.mubr.bf16.mxu0 %v5597_v23  ;;  %9192 = vrsqrt.f32 %v4381_v27  ;;  %v4110_v13 = vpop.xlane.xlu1 %4109  ;;  %v5521_v51 = vmul.f32 %v9171_v2, %v3304_v17 }
 0x40d   : > { %v4254_v15 = vmul.f32 %v10843_v45, %v4110_v13 }
 0x40e   : > { %v9173_v22 = vpop.eup %9172 }
 0x40f   : > { %v9175_v48 = vpop.eup %9174  ;;  %v5141_v40 = vadd.f32 1.0, %v9173_v22  ;;  %v4382_v21 = vadd.f32 1e-12, %v4254_v15  ;;  %v4112_v35 = vpop.xlane.xlu0 %4111  ;;  %v13789_v22 = vld [vmem:[#allocation79_spill] sm:$0xff] }
 0x410   : > { %v9177_v57 = vpop.eup %9176  ;;  %v5522_v47 = vmul.f32 %v9175_v48, %v3306_v24  ;;  %v3726_v23 = vpop.xlane.xlu1 %3725  ;;  %v4255_v2 = vmul.f32 %v10843_v45, %v4112_v35  ;;  %v2983_v17 = vadd.f32 %v13789_v22, %v13642_v56  ;;  %v2987_v24 = vadd.f32 %v11866_v11, %v13642_v56 }
 0x411   : > { %v9179_v55 = vpop.eup %9178  ;;  %9194 = vrcp.f32 %v5141_v40  ;;  %v5142_v50 = vadd.f32 1.0, %v9177_v57  ;;  %v12406_v48 = vpop.f32.mrf.mxu0 }
 0x412   : > { %9196 = vpow2.f32 %v7749_v29  ;;  %v4634_v59 = vmul.f32 %v9179_v55, %v12370_v1  ;;  %v5598_v42 = vpack.c.bf16 %v5522_v47, %v5521_v51  ;;  %v9181_v4 = vpop.eup %9180  ;;  %v4383_v40 = vadd.f32 1e-12, %v4255_v2  ;;  %v13791_v2 = vld [vmem:[#allocation72_spill] sm:$0xff] }
 0x413   : > { %9198 = vrcp.f32 %v5142_v50  ;;  %v4635_v27 = vmul.f32 %v9181_v4, %v12381_v32  ;;  %v9183_v1 = vpop.eup %9182  ;;  %v12408_v47 = vpop.f32.mrf.mxu0  ;;  %v3310_v11 = vmax.f32 %v2987_v24, 0.0  ;;  %v2997_v22 = vadd.f32 %v13791_v2, %v13642_v56 }
 0x414   : > { %v7750_v9 = vmul.f32 -1.442695, %v4634_v59  ;;  %8301 = vmatmul.mubr.bf16.gmra.mxu0 %v5598_v42  ;;  %9200 = vrsqrt.f32 %v4382_v21  ;;  %v9185_v29 = vpop.eup %9184  ;;  %v5143_v57 = vadd.f32 1.0, %v9183_v1  ;;  %v4114_v50 = vpop.xlane.xlu1 %4113  ;;  %v3308_v59 = vmax.f32 %v2983_v17, 0.0  ;;  %v13790_v21 = vld [vmem:[#allocation71_spill] sm:$0xff] }
 0x415   : > { %v7751_v13 = vmul.f32 -1.442695, %v4635_v27  ;;  %v9187_v51 = vpop.eup %9186  ;;  %v4636_v55 = vmul.f32 %v9185_v29, %v3722_v34  ;;  %v4256_v32 = vmul.f32 %v10843_v45, %v4114_v50  ;;  %v2993_v35 = vadd.f32 %v13790_v21, %v13642_v56 }
 0x416   : > { %9202 = vpow2.f32 %v7750_v9  ;;  %v9189_v15 = vpop.eup %9188  ;;  %v5523_v34 = vmul.f32 %v9187_v51, %v3308_v59 }
 0x417   : > { %9204 = vrsqrt.f32 %v4383_v40  ;;  %v5144_v4 = vadd.f32 1.0, %v9189_v15  ;;  %v7752_v9 = vmul.f32 -1.442695, %v4636_v55  ;;  %v4384_v27 = vadd.f32 1e-12, %v4256_v32  ;;  %v12415_v40 = vpop.f32.mrf.mxu0 }
 0x418   : > { %9206 = vrcp.f32 %v5143_v57  ;;  %v9191_v42 = vpop.eup %9190  ;;  %v3312_v21 = vmax.f32 %v2993_v35, 0.0  ;;  %v3314_v15 = vmax.f32 %v2997_v22, 0.0  ;;  %v3007_v35 = vadd.f32 %v11904_v12, %v13642_v56  ;;  %v3730_v12 = vpop.xlane.xlu1 %3729 }
 0x419   : > { %9208 = vpow2.f32 %v7751_v13  ;;  %v5524_v1 = vmul.f32 %v9191_v42, %v3310_v11  ;;  %v9193_v17 = vpop.eup %9192  ;;  %v12417_v55 = vpop.f32.mrf.mxu0 }
 0x41a   : > { %9210 = vrcp.f32 %v5144_v4  ;;  %v4637_v57 = vmul.f32 %v9193_v17, %v3724_v36 }
 0x41b   : > { %9212 = vpow2.f32 %v7752_v9  ;;  %v5599_v24 = vpack.c.bf16 %v5524_v1, %v5523_v34  ;;  %v13792_v34 = vld [vmem:[#allocation58_spill] sm:$0xff]  ;;  %v12423_v22 = vpop.f32.mrf.mxu0 }
 0x41c   : > { %9214 = vrsqrt.f32 %v4384_v27  ;;  %v7753_v32 = vmul.f32 -1.442695, %v4637_v57  ;;  %v3003_v36 = vadd.f32 %v13792_v34, %v13642_v56 }
 0x41d   : > { %8304 = vmatprep.mubr.bf16.mxu0 %v5599_v24  ;;  %v3728_v24 = vpop.xlane.xlu0 %3727  ;;  %v12425_v57 = vpop.f32.mrf.mxu0 }
 0x41e   : > { %v9195_v29 = vpop.eup %9194  ;;  %9216 = vpow2.f32 %v7753_v32  ;;  %13793 = vst [vmem:[#allocation19_spill] sm:$0xff] %v12425_v57 }
 0x41f   : > { %v9197_v50 = vpop.eup %9196  ;;  %v5525_v51 = vmul.f32 %v9195_v29, %v3312_v21  ;;  %v3316_v21 = vmax.f32 %v3003_v36, 0.0  ;;  %v3013_v36 = vadd.f32 %v11912_v18, %v13642_v56 }
 0x420   : > { %v9199_v13 = vpop.eup %9198  ;;  %v5145_v2 = vadd.f32 1.0, %v9197_v50 }
 0x421   : > { %v5526_v59 = vmul.f32 %v9199_v13, %v3314_v15  ;;  %v9201_v11 = vpop.eup %9200  ;;  %v3318_v15 = vmax.f32 %v3007_v35, 0.0  ;;  %v4116_v34 = vpop.xlane.xlu0 %4115  ;;  %v3017_v35 = vadd.f32 %v11926_v43, %v13642_v56 }
 0x422   : > { %v4638_v4 = vmul.f32 %v9201_v11, %v3726_v23  ;;  %9218 = vrcp.f32 %v5145_v2  ;;  %v12427_v2 = vpop.f32.mrf.mxu0 }
 0x423   : > { %v9203_v42 = vpop.eup %9202  ;;  %v5600_v9 = vpack.c.bf16 %v5526_v59, %v5525_v51  ;;  %13794 = vst [vmem:[#allocation29_spill] sm:$0xff] %v12427_v2 }
 0x424   : > { %v5146_v27 = vadd.f32 1.0, %v9203_v42  ;;  %v9205_v1 = vpop.eup %9204  ;;  %v7754_v17 = vmul.f32 -1.442695, %v4638_v4 }
 0x425   : > { %8305 = vmatmul.mubr.bf16.gmra.mxu0 %v5600_v9  ;;  %v9207_v29 = vpop.eup %9206  ;;  %v4639_v23 = vmul.f32 %v9205_v1, %v3728_v24 }
 0x426   : > { %9220 = vrcp.f32 %v5146_v27  ;;  %v9209_v50 = vpop.eup %9208  ;;  %v5527_v11 = vmul.f32 %v9207_v29, %v3316_v21  ;;  %v4118_v29 = vpop.xlane.xlu1 %4117 }
 0x427   : > { %9222 = vpow2.f32 %v7754_v17  ;;  %v5147_v13 = vadd.f32 1.0, %v9209_v50  ;;  %v7755_v32 = vmul.f32 -1.442695, %v4639_v23  ;;  %v9211_v51 = vpop.eup %9210  ;;  %v12433_v17 = vpop.f32.mrf.mxu0  ;;  %v4257_v23 = vmul.f32 %v10843_v45, %v4116_v34 }
 0x428   : > { %v9213_v59 = vpop.eup %9212  ;;  %v5528_v42 = vmul.f32 %v9211_v51, %v3318_v15  ;;  %13795 = vst [vmem:[#allocation31_spill] sm:$0xff] %v12433_v17  ;;  %v4120_v50 = vpop.xlane.xlu0 %4119  ;;  %v4258_v34 = vmul.f32 %v10843_v45, %v4118_v29 }
 0x429   : > { %9224 = vrcp.f32 %v5147_v13  ;;  %v9215_v4 = vpop.eup %9214  ;;  %v5148_v9 = vadd.f32 1.0, %v9213_v59  ;;  %v12436_v51 = vpop.f32.mrf.mxu0  ;;  %v4385_v18 = vadd.f32 1e-12, %v4257_v23  ;;  %v4259_v59 = vmul.f32 %v10843_v45, %v4120_v50 }
 0x42a   : > { %9226 = vpow2.f32 %v7755_v32  ;;  %v4640_v27 = vmul.f32 %v9215_v4, %v3730_v12  ;;  %v5601_v1 = vpack.c.bf16 %v5528_v42, %v5527_v11  ;;  %v3320_v32 = vmax.f32 %v3013_v36, 0.0  ;;  %v4122_v43 = vpop.xlane.xlu1 %4121  ;;  %v13797_v36 = vld [vmem:[#allocation67_spill] sm:$0xff] }
 0x42b   : > { %9228 = vrcp.f32 %v5148_v9  ;;  %v9217_v21 = vpop.eup %9216  ;;  %v3322_v12 = vmax.f32 %v3017_v35, 0.0  ;;  %v3023_v4 = vadd.f32 %v11934_v58, %v13642_v56  ;;  %v12441_v9 = vpop.f32.mrf.mxu0  ;;  %v3027_v35 = vadd.f32 %v13797_v36, %v13642_v56 }
 0x42c   : > { %v7756_v24 = vmul.f32 -1.442695, %v4640_v27  ;;  %8308 = vmatprep.mubr.bf16.mxu0 %v5601_v1  ;;  %v5149_v13 = vadd.f32 1.0, %v9217_v21  ;;  %13796 = vst [vmem:[#allocation82_spill] sm:$0xff] %v12441_v9  ;;  %v4124_v27 = vpop.xlane.xlu0 %4123  ;;  %v4260_v50 = vmul.f32 %v10843_v45, %v4122_v43  ;;  %v4387_v21 = vadd.f32 1e-12, %v4259_v59 }
 0x42d   : > { %v4261_v58 = vmul.f32 %v10843_v45, %v4124_v27  ;;  %v12448_v2 = vpop.f32.mrf.mxu0  ;;  %v4386_v29 = vadd.f32 1e-12, %v4258_v34 }
 0x42e   : > { %9230 = vpow2.f32 %v7756_v24 }
 0x42f   : > { %v9219_v15 = vpop.eup %9218  ;;  %9232 = vrcp.f32 %v5149_v13  ;;  %v4126_v13 = vpop.xlane.xlu1 %4125 }
 0x430   : > { %v5529_v1 = vmul.f32 %v9219_v15, %v3320_v32  ;;  %9234 = vrsqrt.f32 %v4385_v18  ;;  %v3324_v32 = vmax.f32 %v3023_v4, 0.0  ;;  %v4389_v18 = vadd.f32 1e-12, %v4261_v58 }
 0x431   : > { %v4262_v27 = vmul.f32 %v10843_v45, %v4126_v13 }
 0x433   : > { %v9221_v11 = vpop.eup %9220 }
 0x434   : > { %v9223_v42 = vpop.eup %9222  ;;  %v5530_v24 = vmul.f32 %v9221_v11, %v3322_v12  ;;  %v4128_v15 = vpop.xlane.xlu0 %4127  ;;  %v3326_v12 = vmax.f32 %v3027_v35, 0.0  ;;  %v4388_v11 = vadd.f32 1e-12, %v4260_v50  ;;  %v13800_v50 = vld [vmem:[#allocation73_spill] sm:$0xff] }
 0x435   : > { %v5150_v23 = vadd.f32 1.0, %v9223_v42  ;;  %v4263_v59 = vmul.f32 %v10843_v45, %v4128_v15 }
 0x436   : > { %v5602_v57 = vpack.c.bf16 %v5530_v24, %v5529_v1  ;;  %v9225_v17 = vpop.eup %9224  ;;  %v12451_v24 = vpop.f32.mrf.mxu0 }
 0x437   : > { %9236 = vrcp.f32 %v5150_v23  ;;  %v9227_v9 = vpop.eup %9226  ;;  %v5531_v43 = vmul.f32 %v9225_v17, %v3324_v32  ;;  %13798 = vst [vmem:[#allocation32_spill] sm:$0xff] %v12451_v24  ;;  %v13799_v23 = vld [vmem:[#allocation68_spill] sm:$0xff]  ;;  %v4391_v17 = vadd.f32 1e-12, %v4263_v59 }
 0x438   : > { %8309 = vmatmul.mubr.bf16.gmra.mxu0 %v5602_v57  ;;  %v9229_v42 = vpop.eup %9228  ;;  %v5151_v36 = vadd.f32 1.0, %v9227_v9  ;;  %9238 = vrsqrt.f32 %v4387_v21  ;;  %v4130_v57 = vpop.xlane.xlu1 %4129  ;;  %v3033_v9 = vadd.f32 %v13799_v23, %v13642_v56  ;;  %v3037_v21 = vadd.f32 %v13800_v50, %v13642_v56 }
 0x439   : > { %v5532_v1 = vmul.f32 %v9229_v42, %v3326_v12  ;;  %9240 = vrsqrt.f32 %v4386_v29  ;;  %v12458_v58 = vpop.f32.mrf.mxu0  ;;  %v4390_v29 = vadd.f32 1e-12, %v4262_v27  ;;  %v4264_v15 = vmul.f32 %v10843_v45, %v4130_v57 }
 0x43a   : > { %9242 = vrsqrt.f32 %v4388_v11 }
 0x43b   : > { %v9231_v34 = vpop.eup %9230  ;;  %v5603_v4 = vpack.c.bf16 %v5532_v1, %v5531_v43  ;;  %9244 = vrcp.f32 %v5151_v36  ;;  %v4132_v32 = vpop.xlane.xlu0 %4131  ;;  %v3328_v36 = vmax.f32 %v3033_v9, 0.0  ;;  %v3330_v43 = vmax.f32 %v3037_v21, 0.0  ;;  %v13802_v9 = vld [vmem:[#allocation74_spill] sm:$0xff] }
 0x43c   : > { %v5152_v35 = vadd.f32 1.0, %v9231_v34  ;;  %9246 = vrsqrt.f32 %v4389_v18  ;;  %v4265_v12 = vmul.f32 %v10843_v45, %v4132_v32  ;;  %v9233_v11 = vpop.eup %9232  ;;  %v12462_v13 = vpop.f32.mrf.mxu0  ;;  %v4392_v59 = vadd.f32 1e-12, %v4264_v15 }
 0x43d   : > { %8312 = vmatprep.mubr.bf16.mxu0 %v5603_v4  ;;  %13801 = vst [vmem:[#allocation83_spill] sm:$0xff] %v12462_v13  ;;  %v9235_v42 = vpop.eup %9234  ;;  %v5533_v27 = vmul.f32 %v9233_v11, %v3328_v36  ;;  %v3043_v21 = vadd.f32 %v13802_v9, %v13642_v56 }
 0x43e   : > { %9248 = vrcp.f32 %v5152_v35  ;;  %v4393_v1 = vadd.f32 1e-12, %v4265_v12  ;;  %v12464_v57 = vpop.f32.mrf.mxu0 }
 0x43f   : > { %9250 = vrsqrt.f32 %v4391_v17  ;;  %v3732_v34 = vpop.xlane.xlu0 %3731  ;;  %v3047_v17 = vadd.f32 %v11979_v54, %v13642_v56 }
 0x440   : > { %9252 = vrsqrt.f32 %v4390_v29  ;;  %v4134_v4 = vpop.xlane.xlu1 %4133  ;;  %v4641_v35 = vmul.f32 %v9235_v42, %v3732_v34 }
 0x441   : > { %v4266_v50 = vmul.f32 %v10843_v45, %v4134_v4  ;;  %9254 = vrsqrt.f32 %v4393_v1  ;;  %v12471_v45 = vpop.f32.mrf.mxu0  ;;  %v3332_v4 = vmax.f32 %v3043_v21, 0.0 }
 0x442   : > { %v7757_v13 = vmul.f32 -1.442695, %v4641_v35  ;;  %9256 = vrsqrt.f32 %v4392_v59  ;;  %13803 = vst [vmem:[#allocation20_spill] sm:$0xff] %v12471_v45  ;;  %v3334_v35 = vmax.f32 %v3047_v17, 0.0 }
 0x443   : > { %v4394_v29 = vadd.f32 1e-12, %v4266_v50  ;;  %v3736_v15 = vpop.xlane.xlu0 %3735 }
 0x444   : > { %v9237_v18 = vpop.eup %9236  ;;  %9258 = vpow2.f32 %v7757_v13  ;;  %v3734_v11 = vpop.xlane.xlu1 %3733 }
 0x445   : > { %v5534_v23 = vmul.f32 %v9237_v18, %v3330_v43  ;;  %v9239_v32 = vpop.eup %9238  ;;  %9260 = vrsqrt.f32 %v4394_v29  ;;  %v12473_v13 = vpop.f32.mrf.mxu0 }
 0x446   : > { %v9241_v12 = vpop.eup %9240  ;;  %v4643_v42 = vmul.f32 %v9239_v32, %v3736_v15 }
 0x447   : > { %v5604_v24 = vpack.c.bf16 %v5534_v23, %v5533_v27  ;;  %v9243_v36 = vpop.eup %9242  ;;  %v4642_v43 = vmul.f32 %v9241_v12, %v3734_v11  ;;  %v3740_v54 = vpop.xlane.xlu0 %3739 }
 0x448   : > { %v9245_v1 = vpop.eup %9244  ;;  %v7759_v18 = vmul.f32 -1.442695, %v4643_v42  ;;  %v3738_v23 = vpop.xlane.xlu1 %3737 }
 0x449   : > { %8313 = vmatmul.mubr.bf16.gmra.mxu0 %v5604_v24  ;;  %v9247_v34 = vpop.eup %9246  ;;  %v7758_v27 = vmul.f32 -1.442695, %v4642_v43  ;;  %v4644_v24 = vmul.f32 %v9243_v36, %v3738_v23  ;;  %v5535_v32 = vmul.f32 %v9245_v1, %v3332_v4  ;;  %v12475_v11 = vpop.f32.mrf.mxu0 }
 0x44a   : > { %9262 = vpow2.f32 %v7759_v18  ;;  %v4645_v50 = vmul.f32 %v9247_v34, %v3740_v54  ;;  %13804 = vst [vmem:[#allocation21_spill] sm:$0xff] %v12475_v11 }
 0x44b   : > { %v9249_v59 = vpop.eup %9248  ;;  %9264 = vpow2.f32 %v7758_v27  ;;  %v7760_v42 = vmul.f32 -1.442695, %v4644_v24  ;;  %v3744_v21 = vpop.xlane.xlu0 %3743 }
 0x44c   : > { %v5536_v9 = vmul.f32 %v9249_v59, %v3334_v35  ;;  %v7761_v15 = vmul.f32 -1.442695, %v4645_v50  ;;  %v9251_v12 = vpop.eup %9250  ;;  %v3742_v43 = vpop.xlane.xlu1 %3741 }
 0x44d   : > { %v9253_v29 = vpop.eup %9252  ;;  %v4647_v45 = vmul.f32 %v9251_v12, %v3744_v21  ;;  %v12477_v27 = vpop.f32.mrf.mxu0 }
 0x44e   : > { %v5605_v17 = vpack.c.bf16 %v5536_v9, %v5535_v32  ;;  %9266 = vpow2.f32 %v7761_v15  ;;  %v4646_v18 = vmul.f32 %v9253_v29, %v3742_v43  ;;  %v9255_v54 = vpop.eup %9254 }
 0x44f   : > { %9268 = vpow2.f32 %v7760_v42  ;;  %v7763_v34 = vmul.f32 -1.442695, %v4647_v45  ;;  %v3748_v1 = vpop.xlane.xlu0 %3747  ;;  %v9257_v4 = vpop.eup %9256 }
 0x450   : > { %8316 = vmatprep.mubr.bf16.mxu0 %v5605_v17  ;;  %v7762_v36 = vmul.f32 -1.442695, %v4646_v18  ;;  %v3746_v35 = vpop.xlane.xlu1 %3745  ;;  %v4649_v59 = vmul.f32 %v9255_v54, %v3748_v1  ;;  %v12479_v32 = vpop.f32.mrf.mxu0 }
 0x451   : > { %9270 = vpow2.f32 %v7763_v34  ;;  %v9259_v23 = vpop.eup %9258  ;;  %v4648_v50 = vmul.f32 %v9257_v4, %v3746_v35 }
 0x452   : > { %9272 = vpow2.f32 %v7762_v36  ;;  %v7765_v24 = vmul.f32 -1.442695, %v4649_v59  ;;  %v5153_v9 = vadd.f32 1.0, %v9259_v23  ;;  %v9261_v12 = vpop.eup %9260  ;;  %v12481_v29 = vpop.f32.mrf.mxu0 }
 0x453   : > { %v7764_v15 = vmul.f32 -1.442695, %v4648_v50 }
 0x454   : > { %v3750_v42 = vpop.xlane.xlu1 %3749  ;;  %v12483_v36 = vpop.f32.mrf.mxu0 }
 0x455   : > { %9274 = vpow2.f32 %v7764_v15  ;;  %v4650_v21 = vmul.f32 %v9261_v12, %v3750_v42  ;;  %13805 = vst [vmem:[#allocation3_spill] sm:$0xff] %v12483_v36  ;;  %v3053_v15 = vadd.f32 %v11991_v7, %v13642_v56  ;;  %v3057_v12 = vadd.f32 %v11999_v41, %v13642_v56  ;;  %v13811_v36 = vld [vmem:[#allocation70_spill] sm:$0xff] }
 0x456   : > { %9276 = vpow2.f32 %v7765_v24  ;;  %v12485_v23 = vpop.f32.mrf.mxu0  ;;  %v3067_v7 = vadd.f32 %v12025_v30, %v13642_v56  ;;  %v3077_v30 = vadd.f32 %v13811_v36, %v13642_v56  ;;  %v3096_v36 = vpop.f32.mrf.mxu1 }
 0x457   : > { %v9263_v45 = vpop.eup %9262  ;;  %9278 = vrcp.f32 %v5153_v9  ;;  %v7766_v34 = vmul.f32 -1.442695, %v4650_v21  ;;  %13806 = vst [vmem:[#allocation33_spill] sm:$0xff] %v12485_v23 }
 0x458   : > { %v9265_v17 = vpop.eup %9264  ;;  %v5155_v18 = vadd.f32 1.0, %v9263_v45  ;;  %v12491_v42 = vpop.f32.mrf.mxu0 }
 0x459   : > { %v5154_v43 = vadd.f32 1.0, %v9265_v17  ;;  %13807 = vst [vmem:[#allocation6_spill] sm:$0xff] %v12491_v42 }
 0x45b   : > { %v9267_v54 = vpop.eup %9266  ;;  %9280 = vrcp.f32 %v5154_v43 }
 0x45c   : > { %v9269_v1 = vpop.eup %9268  ;;  %9282 = vpow2.f32 %v7766_v34  ;;  %v5157_v35 = vadd.f32 1.0, %v9267_v54  ;;  %v3338_v54 = vmax.f32 %v3057_v12, 0.0 }
 0x45d   : > { %9284 = vrcp.f32 %v5155_v18  ;;  %v5156_v4 = vadd.f32 1.0, %v9269_v1  ;;  %v3336_v18 = vmax.f32 %v3053_v15, 0.0  ;;  %v3063_v1 = vadd.f32 %v12007_v61, %v13642_v56  ;;  %v13810_v15 = vld [vmem:[#allocation28_spill] sm:$0xff] }
 0x45e   : > { %v9271_v59 = vpop.eup %9270  ;;  %v3342_v61 = vmax.f32 %v3067_v7, 0.0 }
 0x45f   : > { %9286 = vrcp.f32 %v5156_v4  ;;  %v9273_v50 = vpop.eup %9272  ;;  %v5159_v9 = vadd.f32 1.0, %v9271_v59  ;;  %v12497_v4 = vpop.f32.mrf.mxu0 }
 0x460   : > { %9288 = vrcp.f32 %v5157_v35  ;;  %v5158_v24 = vadd.f32 1.0, %v9273_v50  ;;  %13808 = vst [vmem:[#allocation5_spill] sm:$0xff] %v12497_v4 }
 0x461   : > { %v12499_v59 = vpop.f32.mrf.mxu0 }
 0x462   : > { %9290 = vrcp.f32 %v5158_v24  ;;  %v9275_v45 = vpop.eup %9274  ;;  %13809 = vst [vmem:[#allocation22_spill] sm:$0xff] %v12499_v59 }
 0x463   : > { %v9277_v21 = vpop.eup %9276  ;;  %9292 = vrcp.f32 %v5159_v9  ;;  %v5160_v17 = vadd.f32 1.0, %v9275_v45  ;;  %v3073_v45 = vadd.f32 %v13810_v15, %v13642_v56  ;;  %v13813_v15 = vld [vmem:[#allocation76_spill] sm:$0xff] }
 0x464   : > { %v9279_v43 = vpop.eup %9278  ;;  %v5161_v34 = vadd.f32 1.0, %v9277_v21  ;;  %v3340_v21 = vmax.f32 %v3063_v1, 0.0  ;;  %v13814_v1 = vld [vmem:[#allocation77_spill] sm:$0xff] }
 0x465   : > { %9294 = vrcp.f32 %v5160_v17  ;;  %v5537_v50 = vmul.f32 %v9279_v43, %v3336_v18  ;;  %v12505_v17 = vpop.f32.mrf.mxu0  ;;  %v3087_v7 = vadd.f32 %v13814_v1, %v13642_v56 }
 0x466   : > { %9296 = vrcp.f32 %v5161_v34  ;;  %13812 = vst [vmem:[#allocation23_spill] sm:$0xff] %v12505_v17  ;;  %v3083_v34 = vadd.f32 %v13813_v15, %v13642_v56  ;;  %v13817_v15 = vld [vmem:[#allocation15_spill] sm:$0xff] }
 0x468   : > { %v9281_v41 = vpop.eup %9280 }
 0x469   : > { %v9283_v35 = vpop.eup %9282  ;;  %v5538_v24 = vmul.f32 %v9281_v41, %v3338_v54  ;;  %v3344_v54 = vmax.f32 %v3073_v45, 0.0  ;;  %v3346_v41 = vmax.f32 %v3077_v30, 0.0  ;;  %v13816_v30 = vld [vmem:[#allocation17_spill] sm:$0xff] }
 0x46a   : > { %v9285_v9 = vpop.eup %9284  ;;  %v5162_v12 = vadd.f32 1.0, %v9283_v35 }
 0x46b   : > { %v5606_v42 = vpack.c.bf16 %v5538_v24, %v5537_v50  ;;  %v5539_v59 = vmul.f32 %v9285_v9, %v3340_v21  ;;  %v12511_v50 = vpop.f32.mrf.mxu0  ;;  %v3348_v9 = vmax.f32 %v3083_v34, 0.0  ;;  %v13818_v34 = vld [vmem:[#allocation75_spill] sm:$0xff] }
 0x46c   : > { %v9287_v23 = vpop.eup %9286  ;;  %9298 = vrcp.f32 %v5162_v12  ;;  %13815 = vst [vmem:[#allocation34_spill] sm:$0xff] %v12511_v50 }
 0x46d   : > { %8317 = vmatmul.mubr.bf16.gmra.mxu0 %v5606_v42  ;;  %v5540_v43 = vmul.f32 %v9287_v23, %v3342_v61  ;;  %v9289_v18 = vpop.eup %9288  ;;  %v3350_v23 = vmax.f32 %v3087_v7, 0.0  ;;  %v12516_v61 = vld [vmem:[%s13379_s7] ss:$0 sm:$0xff] }
 0x46e   : > { %v5541_v24 = vmul.f32 %v9289_v18, %v3344_v54  ;;  %v5720_v1 = vadd.f32 %v12516_v61, %v13817_v15  ;;  %v12523_v18 = vpop.f32.mrf.mxu0  ;;  %v5717_v7 = vadd.f32 %v12516_v61, %v13818_v34 }
 0x46f   : > { %v5607_v35 = vpack.c.bf16 %v5540_v43, %v5539_v59  ;;  %v9291_v11 = vpop.eup %9290  ;;  %v3093_v59 = vadd.f32 %v13816_v30, %v13642_v56  ;;  %v3097_v43 = vadd.f32 %v3096_v36, %v13642_v56 }
 0x470   : > { %v5542_v12 = vmul.f32 %v9291_v11, %v3346_v41  ;;  %v9293_v42 = vpop.eup %9292  ;;  %v6228_v17 = vmax.f32 %v5720_v1, 0.0  ;;  %v6227_v15 = vmax.f32 %v5717_v7, 0.0  ;;  %v13822_v1 = vld [vmem:[#allocation16_spill] sm:$0xff] }
 0x471   : > { %8320 = vmatprep.mubr.bf16.mxu0 %v5607_v35  ;;  %v5543_v11 = vmul.f32 %v9293_v42, %v3348_v9  ;;  %v12527_v35 = vpop.f32.mrf.mxu0  ;;  %v3354_v50 = vmax.f32 %v3097_v43, 0.0  ;;  %v13819_v42 = vld [vmem:[#allocation14_spill] sm:$0xff] }
 0x472   : > { %v5608_v21 = vpack.c.bf16 %v5542_v12, %v5541_v24  ;;  %v9295_v45 = vpop.eup %9294  ;;  %v3352_v12 = vmax.f32 %v3093_v59, 0.0  ;;  %v5728_v9 = vadd.f32 %v13819_v42, %v12516_v61  ;;  %v13821_v59 = vld [vmem:[#allocation13_spill] sm:$0xff] }
 0x473   : > { %v5544_v54 = vmul.f32 %v9295_v45, %v3350_v23  ;;  %v9297_v41 = vpop.eup %9296  ;;  %v12529_v4 = vpop.f32.mrf.mxu0  ;;  %v13820_v45 = vld [vmem:[#allocation81_spill] sm:$0xff]  ;;  %v5725_v43 = vadd.f32 %v13821_v59, %v12516_v61 }
 0x474   : > { %v5545_v56 = vmul.f32 %v9297_v41, %v3352_v12  ;;  %v5736_v34 = vadd.f32 %v12516_v61, %v13820_v45 }
 0x475   : > { %8321 = vmatmul.mubr.bf16.gmra.mxu0 %v5608_v21  ;;  %v5609_v24 = vpack.c.bf16 %v5544_v54, %v5543_v11  ;;  %v6355_v21 = vpack.c.bf16 %v6228_v17, %v6227_v15  ;;  %v5733_v11 = vadd.f32 %v12516_v61, %v13822_v1  ;;  %v6230_v54 = vmax.f32 %v5728_v9, 0.0 }
 0x476   : > { %v6232_v41 = vmax.f32 %v5736_v34, 0.0  ;;  %v6229_v7 = vmax.f32 %v5725_v43, 0.0  ;;  %v5752_v15 = vadd.f32 %v12516_v61, %v12219_v46  ;;  %v5749_v9 = vadd.f32 %v12516_v61, %v12188_v25  ;;  %v13825_v25 = vld [vmem:[#allocation18_spill] sm:$0xff] }
 0x477   : > { %8324 = vmatprep.mubr.bf16.mxu0 %v5609_v24  ;;  %v6231_v24 = vmax.f32 %v5733_v11, 0.0  ;;  %v5760_v46 = vadd.f32 %v12208_v63, %v12516_v61 }
 0x478   : > { %v6356_v17 = vpack.c.bf16 %v6230_v54, %v6229_v7  ;;  %v6236_v34 = vmax.f32 %v5752_v15, 0.0  ;;  %v6235_v1 = vmax.f32 %v5749_v9, 0.0 }
 0x479   : > { %v9299_v30 = vpop.eup %9298 }
 0x47a   : > { %v5546_v36 = vmul.f32 %v9299_v30, %v3354_v50  ;;  %v12539_v50 = vpop.f32.mrf.mxu0  ;;  %v13823_v30 = vld [vmem:[#allocation80_spill] sm:$0xff]  ;;  %v6359_v54 = vpack.c.bf16 %v6236_v34, %v6235_v1  ;;  %v5781_v34 = vadd.f32 %v12516_v61, %v12275_v38  ;;  %v5789_v38 = vadd.f32 %v12264_v52, %v12516_v61 }
 0x47c   : > { %v5610_v23 = vpack.c.bf16 %v5546_v36, %v5545_v56  ;;  %v12542_v12 = vpop.f32.mrf.mxu0  ;;  %v5744_v56 = vadd.f32 %v13823_v30, %v12516_v61  ;;  %v6357_v36 = vpack.c.bf16 %v6232_v41, %v6231_v24  ;;  %v5768_v41 = vadd.f32 %v12516_v61, %v12260_v28 }
 0x47d   : > { %v5757_v24 = vadd.f32 %v13825_v25, %v12516_v61  ;;  %v6238_v30 = vmax.f32 %v5760_v46, 0.0  ;;  %v5800_v25 = vadd.f32 %v12516_v61, %v12322_v62  ;;  %v5808_v62 = vadd.f32 %v12316_v20, %v12516_v61 }
 0x47e   : > { %8325 = vmatmul.mubr.bf16.gmra.mxu0 %v5610_v23  ;;  %v12548_v42 = vpop.f32.mrf.mxu0  ;;  %v13824_v23 = vld [vmem:[#allocation78_spill] sm:$0xff] }
 0x47f   : > { %8336 = vmatprep.mubr.msk.bf16.mxu0 %vm6458_vm3, %v6355_v21  ;;  %v5741_v45 = vadd.f32 %v13824_v23, %v12516_v61  ;;  %v6234_v21 = vmax.f32 %v5744_v56, 0.0  ;;  %v6240_v56 = vmax.f32 %v5768_v41, 0.0  ;;  %v6237_v63 = vmax.f32 %v5757_v24, 0.0 }
 0x480   : > { %v12556_v59 = vpop.f32.mrf.mxu0  ;;  %v5797_v24 = vadd.f32 %v12516_v61, %v12306_v5  ;;  %v5805_v5 = vadd.f32 %v12300_v8, %v12516_v61  ;;  %v5832_v8 = vadd.f32 %v12516_v61, %v12383_v31 }
 0x481   : > { %v6233_v43 = vmax.f32 %v5741_v45, 0.0  ;;  %v6360_v28 = vpack.c.bf16 %v6238_v30, %v6237_v63  ;;  %v5776_v45 = vadd.f32 %v12252_v0, %v12516_v61  ;;  %v6243_v0 = vmax.f32 %v5781_v34, 0.0 }
 0x482   : > { %v12562_v7 = vpop.f32.mrf.mxu0  ;;  %v6249_v20 = vmax.f32 %v5805_v5, 0.0 }
 0x483   : > { %v6358_v11 = vpack.c.bf16 %v6234_v21, %v6233_v43  ;;  %v5784_v21 = vadd.f32 %v12516_v61, %v12294_v33  ;;  %v6242_v1 = vmax.f32 %v5776_v45, 0.0  ;;  %v5792_v33 = vadd.f32 %v12287_v49, %v12516_v61 }
 0x484   : > { %v6245_v49 = vmax.f32 %v5789_v38, 0.0  ;;  %v5816_v45 = vadd.f32 %v12516_v61, %v12354_v3  ;;  %v5824_v3 = vadd.f32 %v12349_v44, %v12516_v61  ;;  %v6256_v44 = vmax.f32 %v5832_v8, 0.0 }
 0x485   : > { %v6246_v30 = vmax.f32 %v5792_v33, 0.0  ;;  %v5829_v33 = vadd.f32 %v12516_v61, %v12368_v53  ;;  %v5837_v53 = vadd.f32 %v12361_v6, %v12516_v61 }
 0x486   : > { %8337 = vmatmul.mubr.msk.bf16.vlgmr.msra.gmra.mxu0 %vm6458_vm3, %v6356_v17  ;;  %v5765_v17 = vadd.f32 %v12516_v61, %v12238_v26  ;;  %v5773_v26 = vadd.f32 %v12227_v60, %v12516_v61  ;;  %v6252_v34 = vmax.f32 %v5816_v45, 0.0 }
 0x487   : > { %8340 = vmatprep.mubr.msk.bf16.mxu0 %vm6458_vm3, %v6357_v36  ;;  %v12570_v36 = vpop.f32.mrf.mxu0  ;;  %v6257_v45 = vmax.f32 %v5837_v53, 0.0 }
 0x488   : > { %v6239_v15 = vmax.f32 %v5765_v17, 0.0  ;;  %v6241_v46 = vmax.f32 %v5773_v26, 0.0  ;;  %v6250_v26 = vmax.f32 %v5808_v62, 0.0 }
 0x489   : > { %v12572_v23 = vpop.f32.mrf.mxu0 }
 0x48a   : > { %v6361_v9 = vpack.c.bf16 %v6240_v56, %v6239_v15  ;;  %v6362_v41 = vpack.c.bf16 %v6242_v1, %v6241_v46  ;;  %v6248_v56 = vmax.f32 %v5800_v25, 0.0  ;;  %v6247_v15 = vmax.f32 %v5797_v24, 0.0 }
 0x48b   : > { %v12583_v43 = vpop.f32.mrf.mxu0  ;;  %v6366_v46 = vpack.c.bf16 %v6250_v26, %v6249_v20  ;;  %v6254_v25 = vmax.f32 %v5824_v3, 0.0  ;;  %v6255_v24 = vmax.f32 %v5829_v33, 0.0  ;;  %v5864_v26 = vadd.f32 %v12516_v61, %v12423_v22 }
 0x48c   : > { %v6365_v52 = vpack.c.bf16 %v6248_v56, %v6247_v15  ;;  %v5840_v56 = vadd.f32 %v12375_v37, %v12516_v61  ;;  %v5845_v15 = vadd.f32 %v12516_v61, %v12394_v10  ;;  %v5853_v10 = vadd.f32 %v12390_v39, %v12516_v61 }
 0x48d   : > { %v5861_v20 = vadd.f32 %v12516_v61, %v12415_v40  ;;  %v5872_v22 = vadd.f32 %v12417_v55, %v12516_v61  ;;  %v5880_v39 = vadd.f32 %v12516_v61, %v12436_v51  ;;  %v5869_v40 = vadd.f32 %v12408_v47, %v12516_v61 }
 0x48e   : > { %8341 = vmatmul.mubr.msk.bf16.gmra.mxu0 %vm6458_vm3, %v6358_v11  ;;  %v6244_v11 = vmax.f32 %v5784_v21, 0.0  ;;  %v5813_v21 = vadd.f32 %v12516_v61, %v12338_v16  ;;  %v5821_v16 = vadd.f32 %v12331_v14, %v12516_v61  ;;  %v6369_v14 = vpack.c.bf16 %v6256_v44, %v6255_v24 }
 0x48f   : > { %8344 = vmatprep.mubr.msk.bf16.mxu0 %vm6458_vm3, %v6359_v54  ;;  %v12586_v54 = vpop.f32.mrf.mxu0  ;;  %v6258_v62 = vmax.f32 %v5840_v56, 0.0  ;;  %v6259_v37 = vmax.f32 %v5845_v15, 0.0  ;;  %v6268_v24 = vmax.f32 %v5880_v39, 0.0  ;;  %v6265_v55 = vmax.f32 %v5869_v40, 0.0 }
 0x490   : > { %v6363_v60 = vpack.c.bf16 %v6244_v11, %v6243_v0  ;;  %v6251_v11 = vmax.f32 %v5813_v21, 0.0  ;;  %v6253_v38 = vmax.f32 %v5821_v16, 0.0  ;;  %v5896_v15 = vadd.f32 %v12516_v61, %v12458_v58  ;;  %v13829_v58 = vld [vmem:[#allocation32_spill] sm:$0xff] }
 0x491   : > { %v12597_v17 = vpop.f32.mrf.mxu0  ;;  %v6370_v21 = vpack.c.bf16 %v6258_v62, %v6257_v45  ;;  %v13828_v62 = vld [vmem:[#allocation19_spill] sm:$0xff]  ;;  %v5893_v45 = vadd.f32 %v12516_v61, %v12448_v2  ;;  %v13830_v2 = vld [vmem:[#allocation82_spill] sm:$0xff] }
 0x492   : > { %v6367_v0 = vpack.c.bf16 %v6252_v34, %v6251_v11  ;;  %v6368_v31 = vpack.c.bf16 %v6254_v25, %v6253_v38  ;;  %v13826_v25 = vld [vmem:[#allocation29_spill] sm:$0xff]  ;;  %v6266_v38 = vmax.f32 %v5872_v22, 0.0 }
 0x493   : > { %v12600_v63 = vpop.f32.mrf.mxu0  ;;  %v5877_v44 = vadd.f32 %v12516_v61, %v13826_v25 }
 0x494   : > { %v6374_v51 = vpack.c.bf16 %v6266_v38, %v6265_v55 }
 0x495   : > { %v6267_v56 = vmax.f32 %v5877_v44, 0.0 }
 0x496   : > { %8345 = vmatmul.mubr.msk.bf16.gmra.mxu0 %vm6458_vm3, %v6360_v28  ;;  %v6364_v28 = vpack.c.bf16 %v6246_v30, %v6245_v49  ;;  %v5848_v49 = vadd.f32 %v12516_v61, %v12406_v48  ;;  %v5856_v48 = vadd.f32 %v12397_v19, %v12516_v61  ;;  %v6261_v19 = vmax.f32 %v5853_v10, 0.0 }
 0x497   : > { %8348 = vmatprep.mubr.msk.bf16.mxu0 %vm6458_vm3, %v6361_v9  ;;  %v12606_v9 = vpop.f32.mrf.mxu0  ;;  %v6375_v47 = vpack.c.bf16 %v6268_v24, %v6267_v56  ;;  %v5928_v56 = vadd.f32 %v12516_v61, %v12481_v29  ;;  %v5936_v29 = vadd.f32 %v12479_v32, %v12516_v61 }
 0x498   : > { %v6262_v11 = vmax.f32 %v5856_v48, 0.0  ;;  %v6272_v48 = vmax.f32 %v5896_v15, 0.0 }
 0x499   : > { %v12614_v1 = vpop.f32.mrf.mxu0  ;;  %v6280_v15 = vmax.f32 %v5928_v56, 0.0  ;;  %v13838_v56 = vld [vmem:[#allocation23_spill] sm:$0xff] }
 0x49a   : > { %v6372_v8 = vpack.c.bf16 %v6262_v11, %v6261_v19  ;;  %v5904_v11 = vadd.f32 %v13829_v58, %v12516_v61  ;;  %v5912_v19 = vadd.f32 %v12516_v61, %v12473_v13  ;;  %v13831_v13 = vld [vmem:[#allocation20_spill] sm:$0xff] }
 0x49b   : > { %v5920_v24 = vadd.f32 %v13831_v13, %v12516_v61  ;;  %v5960_v13 = vadd.f32 %v12516_v61, %v12523_v18  ;;  %v13839_v18 = vld [vmem:[#allocation34_spill] sm:$0xff] }
 0x49c   : > { %v6276_v39 = vmax.f32 %v5912_v19, 0.0 }
 0x49e   : > { %8349 = vmatmul.mubr.msk.bf16.gmra.mxu0 %vm6458_vm3, %v6362_v41  ;;  %v12620_v41 = vpop.f32.mrf.mxu0 }
 0x49f   : > { %8352 = vmatprep.mubr.msk.bf16.mxu0 %vm6458_vm3, %v6363_v60 }
 0x4a0   : > { %v12627_v60 = vpop.f32.mrf.mxu0 }
 0x4a2   : > { %v12630_v30 = vpop.f32.mrf.mxu0 }
 0x4a6   : > { %8353 = vmatmul.mubr.msk.bf16.gmra.mxu0 %vm6458_vm3, %v6364_v28  ;;  %v12641_v28 = vpop.f32.mrf.mxu0 }
 0x4a7   : > { %8356 = vmatprep.mubr.msk.bf16.mxu0 %vm6458_vm3, %v6365_v52  ;;  %v6260_v52 = vmax.f32 %v5848_v49, 0.0  ;;  %v13827_v49 = vld [vmem:[#allocation31_spill] sm:$0xff] }
 0x4a8   : > { %v12644_v5 = vpop.f32.mrf.mxu0  ;;  %v5888_v53 = vadd.f32 %v13827_v49, %v12516_v61 }
 0x4a9   : > { %v6371_v6 = vpack.c.bf16 %v6260_v52, %v6259_v37  ;;  %v5885_v52 = vadd.f32 %v13828_v62, %v12516_v61 }
 0x4aa   : > { %v12650_v34 = vpop.f32.mrf.mxu0 }
 0x4ac   : > { %v12658_v3 = vpop.f32.mrf.mxu0 }
 0x4ae   : > { %8357 = vmatmul.mubr.msk.bf16.gmra.mxu0 %vm6458_vm3, %v6366_v46  ;;  %v6264_v46 = vmax.f32 %v5864_v26, 0.0  ;;  %v12664_v33 = vpop.f32.mrf.mxu0  ;;  %v6271_v26 = vmax.f32 %v5893_v45, 0.0 }
 0x4af   : > { %8360 = vmatprep.mubr.msk.bf16.mxu0 %vm6458_vm3, %v6367_v0  ;;  %v6263_v0 = vmax.f32 %v5861_v20, 0.0 }
 0x4b1   : > { %v6373_v16 = vpack.c.bf16 %v6264_v46, %v6263_v0  ;;  %v6377_v46 = vpack.c.bf16 %v6272_v48, %v6271_v26  ;;  %v5901_v0 = vadd.f32 %v13830_v2, %v12516_v61  ;;  %v6282_v2 = vmax.f32 %v5936_v29, 0.0 }
 0x4b2   : > { %v5968_v29 = vadd.f32 %v13839_v18, %v12516_v61 }
 0x4b3   : > { %v6273_v25 = vmax.f32 %v5901_v0, 0.0 }
 0x4b6   : > { %8361 = vmatmul.mubr.msk.bf16.gmra.mxu0 %vm6458_vm3, %v6368_v31  ;;  %v12672_v31 = vpop.f32.mrf.mxu0 }
 0x4b7   : > { %8364 = vmatprep.mubr.msk.bf16.mxu0 %vm6458_vm3, %v6369_v14 }
 0x4b8   : > { %v12674_v14 = vpop.f32.mrf.mxu0 }
 0x4ba   : > { %v12685_v37 = vpop.f32.mrf.mxu0 }
 0x4bc   : > { %v12688_v10 = vpop.f32.mrf.mxu0 }
 0x4be   : > { %8365 = vmatmul.mubr.msk.bf16.gmra.mxu0 %vm6458_vm3, %v6370_v21  ;;  %v6270_v21 = vmax.f32 %v5888_v53, 0.0  ;;  %v12699_v22 = vpop.f32.mrf.mxu0  ;;  %v5925_v53 = vadd.f32 %v12516_v61, %v12477_v27  ;;  %v13834_v27 = vld [vmem:[#allocation21_spill] sm:$0xff] }
 0x4bf   : > { %8368 = vmatprep.mubr.msk.bf16.mxu0 %vm6458_vm3, %v6371_v6  ;;  %v6269_v6 = vmax.f32 %v5885_v52, 0.0  ;;  %v5933_v58 = vadd.f32 %v13834_v27, %v12516_v61  ;;  %v13840_v27 = vld [vmem:[#allocation22_spill] sm:$0xff] }
 0x4c0   : > { %v12702_v40 = vpop.f32.mrf.mxu0  ;;  %v6279_v45 = vmax.f32 %v5925_v53, 0.0 }
 0x4c1   : > { %v6376_v20 = vpack.c.bf16 %v6270_v21, %v6269_v6  ;;  %v13833_v6 = vld [vmem:[#allocation5_spill] sm:$0xff]  ;;  %v6281_v0 = vmax.f32 %v5933_v58, 0.0  ;;  %v5965_v58 = vadd.f32 %v13840_v27, %v12516_v61 }
 0x4c2   : > { %v6381_v48 = vpack.c.bf16 %v6280_v15, %v6279_v45  ;;  %v5944_v26 = vadd.f32 %v12516_v61, %v13833_v6  ;;  %v5976_v6 = vadd.f32 %v12516_v61, %v12542_v12  ;;  %v5984_v12 = vadd.f32 %v12539_v50, %v12516_v61 }
 0x4c4   : > { %v6284_v32 = vmax.f32 %v5944_v26, 0.0 }
 0x4c6   : > { %8369 = vmatmul.mubr.msk.bf16.gmra.mxu0 %vm6458_vm3, %v6372_v8  ;;  %v5909_v8 = vadd.f32 %v12516_v61, %v12464_v57  ;;  %v13832_v57 = vld [vmem:[#allocation83_spill] sm:$0xff] }
 0x4c7   : > { %8372 = vmatprep.mubr.msk.bf16.mxu0 %vm6458_vm3, %v6373_v16  ;;  %v6274_v16 = vmax.f32 %v5904_v11, 0.0  ;;  %v5917_v49 = vadd.f32 %v13832_v57, %v12516_v61  ;;  %v13835_v11 = vld [vmem:[#allocation33_spill] sm:$0xff]  ;;  %v5957_v57 = vadd.f32 %v12516_v61, %v13838_v56 }
 0x4c8   : > { %v6275_v44 = vmax.f32 %v5909_v8, 0.0 }
 0x4c9   : > { %v6378_v38 = vpack.c.bf16 %v6274_v16, %v6273_v25  ;;  %v6277_v52 = vmax.f32 %v5917_v49, 0.0  ;;  %v13836_v25 = vld [vmem:[#allocation6_spill] sm:$0xff] }
 0x4ca   : > { %v6379_v55 = vpack.c.bf16 %v6276_v39, %v6275_v44  ;;  %v6382_v39 = vpack.c.bf16 %v6282_v2, %v6281_v0  ;;  %v5952_v44 = vadd.f32 %v13836_v25, %v12516_v61  ;;  %v6292_v2 = vmax.f32 %v5976_v6, 0.0 }
 0x4cb   : > { %v6289_v0 = vmax.f32 %v5965_v58, 0.0  ;;  %v6024_v58 = vadd.f32 %v12516_v61, %v12620_v41  ;;  %v6032_v41 = vadd.f32 %v12614_v1, %v12516_v61 }
 0x4cc   : > { %v6286_v53 = vmax.f32 %v5952_v44, 0.0  ;;  %v5992_v44 = vadd.f32 %v12516_v61, %v12570_v36 }
 0x4ce   : > { %8373 = vmatmul.mubr.msk.bf16.gmra.mxu0 %vm6458_vm3, %v6374_v51  ;;  %v12708_v51 = vpop.f32.mrf.mxu0 }
 0x4cf   : > { %8376 = vmatprep.mubr.msk.bf16.mxu0 %vm6458_vm3, %v6375_v47  ;;  %v6278_v47 = vmax.f32 %v5920_v24, 0.0  ;;  %v13837_v24 = vld [vmem:[#allocation3_spill] sm:$0xff] }
 0x4d0   : > { %v12716_v62 = vpop.f32.mrf.mxu0 }
 0x4d1   : > { %v6380_v21 = vpack.c.bf16 %v6278_v47, %v6277_v52  ;;  %v6288_v47 = vmax.f32 %v5960_v13, 0.0  ;;  %v6287_v52 = vmax.f32 %v5957_v57, 0.0  ;;  %v5989_v13 = vadd.f32 %v12516_v61, %v12556_v59 }
 0x4d2   : > { %v5997_v59 = vadd.f32 %v12548_v42, %v12516_v61 }
 0x4d3   : > { %v6295_v57 = vmax.f32 %v5989_v13, 0.0  ;;  %v6306_v13 = vmax.f32 %v6032_v41, 0.0 }
 0x4d6   : > { %8377 = vmatmul.mubr.msk.bf16.gmra.mxu0 %vm6458_vm3, %v6376_v20  ;;  %v12722_v20 = vpop.f32.mrf.mxu0 }
 0x4d7   : > { %8380 = vmatprep.mubr.msk.bf16.mxu0 %vm6458_vm3, %v6377_v46  ;;  %v5941_v46 = vadd.f32 %v12516_v61, %v13835_v11  ;;  %v5973_v11 = vadd.f32 %v12516_v61, %v12529_v4  ;;  %v5981_v4 = vadd.f32 %v12527_v35, %v12516_v61 }
 0x4d8   : > { %v12729_v19 = vpop.f32.mrf.mxu0 }
 0x4d9   : > { %v6283_v8 = vmax.f32 %v5941_v46, 0.0  ;;  %v6290_v46 = vmax.f32 %v5968_v29, 0.0  ;;  %v6293_v50 = vmax.f32 %v5981_v4, 0.0  ;;  %v6037_v4 = vadd.f32 %v12516_v61, %v12630_v30 }
 0x4da   : > { %v12732_v16 = vpop.f32.mrf.mxu0  ;;  %v6045_v30 = vadd.f32 %v12627_v60, %v12516_v61 }
 0x4dc   : > { %v12743_v49 = vpop.f32.mrf.mxu0 }
 0x4de   : > { %8381 = vmatmul.mubr.msk.bf16.gmra.mxu0 %vm6458_vm3, %v6378_v38  ;;  %v6383_v38 = vpack.c.bf16 %v6284_v32, %v6283_v8  ;;  %v12746_v45 = vpop.f32.mrf.mxu0  ;;  %v6291_v8 = vmax.f32 %v5973_v11, 0.0  ;;  %v6021_v11 = vadd.f32 %v12516_v61, %v12606_v9  ;;  %v6029_v9 = vadd.f32 %v12600_v63, %v12516_v61 }
 0x4df   : > { %8384 = vmatprep.mubr.msk.bf16.mxu0 %vm6458_vm3, %v6379_v55  ;;  %v5949_v55 = vadd.f32 %v13837_v24, %v12516_v61  ;;  %v6294_v24 = vmax.f32 %v5984_v12, 0.0  ;;  %v6056_v63 = vadd.f32 %v12516_v61, %v12672_v31 }
 0x4e0   : > { %v12752_v26 = vpop.f32.mrf.mxu0  ;;  %v6387_v25 = vpack.c.bf16 %v6292_v2, %v6291_v8  ;;  %v6305_v1 = vmax.f32 %v6029_v9, 0.0 }
 0x4e1   : > { %v6285_v15 = vmax.f32 %v5949_v55, 0.0  ;;  %v6296_v55 = vmax.f32 %v5992_v44, 0.0  ;;  %v6388_v36 = vpack.c.bf16 %v6294_v24, %v6293_v50  ;;  %v6307_v50 = vmax.f32 %v6037_v4, 0.0 }
 0x4e2   : > { %v12760_v32 = vpop.f32.mrf.mxu0 }
 0x4e3   : > { %v6389_v35 = vpack.c.bf16 %v6296_v55, %v6295_v57  ;;  %v6394_v57 = vpack.c.bf16 %v6306_v13, %v6305_v1  ;;  %v6093_v1 = vadd.f32 %v12702_v40, %v12516_v61  ;;  %v6112_v40 = vadd.f32 %v12743_v49, %v12516_v61 }
 0x4e6   : > { %8385 = vmatmul.mubr.msk.bf16.gmra.mxu0 %vm6458_vm3, %v6380_v21  ;;  %v6384_v21 = vpack.c.bf16 %v6286_v53, %v6285_v15  ;;  %v6008_v15 = vadd.f32 %v12516_v61, %v12597_v17  ;;  %v6016_v17 = vadd.f32 %v12586_v54, %v12516_v61 }
 0x4e7   : > { %8388 = vmatprep.mubr.msk.bf16.mxu0 %vm6458_vm3, %v6381_v48  ;;  %v6385_v48 = vpack.c.bf16 %v6288_v47, %v6287_v52  ;;  %v6000_v47 = vadd.f32 %v12562_v7, %v12516_v61  ;;  %v6005_v52 = vadd.f32 %v12516_v61, %v12583_v43  ;;  %v6013_v43 = vadd.f32 %v12572_v23, %v12516_v61 }
 0x4e8   : > { %v6300_v29 = vmax.f32 %v6008_v15, 0.0  ;;  %v6302_v2 = vmax.f32 %v6016_v17, 0.0 }
 0x4e9   : > { %v6298_v18 = vmax.f32 %v6000_v47, 0.0  ;;  %v6299_v7 = vmax.f32 %v6005_v52, 0.0  ;;  %v6301_v54 = vmax.f32 %v6013_v43, 0.0  ;;  %v6309_v52 = vmax.f32 %v6045_v30, 0.0 }
 0x4eb   : > { %v6391_v42 = vpack.c.bf16 %v6300_v29, %v6299_v7  ;;  %v6392_v12 = vpack.c.bf16 %v6302_v2, %v6301_v54  ;;  %v6072_v7 = vadd.f32 %v12516_v61, %v12699_v22  ;;  %v6080_v22 = vadd.f32 %v12688_v10, %v12516_v61 }
 0x4ed   : > { %v6318_v41 = vmax.f32 %v6080_v22, 0.0 }
 0x4ee   : > { %8389 = vmatmul.mubr.msk.bf16.gmra.mxu0 %vm6458_vm3, %v6382_v39  ;;  %v6386_v39 = vpack.c.bf16 %v6290_v46, %v6289_v0  ;;  %v6304_v0 = vmax.f32 %v6024_v58, 0.0  ;;  %v6316_v58 = vmax.f32 %v6072_v7, 0.0 }
 0x4ef   : > { %8392 = vmatprep.mubr.msk.bf16.mxu0 %vm6458_vm3, %v6383_v38  ;;  %v12766_v38 = vpop.f32.mrf.mxu0 }
 0x4f1   : > { %v12774_v56 = vpop.f32.mrf.mxu0 }
 0x4f3   : > { %v12776_v53 = vpop.f32.mrf.mxu0 }
 0x4f6   : > { %8393 = vmatmul.mubr.msk.bf16.gmra.mxu0 %vm6458_vm3, %v6384_v21  ;;  %v12787_v21 = vpop.f32.mrf.mxu0 }
 0x4f7   : > { %8396 = vmatprep.mubr.msk.bf16.mxu0 %vm6458_vm3, %v6385_v48  ;;  %v6297_v48 = vmax.f32 %v5997_v59, 0.0 }
 0x4f8   : > { %v12790_v6 = vpop.f32.mrf.mxu0 }
 0x4f9   : > { %v6390_v27 = vpack.c.bf16 %v6298_v18, %v6297_v48  ;;  %v6064_v48 = vadd.f32 %v12664_v33, %v12516_v61 }
 0x4fa   : > { %v12801_v46 = vpop.f32.mrf.mxu0 }
 0x4fc   : > { %v12804_v8 = vpop.f32.mrf.mxu0 }
 0x4fe   : > { %8397 = vmatmul.mubr.msk.bf16.gmra.mxu0 %vm6458_vm3, %v6386_v39  ;;  %v6303_v39 = vmax.f32 %v6021_v11, 0.0  ;;  %v12810_v44 = vpop.f32.mrf.mxu0 }
 0x4ff   : > { %8400 = vmatprep.mubr.msk.bf16.mxu0 %vm6458_vm3, %v6387_v25  ;;  %v6040_v25 = vadd.f32 %v12516_v61, %v12644_v5  ;;  %v6048_v5 = vadd.f32 %v12641_v28, %v12516_v61  ;;  %v6312_v28 = vmax.f32 %v6056_v63, 0.0  ;;  %v6321_v63 = vmax.f32 %v6093_v1, 0.0 }
 0x500   : > { %v6393_v23 = vpack.c.bf16 %v6304_v0, %v6303_v39  ;;  %v12818_v55 = vpop.f32.mrf.mxu0  ;;  %v6088_v0 = vadd.f32 %v12516_v61, %v12722_v20  ;;  %v6085_v39 = vadd.f32 %v12516_v61, %v12708_v51  ;;  %v6104_v51 = vadd.f32 %v12516_v61, %v12746_v45 }
 0x501   : > { %v6308_v24 = vmax.f32 %v6040_v25, 0.0  ;;  %v6310_v59 = vmax.f32 %v6048_v5, 0.0 }
 0x502   : > { %v12824_v47 = vpop.f32.mrf.mxu0  ;;  %v6320_v10 = vmax.f32 %v6088_v0, 0.0  ;;  %v6319_v20 = vmax.f32 %v6085_v39, 0.0 }
 0x503   : > { %v6396_v31 = vpack.c.bf16 %v6310_v59, %v6309_v52 }
 0x504   : > { %v6401_v13 = vpack.c.bf16 %v6320_v10, %v6319_v20  ;;  %v6144_v20 = vadd.f32 %v12790_v6, %v12516_v61  ;;  %v6149_v6 = vadd.f32 %v12516_v61, %v12810_v44 }
 0x506   : > { %8401 = vmatmul.mubr.msk.bf16.gmra.mxu0 %vm6458_vm3, %v6388_v36  ;;  %v6395_v36 = vpack.c.bf16 %v6308_v24, %v6307_v50  ;;  %v6101_v50 = vadd.f32 %v12516_v61, %v12732_v16  ;;  %v6120_v16 = vadd.f32 %v12516_v61, %v12774_v56 }
 0x507   : > { %8404 = vmatprep.mubr.msk.bf16.mxu0 %vm6458_vm3, %v6389_v35  ;;  %v6053_v35 = vadd.f32 %v12516_v61, %v12658_v3  ;;  %v6061_v3 = vadd.f32 %v12650_v34, %v12516_v61 }
 0x508   : > { %v6323_v45 = vmax.f32 %v6101_v50, 0.0  ;;  %v6328_v49 = vmax.f32 %v6120_v16, 0.0  ;;  %v6141_v50 = vadd.f32 %v12776_v53, %v12516_v61 }
 0x509   : > { %v12831_v15 = vpop.f32.mrf.mxu0  ;;  %v6311_v18 = vmax.f32 %v6053_v35, 0.0  ;;  %v6313_v43 = vmax.f32 %v6061_v3, 0.0 }
 0x50b   : > { %v12834_v29 = vpop.f32.mrf.mxu0  ;;  %v6397_v60 = vpack.c.bf16 %v6312_v28, %v6311_v18  ;;  %v6109_v28 = vadd.f32 %v12729_v19, %v12516_v61  ;;  %v6117_v18 = vadd.f32 %v12516_v61, %v12760_v32  ;;  %v6128_v19 = vadd.f32 %v12766_v38, %v12516_v61 }
 0x50d   : > { %v12845_v17 = vpop.f32.mrf.mxu0  ;;  %v6327_v56 = vmax.f32 %v6117_v18, 0.0  ;;  %v6330_v38 = vmax.f32 %v6128_v19, 0.0 }
 0x50e   : > { %8405 = vmatmul.mubr.msk.bf16.gmra.mxu0 %vm6458_vm3, %v6390_v27  ;;  %v6069_v27 = vadd.f32 %v12516_v61, %v12685_v37  ;;  %v6077_v37 = vadd.f32 %v12674_v14, %v12516_v61  ;;  %v6096_v14 = vadd.f32 %v12716_v62, %v12516_v61  ;;  %v6324_v62 = vmax.f32 %v6104_v51, 0.0 }
 0x50f   : > { %8408 = vmatprep.mubr.msk.bf16.mxu0 %vm6458_vm3, %v6391_v42  ;;  %v6314_v42 = vmax.f32 %v6064_v48, 0.0  ;;  %v12848_v11 = vpop.f32.mrf.mxu0  ;;  %v6405_v32 = vpack.c.bf16 %v6328_v49, %v6327_v56  ;;  %v6160_v49 = vadd.f32 %v12818_v55, %v12516_v61  ;;  %v6165_v55 = vadd.f32 %v12516_v61, %v12834_v29 }
 0x510   : > { %v6315_v33 = vmax.f32 %v6069_v27, 0.0  ;;  %v6317_v25 = vmax.f32 %v6077_v37, 0.0  ;;  %v6322_v5 = vmax.f32 %v6096_v14, 0.0  ;;  %v6403_v59 = vpack.c.bf16 %v6324_v62, %v6323_v45 }
 0x511   : > { %v6398_v2 = vpack.c.bf16 %v6314_v42, %v6313_v43  ;;  %v12906_v42 = vld [vmem:[#allocation2] ss:$0 sm:$0xff]  ;;  %v6125_v43 = vadd.f32 %v12752_v26, %v12516_v61 }
 0x512   : > { %v6399_v34 = vpack.c.bf16 %v6316_v58, %v6315_v33  ;;  %v6400_v4 = vpack.c.bf16 %v6318_v41, %v6317_v25  ;;  %v6402_v35 = vpack.c.bf16 %v6322_v5, %v6321_v63  ;;  %v6136_v58 = vadd.f32 %v12516_v61, %v12801_v46 }
 0x513   : > { %v6334_v63 = vmax.f32 %v6144_v20, 0.0 }
 0x514   : > { %v6332_v46 = vmax.f32 %v6136_v58, 0.0  ;;  %v6157_v58 = vadd.f32 %v12804_v8, %v12516_v61 }
 0x516   : > { %8409 = vmatmul.mubr.msk.bf16.gmra.mxu0 %vm6458_vm3, %v6392_v12 }
 0x517   : > { %8412 = vmatprep.mubr.msk.bf16.mxu0 %vm6458_vm3, %v6393_v23 }
 0x51e   : > { %8413 = vmatmul.mubr.msk.bf16.gmra.mxu0 %vm6458_vm3, %v6394_v57 }
 0x51f   : > { %8416 = vmatprep.mubr.msk.bf16.mxu0 %vm6458_vm3, %v6395_v36 }
 0x526   : > { %8417 = vmatmul.mubr.msk.bf16.gmra.mxu0 %vm6458_vm3, %v6396_v31  ;;  %v6326_v31 = vmax.f32 %v6112_v40, 0.0 }
 0x527   : > { %8420 = vmatprep.mubr.msk.bf16.mxu0 %vm6458_vm3, %v6397_v60  ;;  %v6325_v60 = vmax.f32 %v6109_v28, 0.0  ;;  %v6335_v28 = vmax.f32 %v6149_v6, 0.0 }
 0x529   : > { %v6404_v3 = vpack.c.bf16 %v6326_v31, %v6325_v60 }
 0x52d   : > { %v12854_v54 = vpop.f32.mrf.mxu0 }
 0x52e   : > { %8421 = vmatmul.mubr.msk.bf16.gmra.mxu0 %vm6458_vm3, %v6398_v2  ;;  %v6133_v2 = vadd.f32 %v12516_v61, %v12787_v21  ;;  %v6329_v21 = vmax.f32 %v6125_v43, 0.0 }
 0x52f   : > { %8424 = vmatprep.mubr.msk.bf16.mxu0 %vm6458_vm3, %v6399_v34  ;;  %v12862_v12 = vpop.f32.mrf.mxu0 }
 0x530   : > { %v6331_v39 = vmax.f32 %v6133_v2, 0.0  ;;  %v6406_v25 = vpack.c.bf16 %v6330_v38, %v6329_v21  ;;  %v6338_v2 = vmax.f32 %v6160_v49, 0.0 }
 0x531   : > { %v12864_v23 = vpop.f32.mrf.mxu0 }
 0x532   : > { %v6407_v14 = vpack.c.bf16 %v6332_v46, %v6331_v39  ;;  %v6337_v46 = vmax.f32 %v6157_v58, 0.0  ;;  %v6176_v39 = vadd.f32 %v12845_v17, %v12516_v61  ;;  %v6181_v17 = vadd.f32 %v12516_v61, %v12862_v12 }
 0x533   : > { %v12866_v9 = vpop.f32.mrf.mxu0 }
 0x535   : > { %v12872_v24 = vpop.f32.mrf.mxu0 }
 0x536   : > { %8425 = vmatmul.mubr.msk.bf16.gmra.mxu0 %vm6458_vm3, %v6400_v4 }
 0x537   : > { %8428 = vmatprep.mubr.msk.bf16.mxu0 %vm6458_vm3, %v6401_v13  ;;  %v12880_v57 = vpop.f32.mrf.mxu0  ;;  %v6152_v13 = vadd.f32 %v12516_v61, %v12824_v47 }
 0x539   : > { %v12882_v36 = vpop.f32.mrf.mxu0 }
 0x53b   : > { %v12884_v30 = vpop.f32.mrf.mxu0 }
 0x53e   : > { %v12892_v52 = vpop.f32.mrf.mxu0  ;;  %8429 = vmatmul.mubr.msk.bf16.gmra.mxu0 %vm6458_vm3, %v6402_v35  ;;  %v6336_v35 = vmax.f32 %v6152_v13, 0.0 }
 0x53f   : > { %8432 = vmatprep.mubr.msk.bf16.mxu0 %vm6458_vm3, %v6403_v59  ;;  %v6333_v59 = vmax.f32 %v6141_v50, 0.0 }
 0x540   : > { %v12898_v48 = vpop.f32.mrf.mxu0  ;;  %v6409_v56 = vpack.c.bf16 %v6336_v35, %v6335_v28 }
 0x541   : > { %v6408_v31 = vpack.c.bf16 %v6334_v63, %v6333_v59  ;;  %v6343_v63 = vmax.f32 %v6181_v17, 0.0 }
 0x542   : > { %v12900_v7 = vpop.f32.mrf.mxu0 }
 0x544   : > { %v12904_v27 = vpop.f32.mrf.mxu0 }
 0x546   : > { %v8338_v33 = vpop.f32.mrf.mxu0  ;;  %8433 = vmatmul.mubr.msk.bf16.gmra.mxu0 %vm6458_vm3, %v6404_v3  ;;  %v6168_v3 = vadd.f32 %v12516_v61, %v12848_v11 }
 0x547   : > { %v6694_v22 = vadd.f32 %v8338_v33, %v12906_v42  ;;  %8436 = vmatprep.mubr.msk.bf16.mxu0 %vm6458_vm3, %v6405_v32 }
 0x548   : > { %v6685_v26 = vpop.f32.mrf.mxu0  ;;  %v6340_v38 = vmax.f32 %v6168_v3, 0.0 }
 0x549   : > { %v7198_v34 = vmax.f32 %v6694_v22, 0.0  ;;  %v6686_v0 = vadd.f32 %v12906_v42, %v6685_v26 }
 0x54a   : > { %v8339_v37 = vpop.f32.mrf.mxu0 }
 0x54b   : > { %7327 = vst.msk [vmem:[%s12922_s12 + $0x10] sm:$0xff] %vm7324_vm4, %v7198_v34  ;;  %v7196_v41 = vmax.f32 %v6686_v0, 0.0  ;;  %v6697_v10 = vadd.f32 %v8339_v37, %v12906_v42  ;;  %v6339_v0 = vmax.f32 %v6165_v55, 0.0  ;;  %v6410_v37 = vpack.c.bf16 %v6338_v2, %v6337_v46 }
 0x54c   : > { %v6688_v4 = vpop.f32.mrf.mxu0 }
 0x54d   : > { %7325 = vst.msk [vmem:[%s12922_s12] sm:$0xff] %vm7324_vm4, %v7196_v41  ;;  %v7199_v51 = vmax.f32 %v6697_v10, 0.0  ;;  %v6689_v1 = vadd.f32 %v12906_v42, %v6688_v4  ;;  %v6411_v10 = vpack.c.bf16 %v6340_v38, %v6339_v0 }
 0x54e   : > { %v8342_v5 = vpop.f32.mrf.mxu0  ;;  %8437 = vmatmul.mubr.msk.bf16.gmra.mxu0 %vm6458_vm3, %v6406_v25  ;;  %v6184_v25 = vadd.f32 %v12516_v61, %v12866_v9 }
 0x54f   : > { %7328 = vst.msk [vmem:[%s12922_s12 + $0x18] sm:$0xff] %vm7324_vm4, %v7199_v51  ;;  %v7197_v62 = vmax.f32 %v6689_v1, 0.0  ;;  %v6710_v47 = vadd.f32 %v8342_v5, %v12906_v42  ;;  %8440 = vmatprep.mubr.msk.bf16.mxu0 %vm6458_vm3, %v6407_v14  ;;  %v6173_v14 = vadd.f32 %v12831_v15, %v12516_v61  ;;  %v6342_v1 = vmax.f32 %v6176_v39, 0.0 }
 0x550   : > { %v6701_v45 = vpop.f32.mrf.mxu0  ;;  %v6344_v5 = vmax.f32 %v6184_v25, 0.0 }
 0x551   : > { %7326 = vst.msk [vmem:[%s12922_s12 + $0x8] sm:$0xff] %vm7324_vm4, %v7197_v62  ;;  %v7202_v53 = vmax.f32 %v6710_v47, 0.0  ;;  %v6702_v40 = vadd.f32 %v12906_v42, %v6701_v45  ;;  %v6341_v62 = vmax.f32 %v6173_v14, 0.0 }
 0x552   : > { %v8343_v16 = vpop.f32.mrf.mxu0  ;;  %v6413_v59 = vpack.c.bf16 %v6344_v5, %v6343_v63 }
 0x553   : > { %7331 = vst.msk [vmem:[%s12922_s12 + $0x30] sm:$0xff] %vm7324_vm4, %v7202_v53  ;;  %v7200_v44 = vmax.f32 %v6702_v40, 0.0  ;;  %v6713_v18 = vadd.f32 %v8343_v16, %v12906_v42  ;;  %v6412_v35 = vpack.c.bf16 %v6342_v1, %v6341_v62  ;;  %v6192_v53 = vadd.f32 %v12864_v23, %v12516_v61 }
 0x554   : > { %v6704_v60 = vpop.f32.mrf.mxu0  ;;  %v6200_v16 = vadd.f32 %v12516_v61, %v12884_v30  ;;  %v6197_v23 = vadd.f32 %v12516_v61, %v12880_v57 }
 0x555   : > { %7329 = vst.msk [vmem:[%s12922_s12 + $0x20] sm:$0xff] %vm7324_vm4, %v7200_v44  ;;  %v7203_v19 = vmax.f32 %v6713_v18, 0.0  ;;  %v6705_v32 = vadd.f32 %v12906_v42, %v6704_v60  ;;  %v6189_v18 = vadd.f32 %v12854_v54, %v12516_v61  ;;  %v6346_v60 = vmax.f32 %v6192_v53, 0.0 }
 0x556   : > { %v8346_v43 = vpop.f32.mrf.mxu0  ;;  %8441 = vmatmul.mubr.msk.bf16.gmra.mxu0 %vm6458_vm3, %v6408_v31  ;;  %v6348_v3 = vmax.f32 %v6200_v16, 0.0 }
 0x557   : > { %7332 = vst.msk [vmem:[%s12922_s12 + $0x38] sm:$0xff] %vm7324_vm4, %v7203_v19  ;;  %v7201_v33 = vmax.f32 %v6705_v32, 0.0  ;;  %v6726_v11 = vadd.f32 %v8346_v43, %v12906_v42  ;;  %8444 = vmatprep.mubr.msk.bf16.mxu0 %vm6458_vm3, %v6409_v56  ;;  %v6345_v32 = vmax.f32 %v6189_v18, 0.0  ;;  %v6347_v43 = vmax.f32 %v6197_v23, 0.0 }
 0x558   : > { %v6717_v22 = vpop.f32.mrf.mxu0 }
 0x559   : > { %7330 = vst.msk [vmem:[%s12922_s12 + $0x28] sm:$0xff] %vm7324_vm4, %v7201_v33  ;;  %v7206_v8 = vmax.f32 %v6726_v11, 0.0  ;;  %v6718_v26 = vadd.f32 %v12906_v42, %v6717_v22  ;;  %v6414_v55 = vpack.c.bf16 %v6346_v60, %v6345_v32  ;;  %v9302_v33 = vld [vmem:[%s13379_s7] ss:$0 sm:$0xff]  ;;  %v6415_v22 = vpack.c.bf16 %v6348_v3, %v6347_v43 }
 0x55a   : > { %v8347_v34 = vpop.f32.mrf.mxu0  ;;  %v6208_v11 = vadd.f32 %v9302_v33, %v12882_v36  ;;  %v6216_v38 = vadd.f32 %v9302_v33, %v12904_v27  ;;  %v6205_v46 = vadd.f32 %v9302_v33, %v12872_v24  ;;  %v6213_v0 = vadd.f32 %v9302_v33, %v12898_v48 }
 0x55b   : > { %7335 = vst.msk [vmem:[%s12922_s12 + $0x50] sm:$0xff] %vm7324_vm4, %v7206_v8  ;;  %v7204_v29 = vmax.f32 %v6718_v26, 0.0  ;;  %v6729_v21 = vadd.f32 %v8347_v34, %v12906_v42  ;;  %v6224_v14 = vadd.f32 %v9302_v33, %v12900_v7  ;;  %v6221_v1 = vadd.f32 %v9302_v33, %v12892_v52 }
 0x55c   : > { %v6720_v41 = vpop.f32.mrf.mxu0  ;;  %v6350_v27 = vmax.f32 %v6208_v11, 0.0  ;;  %v6351_v48 = vmax.f32 %v6213_v0, 0.0 }
 0x55d   : > { %7333 = vst.msk [vmem:[%s12922_s12 + $0x40] sm:$0xff] %vm7324_vm4, %v7204_v29  ;;  %v7207_v20 = vmax.f32 %v6729_v21, 0.0  ;;  %v6721_v4 = vadd.f32 %v12906_v42, %v6720_v41  ;;  %v6349_v41 = vmax.f32 %v6205_v46, 0.0  ;;  %v6354_v7 = vmax.f32 %v6224_v14, 0.0 }
 0x55e   : > { %v8350_v13 = vpop.f32.mrf.mxu0  ;;  %8445 = vmatmul.mubr.msk.bf16.gmra.mxu0 %vm6458_vm3, %v6410_v37  ;;  %v6352_v37 = vmax.f32 %v6216_v38, 0.0  ;;  %v6353_v52 = vmax.f32 %v6221_v1, 0.0 }
 0x55f   : > { %7336 = vst.msk [vmem:[%s12922_s12 + $0x58] sm:$0xff] %vm7324_vm4, %v7207_v20  ;;  %v7205_v51 = vmax.f32 %v6721_v4, 0.0  ;;  %v6742_v9 = vadd.f32 %v8350_v13, %v12906_v42  ;;  %8448 = vmatprep.mubr.msk.bf16.mxu0 %vm6458_vm3, %v6411_v10  ;;  %v6416_v4 = vpack.c.bf16 %v6350_v27, %v6349_v41 }
 0x560   : > { %v6733_v50 = vpop.f32.mrf.mxu0  ;;  %v6417_v17 = vpack.c.bf16 %v6352_v37, %v6351_v48 }
 0x561   : > { %7334 = vst.msk [vmem:[%s12922_s12 + $0x48] sm:$0xff] %vm7324_vm4, %v7205_v51  ;;  %v7210_v15 = vmax.f32 %v6742_v9, 0.0  ;;  %v6734_v6 = vadd.f32 %v12906_v42, %v6733_v50 }
 0x562   : > { %v8351_v47 = vpop.f32.mrf.mxu0 }
 0x563   : > { %7339 = vst.msk [vmem:[%s12922_s12 + $0x70] sm:$0xff] %vm7324_vm4, %v7210_v15  ;;  %v7208_v12 = vmax.f32 %v6734_v6, 0.0  ;;  %v6745_v45 = vadd.f32 %v8351_v47, %v12906_v42 }
 0x564   : > { %v6736_v40 = vpop.f32.mrf.mxu0 }
 0x565   : > { %7337 = vst.msk [vmem:[%s12922_s12 + $0x60] sm:$0xff] %vm7324_vm4, %v7208_v12  ;;  %v7211_v28 = vmax.f32 %v6745_v45, 0.0  ;;  %v6737_v44 = vadd.f32 %v12906_v42, %v6736_v40 }
 0x566   : > { %v8354_v31 = vpop.f32.mrf.mxu0  ;;  %8449 = vmatmul.mubr.msk.bf16.gmra.mxu0 %vm6458_vm3, %v6412_v35  ;;  %v6418_v35 = vpack.c.bf16 %v6354_v7, %v6353_v52 }
 0x567   : > { %7340 = vst.msk [vmem:[%s12922_s12 + $0x78] sm:$0xff] %vm7324_vm4, %v7211_v28  ;;  %v7209_v49 = vmax.f32 %v6737_v44, 0.0  ;;  %v6758_v30 = vadd.f32 %v8354_v31, %v12906_v42  ;;  %8452 = vmatprep.mubr.msk.bf16.mxu0 %vm6458_vm3, %v6413_v59 }
 0x568   : > { %v6749_v56 = vpop.f32.mrf.mxu0 }
 0x569   : > { %7338 = vst.msk [vmem:[%s12922_s12 + $0x68] sm:$0xff] %vm7324_vm4, %v7209_v49  ;;  %v7214_v54 = vmax.f32 %v6758_v30, 0.0  ;;  %v6750_v19 = vadd.f32 %v12906_v42, %v6749_v56 }
 0x56a   : > { %v8355_v58 = vpop.f32.mrf.mxu0 }
 0x56b   : > { %7343 = vst.msk [vmem:[%s12922_s12 + $0x90] sm:$0xff] %vm7324_vm4, %v7214_v54  ;;  %v7212_v61 = vmax.f32 %v6750_v19, 0.0  ;;  %v6761_v57 = vadd.f32 %v8355_v58, %v12906_v42 }
 0x56c   : > { %v6752_v2 = vpop.f32.mrf.mxu0 }
 0x56d   : > { %7341 = vst.msk [vmem:[%s12922_s12 + $0x80] sm:$0xff] %vm7324_vm4, %v7212_v61  ;;  %v7215_v8 = vmax.f32 %v6761_v57, 0.0  ;;  %v6753_v26 = vadd.f32 %v12906_v42, %v6752_v2 }
 0x56e   : > { %v8358_v34 = vpop.f32.mrf.mxu0  ;;  %8453 = vmatmul.mubr.msk.bf16.gmra.mxu0 %vm6458_vm3, %v6414_v55 }
 0x56f   : > { %7344 = vst.msk [vmem:[%s12922_s12 + $0x98] sm:$0xff] %vm7324_vm4, %v7215_v8  ;;  %v7213_v36 = vmax.f32 %v6753_v26, 0.0  ;;  %v6774_v29 = vadd.f32 %v8358_v34, %v12906_v42  ;;  %8456 = vmatprep.mubr.msk.bf16.mxu0 %vm6458_vm3, %v6415_v22 }
 0x570   : > { %v6765_v21 = vpop.f32.mrf.mxu0 }
 0x571   : > { %7342 = vst.msk [vmem:[%s12922_s12 + $0x88] sm:$0xff] %vm7324_vm4, %v7213_v36  ;;  %v7218_v24 = vmax.f32 %v6774_v29, 0.0  ;;  %v6766_v39 = vadd.f32 %v12906_v42, %v6765_v21 }
 0x572   : > { %v8359_v10 = vpop.f32.mrf.mxu0 }
 0x573   : > { %7347 = vst.msk [vmem:[%s12922_s12 + $0xb0] sm:$0xff] %vm7324_vm4, %v7218_v24  ;;  %v7216_v25 = vmax.f32 %v6766_v39, 0.0  ;;  %v6777_v20 = vadd.f32 %v8359_v10, %v12906_v42 }
 0x574   : > { %v6768_v13 = vpop.f32.mrf.mxu0 }
 0x575   : > { %7345 = vst.msk [vmem:[%s12922_s12 + $0xa0] sm:$0xff] %vm7324_vm4, %v7216_v25  ;;  %v7219_v51 = vmax.f32 %v6777_v20, 0.0  ;;  %v6769_v9 = vadd.f32 %v12906_v42, %v6768_v13 }
 0x576   : > { %v8362_v50 = vpop.f32.mrf.mxu0  ;;  %8457 = vmatmul.mubr.msk.bf16.gmra.mxu0 %vm6458_vm3, %v6416_v4 }
 0x577   : > { %7348 = vst.msk [vmem:[%s12922_s12 + $0xb8] sm:$0xff] %vm7324_vm4, %v7219_v51  ;;  %v7217_v5 = vmax.f32 %v6769_v9, 0.0  ;;  %v6790_v15 = vadd.f32 %v8362_v50, %v12906_v42  ;;  %8460 = vmatprep.mubr.msk.bf16.mxu0 %vm6458_vm3, %v6417_v17 }
 0x578   : > { %v6781_v6 = vpop.f32.mrf.mxu0 }
 0x579   : > { %7346 = vst.msk [vmem:[%s12922_s12 + $0xa8] sm:$0xff] %vm7324_vm4, %v7217_v5  ;;  %v7222_v62 = vmax.f32 %v6790_v15, 0.0  ;;  %v6782_v47 = vadd.f32 %v12906_v42, %v6781_v6 }
 0x57a   : > { %v8363_v63 = vpop.f32.mrf.mxu0 }
 0x57b   : > { %7351 = vst.msk [vmem:[%s12922_s12 + $0xd0] sm:$0xff] %vm7324_vm4, %v7222_v62  ;;  %v7220_v12 = vmax.f32 %v6782_v47, 0.0  ;;  %v6793_v45 = vadd.f32 %v8363_v63, %v12906_v42 }
 0x57c   : > { %v6784_v53 = vpop.f32.mrf.mxu0 }
 0x57d   : > { %7349 = vst.msk [vmem:[%s12922_s12 + $0xc0] sm:$0xff] %vm7324_vm4, %v7220_v12  ;;  %v7223_v40 = vmax.f32 %v6793_v45, 0.0  ;;  %v6785_v59 = vadd.f32 %v12906_v42, %v6784_v53 }
 0x57e   : > { %v8366_v16 = vpop.f32.mrf.mxu0  ;;  %8461 = vmatmul.mubr.msk.bf16.gmra.mxu0 %vm6458_vm3, %v6418_v35 }
 0x57f   : > { %7352 = vst.msk [vmem:[%s12922_s12 + $0xd8] sm:$0xff] %vm7324_vm4, %v7223_v40  ;;  %v7221_v28 = vmax.f32 %v6785_v59, 0.0  ;;  %v6806_v44 = vadd.f32 %v8366_v16, %v12906_v42 }
 0x580   : > { %v6797_v18 = vpop.f32.mrf.mxu0 }
 0x581   : > { %7350 = vst.msk [vmem:[%s12922_s12 + $0xc8] sm:$0xff] %vm7324_vm4, %v7221_v28  ;;  %v7226_v31 = vmax.f32 %v6806_v44, 0.0  ;;  %v6798_v23 = vadd.f32 %v12906_v42, %v6797_v18 }
 0x582   : > { %v8367_v49 = vpop.f32.mrf.mxu0 }
 0x583   : > { %7355 = vst.msk [vmem:[%s12922_s12 + $0xf0] sm:$0xff] %vm7324_vm4, %v7226_v31  ;;  %v7224_v30 = vmax.f32 %v6798_v23, 0.0  ;;  %v6809_v60 = vadd.f32 %v8367_v49, %v12906_v42 }
 0x584   : > { %v6800_v56 = vpop.f32.mrf.mxu0 }
 0x585   : > { %7353 = vst.msk [vmem:[%s12922_s12 + $0xe0] sm:$0xff] %vm7324_vm4, %v7224_v30  ;;  %v7227_v3 = vmax.f32 %v6809_v60, 0.0  ;;  %v6801_v54 = vadd.f32 %v12906_v42, %v6800_v56 }
 0x586   : > { %v8370_v19 = vpop.f32.mrf.mxu0 }
 0x587   : > { %7356 = vst.msk [vmem:[%s12922_s12 + $0xf8] sm:$0xff] %vm7324_vm4, %v7227_v3  ;;  %v7225_v32 = vmax.f32 %v6801_v54, 0.0  ;;  %v6822_v58 = vadd.f32 %v8370_v19, %v12906_v42 }
 0x588   : > { %v6813_v43 = vpop.f32.mrf.mxu0 }
 0x589   : > { %7354 = vst.msk [vmem:[%s12922_s12 + $0xe8] sm:$0xff] %vm7324_vm4, %v7225_v32  ;;  %v7230_v61 = vmax.f32 %v6822_v58, 0.0  ;;  %v6814_v57 = vadd.f32 %v12906_v42, %v6813_v43 }
 0x58a   : > { %v8371_v55 = vpop.f32.mrf.mxu0 }
 0x58b   : > { %7359 = vst.msk [vmem:[%s12922_s12 + $0x110] sm:$0xff] %vm7324_vm4, %v7230_v61  ;;  %v7228_v33 = vmax.f32 %v6814_v57, 0.0  ;;  %v6825_v11 = vadd.f32 %v8371_v55, %v12906_v42 }
 0x58c   : > { %v6816_v2 = vpop.f32.mrf.mxu0 }
 0x58d   : > { %7357 = vst.msk [vmem:[%s12922_s12 + $0x100] sm:$0xff] %vm7324_vm4, %v7228_v33  ;;  %v7231_v22 = vmax.f32 %v6825_v11, 0.0  ;;  %v6817_v38 = vadd.f32 %v12906_v42, %v6816_v2 }
 0x58e   : > { %v8374_v8 = vpop.f32.mrf.mxu0 }
 0x58f   : > { %7360 = vst.msk [vmem:[%s12922_s12 + $0x118] sm:$0xff] %vm7324_vm4, %v7231_v22  ;;  %v7229_v26 = vmax.f32 %v6817_v38, 0.0  ;;  %v6838_v46 = vadd.f32 %v8374_v8, %v12906_v42 }
 0x590   : > { %v6829_v34 = vpop.f32.mrf.mxu0 }
 0x591   : > { %7358 = vst.msk [vmem:[%s12922_s12 + $0x108] sm:$0xff] %vm7324_vm4, %v7229_v26  ;;  %v7234_v0 = vmax.f32 %v6838_v46, 0.0  ;;  %v6830_v36 = vadd.f32 %v12906_v42, %v6829_v34 }
 0x592   : > { %v8375_v29 = vpop.f32.mrf.mxu0 }
 0x593   : > { %7363 = vst.msk [vmem:[%s12922_s12 + $0x130] sm:$0xff] %vm7324_vm4, %v7234_v0  ;;  %v7232_v27 = vmax.f32 %v6830_v36, 0.0  ;;  %v6841_v21 = vadd.f32 %v8375_v29, %v12906_v42 }
 0x594   : > { %v6832_v37 = vpop.f32.mrf.mxu0 }
 0x595   : > { %7361 = vst.msk [vmem:[%s12922_s12 + $0x120] sm:$0xff] %vm7324_vm4, %v7232_v27  ;;  %v7235_v24 = vmax.f32 %v6841_v21, 0.0  ;;  %v6833_v39 = vadd.f32 %v12906_v42, %v6832_v37 }
 0x596   : > { %v8378_v41 = vpop.f32.mrf.mxu0 }
 0x597   : > { %7364 = vst.msk [vmem:[%s12922_s12 + $0x138] sm:$0xff] %vm7324_vm4, %v7235_v24  ;;  %v7233_v10 = vmax.f32 %v6833_v39, 0.0  ;;  %v6854_v48 = vadd.f32 %v8378_v41, %v12906_v42 }
 0x598   : > { %v6845_v25 = vpop.f32.mrf.mxu0 }
 0x599   : > { %7362 = vst.msk [vmem:[%s12922_s12 + $0x128] sm:$0xff] %vm7324_vm4, %v7233_v10  ;;  %v7238_v20 = vmax.f32 %v6854_v48, 0.0  ;;  %v6846_v4 = vadd.f32 %v12906_v42, %v6845_v25 }
 0x59a   : > { %v8379_v14 = vpop.f32.mrf.mxu0 }
 0x59b   : > { %7367 = vst.msk [vmem:[%s12922_s12 + $0x150] sm:$0xff] %vm7324_vm4, %v7238_v20  ;;  %v7236_v13 = vmax.f32 %v6846_v4, 0.0  ;;  %v6857_v17 = vadd.f32 %v8379_v14, %v12906_v42 }
 0x59c   : > { %v6848_v51 = vpop.f32.mrf.mxu0 }
 0x59d   : > { %7365 = vst.msk [vmem:[%s12922_s12 + $0x140] sm:$0xff] %vm7324_vm4, %v7236_v13  ;;  %v7239_v9 = vmax.f32 %v6857_v17, 0.0  ;;  %v6849_v1 = vadd.f32 %v12906_v42, %v6848_v51 }
 0x59e   : > { %v8382_v50 = vpop.f32.mrf.mxu0 }
 0x59f   : > { %7368 = vst.msk [vmem:[%s12922_s12 + $0x158] sm:$0xff] %vm7324_vm4, %v7239_v9  ;;  %v7237_v5 = vmax.f32 %v6849_v1, 0.0  ;;  %v6870_v15 = vadd.f32 %v8382_v50, %v12906_v42 }
 0x5a0   : > { %v6861_v7 = vpop.f32.mrf.mxu0 }
 0x5a1   : > { %7366 = vst.msk [vmem:[%s12922_s12 + $0x148] sm:$0xff] %vm7324_vm4, %v7237_v5  ;;  %v7242_v6 = vmax.f32 %v6870_v15, 0.0  ;;  %v6862_v62 = vadd.f32 %v12906_v42, %v6861_v7 }
 0x5a2   : > { %v8383_v47 = vpop.f32.mrf.mxu0 }
 0x5a3   : > { %7371 = vst.msk [vmem:[%s12922_s12 + $0x170] sm:$0xff] %vm7324_vm4, %v7242_v6  ;;  %v7240_v52 = vmax.f32 %v6862_v62, 0.0  ;;  %v6873_v63 = vadd.f32 %v8383_v47, %v12906_v42 }
 0x5a4   : > { %v6864_v12 = vpop.f32.mrf.mxu0 }
 0x5a5   : > { %7369 = vst.msk [vmem:[%s12922_s12 + $0x160] sm:$0xff] %vm7324_vm4, %v7240_v52  ;;  %v7243_v45 = vmax.f32 %v6873_v63, 0.0  ;;  %v6865_v35 = vadd.f32 %v12906_v42, %v6864_v12 }
 0x5a6   : > { %v8386_v53 = vpop.f32.mrf.mxu0 }
 0x5a7   : > { %7372 = vst.msk [vmem:[%s12922_s12 + $0x178] sm:$0xff] %vm7324_vm4, %v7243_v45  ;;  %v7241_v40 = vmax.f32 %v6865_v35, 0.0  ;;  %v6886_v59 = vadd.f32 %v8386_v53, %v12906_v42 }
 0x5a8   : > { %v6877_v16 = vpop.f32.mrf.mxu0 }
 0x5a9   : > { %7370 = vst.msk [vmem:[%s12922_s12 + $0x168] sm:$0xff] %vm7324_vm4, %v7241_v40  ;;  %v7246_v28 = vmax.f32 %v6886_v59, 0.0  ;;  %v6878_v44 = vadd.f32 %v12906_v42, %v6877_v16 }
 0x5aa   : > { %v8387_v18 = vpop.f32.mrf.mxu0 }
 0x5ab   : > { %7375 = vst.msk [vmem:[%s12922_s12 + $0x190] sm:$0xff] %vm7324_vm4, %v7246_v28  ;;  %v7244_v31 = vmax.f32 %v6878_v44, 0.0  ;;  %v6889_v23 = vadd.f32 %v8387_v18, %v12906_v42 }
 0x5ac   : > { %v6880_v49 = vpop.f32.mrf.mxu0 }
 0x5ad   : > { %7373 = vst.msk [vmem:[%s12922_s12 + $0x180] sm:$0xff] %vm7324_vm4, %v7244_v31  ;;  %v7247_v30 = vmax.f32 %v6889_v23, 0.0  ;;  %v6881_v60 = vadd.f32 %v12906_v42, %v6880_v49 }
 0x5ae   : > { %v8390_v56 = vpop.f32.mrf.mxu0 }
 0x5af   : > { %7376 = vst.msk [vmem:[%s12922_s12 + $0x198] sm:$0xff] %vm7324_vm4, %v7247_v30  ;;  %v7245_v3 = vmax.f32 %v6881_v60, 0.0  ;;  %v6902_v54 = vadd.f32 %v8390_v56, %v12906_v42 }
 0x5b0   : > { %v6893_v19 = vpop.f32.mrf.mxu0 }
 0x5b1   : > { %7374 = vst.msk [vmem:[%s12922_s12 + $0x188] sm:$0xff] %vm7324_vm4, %v7245_v3  ;;  %v7250_v32 = vmax.f32 %v6902_v54, 0.0  ;;  %v6894_v58 = vadd.f32 %v12906_v42, %v6893_v19 }
 0x5b2   : > { %v8391_v43 = vpop.f32.mrf.mxu0 }
 0x5b3   : > { %7379 = vst.msk [vmem:[%s12922_s12 + $0x1b0] sm:$0xff] %vm7324_vm4, %v7250_v32  ;;  %v7248_v61 = vmax.f32 %v6894_v58, 0.0  ;;  %v6905_v57 = vadd.f32 %v8391_v43, %v12906_v42 }
 0x5b4   : > { %v6896_v55 = vpop.f32.mrf.mxu0 }
 0x5b5   : > { %7377 = vst.msk [vmem:[%s12922_s12 + $0x1a0] sm:$0xff] %vm7324_vm4, %v7248_v61  ;;  %v7251_v33 = vmax.f32 %v6905_v57, 0.0  ;;  %v6897_v11 = vadd.f32 %v12906_v42, %v6896_v55 }
 0x5b6   : > { %v8394_v2 = vpop.f32.mrf.mxu0 }
 0x5b7   : > { %7380 = vst.msk [vmem:[%s12922_s12 + $0x1b8] sm:$0xff] %vm7324_vm4, %v7251_v33  ;;  %v7249_v22 = vmax.f32 %v6897_v11, 0.0  ;;  %v6918_v38 = vadd.f32 %v8394_v2, %v12906_v42 }
 0x5b8   : > { %v6909_v8 = vpop.f32.mrf.mxu0 }
 0x5b9   : > { %7378 = vst.msk [vmem:[%s12922_s12 + $0x1a8] sm:$0xff] %vm7324_vm4, %v7249_v22  ;;  %v7254_v26 = vmax.f32 %v6918_v38, 0.0  ;;  %v6910_v46 = vadd.f32 %v12906_v42, %v6909_v8 }
 0x5ba   : > { %v8395_v34 = vpop.f32.mrf.mxu0 }
 0x5bb   : > { %7383 = vst.msk [vmem:[%s12922_s12 + $0x1d0] sm:$0xff] %vm7324_vm4, %v7254_v26  ;;  %v7252_v0 = vmax.f32 %v6910_v46, 0.0  ;;  %v6921_v36 = vadd.f32 %v8395_v34, %v12906_v42 }
 0x5bc   : > { %v6912_v29 = vpop.f32.mrf.mxu0 }
 0x5bd   : > { %7381 = vst.msk [vmem:[%s12922_s12 + $0x1c0] sm:$0xff] %vm7324_vm4, %v7252_v0  ;;  %v7255_v27 = vmax.f32 %v6921_v36, 0.0  ;;  %v6913_v21 = vadd.f32 %v12906_v42, %v6912_v29 }
 0x5be   : > { %v8398_v37 = vpop.f32.mrf.mxu0 }
 0x5bf   : > { %7384 = vst.msk [vmem:[%s12922_s12 + $0x1d8] sm:$0xff] %vm7324_vm4, %v7255_v27  ;;  %v7253_v24 = vmax.f32 %v6913_v21, 0.0  ;;  %v6934_v39 = vadd.f32 %v8398_v37, %v12906_v42 }
 0x5c0   : > { %v6925_v41 = vpop.f32.mrf.mxu0 }
 0x5c1   : > { %7382 = vst.msk [vmem:[%s12922_s12 + $0x1c8] sm:$0xff] %vm7324_vm4, %v7253_v24  ;;  %v7258_v10 = vmax.f32 %v6934_v39, 0.0  ;;  %v6926_v48 = vadd.f32 %v12906_v42, %v6925_v41 }
 0x5c2   : > { %v8399_v25 = vpop.f32.mrf.mxu0 }
 0x5c3   : > { %7387 = vst.msk [vmem:[%s12922_s12 + $0x1f0] sm:$0xff] %vm7324_vm4, %v7258_v10  ;;  %v7256_v20 = vmax.f32 %v6926_v48, 0.0  ;;  %v6937_v4 = vadd.f32 %v8399_v25, %v12906_v42 }
 0x5c4   : > { %v6928_v14 = vpop.f32.mrf.mxu0 }
 0x5c5   : > { %7385 = vst.msk [vmem:[%s12922_s12 + $0x1e0] sm:$0xff] %vm7324_vm4, %v7256_v20  ;;  %v7259_v13 = vmax.f32 %v6937_v4, 0.0  ;;  %v6929_v17 = vadd.f32 %v12906_v42, %v6928_v14 }
 0x5c6   : > { %v8402_v51 = vpop.f32.mrf.mxu0 }
 0x5c7   : > { %7388 = vst.msk [vmem:[%s12922_s12 + $0x1f8] sm:$0xff] %vm7324_vm4, %v7259_v13  ;;  %v7257_v9 = vmax.f32 %v6929_v17, 0.0  ;;  %v6950_v1 = vadd.f32 %v8402_v51, %v12906_v42 }
 0x5c8   : > { %v6941_v50 = vpop.f32.mrf.mxu0 }
 0x5c9   : > { %7386 = vst.msk [vmem:[%s12922_s12 + $0x1e8] sm:$0xff] %vm7324_vm4, %v7257_v9  ;;  %v7262_v5 = vmax.f32 %v6950_v1, 0.0  ;;  %v6942_v15 = vadd.f32 %v12906_v42, %v6941_v50 }
 0x5ca   : > { %v8403_v7 = vpop.f32.mrf.mxu0 }
 0x5cb   : > { %7391 = vst.msk [vmem:[%s12922_s12 + $0x210] sm:$0xff] %vm7324_vm4, %v7262_v5  ;;  %v7260_v6 = vmax.f32 %v6942_v15, 0.0  ;;  %v6953_v62 = vadd.f32 %v8403_v7, %v12906_v42 }
 0x5cc   : > { %v6944_v47 = vpop.f32.mrf.mxu0 }
 0x5cd   : > { %7389 = vst.msk [vmem:[%s12922_s12 + $0x200] sm:$0xff] %vm7324_vm4, %v7260_v6  ;;  %v7263_v52 = vmax.f32 %v6953_v62, 0.0  ;;  %v6945_v63 = vadd.f32 %v12906_v42, %v6944_v47 }
 0x5ce   : > { %v8406_v12 = vpop.f32.mrf.mxu0 }
 0x5cf   : > { %7392 = vst.msk [vmem:[%s12922_s12 + $0x218] sm:$0xff] %vm7324_vm4, %v7263_v52  ;;  %v7261_v45 = vmax.f32 %v6945_v63, 0.0  ;;  %v6966_v35 = vadd.f32 %v8406_v12, %v12906_v42 }
 0x5d0   : > { %v6957_v53 = vpop.f32.mrf.mxu0 }
 0x5d1   : > { %7390 = vst.msk [vmem:[%s12922_s12 + $0x208] sm:$0xff] %vm7324_vm4, %v7261_v45  ;;  %v7266_v40 = vmax.f32 %v6966_v35, 0.0  ;;  %v6958_v59 = vadd.f32 %v12906_v42, %v6957_v53 }
 0x5d2   : > { %v8407_v16 = vpop.f32.mrf.mxu0 }
 0x5d3   : > { %7395 = vst.msk [vmem:[%s12922_s12 + $0x230] sm:$0xff] %vm7324_vm4, %v7266_v40  ;;  %v7264_v28 = vmax.f32 %v6958_v59, 0.0  ;;  %v6969_v44 = vadd.f32 %v8407_v16, %v12906_v42 }
 0x5d4   : > { %v6960_v18 = vpop.f32.mrf.mxu0 }
 0x5d5   : > { %7393 = vst.msk [vmem:[%s12922_s12 + $0x220] sm:$0xff] %vm7324_vm4, %v7264_v28  ;;  %v7267_v31 = vmax.f32 %v6969_v44, 0.0  ;;  %v6961_v23 = vadd.f32 %v12906_v42, %v6960_v18 }
 0x5d6   : > { %v8410_v49 = vpop.f32.mrf.mxu0 }
 0x5d7   : > { %7396 = vst.msk [vmem:[%s12922_s12 + $0x238] sm:$0xff] %vm7324_vm4, %v7267_v31  ;;  %v7265_v30 = vmax.f32 %v6961_v23, 0.0  ;;  %v6982_v60 = vadd.f32 %v8410_v49, %v12906_v42 }
 0x5d8   : > { %v6973_v56 = vpop.f32.mrf.mxu0 }
 0x5d9   : > { %7394 = vst.msk [vmem:[%s12922_s12 + $0x228] sm:$0xff] %vm7324_vm4, %v7265_v30  ;;  %v7270_v3 = vmax.f32 %v6982_v60, 0.0  ;;  %v6974_v54 = vadd.f32 %v12906_v42, %v6973_v56 }
 0x5da   : > { %v8411_v19 = vpop.f32.mrf.mxu0 }
 0x5db   : > { %7399 = vst.msk [vmem:[%s12922_s12 + $0x250] sm:$0xff] %vm7324_vm4, %v7270_v3  ;;  %v7268_v32 = vmax.f32 %v6974_v54, 0.0  ;;  %v6985_v58 = vadd.f32 %v8411_v19, %v12906_v42 }
 0x5dc   : > { %v6976_v43 = vpop.f32.mrf.mxu0 }
 0x5dd   : > { %7397 = vst.msk [vmem:[%s12922_s12 + $0x240] sm:$0xff] %vm7324_vm4, %v7268_v32  ;;  %v7271_v61 = vmax.f32 %v6985_v58, 0.0  ;;  %v6977_v57 = vadd.f32 %v12906_v42, %v6976_v43 }
 0x5de   : > { %v8414_v55 = vpop.f32.mrf.mxu0 }
 0x5df   : > { %7400 = vst.msk [vmem:[%s12922_s12 + $0x258] sm:$0xff] %vm7324_vm4, %v7271_v61  ;;  %v7269_v33 = vmax.f32 %v6977_v57, 0.0  ;;  %v6998_v11 = vadd.f32 %v8414_v55, %v12906_v42 }
 0x5e0   : > { %v6989_v2 = vpop.f32.mrf.mxu0 }
 0x5e1   : > { %7398 = vst.msk [vmem:[%s12922_s12 + $0x248] sm:$0xff] %vm7324_vm4, %v7269_v33  ;;  %v7274_v22 = vmax.f32 %v6998_v11, 0.0  ;;  %v6990_v38 = vadd.f32 %v12906_v42, %v6989_v2 }
 0x5e2   : > { %v8415_v8 = vpop.f32.mrf.mxu0 }
 0x5e3   : > { %7403 = vst.msk [vmem:[%s12922_s12 + $0x270] sm:$0xff] %vm7324_vm4, %v7274_v22  ;;  %v7272_v26 = vmax.f32 %v6990_v38, 0.0  ;;  %v7001_v46 = vadd.f32 %v8415_v8, %v12906_v42 }
 0x5e4   : > { %v6992_v34 = vpop.f32.mrf.mxu0 }
 0x5e5   : > { %7401 = vst.msk [vmem:[%s12922_s12 + $0x260] sm:$0xff] %vm7324_vm4, %v7272_v26  ;;  %v7275_v0 = vmax.f32 %v7001_v46, 0.0  ;;  %v6993_v36 = vadd.f32 %v12906_v42, %v6992_v34 }
 0x5e6   : > { %v8418_v29 = vpop.f32.mrf.mxu0 }
 0x5e7   : > { %7404 = vst.msk [vmem:[%s12922_s12 + $0x278] sm:$0xff] %vm7324_vm4, %v7275_v0  ;;  %v7273_v27 = vmax.f32 %v6993_v36, 0.0  ;;  %v7014_v21 = vadd.f32 %v8418_v29, %v12906_v42 }
 0x5e8   : > { %v7005_v37 = vpop.f32.mrf.mxu0 }
 0x5e9   : > { %7402 = vst.msk [vmem:[%s12922_s12 + $0x268] sm:$0xff] %vm7324_vm4, %v7273_v27  ;;  %v7278_v24 = vmax.f32 %v7014_v21, 0.0  ;;  %v7006_v39 = vadd.f32 %v12906_v42, %v7005_v37 }
 0x5ea   : > { %v8419_v41 = vpop.f32.mrf.mxu0 }
 0x5eb   : > { %7407 = vst.msk [vmem:[%s12922_s12 + $0x290] sm:$0xff] %vm7324_vm4, %v7278_v24  ;;  %v7276_v10 = vmax.f32 %v7006_v39, 0.0  ;;  %v7017_v48 = vadd.f32 %v8419_v41, %v12906_v42 }
 0x5ec   : > { %v7008_v25 = vpop.f32.mrf.mxu0 }
 0x5ed   : > { %7405 = vst.msk [vmem:[%s12922_s12 + $0x280] sm:$0xff] %vm7324_vm4, %v7276_v10  ;;  %v7279_v20 = vmax.f32 %v7017_v48, 0.0  ;;  %v7009_v4 = vadd.f32 %v12906_v42, %v7008_v25 }
 0x5ee   : > { %v8422_v14 = vpop.f32.mrf.mxu0 }
 0x5ef   : > { %7408 = vst.msk [vmem:[%s12922_s12 + $0x298] sm:$0xff] %vm7324_vm4, %v7279_v20  ;;  %v7277_v13 = vmax.f32 %v7009_v4, 0.0  ;;  %v7030_v17 = vadd.f32 %v8422_v14, %v12906_v42 }
 0x5f0   : > { %v7021_v51 = vpop.f32.mrf.mxu0 }
 0x5f1   : > { %7406 = vst.msk [vmem:[%s12922_s12 + $0x288] sm:$0xff] %vm7324_vm4, %v7277_v13  ;;  %v7282_v9 = vmax.f32 %v7030_v17, 0.0  ;;  %v7022_v1 = vadd.f32 %v12906_v42, %v7021_v51 }
 0x5f2   : > { %v8423_v50 = vpop.f32.mrf.mxu0 }
 0x5f3   : > { %7411 = vst.msk [vmem:[%s12922_s12 + $0x2b0] sm:$0xff] %vm7324_vm4, %v7282_v9  ;;  %v7280_v5 = vmax.f32 %v7022_v1, 0.0  ;;  %v7033_v15 = vadd.f32 %v8423_v50, %v12906_v42 }
 0x5f4   : > { %v7024_v7 = vpop.f32.mrf.mxu0 }
 0x5f5   : > { %7409 = vst.msk [vmem:[%s12922_s12 + $0x2a0] sm:$0xff] %vm7324_vm4, %v7280_v5  ;;  %v7283_v6 = vmax.f32 %v7033_v15, 0.0  ;;  %v7025_v62 = vadd.f32 %v12906_v42, %v7024_v7 }
 0x5f6   : > { %v8426_v47 = vpop.f32.mrf.mxu0 }
 0x5f7   : > { %7412 = vst.msk [vmem:[%s12922_s12 + $0x2b8] sm:$0xff] %vm7324_vm4, %v7283_v6  ;;  %v7281_v52 = vmax.f32 %v7025_v62, 0.0  ;;  %v7046_v63 = vadd.f32 %v8426_v47, %v12906_v42  ;;  %v13299_v62 = vld [vmem:[#allocation2] ss:$0 sm:$0xff] }
 0x5f8   : > { %v7037_v12 = vpop.f32.mrf.mxu0 }
 0x5f9   : > { %7410 = vst.msk [vmem:[%s12922_s12 + $0x2a8] sm:$0xff] %vm7324_vm4, %v7281_v52  ;;  %v7286_v45 = vmax.f32 %v7046_v63, 0.0  ;;  %v7038_v35 = vadd.f32 %v12906_v42, %v7037_v12 }
 0x5fa   : > { %v8427_v53 = vpop.f32.mrf.mxu0 }
 0x5fb   : > { %7415 = vst.msk [vmem:[%s12922_s12 + $0x2d0] sm:$0xff] %vm7324_vm4, %v7286_v45  ;;  %v7284_v40 = vmax.f32 %v7038_v35, 0.0  ;;  %v7049_v59 = vadd.f32 %v8427_v53, %v12906_v42 }
 0x5fc   : > { %v7040_v16 = vpop.f32.mrf.mxu0 }
 0x5fd   : > { %7413 = vst.msk [vmem:[%s12922_s12 + $0x2c0] sm:$0xff] %vm7324_vm4, %v7284_v40  ;;  %v7287_v28 = vmax.f32 %v7049_v59, 0.0  ;;  %v7041_v44 = vadd.f32 %v12906_v42, %v7040_v16 }
 0x5fe   : > { %v8430_v18 = vpop.f32.mrf.mxu0 }
 0x5ff   : > { %7416 = vst.msk [vmem:[%s12922_s12 + $0x2d8] sm:$0xff] %vm7324_vm4, %v7287_v28  ;;  %v7285_v31 = vmax.f32 %v7041_v44, 0.0  ;;  %v7062_v23 = vadd.f32 %v8430_v18, %v12906_v42 }
 0x600   : > { %v7053_v49 = vpop.f32.mrf.mxu0 }
 0x601   : > { %7414 = vst.msk [vmem:[%s12922_s12 + $0x2c8] sm:$0xff] %vm7324_vm4, %v7285_v31  ;;  %v7290_v30 = vmax.f32 %v7062_v23, 0.0  ;;  %v7054_v60 = vadd.f32 %v12906_v42, %v7053_v49 }
 0x602   : > { %v8431_v56 = vpop.f32.mrf.mxu0 }
 0x603   : > { %7419 = vst.msk [vmem:[%s12922_s12 + $0x2f0] sm:$0xff] %vm7324_vm4, %v7290_v30  ;;  %v7288_v3 = vmax.f32 %v7054_v60, 0.0  ;;  %v7065_v54 = vadd.f32 %v8431_v56, %v12906_v42 }
 0x604   : > { %v7056_v19 = vpop.f32.mrf.mxu0 }
 0x605   : > { %7417 = vst.msk [vmem:[%s12922_s12 + $0x2e0] sm:$0xff] %vm7324_vm4, %v7288_v3  ;;  %v7291_v32 = vmax.f32 %v7065_v54, 0.0  ;;  %v7057_v58 = vadd.f32 %v12906_v42, %v7056_v19 }
 0x606   : > { %v8434_v43 = vpop.f32.mrf.mxu0 }
 0x607   : > { %7420 = vst.msk [vmem:[%s12922_s12 + $0x2f8] sm:$0xff] %vm7324_vm4, %v7291_v32  ;;  %v7289_v61 = vmax.f32 %v7057_v58, 0.0  ;;  %v7078_v57 = vadd.f32 %v8434_v43, %v12906_v42 }
 0x608   : > { %v7069_v55 = vpop.f32.mrf.mxu0 }
 0x609   : > { %7418 = vst.msk [vmem:[%s12922_s12 + $0x2e8] sm:$0xff] %vm7324_vm4, %v7289_v61  ;;  %v7294_v33 = vmax.f32 %v7078_v57, 0.0  ;;  %v7070_v11 = vadd.f32 %v12906_v42, %v7069_v55 }
 0x60a   : > { %v8435_v2 = vpop.f32.mrf.mxu0 }
 0x60b   : > { %7423 = vst.msk [vmem:[%s12922_s12 + $0x310] sm:$0xff] %vm7324_vm4, %v7294_v33  ;;  %v7292_v22 = vmax.f32 %v7070_v11, 0.0  ;;  %v7081_v38 = vadd.f32 %v8435_v2, %v12906_v42 }
 0x60c   : > { %v7072_v8 = vpop.f32.mrf.mxu0 }
 0x60d   : > { %7421 = vst.msk [vmem:[%s12922_s12 + $0x300] sm:$0xff] %vm7324_vm4, %v7292_v22  ;;  %v7295_v26 = vmax.f32 %v7081_v38, 0.0  ;;  %v7073_v46 = vadd.f32 %v12906_v42, %v7072_v8 }
 0x60e   : > { %v8438_v34 = vpop.f32.mrf.mxu0 }
 0x60f   : > { %7424 = vst.msk [vmem:[%s12922_s12 + $0x318] sm:$0xff] %vm7324_vm4, %v7295_v26  ;;  %v7293_v0 = vmax.f32 %v7073_v46, 0.0  ;;  %v7094_v36 = vadd.f32 %v8438_v34, %v12906_v42 }
 0x610   : > { %v7085_v29 = vpop.f32.mrf.mxu0 }
 0x611   : > { %7422 = vst.msk [vmem:[%s12922_s12 + $0x308] sm:$0xff] %vm7324_vm4, %v7293_v0  ;;  %v7298_v27 = vmax.f32 %v7094_v36, 0.0  ;;  %v7086_v21 = vadd.f32 %v12906_v42, %v7085_v29 }
 0x612   : > { %v8439_v37 = vpop.f32.mrf.mxu0 }
 0x613   : > { %7427 = vst.msk [vmem:[%s12922_s12 + $0x330] sm:$0xff] %vm7324_vm4, %v7298_v27  ;;  %v7296_v24 = vmax.f32 %v7086_v21, 0.0  ;;  %v7097_v39 = vadd.f32 %v8439_v37, %v12906_v42 }
 0x614   : > { %v7088_v41 = vpop.f32.mrf.mxu0 }
 0x615   : > { %7425 = vst.msk [vmem:[%s12922_s12 + $0x320] sm:$0xff] %vm7324_vm4, %v7296_v24  ;;  %v7299_v10 = vmax.f32 %v7097_v39, 0.0  ;;  %v7089_v48 = vadd.f32 %v12906_v42, %v7088_v41 }
 0x616   : > { %v8442_v25 = vpop.f32.mrf.mxu0 }
 0x617   : > { %7428 = vst.msk [vmem:[%s12922_s12 + $0x338] sm:$0xff] %vm7324_vm4, %v7299_v10  ;;  %v7297_v20 = vmax.f32 %v7089_v48, 0.0  ;;  %v7110_v4 = vadd.f32 %v8442_v25, %v12906_v42 }
 0x618   : > { %v7101_v14 = vpop.f32.mrf.mxu0 }
 0x619   : > { %7426 = vst.msk [vmem:[%s12922_s12 + $0x328] sm:$0xff] %vm7324_vm4, %v7297_v20  ;;  %v7302_v13 = vmax.f32 %v7110_v4, 0.0  ;;  %v7102_v17 = vadd.f32 %v12906_v42, %v7101_v14 }
 0x61a   : > { %v8443_v51 = vpop.f32.mrf.mxu0 }
 0x61b   : > { %7431 = vst.msk [vmem:[%s12922_s12 + $0x350] sm:$0xff] %vm7324_vm4, %v7302_v13  ;;  %v7300_v9 = vmax.f32 %v7102_v17, 0.0  ;;  %v7113_v1 = vadd.f32 %v8443_v51, %v12906_v42 }
 0x61c   : > { %v7104_v50 = vpop.f32.mrf.mxu0 }
 0x61d   : > { %7429 = vst.msk [vmem:[%s12922_s12 + $0x340] sm:$0xff] %vm7324_vm4, %v7300_v9  ;;  %v7303_v5 = vmax.f32 %v7113_v1, 0.0  ;;  %v7105_v15 = vadd.f32 %v12906_v42, %v7104_v50 }
 0x61e   : > { %v8446_v7 = vpop.f32.mrf.mxu0 }
 0x61f   : > { %7432 = vst.msk [vmem:[%s12922_s12 + $0x358] sm:$0xff] %vm7324_vm4, %v7303_v5  ;;  %v7301_v6 = vmax.f32 %v7105_v15, 0.0  ;;  %v7126_v47 = vadd.f32 %v13299_v62, %v8446_v7 }
 0x620   : > { %v7117_v52 = vpop.f32.mrf.mxu0 }
 0x621   : > { %7430 = vst.msk [vmem:[%s12922_s12 + $0x348] sm:$0xff] %vm7324_vm4, %v7301_v6  ;;  %v7306_v63 = vmax.f32 %v7126_v47, 0.0  ;;  %v7118_v12 = vadd.f32 %v13299_v62, %v7117_v52 }
 0x622   : > { %v8447_v45 = vpop.f32.mrf.mxu0 }
 0x623   : > { %7435 = vst.msk [vmem:[%s12922_s12 + $0x370] sm:$0xff] %vm7324_vm4, %v7306_v63  ;;  %v7304_v42 = vmax.f32 %v7118_v12, 0.0  ;;  %v7129_v35 = vadd.f32 %v13299_v62, %v8447_v45 }
 0x624   : > { %v7120_v53 = vpop.f32.mrf.mxu0 }
 0x625   : > { %7433 = vst.msk [vmem:[%s12922_s12 + $0x360] sm:$0xff] %vm7324_vm4, %v7304_v42  ;;  %v7307_v40 = vmax.f32 %v7129_v35, 0.0  ;;  %v7121_v59 = vadd.f32 %v13299_v62, %v7120_v53 }
 0x626   : > { %v8450_v16 = vpop.f32.mrf.mxu0 }
 0x627   : > { %7436 = vst.msk [vmem:[%s12922_s12 + $0x378] sm:$0xff] %vm7324_vm4, %v7307_v40  ;;  %v7305_v28 = vmax.f32 %v7121_v59, 0.0  ;;  %v7142_v44 = vadd.f32 %v13299_v62, %v8450_v16 }
 0x628   : > { %v7133_v18 = vpop.f32.mrf.mxu0 }
 0x629   : > { %7434 = vst.msk [vmem:[%s12922_s12 + $0x368] sm:$0xff] %vm7324_vm4, %v7305_v28  ;;  %v7310_v31 = vmax.f32 %v7142_v44, 0.0  ;;  %v7134_v23 = vadd.f32 %v13299_v62, %v7133_v18 }
 0x62a   : > { %v8451_v49 = vpop.f32.mrf.mxu0 }
 0x62b   : > { %7439 = vst.msk [vmem:[%s12922_s12 + $0x390] sm:$0xff] %vm7324_vm4, %v7310_v31  ;;  %v7308_v30 = vmax.f32 %v7134_v23, 0.0  ;;  %v7145_v60 = vadd.f32 %v13299_v62, %v8451_v49 }
 0x62c   : > { %v7136_v56 = vpop.f32.mrf.mxu0 }
 0x62d   : > { %7437 = vst.msk [vmem:[%s12922_s12 + $0x380] sm:$0xff] %vm7324_vm4, %v7308_v30  ;;  %v7311_v3 = vmax.f32 %v7145_v60, 0.0  ;;  %v7137_v54 = vadd.f32 %v13299_v62, %v7136_v56 }
 0x62e   : > { %v8454_v19 = vpop.f32.mrf.mxu0 }
 0x62f   : > { %7440 = vst.msk [vmem:[%s12922_s12 + $0x398] sm:$0xff] %vm7324_vm4, %v7311_v3  ;;  %v7309_v32 = vmax.f32 %v7137_v54, 0.0  ;;  %v7158_v58 = vadd.f32 %v13299_v62, %v8454_v19 }
 0x630   : > { %v7149_v43 = vpop.f32.mrf.mxu0 }
 0x631   : > { %7438 = vst.msk [vmem:[%s12922_s12 + $0x388] sm:$0xff] %vm7324_vm4, %v7309_v32  ;;  %v7314_v61 = vmax.f32 %v7158_v58, 0.0  ;;  %v7150_v57 = vadd.f32 %v13299_v62, %v7149_v43 }
 0x632   : > { %v8455_v55 = vpop.f32.mrf.mxu0 }
 0x633   : > { %7443 = vst.msk [vmem:[%s12922_s12 + $0x3b0] sm:$0xff] %vm7324_vm4, %v7314_v61  ;;  %v7312_v33 = vmax.f32 %v7150_v57, 0.0  ;;  %v7161_v11 = vadd.f32 %v13299_v62, %v8455_v55 }
 0x634   : > { %v7152_v2 = vpop.f32.mrf.mxu0 }
 0x635   : > { %7441 = vst.msk [vmem:[%s12922_s12 + $0x3a0] sm:$0xff] %vm7324_vm4, %v7312_v33  ;;  %v7315_v22 = vmax.f32 %v7161_v11, 0.0  ;;  %v7153_v38 = vadd.f32 %v13299_v62, %v7152_v2 }
 0x636   : > { %v8458_v8 = vpop.f32.mrf.mxu0 }
 0x637   : > { %7444 = vst.msk [vmem:[%s12922_s12 + $0x3b8] sm:$0xff] %vm7324_vm4, %v7315_v22  ;;  %v7313_v26 = vmax.f32 %v7153_v38, 0.0  ;;  %v7174_v46 = vadd.f32 %v13299_v62, %v8458_v8 }
 0x638   : > { %v7165_v34 = vpop.f32.mrf.mxu0 }
 0x639   : > { %7442 = vst.msk [vmem:[%s12922_s12 + $0x3a8] sm:$0xff] %vm7324_vm4, %v7313_v26  ;;  %v7318_v0 = vmax.f32 %v7174_v46, 0.0  ;;  %v7166_v36 = vadd.f32 %v13299_v62, %v7165_v34 }
 0x63a   : > { %v8459_v29 = vpop.f32.mrf.mxu0 }
 0x63b   : > { %7447 = vst.msk [vmem:[%s12922_s12 + $0x3d0] sm:$0xff] %vm7324_vm4, %v7318_v0  ;;  %v7316_v27 = vmax.f32 %v7166_v36, 0.0  ;;  %v7177_v21 = vadd.f32 %v13299_v62, %v8459_v29 }
 0x63c   : > { %v7168_v37 = vpop.f32.mrf.mxu0 }
 0x63d   : > { %7445 = vst.msk [vmem:[%s12922_s12 + $0x3c0] sm:$0xff] %vm7324_vm4, %v7316_v27  ;;  %v7319_v24 = vmax.f32 %v7177_v21, 0.0  ;;  %v7169_v39 = vadd.f32 %v13299_v62, %v7168_v37 }
 0x63e   : > { %v8462_v41 = vpop.f32.mrf.mxu0 }
 0x63f   : > { %7448 = vst.msk [vmem:[%s12922_s12 + $0x3d8] sm:$0xff] %vm7324_vm4, %v7319_v24  ;;  %v7317_v10 = vmax.f32 %v7169_v39, 0.0  ;;  %v7190_v48 = vadd.f32 %v13299_v62, %v8462_v41 }
 0x640   : > { %v7181_v25 = vpop.f32.mrf.mxu0 }
 0x641   : > { %7446 = vst.msk [vmem:[%s12922_s12 + $0x3c8] sm:$0xff] %vm7324_vm4, %v7317_v10  ;;  %v7322_v20 = vmax.f32 %v7190_v48, 0.0  ;;  %v7182_v4 = vadd.f32 %v13299_v62, %v7181_v25 }
 0x642   : > { %v8463_v14 = vpop.f32.mrf.mxu0 }
 0x643   : > { %7451 = vst.msk [vmem:[%s12922_s12 + $0x3f0] sm:$0xff] %vm7324_vm4, %v7322_v20  ;;  %v7320_v13 = vmax.f32 %v7182_v4, 0.0  ;;  %v7193_v17 = vadd.f32 %v13299_v62, %v8463_v14 }
 0x644   : > { %v7184_v51 = vpop.f32.mrf.mxu0 }
 0x645   : > { %7449 = vst.msk [vmem:[%s12922_s12 + $0x3e0] sm:$0xff] %vm7324_vm4, %v7320_v13  ;;  %v7323_v9 = vmax.f32 %v7193_v17, 0.0  ;;  %v7185_v1 = vadd.f32 %v13299_v62, %v7184_v51 }
 0x647   : > { %7452 = vst.msk [vmem:[%s12922_s12 + $0x3f8] sm:$0xff] %vm7324_vm4, %v7323_v9  ;;  %v7321_v50 = vmax.f32 %v7185_v1, 0.0 }
 0x649   : > { %7450 = vst.msk [vmem:[%s12922_s12 + $0x3e8] sm:$0xff] %vm7324_vm4, %v7321_v50 }
 0x64a PF: > { %s22_s17 = sadd.s32 1, %s9326_s17   ;;  %s13841_s15 = smov %s9322_s16 }
 0x64b   : > { %p19_p5 = scmp.ge.s32.totalorder %s22_s17, 4   ;;  %s13842_s16 = smov %s13844_s9 }
 0x64d   :  { %21 = sbr.rel (!%p19_p5) target bundleno = 3 (0x3), region = 93 }

</bundles_post_ra>
